<compile_context>
chip_gen: v6e
topology: v6e:2x2x1
jax: 0.10.0
libtpu: 0.0.40
codegen_flags: <defaults>
</compile_context>

<pallas_src>
import jax
import jax.numpy as jnp
from jax.experimental import pallas as pl
from jax.experimental.pallas import tpu as pltpu

# ----------------------------- model config ---------------------------------
PATCH_SIZE = 4
INPUT_DIM = 3
DEPTHS = (1, 1)
DIMS = (8, 16)
KERNEL_SIZE = 7
EPS_LN = 1e-6
EPS_GRN = 1e-6
INV_SQRT2 = 0.7071067811865476
B_BLK = 2                      # samples per grid step


# ------------------------------ small helpers --------------------------------
def _layernorm(x, w, b, eps=EPS_LN):
    """Per-row (per-pixel) layernorm over channels, biased variance (torch)."""
    mean = jnp.mean(x, axis=-1, keepdims=True)
    var = jnp.mean(jnp.square(x - mean), axis=-1, keepdims=True)
    return (x - mean) * jax.lax.rsqrt(var + eps) * w + b


def _stage_geometry(h0, w0):
    stages = []
    H, W = h0, w0
    dim = DIMS[0]
    for depth, d_out in zip(DEPTHS, DIMS):
        down = d_out != dim
        if down:
            H, W = H // 2, W // 2
        stages.append(dict(down=down, in_dim=dim, dim=d_out, depth=depth, H=H, W=W))
        dim = d_out
    return stages


def _pack_params(params, stages):
    """Pack all params into one (1,V) vector slab and one (R, Wmax) matrix slab."""
    vec_parts, vec_layout, voff = [], {}, 0
    mat_parts, mat_layout, mrow = [], {}, 0

    def add_vec(name, arr):
        nonlocal voff
        arr = jnp.asarray(arr, jnp.float32).reshape(1, -1)
        vec_layout[name] = (voff, arr.shape[1])
        vec_parts.append(arr)
        voff += arr.shape[1]

    def add_mat(name, arr):
        nonlocal mrow
        arr = jnp.asarray(arr, jnp.float32)
        mat_layout[name] = (mrow, arr.shape)
        mat_parts.append(arr)
        mrow += arr.shape[0]

    add_mat("stem_w", params["stem_w"])
    add_vec("stem_b", params["stem_b"])
    add_vec("stem_ln_w", params["stem_ln_w"])
    add_vec("stem_ln_b", params["stem_ln_b"])
    for si, (geom, st) in enumerate(zip(stages, params["stages"])):
        if geom["down"]:
            add_vec((si, "ds_ln_w"), st["ds_ln_w"])
            add_vec((si, "ds_ln_b"), st["ds_ln_b"])
            add_mat((si, "ds_w"), st["ds_w"])
            add_vec((si, "ds_b"), st["ds_b"])
        for bi, blk in enumerate(st["blocks"]):
            add_mat((si, bi, "dw_w"), blk["dw_w"])
            add_vec((si, bi, "dw_b"), blk["dw_b"])
            add_vec((si, bi, "ln_w"), blk["ln_w"])
            add_vec((si, bi, "ln_b"), blk["ln_b"])
            add_mat((si, bi, "fc1_w"), blk["fc1_w"])
            add_vec((si, bi, "fc1_b"), blk["fc1_b"])
            add_vec((si, bi, "grn_g"), blk["grn_g"])
            add_vec((si, bi, "grn_b"), blk["grn_b"])
            add_mat((si, bi, "fc2_w"), blk["fc2_w"])
            add_vec((si, bi, "fc2_b"), blk["fc2_b"])

    maxw = max(m.shape[1] for m in mat_parts)
    mat_parts = [jnp.pad(m, ((0, 0), (0, maxw - m.shape[1]))) for m in mat_parts]
    vec_slab = jnp.concatenate(vec_parts, axis=1)
    mat_slab = jnp.concatenate(mat_parts, axis=0)
    return vec_slab, mat_slab, vec_layout, mat_layout


# --------------------------- fused forward kernel ----------------------------
def _make_kernel(stages, B, vec_layout, mat_layout):
    K = KERNEL_SIZE
    PAD = K // 2

    def kernel(x_ref, vec_ref, mat_ref, out_ref, *pad_refs):
        def vec(name):
            off, n = vec_layout[name]
            return vec_ref[:, off:off + n]                       # (1, n)

        def mat(name):
            r0, (rows, cols) = mat_layout[name]
            return mat_ref[r0:r0 + rows, 0:cols]                 # (rows, cols)

        # ---- stem: patchified conv (matmul) + LayerNorm2d -------------------
        x = jnp.dot(x_ref[...], mat("stem_w"),
                    preferred_element_type=jnp.float32) + vec("stem_b")
        x = _layernorm(x, vec("stem_ln_w"), vec("stem_ln_b"))    # (B*S0, d0)

        # ---- stages ----------------------------------------------------------
        # NOTE: depths are tiny here so the Python loops stay unrolled; at real
        # ConvNeXt depths convert the block loop to lax.fori_loop over stacked
        # per-block parameter slabs to bound live ranges.
        for si, st in enumerate(stages):
            H, W, dim = st["H"], st["W"], st["dim"]
            S = H * W

            if st["down"]:
                # LayerNorm2d + Conv(k=2, s=2): value-level 2x2 gather + matmuls
                cin = st["in_dim"]
                x = _layernorm(x, vec((si, "ds_ln_w")), vec((si, "ds_ln_b")))
                x6 = x.reshape(B, H, 2, W, 2, cin)
                ds_w = mat((si, "ds_w"))                         # (4*cin, dim)
                acc = jnp.zeros((B * S, dim), jnp.float32)
                for kh in range(2):
                    for kw in range(2):
                        t = kh * 2 + kw
                        tap = x6[:, :, kh, :, kw, :].reshape(B * S, cin)
                        acc = acc + jnp.dot(tap, ds_w[t * cin:(t + 1) * cin, :],
                                            preferred_element_type=jnp.float32)
                x = acc + vec((si, "ds_b"))

            pad_ref = pad_refs[si]
            # Zero ONCE per stage: border stays zero, interior is fully
            # overwritten by every block below.
            pad_ref[...] = jnp.zeros(pad_ref.shape, jnp.float32)

            # Per-sample segment matrices (one-hot) for the GRN spatial
            # reduction / broadcast -> samples inside the batch block never mix.
            rid = jax.lax.broadcasted_iota(jnp.int32, (B * S, B), 0)
            cid = jax.lax.broadcasted_iota(jnp.int32, (B * S, B), 1)
            seg_fwd = ((rid >= cid * S) & (rid < (cid + 1) * S)).astype(jnp.float32)
            ridt = jax.lax.broadcasted_iota(jnp.int32, (B, B * S), 1)
            cidt = jax.lax.broadcasted_iota(jnp.int32, (B, B * S), 0)
            seg_bwd = ((ridt >= cidt * S) & (ridt < (cidt + 1) * S)).astype(jnp.float32)

            for bi in range(st["depth"]):
                # ---- depthwise 7x7 conv, one interior slab store ------------
                pad_ref[:, PAD:PAD + H, PAD:PAD + W, :] = x.reshape(B, H, W, dim)
                xp = pad_ref[...]                                # (B, H+6, W+6, dim)
                dw_w = mat((si, bi, "dw_w"))                     # (49, dim)
                acc = jnp.zeros((B, H, W, dim), jnp.float32)
                for kh in range(K):
                    for kw in range(K):
                        t = kh * K + kw
                        acc = acc + xp[:, kh:kh + H, kw:kw + W, :] * dw_w[t:t + 1, :]
                y = acc.reshape(B * S, dim) + vec((si, bi, "dw_b"))

                # ---- LayerNorm2d (per-pixel channel layernorm) --------------
                y = _layernorm(y, vec((si, bi, "ln_w")), vec((si, bi, "ln_b")))

                # ---- Mlp: fc1 -> GELU(erf) -> GRN -> fc2 + residual ---------
                h1 = jnp.dot(y, mat((si, bi, "fc1_w")),
                             preferred_element_type=jnp.float32) + vec((si, bi, "fc1_b"))
                g = 0.5 * h1 * (1.0 + jax.lax.erf(h1 * INV_SQRT2))
                # GRN (ConvNeXt-V2): per-sample L2 over spatial, exact divide.
                ss = jnp.dot(seg_bwd, g * g, preferred_element_type=jnp.float32)  # (B, 4d)
                gx = jnp.sqrt(ss)
                nx = gx / (jnp.mean(gx, axis=-1, keepdims=True) + EPS_GRN)
                row_nx = jnp.dot(seg_fwd, nx, preferred_element_type=jnp.float32)  # (B*S, 4d)
                g = vec((si, bi, "grn_g")) * (g * row_nx) + vec((si, bi, "grn_b")) + g
                x = jnp.dot(g, mat((si, bi, "fc2_w")),
                            preferred_element_type=jnp.float32) + vec((si, bi, "fc2_b")) + x

        out_ref[...] = x                                         # (B*Sf, Cf)

    return kernel


# ------------------------------ public wrapper --------------------------------
def convnext_forward(x_nchw, params, *, block_batch=B_BLK):
    x = jnp.transpose(x_nchw, (0, 2, 3, 1)).astype(jnp.float32)  # NHWC
    N, H, W, Cin = x.shape
    P = PATCH_SIZE
    H0, W0 = H // P, W // P
    S0 = H0 * W0
    x_patches = (x.reshape(N, H0, P, W0, P, Cin)
                  .transpose(0, 1, 3, 2, 4, 5)
                  .reshape(N * S0, P * P * Cin))

    stages = _stage_geometry(H0, W0)
    vec_slab, mat_slab, vec_layout, mat_layout = _pack_params(params, stages)

    Hf, Wf, Cf = stages[-1]["H"], stages[-1]["W"], stages[-1]["dim"]
    Sf = Hf * Wf
    B = max(1, min(block_batch, N))
    assert N % B == 0, "batch must be divisible by block_batch"

    out = pl.pallas_call(
        _make_kernel(stages, B, vec_layout, mat_layout),
        grid=(N // B,),                                          # >=2 steps on v7x
        in_specs=[
            pl.BlockSpec((B * S0, P * P * Cin), lambda b: (b, 0)),
            pl.BlockSpec(vec_slab.shape, lambda b: (0, 0)),      # packed vectors
            pl.BlockSpec(mat_slab.shape, lambda b: (0, 0)),      # packed matrices
        ],
        out_specs=pl.BlockSpec((B * Sf, Cf), lambda b: (b, 0)),
        out_shape=jax.ShapeDtypeStruct((N * Sf, Cf), jnp.float32),
        scratch_shapes=[
            pltpu.VMEM((B, st["H"] + KERNEL_SIZE - 1,
                        st["W"] + KERNEL_SIZE - 1, st["dim"]), jnp.float32)
            for st in stages
        ],
        compiler_params=pltpu.CompilerParams(
            dimension_semantics=("parallel",),
            vmem_limit_bytes=32 * 1024 * 1024),
    )(x_patches, vec_slab, mat_slab)

    out = out.reshape(N, Hf, Wf, Cf)
    return jnp.transpose(out, (0, 3, 1, 2))                      # back to NCHW


# ------------------------------ parameters -----------------------------------
def init_params(key):
    keys = iter(jax.random.split(key, 128))

    def w(shape, std=0.02):
        # deterministic stand-in for 'truncnormal002'
        return (std * jax.random.normal(next(keys), shape)).astype(jnp.float32)

    params = {}
    P, d0 = PATCH_SIZE, DIMS[0]
    params["stem_w"] = w((P * P * INPUT_DIM, d0))
    params["stem_b"] = jnp.zeros((1, d0), jnp.float32)
    params["stem_ln_w"] = jnp.ones((1, d0), jnp.float32)
    params["stem_ln_b"] = jnp.zeros((1, d0), jnp.float32)

    stages = []
    prev = d0
    for depth, d in zip(DEPTHS, DIMS):
        st = {}
        if d != prev:
            st["ds_ln_w"] = jnp.ones((1, prev), jnp.float32)
            st["ds_ln_b"] = jnp.zeros((1, prev), jnp.float32)
            st["ds_w"] = w((2 * 2 * prev, d))                    # (kh,kw,cin)-flattened
            st["ds_b"] = jnp.zeros((1, d), jnp.float32)
        blocks = []
        for _ in range(depth):
            blocks.append(dict(
                dw_w=w((KERNEL_SIZE * KERNEL_SIZE, d)),          # depthwise taps [K*K, C]
                dw_b=jnp.zeros((1, d), jnp.float32),
                ln_w=jnp.ones((1, d), jnp.float32),
                ln_b=jnp.zeros((1, d), jnp.float32),
                fc1_w=w((d, 4 * d)),
                fc1_b=jnp.zeros((1, 4 * d), jnp.float32),
                # GRN gamma/beta are zeros in ConvNeXt-V2; small randoms so the
                # GRN math is actually exercised.
                grn_g=w((1, 4 * d)),
                grn_b=w((1, 4 * d)),
                fc2_w=w((4 * d, d)),
                fc2_b=jnp.zeros((1, d), jnp.float32),
            ))
        st["blocks"] = blocks
        stages.append(st)
        prev = d
    params["stages"] = stages
    return params


# --------------------------------- main ---------------------------------------
if __name__ == "__main__":
    key = jax.random.PRNGKey(0)
    kx, kp = jax.random.split(key)
    N = 4                                                        # 2 grid steps of B_BLK=2
    x = jax.random.normal(kx, (N, INPUT_DIM, 16, 16), dtype=jnp.float32)  # NCHW
    params = init_params(kp)

    fwd = jax.jit(convnext_forward)
    out = jax.block_until_ready(fwd(x, params))

    expected_spatial = 16 // PATCH_SIZE // 2   # stem patchify then one 2x2 downsample
    assert out.shape == (N, DIMS[-1], expected_spatial, expected_spatial), out.shape
    assert bool(jnp.all(jnp.isfinite(out)))
    print("KERNEL_OK")
</pallas_src>

<mosaic_0001>
module attributes {stable_mosaic.version = 11 : i64} {
  func.func @kernel(%arg0: i32, %arg1: memref<32x48xf32, #tpu.memory_space<vmem>>, %arg2: memref<1x440xf32, #tpu.memory_space<vmem>>, %arg3: memref<298x64xf32, #tpu.memory_space<vmem>>, %arg4: memref<8x16xf32, #tpu.memory_space<vmem>>, %arg5: memref<2x10x10x8xf32, #tpu.memory_space<vmem>>, %arg6: memref<2x8x8x16xf32, #tpu.memory_space<vmem>>) attributes {dimension_semantics = [#tpu.dimension_semantics<parallel>], iteration_bounds = array<i64: 2>, scalar_prefetch = 0 : i64, scratch_operands = 2 : i64, tpu.core_type = #tpu.core_type<tc>, window_params = [{transform_indices = @transform_0, window_bounds = array<i64: 32, 48>}, {pipeline_mode = #tpu.pipeline_mode<synchronous>, transform_indices = @transform_1, window_bounds = array<i64: 1, 440>}, {pipeline_mode = #tpu.pipeline_mode<synchronous>, transform_indices = @transform_2, window_bounds = array<i64: 298, 64>}, {transform_indices = @transform_3, window_bounds = array<i64: 8, 16>}]} {
    %c0 = arith.constant 0 : index
    %c0_0 = arith.constant 0 : index
    %0 = vector.load %arg1[%c0, %c0_0] : memref<32x48xf32, #tpu.memory_space<vmem>>, vector<32x48xf32>
    %c0_1 = arith.constant 0 : index
    %c0_2 = arith.constant 0 : index
    %1 = vector.load %arg3[%c0_1, %c0_2] : memref<298x64xf32, #tpu.memory_space<vmem>>, vector<48x8xf32>
    %cst = arith.constant dense<0.000000e+00> : vector<32x8xf32>
    %2 = tpu.matmul %0, %1, %cst {dimension_numbers = #tpu.dot_dimension_numbers<[1], [0], [0], [1], [0, 0, 1, 1], [], []>} : vector<32x48xf32>, vector<48x8xf32>, vector<32x8xf32> -> vector<32x8xf32>
    %c0_3 = arith.constant 0 : index
    %c0_4 = arith.constant 0 : index
    %3 = vector.load %arg2[%c0_3, %c0_4] : memref<1x440xf32, #tpu.memory_space<vmem>>, vector<1x8xf32>
    %4 = vector.broadcast %3 : vector<1x8xf32> to vector<32x8xf32>
    %5 = arith.addf %2, %4 : vector<32x8xf32>
    %c0_5 = arith.constant 0 : index
    %c8 = arith.constant 8 : index
    %6 = vector.load %arg2[%c0_5, %c8] : memref<1x440xf32, #tpu.memory_space<vmem>>, vector<1x8xf32>
    %c0_6 = arith.constant 0 : index
    %c16 = arith.constant 16 : index
    %7 = vector.load %arg2[%c0_6, %c16] : memref<1x440xf32, #tpu.memory_space<vmem>>, vector<1x8xf32>
    %cst_7 = arith.constant dense<0.000000e+00> : vector<32xf32>
    %8 = vector.multi_reduction <add>, %5, %cst_7 [1] : vector<32x8xf32> to vector<32xf32>
    %9 = vector.shape_cast %8 : vector<32xf32> to vector<32x1xf32>
    %cst_8 = arith.constant 8.000000e+00 : f32
    %10 = vector.broadcast %cst_8 : f32 to vector<32x1xf32>
    %11 = arith.divf %9, %10 : vector<32x1xf32>
    %12 = vector.broadcast %11 : vector<32x1xf32> to vector<32x8xf32>
    %13 = arith.subf %5, %12 : vector<32x8xf32>
    %14 = arith.mulf %13, %13 : vector<32x8xf32>
    %cst_9 = arith.constant dense<0.000000e+00> : vector<32xf32>
    %15 = vector.multi_reduction <add>, %14, %cst_9 [1] : vector<32x8xf32> to vector<32xf32>
    %16 = vector.shape_cast %15 : vector<32xf32> to vector<32x1xf32>
    %cst_10 = arith.constant 8.000000e+00 : f32
    %17 = vector.broadcast %cst_10 : f32 to vector<32x1xf32>
    %18 = arith.divf %16, %17 : vector<32x1xf32>
    %19 = vector.broadcast %11 : vector<32x1xf32> to vector<32x8xf32>
    %20 = arith.subf %5, %19 : vector<32x8xf32>
    %cst_11 = arith.constant 9.99999997E-7 : f32
    %21 = vector.broadcast %cst_11 : f32 to vector<32x1xf32>
    %22 = arith.addf %18, %21 : vector<32x1xf32>
    %23 = math.rsqrt %22 : vector<32x1xf32>
    %24 = vector.broadcast %23 : vector<32x1xf32> to vector<32x8xf32>
    %25 = arith.mulf %20, %24 : vector<32x8xf32>
    %26 = vector.broadcast %6 : vector<1x8xf32> to vector<32x8xf32>
    %27 = arith.mulf %25, %26 : vector<32x8xf32>
    %28 = vector.broadcast %7 : vector<1x8xf32> to vector<32x8xf32>
    %29 = arith.addf %27, %28 : vector<32x8xf32>
    %cst_12 = arith.constant 0.000000e+00 : f32
    %30 = vector.broadcast %cst_12 : f32 to vector<2x10x10x8xf32>
    %c0_13 = arith.constant 0 : index
    %c0_14 = arith.constant 0 : index
    %c0_15 = arith.constant 0 : index
    %c0_16 = arith.constant 0 : index
    %31 = vector.load %arg5[%c0_13, %c0_14, %c0_15, %c0_16] : memref<2x10x10x8xf32, #tpu.memory_space<vmem>>, vector<2x10x10x8xf32>
    tpu.vector_store %arg5[%c0_13, %c0_14, %c0_15, %c0_16], %30 {strides = array<i32>} : memref<2x10x10x8xf32, #tpu.memory_space<vmem>>, vector<2x10x10x8xf32>,
    %32 = tpu.iota {dimensions = array<i32: 0>} : vector<32x2xi32>
    %33 = tpu.iota {dimensions = array<i32: 1>} : vector<32x2xi32>
    %c16_i32 = arith.constant 16 : i32
    %34 = vector.broadcast %c16_i32 : i32 to vector<32x2xi32>
    %35 = arith.muli %33, %34 : vector<32x2xi32>
    %36 = arith.cmpi sge, %32, %35 : vector<32x2xi32>
    %c1_i32 = arith.constant 1 : i32
    %37 = vector.broadcast %c1_i32 : i32 to vector<32x2xi32>
    %38 = arith.addi %33, %37 : vector<32x2xi32>
    %c16_i32_17 = arith.constant 16 : i32
    %39 = vector.broadcast %c16_i32_17 : i32 to vector<32x2xi32>
    %40 = arith.muli %38, %39 : vector<32x2xi32>
    %41 = arith.cmpi slt, %32, %40 : vector<32x2xi32>
    %42 = arith.andi %36, %41 : vector<32x2xi1>
    %43 = arith.extui %42 : vector<32x2xi1> to vector<32x2xi32>
    %44 = arith.sitofp %43 : vector<32x2xi32> to vector<32x2xf32>
    %45 = tpu.iota {dimensions = array<i32: 1>} : vector<2x32xi32>
    %46 = tpu.iota {dimensions = array<i32: 0>} : vector<2x32xi32>
    %c16_i32_18 = arith.constant 16 : i32
    %47 = vector.broadcast %c16_i32_18 : i32 to vector<2x32xi32>
    %48 = arith.muli %46, %47 : vector<2x32xi32>
    %49 = arith.cmpi sge, %45, %48 : vector<2x32xi32>
    %c1_i32_19 = arith.constant 1 : i32
    %50 = vector.broadcast %c1_i32_19 : i32 to vector<2x32xi32>
    %51 = arith.addi %46, %50 : vector<2x32xi32>
    %c16_i32_20 = arith.constant 16 : i32
    %52 = vector.broadcast %c16_i32_20 : i32 to vector<2x32xi32>
    %53 = arith.muli %51, %52 : vector<2x32xi32>
    %54 = arith.cmpi slt, %45, %53 : vector<2x32xi32>
    %55 = arith.andi %49, %54 : vector<2x32xi1>
    %56 = arith.extui %55 : vector<2x32xi1> to vector<2x32xi32>
    %57 = arith.sitofp %56 : vector<2x32xi32> to vector<2x32xf32>
    %58 = vector.shape_cast %29 : vector<32x8xf32> to vector<2x4x4x8xf32>
    %c0_21 = arith.constant 0 : index
    %c3 = arith.constant 3 : index
    %c3_22 = arith.constant 3 : index
    %c0_23 = arith.constant 0 : index
    %59 = vector.load %arg5[%c0_21, %c3, %c3_22, %c0_23] : memref<2x10x10x8xf32, #tpu.memory_space<vmem>>, vector<2x4x4x8xf32>
    tpu.vector_store %arg5[%c0_21, %c3, %c3_22, %c0_23], %58 {strides = array<i32>} : memref<2x10x10x8xf32, #tpu.memory_space<vmem>>, vector<2x4x4x8xf32>,
    %c0_24 = arith.constant 0 : index
    %c0_25 = arith.constant 0 : index
    %c0_26 = arith.constant 0 : index
    %c0_27 = arith.constant 0 : index
    %60 = vector.load %arg5[%c0_24, %c0_25, %c0_26, %c0_27] : memref<2x10x10x8xf32, #tpu.memory_space<vmem>>, vector<2x10x10x8xf32>
    %c48 = arith.constant 48 : index
    %c0_28 = arith.constant 0 : index
    %61 = vector.load %arg3[%c48, %c0_28] : memref<298x64xf32, #tpu.memory_space<vmem>>, vector<49x8xf32>
    %cst_29 = arith.constant 0.000000e+00 : f32
    %62 = vector.broadcast %cst_29 : f32 to vector<2x4x4x8xf32>
    %63 = vector.extract_strided_slice %60 {offsets = [0, 0, 0, 0], sizes = [2, 4, 4, 8], strides = [1, 1, 1, 1]} : vector<2x10x10x8xf32> to vector<2x4x4x8xf32>
    %64 = vector.extract_strided_slice %61 {offsets = [0, 0], sizes = [1, 8], strides = [1, 1]} : vector<49x8xf32> to vector<1x8xf32>
    %65 = vector.shape_cast %64 : vector<1x8xf32> to vector<1x1x1x8xf32>
    %66 = vector.broadcast %65 : vector<1x1x1x8xf32> to vector<2x4x4x8xf32>
    %67 = arith.mulf %63, %66 : vector<2x4x4x8xf32>
    %68 = arith.addf %62, %67 : vector<2x4x4x8xf32>
    %69 = vector.extract_strided_slice %60 {offsets = [0, 0, 1, 0], sizes = [2, 4, 4, 8], strides = [1, 1, 1, 1]} : vector<2x10x10x8xf32> to vector<2x4x4x8xf32>
    %70 = vector.extract_strided_slice %61 {offsets = [1, 0], sizes = [1, 8], strides = [1, 1]} : vector<49x8xf32> to vector<1x8xf32>
    %71 = vector.shape_cast %70 : vector<1x8xf32> to vector<1x1x1x8xf32>
    %72 = vector.broadcast %71 : vector<1x1x1x8xf32> to vector<2x4x4x8xf32>
    %73 = arith.mulf %69, %72 : vector<2x4x4x8xf32>
    %74 = arith.addf %68, %73 : vector<2x4x4x8xf32>
    %75 = vector.extract_strided_slice %60 {offsets = [0, 0, 2, 0], sizes = [2, 4, 4, 8], strides = [1, 1, 1, 1]} : vector<2x10x10x8xf32> to vector<2x4x4x8xf32>
    %76 = vector.extract_strided_slice %61 {offsets = [2, 0], sizes = [1, 8], strides = [1, 1]} : vector<49x8xf32> to vector<1x8xf32>
    %77 = vector.shape_cast %76 : vector<1x8xf32> to vector<1x1x1x8xf32>
    %78 = vector.broadcast %77 : vector<1x1x1x8xf32> to vector<2x4x4x8xf32>
    %79 = arith.mulf %75, %78 : vector<2x4x4x8xf32>
    %80 = arith.addf %74, %79 : vector<2x4x4x8xf32>
    %81 = vector.extract_strided_slice %60 {offsets = [0, 0, 3, 0], sizes = [2, 4, 4, 8], strides = [1, 1, 1, 1]} : vector<2x10x10x8xf32> to vector<2x4x4x8xf32>
    %82 = vector.extract_strided_slice %61 {offsets = [3, 0], sizes = [1, 8], strides = [1, 1]} : vector<49x8xf32> to vector<1x8xf32>
    %83 = vector.shape_cast %82 : vector<1x8xf32> to vector<1x1x1x8xf32>
    %84 = vector.broadcast %83 : vector<1x1x1x8xf32> to vector<2x4x4x8xf32>
    %85 = arith.mulf %81, %84 : vector<2x4x4x8xf32>
    %86 = arith.addf %80, %85 : vector<2x4x4x8xf32>
    %87 = vector.extract_strided_slice %60 {offsets = [0, 0, 4, 0], sizes = [2, 4, 4, 8], strides = [1, 1, 1, 1]} : vector<2x10x10x8xf32> to vector<2x4x4x8xf32>
    %88 = vector.extract_strided_slice %61 {offsets = [4, 0], sizes = [1, 8], strides = [1, 1]} : vector<49x8xf32> to vector<1x8xf32>
    %89 = vector.shape_cast %88 : vector<1x8xf32> to vector<1x1x1x8xf32>
    %90 = vector.broadcast %89 : vector<1x1x1x8xf32> to vector<2x4x4x8xf32>
    %91 = arith.mulf %87, %90 : vector<2x4x4x8xf32>
    %92 = arith.addf %86, %91 : vector<2x4x4x8xf32>
    %93 = vector.extract_strided_slice %60 {offsets = [0, 0, 5, 0], sizes = [2, 4, 4, 8], strides = [1, 1, 1, 1]} : vector<2x10x10x8xf32> to vector<2x4x4x8xf32>
    %94 = vector.extract_strided_slice %61 {offsets = [5, 0], sizes = [1, 8], strides = [1, 1]} : vector<49x8xf32> to vector<1x8xf32>
    %95 = vector.shape_cast %94 : vector<1x8xf32> to vector<1x1x1x8xf32>
    %96 = vector.broadcast %95 : vector<1x1x1x8xf32> to vector<2x4x4x8xf32>
    %97 = arith.mulf %93, %96 : vector<2x4x4x8xf32>
    %98 = arith.addf %92, %97 : vector<2x4x4x8xf32>
    %99 = vector.extract_strided_slice %60 {offsets = [0, 0, 6, 0], sizes = [2, 4, 4, 8], strides = [1, 1, 1, 1]} : vector<2x10x10x8xf32> to vector<2x4x4x8xf32>
    %100 = vector.extract_strided_slice %61 {offsets = [6, 0], sizes = [1, 8], strides = [1, 1]} : vector<49x8xf32> to vector<1x8xf32>
    %101 = vector.shape_cast %100 : vector<1x8xf32> to vector<1x1x1x8xf32>
    %102 = vector.broadcast %101 : vector<1x1x1x8xf32> to vector<2x4x4x8xf32>
    %103 = arith.mulf %99, %102 : vector<2x4x4x8xf32>
    %104 = arith.addf %98, %103 : vector<2x4x4x8xf32>
    %105 = vector.extract_strided_slice %60 {offsets = [0, 1, 0, 0], sizes = [2, 4, 4, 8], strides = [1, 1, 1, 1]} : vector<2x10x10x8xf32> to vector<2x4x4x8xf32>
    %106 = vector.extract_strided_slice %61 {offsets = [7, 0], sizes = [1, 8], strides = [1, 1]} : vector<49x8xf32> to vector<1x8xf32>
    %107 = vector.shape_cast %106 : vector<1x8xf32> to vector<1x1x1x8xf32>
    %108 = vector.broadcast %107 : vector<1x1x1x8xf32> to vector<2x4x4x8xf32>
    %109 = arith.mulf %105, %108 : vector<2x4x4x8xf32>
    %110 = arith.addf %104, %109 : vector<2x4x4x8xf32>
    %111 = vector.extract_strided_slice %60 {offsets = [0, 1, 1, 0], sizes = [2, 4, 4, 8], strides = [1, 1, 1, 1]} : vector<2x10x10x8xf32> to vector<2x4x4x8xf32>
    %112 = vector.extract_strided_slice %61 {offsets = [8, 0], sizes = [1, 8], strides = [1, 1]} : vector<49x8xf32> to vector<1x8xf32>
    %113 = vector.shape_cast %112 : vector<1x8xf32> to vector<1x1x1x8xf32>
    %114 = vector.broadcast %113 : vector<1x1x1x8xf32> to vector<2x4x4x8xf32>
    %115 = arith.mulf %111, %114 : vector<2x4x4x8xf32>
    %116 = arith.addf %110, %115 : vector<2x4x4x8xf32>
    %117 = vector.extract_strided_slice %60 {offsets = [0, 1, 2, 0], sizes = [2, 4, 4, 8], strides = [1, 1, 1, 1]} : vector<2x10x10x8xf32> to vector<2x4x4x8xf32>
    %118 = vector.extract_strided_slice %61 {offsets = [9, 0], sizes = [1, 8], strides = [1, 1]} : vector<49x8xf32> to vector<1x8xf32>
    %119 = vector.shape_cast %118 : vector<1x8xf32> to vector<1x1x1x8xf32>
    %120 = vector.broadcast %119 : vector<1x1x1x8xf32> to vector<2x4x4x8xf32>
    %121 = arith.mulf %117, %120 : vector<2x4x4x8xf32>
    %122 = arith.addf %116, %121 : vector<2x4x4x8xf32>
    %123 = vector.extract_strided_slice %60 {offsets = [0, 1, 3, 0], sizes = [2, 4, 4, 8], strides = [1, 1, 1, 1]} : vector<2x10x10x8xf32> to vector<2x4x4x8xf32>
    %124 = vector.extract_strided_slice %61 {offsets = [10, 0], sizes = [1, 8], strides = [1, 1]} : vector<49x8xf32> to vector<1x8xf32>
    %125 = vector.shape_cast %124 : vector<1x8xf32> to vector<1x1x1x8xf32>
    %126 = vector.broadcast %125 : vector<1x1x1x8xf32> to vector<2x4x4x8xf32>
    %127 = arith.mulf %123, %126 : vector<2x4x4x8xf32>
    %128 = arith.addf %122, %127 : vector<2x4x4x8xf32>
    %129 = vector.extract_strided_slice %60 {offsets = [0, 1, 4, 0], sizes = [2, 4, 4, 8], strides = [1, 1, 1, 1]} : vector<2x10x10x8xf32> to vector<2x4x4x8xf32>
    %130 = vector.extract_strided_slice %61 {offsets = [11, 0], sizes = [1, 8], strides = [1, 1]} : vector<49x8xf32> to vector<1x8xf32>
    %131 = vector.shape_cast %130 : vector<1x8xf32> to vector<1x1x1x8xf32>
    %132 = vector.broadcast %131 : vector<1x1x1x8xf32> to vector<2x4x4x8xf32>
    %133 = arith.mulf %129, %132 : vector<2x4x4x8xf32>
    %134 = arith.addf %128, %133 : vector<2x4x4x8xf32>
    %135 = vector.extract_strided_slice %60 {offsets = [0, 1, 5, 0], sizes = [2, 4, 4, 8], strides = [1, 1, 1, 1]} : vector<2x10x10x8xf32> to vector<2x4x4x8xf32>
    %136 = vector.extract_strided_slice %61 {offsets = [12, 0], sizes = [1, 8], strides = [1, 1]} : vector<49x8xf32> to vector<1x8xf32>
    %137 = vector.shape_cast %136 : vector<1x8xf32> to vector<1x1x1x8xf32>
    %138 = vector.broadcast %137 : vector<1x1x1x8xf32> to vector<2x4x4x8xf32>
    %139 = arith.mulf %135, %138 : vector<2x4x4x8xf32>
    %140 = arith.addf %134, %139 : vector<2x4x4x8xf32>
    %141 = vector.extract_strided_slice %60 {offsets = [0, 1, 6, 0], sizes = [2, 4, 4, 8], strides = [1, 1, 1, 1]} : vector<2x10x10x8xf32> to vector<2x4x4x8xf32>
    %142 = vector.extract_strided_slice %61 {offsets = [13, 0], sizes = [1, 8], strides = [1, 1]} : vector<49x8xf32> to vector<1x8xf32>
    %143 = vector.shape_cast %142 : vector<1x8xf32> to vector<1x1x1x8xf32>
    %144 = vector.broadcast %143 : vector<1x1x1x8xf32> to vector<2x4x4x8xf32>
    %145 = arith.mulf %141, %144 : vector<2x4x4x8xf32>
    %146 = arith.addf %140, %145 : vector<2x4x4x8xf32>
    %147 = vector.extract_strided_slice %60 {offsets = [0, 2, 0, 0], sizes = [2, 4, 4, 8], strides = [1, 1, 1, 1]} : vector<2x10x10x8xf32> to vector<2x4x4x8xf32>
    %148 = vector.extract_strided_slice %61 {offsets = [14, 0], sizes = [1, 8], strides = [1, 1]} : vector<49x8xf32> to vector<1x8xf32>
    %149 = vector.shape_cast %148 : vector<1x8xf32> to vector<1x1x1x8xf32>
    %150 = vector.broadcast %149 : vector<1x1x1x8xf32> to vector<2x4x4x8xf32>
    %151 = arith.mulf %147, %150 : vector<2x4x4x8xf32>
    %152 = arith.addf %146, %151 : vector<2x4x4x8xf32>
    %153 = vector.extract_strided_slice %60 {offsets = [0, 2, 1, 0], sizes = [2, 4, 4, 8], strides = [1, 1, 1, 1]} : vector<2x10x10x8xf32> to vector<2x4x4x8xf32>
    %154 = vector.extract_strided_slice %61 {offsets = [15, 0], sizes = [1, 8], strides = [1, 1]} : vector<49x8xf32> to vector<1x8xf32>
    %155 = vector.shape_cast %154 : vector<1x8xf32> to vector<1x1x1x8xf32>
    %156 = vector.broadcast %155 : vector<1x1x1x8xf32> to vector<2x4x4x8xf32>
    %157 = arith.mulf %153, %156 : vector<2x4x4x8xf32>
    %158 = arith.addf %152, %157 : vector<2x4x4x8xf32>
    %159 = vector.extract_strided_slice %60 {offsets = [0, 2, 2, 0], sizes = [2, 4, 4, 8], strides = [1, 1, 1, 1]} : vector<2x10x10x8xf32> to vector<2x4x4x8xf32>
    %160 = vector.extract_strided_slice %61 {offsets = [16, 0], sizes = [1, 8], strides = [1, 1]} : vector<49x8xf32> to vector<1x8xf32>
    %161 = vector.shape_cast %160 : vector<1x8xf32> to vector<1x1x1x8xf32>
    %162 = vector.broadcast %161 : vector<1x1x1x8xf32> to vector<2x4x4x8xf32>
    %163 = arith.mulf %159, %162 : vector<2x4x4x8xf32>
    %164 = arith.addf %158, %163 : vector<2x4x4x8xf32>
    %165 = vector.extract_strided_slice %60 {offsets = [0, 2, 3, 0], sizes = [2, 4, 4, 8], strides = [1, 1, 1, 1]} : vector<2x10x10x8xf32> to vector<2x4x4x8xf32>
    %166 = vector.extract_strided_slice %61 {offsets = [17, 0], sizes = [1, 8], strides = [1, 1]} : vector<49x8xf32> to vector<1x8xf32>
    %167 = vector.shape_cast %166 : vector<1x8xf32> to vector<1x1x1x8xf32>
    %168 = vector.broadcast %167 : vector<1x1x1x8xf32> to vector<2x4x4x8xf32>
    %169 = arith.mulf %165, %168 : vector<2x4x4x8xf32>
    %170 = arith.addf %164, %169 : vector<2x4x4x8xf32>
    %171 = vector.extract_strided_slice %60 {offsets = [0, 2, 4, 0], sizes = [2, 4, 4, 8], strides = [1, 1, 1, 1]} : vector<2x10x10x8xf32> to vector<2x4x4x8xf32>
    %172 = vector.extract_strided_slice %61 {offsets = [18, 0], sizes = [1, 8], strides = [1, 1]} : vector<49x8xf32> to vector<1x8xf32>
    %173 = vector.shape_cast %172 : vector<1x8xf32> to vector<1x1x1x8xf32>
    %174 = vector.broadcast %173 : vector<1x1x1x8xf32> to vector<2x4x4x8xf32>
    %175 = arith.mulf %171, %174 : vector<2x4x4x8xf32>
    %176 = arith.addf %170, %175 : vector<2x4x4x8xf32>
    %177 = vector.extract_strided_slice %60 {offsets = [0, 2, 5, 0], sizes = [2, 4, 4, 8], strides = [1, 1, 1, 1]} : vector<2x10x10x8xf32> to vector<2x4x4x8xf32>
    %178 = vector.extract_strided_slice %61 {offsets = [19, 0], sizes = [1, 8], strides = [1, 1]} : vector<49x8xf32> to vector<1x8xf32>
    %179 = vector.shape_cast %178 : vector<1x8xf32> to vector<1x1x1x8xf32>
    %180 = vector.broadcast %179 : vector<1x1x1x8xf32> to vector<2x4x4x8xf32>
    %181 = arith.mulf %177, %180 : vector<2x4x4x8xf32>
    %182 = arith.addf %176, %181 : vector<2x4x4x8xf32>
    %183 = vector.extract_strided_slice %60 {offsets = [0, 2, 6, 0], sizes = [2, 4, 4, 8], strides = [1, 1, 1, 1]} : vector<2x10x10x8xf32> to vector<2x4x4x8xf32>
    %184 = vector.extract_strided_slice %61 {offsets = [20, 0], sizes = [1, 8], strides = [1, 1]} : vector<49x8xf32> to vector<1x8xf32>
    %185 = vector.shape_cast %184 : vector<1x8xf32> to vector<1x1x1x8xf32>
    %186 = vector.broadcast %185 : vector<1x1x1x8xf32> to vector<2x4x4x8xf32>
    %187 = arith.mulf %183, %186 : vector<2x4x4x8xf32>
    %188 = arith.addf %182, %187 : vector<2x4x4x8xf32>
    %189 = vector.extract_strided_slice %60 {offsets = [0, 3, 0, 0], sizes = [2, 4, 4, 8], strides = [1, 1, 1, 1]} : vector<2x10x10x8xf32> to vector<2x4x4x8xf32>
    %190 = vector.extract_strided_slice %61 {offsets = [21, 0], sizes = [1, 8], strides = [1, 1]} : vector<49x8xf32> to vector<1x8xf32>
    %191 = vector.shape_cast %190 : vector<1x8xf32> to vector<1x1x1x8xf32>
    %192 = vector.broadcast %191 : vector<1x1x1x8xf32> to vector<2x4x4x8xf32>
    %193 = arith.mulf %189, %192 : vector<2x4x4x8xf32>
    %194 = arith.addf %188, %193 : vector<2x4x4x8xf32>
    %195 = vector.extract_strided_slice %60 {offsets = [0, 3, 1, 0], sizes = [2, 4, 4, 8], strides = [1, 1, 1, 1]} : vector<2x10x10x8xf32> to vector<2x4x4x8xf32>
    %196 = vector.extract_strided_slice %61 {offsets = [22, 0], sizes = [1, 8], strides = [1, 1]} : vector<49x8xf32> to vector<1x8xf32>
    %197 = vector.shape_cast %196 : vector<1x8xf32> to vector<1x1x1x8xf32>
    %198 = vector.broadcast %197 : vector<1x1x1x8xf32> to vector<2x4x4x8xf32>
    %199 = arith.mulf %195, %198 : vector<2x4x4x8xf32>
    %200 = arith.addf %194, %199 : vector<2x4x4x8xf32>
    %201 = vector.extract_strided_slice %60 {offsets = [0, 3, 2, 0], sizes = [2, 4, 4, 8], strides = [1, 1, 1, 1]} : vector<2x10x10x8xf32> to vector<2x4x4x8xf32>
    %202 = vector.extract_strided_slice %61 {offsets = [23, 0], sizes = [1, 8], strides = [1, 1]} : vector<49x8xf32> to vector<1x8xf32>
    %203 = vector.shape_cast %202 : vector<1x8xf32> to vector<1x1x1x8xf32>
    %204 = vector.broadcast %203 : vector<1x1x1x8xf32> to vector<2x4x4x8xf32>
    %205 = arith.mulf %201, %204 : vector<2x4x4x8xf32>
    %206 = arith.addf %200, %205 : vector<2x4x4x8xf32>
    %207 = vector.extract_strided_slice %60 {offsets = [0, 3, 3, 0], sizes = [2, 4, 4, 8], strides = [1, 1, 1, 1]} : vector<2x10x10x8xf32> to vector<2x4x4x8xf32>
    %208 = vector.extract_strided_slice %61 {offsets = [24, 0], sizes = [1, 8], strides = [1, 1]} : vector<49x8xf32> to vector<1x8xf32>
    %209 = vector.shape_cast %208 : vector<1x8xf32> to vector<1x1x1x8xf32>
    %210 = vector.broadcast %209 : vector<1x1x1x8xf32> to vector<2x4x4x8xf32>
    %211 = arith.mulf %207, %210 : vector<2x4x4x8xf32>
    %212 = arith.addf %206, %211 : vector<2x4x4x8xf32>
    %213 = vector.extract_strided_slice %60 {offsets = [0, 3, 4, 0], sizes = [2, 4, 4, 8], strides = [1, 1, 1, 1]} : vector<2x10x10x8xf32> to vector<2x4x4x8xf32>
    %214 = vector.extract_strided_slice %61 {offsets = [25, 0], sizes = [1, 8], strides = [1, 1]} : vector<49x8xf32> to vector<1x8xf32>
    %215 = vector.shape_cast %214 : vector<1x8xf32> to vector<1x1x1x8xf32>
    %216 = vector.broadcast %215 : vector<1x1x1x8xf32> to vector<2x4x4x8xf32>
    %217 = arith.mulf %213, %216 : vector<2x4x4x8xf32>
    %218 = arith.addf %212, %217 : vector<2x4x4x8xf32>
    %219 = vector.extract_strided_slice %60 {offsets = [0, 3, 5, 0], sizes = [2, 4, 4, 8], strides = [1, 1, 1, 1]} : vector<2x10x10x8xf32> to vector<2x4x4x8xf32>
    %220 = vector.extract_strided_slice %61 {offsets = [26, 0], sizes = [1, 8], strides = [1, 1]} : vector<49x8xf32> to vector<1x8xf32>
    %221 = vector.shape_cast %220 : vector<1x8xf32> to vector<1x1x1x8xf32>
    %222 = vector.broadcast %221 : vector<1x1x1x8xf32> to vector<2x4x4x8xf32>
    %223 = arith.mulf %219, %222 : vector<2x4x4x8xf32>
    %224 = arith.addf %218, %223 : vector<2x4x4x8xf32>
    %225 = vector.extract_strided_slice %60 {offsets = [0, 3, 6, 0], sizes = [2, 4, 4, 8], strides = [1, 1, 1, 1]} : vector<2x10x10x8xf32> to vector<2x4x4x8xf32>
    %226 = vector.extract_strided_slice %61 {offsets = [27, 0], sizes = [1, 8], strides = [1, 1]} : vector<49x8xf32> to vector<1x8xf32>
    %227 = vector.shape_cast %226 : vector<1x8xf32> to vector<1x1x1x8xf32>
    %228 = vector.broadcast %227 : vector<1x1x1x8xf32> to vector<2x4x4x8xf32>
    %229 = arith.mulf %225, %228 : vector<2x4x4x8xf32>
    %230 = arith.addf %224, %229 : vector<2x4x4x8xf32>
    %231 = vector.extract_strided_slice %60 {offsets = [0, 4, 0, 0], sizes = [2, 4, 4, 8], strides = [1, 1, 1, 1]} : vector<2x10x10x8xf32> to vector<2x4x4x8xf32>
    %232 = vector.extract_strided_slice %61 {offsets = [28, 0], sizes = [1, 8], strides = [1, 1]} : vector<49x8xf32> to vector<1x8xf32>
    %233 = vector.shape_cast %232 : vector<1x8xf32> to vector<1x1x1x8xf32>
    %234 = vector.broadcast %233 : vector<1x1x1x8xf32> to vector<2x4x4x8xf32>
    %235 = arith.mulf %231, %234 : vector<2x4x4x8xf32>
    %236 = arith.addf %230, %235 : vector<2x4x4x8xf32>
    %237 = vector.extract_strided_slice %60 {offsets = [0, 4, 1, 0], sizes = [2, 4, 4, 8], strides = [1, 1, 1, 1]} : vector<2x10x10x8xf32> to vector<2x4x4x8xf32>
    %238 = vector.extract_strided_slice %61 {offsets = [29, 0], sizes = [1, 8], strides = [1, 1]} : vector<49x8xf32> to vector<1x8xf32>
    %239 = vector.shape_cast %238 : vector<1x8xf32> to vector<1x1x1x8xf32>
    %240 = vector.broadcast %239 : vector<1x1x1x8xf32> to vector<2x4x4x8xf32>
    %241 = arith.mulf %237, %240 : vector<2x4x4x8xf32>
    %242 = arith.addf %236, %241 : vector<2x4x4x8xf32>
    %243 = vector.extract_strided_slice %60 {offsets = [0, 4, 2, 0], sizes = [2, 4, 4, 8], strides = [1, 1, 1, 1]} : vector<2x10x10x8xf32> to vector<2x4x4x8xf32>
    %244 = vector.extract_strided_slice %61 {offsets = [30, 0], sizes = [1, 8], strides = [1, 1]} : vector<49x8xf32> to vector<1x8xf32>
    %245 = vector.shape_cast %244 : vector<1x8xf32> to vector<1x1x1x8xf32>
    %246 = vector.broadcast %245 : vector<1x1x1x8xf32> to vector<2x4x4x8xf32>
    %247 = arith.mulf %243, %246 : vector<2x4x4x8xf32>
    %248 = arith.addf %242, %247 : vector<2x4x4x8xf32>
    %249 = vector.extract_strided_slice %60 {offsets = [0, 4, 3, 0], sizes = [2, 4, 4, 8], strides = [1, 1, 1, 1]} : vector<2x10x10x8xf32> to vector<2x4x4x8xf32>
    %250 = vector.extract_strided_slice %61 {offsets = [31, 0], sizes = [1, 8], strides = [1, 1]} : vector<49x8xf32> to vector<1x8xf32>
    %251 = vector.shape_cast %250 : vector<1x8xf32> to vector<1x1x1x8xf32>
    %252 = vector.broadcast %251 : vector<1x1x1x8xf32> to vector<2x4x4x8xf32>
    %253 = arith.mulf %249, %252 : vector<2x4x4x8xf32>
    %254 = arith.addf %248, %253 : vector<2x4x4x8xf32>
    %255 = vector.extract_strided_slice %60 {offsets = [0, 4, 4, 0], sizes = [2, 4, 4, 8], strides = [1, 1, 1, 1]} : vector<2x10x10x8xf32> to vector<2x4x4x8xf32>
    %256 = vector.extract_strided_slice %61 {offsets = [32, 0], sizes = [1, 8], strides = [1, 1]} : vector<49x8xf32> to vector<1x8xf32>
    %257 = vector.shape_cast %256 : vector<1x8xf32> to vector<1x1x1x8xf32>
    %258 = vector.broadcast %257 : vector<1x1x1x8xf32> to vector<2x4x4x8xf32>
    %259 = arith.mulf %255, %258 : vector<2x4x4x8xf32>
    %260 = arith.addf %254, %259 : vector<2x4x4x8xf32>
    %261 = vector.extract_strided_slice %60 {offsets = [0, 4, 5, 0], sizes = [2, 4, 4, 8], strides = [1, 1, 1, 1]} : vector<2x10x10x8xf32> to vector<2x4x4x8xf32>
    %262 = vector.extract_strided_slice %61 {offsets = [33, 0], sizes = [1, 8], strides = [1, 1]} : vector<49x8xf32> to vector<1x8xf32>
    %263 = vector.shape_cast %262 : vector<1x8xf32> to vector<1x1x1x8xf32>
    %264 = vector.broadcast %263 : vector<1x1x1x8xf32> to vector<2x4x4x8xf32>
    %265 = arith.mulf %261, %264 : vector<2x4x4x8xf32>
    %266 = arith.addf %260, %265 : vector<2x4x4x8xf32>
    %267 = vector.extract_strided_slice %60 {offsets = [0, 4, 6, 0], sizes = [2, 4, 4, 8], strides = [1, 1, 1, 1]} : vector<2x10x10x8xf32> to vector<2x4x4x8xf32>
    %268 = vector.extract_strided_slice %61 {offsets = [34, 0], sizes = [1, 8], strides = [1, 1]} : vector<49x8xf32> to vector<1x8xf32>
    %269 = vector.shape_cast %268 : vector<1x8xf32> to vector<1x1x1x8xf32>
    %270 = vector.broadcast %269 : vector<1x1x1x8xf32> to vector<2x4x4x8xf32>
    %271 = arith.mulf %267, %270 : vector<2x4x4x8xf32>
    %272 = arith.addf %266, %271 : vector<2x4x4x8xf32>
    %273 = vector.extract_strided_slice %60 {offsets = [0, 5, 0, 0], sizes = [2, 4, 4, 8], strides = [1, 1, 1, 1]} : vector<2x10x10x8xf32> to vector<2x4x4x8xf32>
    %274 = vector.extract_strided_slice %61 {offsets = [35, 0], sizes = [1, 8], strides = [1, 1]} : vector<49x8xf32> to vector<1x8xf32>
    %275 = vector.shape_cast %274 : vector<1x8xf32> to vector<1x1x1x8xf32>
    %276 = vector.broadcast %275 : vector<1x1x1x8xf32> to vector<2x4x4x8xf32>
    %277 = arith.mulf %273, %276 : vector<2x4x4x8xf32>
    %278 = arith.addf %272, %277 : vector<2x4x4x8xf32>
    %279 = vector.extract_strided_slice %60 {offsets = [0, 5, 1, 0], sizes = [2, 4, 4, 8], strides = [1, 1, 1, 1]} : vector<2x10x10x8xf32> to vector<2x4x4x8xf32>
    %280 = vector.extract_strided_slice %61 {offsets = [36, 0], sizes = [1, 8], strides = [1, 1]} : vector<49x8xf32> to vector<1x8xf32>
    %281 = vector.shape_cast %280 : vector<1x8xf32> to vector<1x1x1x8xf32>
    %282 = vector.broadcast %281 : vector<1x1x1x8xf32> to vector<2x4x4x8xf32>
    %283 = arith.mulf %279, %282 : vector<2x4x4x8xf32>
    %284 = arith.addf %278, %283 : vector<2x4x4x8xf32>
    %285 = vector.extract_strided_slice %60 {offsets = [0, 5, 2, 0], sizes = [2, 4, 4, 8], strides = [1, 1, 1, 1]} : vector<2x10x10x8xf32> to vector<2x4x4x8xf32>
    %286 = vector.extract_strided_slice %61 {offsets = [37, 0], sizes = [1, 8], strides = [1, 1]} : vector<49x8xf32> to vector<1x8xf32>
    %287 = vector.shape_cast %286 : vector<1x8xf32> to vector<1x1x1x8xf32>
    %288 = vector.broadcast %287 : vector<1x1x1x8xf32> to vector<2x4x4x8xf32>
    %289 = arith.mulf %285, %288 : vector<2x4x4x8xf32>
    %290 = arith.addf %284, %289 : vector<2x4x4x8xf32>
    %291 = vector.extract_strided_slice %60 {offsets = [0, 5, 3, 0], sizes = [2, 4, 4, 8], strides = [1, 1, 1, 1]} : vector<2x10x10x8xf32> to vector<2x4x4x8xf32>
    %292 = vector.extract_strided_slice %61 {offsets = [38, 0], sizes = [1, 8], strides = [1, 1]} : vector<49x8xf32> to vector<1x8xf32>
    %293 = vector.shape_cast %292 : vector<1x8xf32> to vector<1x1x1x8xf32>
    %294 = vector.broadcast %293 : vector<1x1x1x8xf32> to vector<2x4x4x8xf32>
    %295 = arith.mulf %291, %294 : vector<2x4x4x8xf32>
    %296 = arith.addf %290, %295 : vector<2x4x4x8xf32>
    %297 = vector.extract_strided_slice %60 {offsets = [0, 5, 4, 0], sizes = [2, 4, 4, 8], strides = [1, 1, 1, 1]} : vector<2x10x10x8xf32> to vector<2x4x4x8xf32>
    %298 = vector.extract_strided_slice %61 {offsets = [39, 0], sizes = [1, 8], strides = [1, 1]} : vector<49x8xf32> to vector<1x8xf32>
    %299 = vector.shape_cast %298 : vector<1x8xf32> to vector<1x1x1x8xf32>
    %300 = vector.broadcast %299 : vector<1x1x1x8xf32> to vector<2x4x4x8xf32>
    %301 = arith.mulf %297, %300 : vector<2x4x4x8xf32>
    %302 = arith.addf %296, %301 : vector<2x4x4x8xf32>
    %303 = vector.extract_strided_slice %60 {offsets = [0, 5, 5, 0], sizes = [2, 4, 4, 8], strides = [1, 1, 1, 1]} : vector<2x10x10x8xf32> to vector<2x4x4x8xf32>
    %304 = vector.extract_strided_slice %61 {offsets = [40, 0], sizes = [1, 8], strides = [1, 1]} : vector<49x8xf32> to vector<1x8xf32>
    %305 = vector.shape_cast %304 : vector<1x8xf32> to vector<1x1x1x8xf32>
    %306 = vector.broadcast %305 : vector<1x1x1x8xf32> to vector<2x4x4x8xf32>
    %307 = arith.mulf %303, %306 : vector<2x4x4x8xf32>
    %308 = arith.addf %302, %307 : vector<2x4x4x8xf32>
    %309 = vector.extract_strided_slice %60 {offsets = [0, 5, 6, 0], sizes = [2, 4, 4, 8], strides = [1, 1, 1, 1]} : vector<2x10x10x8xf32> to vector<2x4x4x8xf32>
    %310 = vector.extract_strided_slice %61 {offsets = [41, 0], sizes = [1, 8], strides = [1, 1]} : vector<49x8xf32> to vector<1x8xf32>
    %311 = vector.shape_cast %310 : vector<1x8xf32> to vector<1x1x1x8xf32>
    %312 = vector.broadcast %311 : vector<1x1x1x8xf32> to vector<2x4x4x8xf32>
    %313 = arith.mulf %309, %312 : vector<2x4x4x8xf32>
    %314 = arith.addf %308, %313 : vector<2x4x4x8xf32>
    %315 = vector.extract_strided_slice %60 {offsets = [0, 6, 0, 0], sizes = [2, 4, 4, 8], strides = [1, 1, 1, 1]} : vector<2x10x10x8xf32> to vector<2x4x4x8xf32>
    %316 = vector.extract_strided_slice %61 {offsets = [42, 0], sizes = [1, 8], strides = [1, 1]} : vector<49x8xf32> to vector<1x8xf32>
    %317 = vector.shape_cast %316 : vector<1x8xf32> to vector<1x1x1x8xf32>
    %318 = vector.broadcast %317 : vector<1x1x1x8xf32> to vector<2x4x4x8xf32>
    %319 = arith.mulf %315, %318 : vector<2x4x4x8xf32>
    %320 = arith.addf %314, %319 : vector<2x4x4x8xf32>
    %321 = vector.extract_strided_slice %60 {offsets = [0, 6, 1, 0], sizes = [2, 4, 4, 8], strides = [1, 1, 1, 1]} : vector<2x10x10x8xf32> to vector<2x4x4x8xf32>
    %322 = vector.extract_strided_slice %61 {offsets = [43, 0], sizes = [1, 8], strides = [1, 1]} : vector<49x8xf32> to vector<1x8xf32>
    %323 = vector.shape_cast %322 : vector<1x8xf32> to vector<1x1x1x8xf32>
    %324 = vector.broadcast %323 : vector<1x1x1x8xf32> to vector<2x4x4x8xf32>
    %325 = arith.mulf %321, %324 : vector<2x4x4x8xf32>
    %326 = arith.addf %320, %325 : vector<2x4x4x8xf32>
    %327 = vector.extract_strided_slice %60 {offsets = [0, 6, 2, 0], sizes = [2, 4, 4, 8], strides = [1, 1, 1, 1]} : vector<2x10x10x8xf32> to vector<2x4x4x8xf32>
    %328 = vector.extract_strided_slice %61 {offsets = [44, 0], sizes = [1, 8], strides = [1, 1]} : vector<49x8xf32> to vector<1x8xf32>
    %329 = vector.shape_cast %328 : vector<1x8xf32> to vector<1x1x1x8xf32>
    %330 = vector.broadcast %329 : vector<1x1x1x8xf32> to vector<2x4x4x8xf32>
    %331 = arith.mulf %327, %330 : vector<2x4x4x8xf32>
    %332 = arith.addf %326, %331 : vector<2x4x4x8xf32>
    %333 = vector.extract_strided_slice %60 {offsets = [0, 6, 3, 0], sizes = [2, 4, 4, 8], strides = [1, 1, 1, 1]} : vector<2x10x10x8xf32> to vector<2x4x4x8xf32>
    %334 = vector.extract_strided_slice %61 {offsets = [45, 0], sizes = [1, 8], strides = [1, 1]} : vector<49x8xf32> to vector<1x8xf32>
    %335 = vector.shape_cast %334 : vector<1x8xf32> to vector<1x1x1x8xf32>
    %336 = vector.broadcast %335 : vector<1x1x1x8xf32> to vector<2x4x4x8xf32>
    %337 = arith.mulf %333, %336 : vector<2x4x4x8xf32>
    %338 = arith.addf %332, %337 : vector<2x4x4x8xf32>
    %339 = vector.extract_strided_slice %60 {offsets = [0, 6, 4, 0], sizes = [2, 4, 4, 8], strides = [1, 1, 1, 1]} : vector<2x10x10x8xf32> to vector<2x4x4x8xf32>
    %340 = vector.extract_strided_slice %61 {offsets = [46, 0], sizes = [1, 8], strides = [1, 1]} : vector<49x8xf32> to vector<1x8xf32>
    %341 = vector.shape_cast %340 : vector<1x8xf32> to vector<1x1x1x8xf32>
    %342 = vector.broadcast %341 : vector<1x1x1x8xf32> to vector<2x4x4x8xf32>
    %343 = arith.mulf %339, %342 : vector<2x4x4x8xf32>
    %344 = arith.addf %338, %343 : vector<2x4x4x8xf32>
    %345 = vector.extract_strided_slice %60 {offsets = [0, 6, 5, 0], sizes = [2, 4, 4, 8], strides = [1, 1, 1, 1]} : vector<2x10x10x8xf32> to vector<2x4x4x8xf32>
    %346 = vector.extract_strided_slice %61 {offsets = [47, 0], sizes = [1, 8], strides = [1, 1]} : vector<49x8xf32> to vector<1x8xf32>
    %347 = vector.shape_cast %346 : vector<1x8xf32> to vector<1x1x1x8xf32>
    %348 = vector.broadcast %347 : vector<1x1x1x8xf32> to vector<2x4x4x8xf32>
    %349 = arith.mulf %345, %348 : vector<2x4x4x8xf32>
    %350 = arith.addf %344, %349 : vector<2x4x4x8xf32>
    %351 = vector.extract_strided_slice %60 {offsets = [0, 6, 6, 0], sizes = [2, 4, 4, 8], strides = [1, 1, 1, 1]} : vector<2x10x10x8xf32> to vector<2x4x4x8xf32>
    %352 = vector.extract_strided_slice %61 {offsets = [48, 0], sizes = [1, 8], strides = [1, 1]} : vector<49x8xf32> to vector<1x8xf32>
    %353 = vector.shape_cast %352 : vector<1x8xf32> to vector<1x1x1x8xf32>
    %354 = vector.broadcast %353 : vector<1x1x1x8xf32> to vector<2x4x4x8xf32>
    %355 = arith.mulf %351, %354 : vector<2x4x4x8xf32>
    %356 = arith.addf %350, %355 : vector<2x4x4x8xf32>
    %357 = vector.shape_cast %356 : vector<2x4x4x8xf32> to vector<32x8xf32>
    %c0_30 = arith.constant 0 : index
    %c24 = arith.constant 24 : index
    %358 = vector.load %arg2[%c0_30, %c24] : memref<1x440xf32, #tpu.memory_space<vmem>>, vector<1x8xf32>
    %359 = vector.broadcast %358 : vector<1x8xf32> to vector<32x8xf32>
    %360 = arith.addf %357, %359 : vector<32x8xf32>
    %c0_31 = arith.constant 0 : index
    %c32 = arith.constant 32 : index
    %361 = vector.load %arg2[%c0_31, %c32] : memref<1x440xf32, #tpu.memory_space<vmem>>, vector<1x8xf32>
    %c0_32 = arith.constant 0 : index
    %c40 = arith.constant 40 : index
    %362 = vector.load %arg2[%c0_32, %c40] : memref<1x440xf32, #tpu.memory_space<vmem>>, vector<1x8xf32>
    %cst_33 = arith.constant dense<0.000000e+00> : vector<32xf32>
    %363 = vector.multi_reduction <add>, %360, %cst_33 [1] : vector<32x8xf32> to vector<32xf32>
    %364 = vector.shape_cast %363 : vector<32xf32> to vector<32x1xf32>
    %cst_34 = arith.constant 8.000000e+00 : f32
    %365 = vector.broadcast %cst_34 : f32 to vector<32x1xf32>
    %366 = arith.divf %364, %365 : vector<32x1xf32>
    %367 = vector.broadcast %366 : vector<32x1xf32> to vector<32x8xf32>
    %368 = arith.subf %360, %367 : vector<32x8xf32>
    %369 = arith.mulf %368, %368 : vector<32x8xf32>
    %cst_35 = arith.constant dense<0.000000e+00> : vector<32xf32>
    %370 = vector.multi_reduction <add>, %369, %cst_35 [1] : vector<32x8xf32> to vector<32xf32>
    %371 = vector.shape_cast %370 : vector<32xf32> to vector<32x1xf32>
    %cst_36 = arith.constant 8.000000e+00 : f32
    %372 = vector.broadcast %cst_36 : f32 to vector<32x1xf32>
    %373 = arith.divf %371, %372 : vector<32x1xf32>
    %374 = vector.broadcast %366 : vector<32x1xf32> to vector<32x8xf32>
    %375 = arith.subf %360, %374 : vector<32x8xf32>
    %cst_37 = arith.constant 9.99999997E-7 : f32
    %376 = vector.broadcast %cst_37 : f32 to vector<32x1xf32>
    %377 = arith.addf %373, %376 : vector<32x1xf32>
    %378 = math.rsqrt %377 : vector<32x1xf32>
    %379 = vector.broadcast %378 : vector<32x1xf32> to vector<32x8xf32>
    %380 = arith.mulf %375, %379 : vector<32x8xf32>
    %381 = vector.broadcast %361 : vector<1x8xf32> to vector<32x8xf32>
    %382 = arith.mulf %380, %381 : vector<32x8xf32>
    %383 = vector.broadcast %362 : vector<1x8xf32> to vector<32x8xf32>
    %384 = arith.addf %382, %383 : vector<32x8xf32>
    %c97 = arith.constant 97 : index
    %c0_38 = arith.constant 0 : index
    %385 = vector.load %arg3[%c97, %c0_38] : memref<298x64xf32, #tpu.memory_space<vmem>>, vector<8x32xf32>
    %cst_39 = arith.constant dense<0.000000e+00> : vector<32x32xf32>
    %386 = tpu.matmul %384, %385, %cst_39 {dimension_numbers = #tpu.dot_dimension_numbers<[1], [0], [0], [1], [0, 0, 1, 1], [], []>} : vector<32x8xf32>, vector<8x32xf32>, vector<32x32xf32> -> vector<32x32xf32>
    %c0_40 = arith.constant 0 : index
    %c48_41 = arith.constant 48 : index
    %387 = vector.load %arg2[%c0_40, %c48_41] : memref<1x440xf32, #tpu.memory_space<vmem>>, vector<1x32xf32>
    %388 = vector.broadcast %387 : vector<1x32xf32> to vector<32x32xf32>
    %389 = arith.addf %386, %388 : vector<32x32xf32>
    %cst_42 = arith.constant 5.000000e-01 : f32
    %390 = vector.broadcast %cst_42 : f32 to vector<32x32xf32>
    %391 = arith.mulf %390, %389 : vector<32x32xf32>
    %cst_43 = arith.constant 0.707106769 : f32
    %392 = vector.broadcast %cst_43 : f32 to vector<32x32xf32>
    %393 = arith.mulf %389, %392 : vector<32x32xf32>
    %394 = math.erf %393 : vector<32x32xf32>
    %cst_44 = arith.constant 1.000000e+00 : f32
    %395 = vector.broadcast %cst_44 : f32 to vector<32x32xf32>
    %396 = arith.addf %395, %394 : vector<32x32xf32>
    %397 = arith.mulf %391, %396 : vector<32x32xf32>
    %398 = arith.mulf %397, %397 : vector<32x32xf32>
    %cst_45 = arith.constant dense<0.000000e+00> : vector<2x32xf32>
    %399 = tpu.matmul %57, %398, %cst_45 {dimension_numbers = #tpu.dot_dimension_numbers<[1], [0], [0], [1], [0, 0, 1, 1], [], []>} : vector<2x32xf32>, vector<32x32xf32>, vector<2x32xf32> -> vector<2x32xf32>
    %400 = math.sqrt %399 : vector<2x32xf32>
    %cst_46 = arith.constant dense<0.000000e+00> : vector<2xf32>
    %401 = vector.multi_reduction <add>, %400, %cst_46 [1] : vector<2x32xf32> to vector<2xf32>
    %402 = vector.shape_cast %401 : vector<2xf32> to vector<2x1xf32>
    %cst_47 = arith.constant 3.200000e+01 : f32
    %403 = vector.broadcast %cst_47 : f32 to vector<2x1xf32>
    %404 = arith.divf %402, %403 : vector<2x1xf32>
    %cst_48 = arith.constant 9.99999997E-7 : f32
    %405 = vector.broadcast %cst_48 : f32 to vector<2x1xf32>
    %406 = arith.addf %404, %405 : vector<2x1xf32>
    %407 = vector.broadcast %406 : vector<2x1xf32> to vector<2x32xf32>
    %408 = arith.divf %400, %407 : vector<2x32xf32>
    %cst_49 = arith.constant dense<0.000000e+00> : vector<32x32xf32>
    %409 = tpu.matmul %44, %408, %cst_49 {dimension_numbers = #tpu.dot_dimension_numbers<[1], [0], [0], [1], [0, 0, 1, 1], [], []>} : vector<32x2xf32>, vector<2x32xf32>, vector<32x32xf32> -> vector<32x32xf32>
    %c0_50 = arith.constant 0 : index
    %c80 = arith.constant 80 : index
    %410 = vector.load %arg2[%c0_50, %c80] : memref<1x440xf32, #tpu.memory_space<vmem>>, vector<1x32xf32>
    %411 = arith.mulf %397, %409 : vector<32x32xf32>
    %412 = vector.broadcast %410 : vector<1x32xf32> to vector<32x32xf32>
    %413 = arith.mulf %412, %411 : vector<32x32xf32>
    %c0_51 = arith.constant 0 : index
    %c112 = arith.constant 112 : index
    %414 = vector.load %arg2[%c0_51, %c112] : memref<1x440xf32, #tpu.memory_space<vmem>>, vector<1x32xf32>
    %415 = vector.broadcast %414 : vector<1x32xf32> to vector<32x32xf32>
    %416 = arith.addf %413, %415 : vector<32x32xf32>
    %417 = arith.addf %416, %397 : vector<32x32xf32>
    %c105 = arith.constant 105 : index
    %c0_52 = arith.constant 0 : index
    %418 = vector.load %arg3[%c105, %c0_52] : memref<298x64xf32, #tpu.memory_space<vmem>>, vector<32x8xf32>
    %cst_53 = arith.constant dense<0.000000e+00> : vector<32x8xf32>
    %419 = tpu.matmul %417, %418, %cst_53 {dimension_numbers = #tpu.dot_dimension_numbers<[1], [0], [0], [1], [0, 0, 1, 1], [], []>} : vector<32x32xf32>, vector<32x8xf32>, vector<32x8xf32> -> vector<32x8xf32>
    %c0_54 = arith.constant 0 : index
    %c144 = arith.constant 144 : index
    %420 = vector.load %arg2[%c0_54, %c144] : memref<1x440xf32, #tpu.memory_space<vmem>>, vector<1x8xf32>
    %421 = vector.broadcast %420 : vector<1x8xf32> to vector<32x8xf32>
    %422 = arith.addf %419, %421 : vector<32x8xf32>
    %423 = arith.addf %422, %29 : vector<32x8xf32>
    %c0_55 = arith.constant 0 : index
    %c152 = arith.constant 152 : index
    %424 = vector.load %arg2[%c0_55, %c152] : memref<1x440xf32, #tpu.memory_space<vmem>>, vector<1x8xf32>
    %c0_56 = arith.constant 0 : index
    %c160 = arith.constant 160 : index
    %425 = vector.load %arg2[%c0_56, %c160] : memref<1x440xf32, #tpu.memory_space<vmem>>, vector<1x8xf32>
    %cst_57 = arith.constant dense<0.000000e+00> : vector<32xf32>
    %426 = vector.multi_reduction <add>, %423, %cst_57 [1] : vector<32x8xf32> to vector<32xf32>
    %427 = vector.shape_cast %426 : vector<32xf32> to vector<32x1xf32>
    %cst_58 = arith.constant 8.000000e+00 : f32
    %428 = vector.broadcast %cst_58 : f32 to vector<32x1xf32>
    %429 = arith.divf %427, %428 : vector<32x1xf32>
    %430 = vector.broadcast %429 : vector<32x1xf32> to vector<32x8xf32>
    %431 = arith.subf %423, %430 : vector<32x8xf32>
    %432 = arith.mulf %431, %431 : vector<32x8xf32>
    %cst_59 = arith.constant dense<0.000000e+00> : vector<32xf32>
    %433 = vector.multi_reduction <add>, %432, %cst_59 [1] : vector<32x8xf32> to vector<32xf32>
    %434 = vector.shape_cast %433 : vector<32xf32> to vector<32x1xf32>
    %cst_60 = arith.constant 8.000000e+00 : f32
    %435 = vector.broadcast %cst_60 : f32 to vector<32x1xf32>
    %436 = arith.divf %434, %435 : vector<32x1xf32>
    %437 = vector.broadcast %429 : vector<32x1xf32> to vector<32x8xf32>
    %438 = arith.subf %423, %437 : vector<32x8xf32>
    %cst_61 = arith.constant 9.99999997E-7 : f32
    %439 = vector.broadcast %cst_61 : f32 to vector<32x1xf32>
    %440 = arith.addf %436, %439 : vector<32x1xf32>
    %441 = math.rsqrt %440 : vector<32x1xf32>
    %442 = vector.broadcast %441 : vector<32x1xf32> to vector<32x8xf32>
    %443 = arith.mulf %438, %442 : vector<32x8xf32>
    %444 = vector.broadcast %424 : vector<1x8xf32> to vector<32x8xf32>
    %445 = arith.mulf %443, %444 : vector<32x8xf32>
    %446 = vector.broadcast %425 : vector<1x8xf32> to vector<32x8xf32>
    %447 = arith.addf %445, %446 : vector<32x8xf32>
    %448 = vector.shape_cast %447 : vector<32x8xf32> to vector<2x2x2x2x2x8xf32>
    %c137 = arith.constant 137 : index
    %c0_62 = arith.constant 0 : index
    %449 = vector.load %arg3[%c137, %c0_62] : memref<298x64xf32, #tpu.memory_space<vmem>>, vector<32x16xf32>
    %cst_63 = arith.constant 0.000000e+00 : f32
    %450 = vector.broadcast %cst_63 : f32 to vector<8x16xf32>
    %451 = vector.extract_strided_slice %448 {offsets = [0, 0, 0, 0, 0, 0], sizes = [2, 2, 1, 2, 1, 8], strides = [1, 1, 1, 1, 1, 1]} : vector<2x2x2x2x2x8xf32> to vector<2x2x1x2x1x8xf32>
    %452 = vector.shape_cast %451 : vector<2x2x1x2x1x8xf32> to vector<2x2x2x8xf32>
    %453 = vector.shape_cast %452 : vector<2x2x2x8xf32> to vector<8x8xf32>
    %454 = vector.extract_strided_slice %449 {offsets = [0, 0], sizes = [8, 16], strides = [1, 1]} : vector<32x16xf32> to vector<8x16xf32>
    %cst_64 = arith.constant dense<0.000000e+00> : vector<8x16xf32>
    %455 = tpu.matmul %453, %454, %cst_64 {dimension_numbers = #tpu.dot_dimension_numbers<[1], [0], [0], [1], [0, 0, 1, 1], [], []>} : vector<8x8xf32>, vector<8x16xf32>, vector<8x16xf32> -> vector<8x16xf32>
    %456 = arith.addf %450, %455 : vector<8x16xf32>
    %457 = vector.extract_strided_slice %448 {offsets = [0, 0, 0, 0, 1, 0], sizes = [2, 2, 1, 2, 1, 8], strides = [1, 1, 1, 1, 1, 1]} : vector<2x2x2x2x2x8xf32> to vector<2x2x1x2x1x8xf32>
    %458 = vector.shape_cast %457 : vector<2x2x1x2x1x8xf32> to vector<2x2x2x8xf32>
    %459 = vector.shape_cast %458 : vector<2x2x2x8xf32> to vector<8x8xf32>
    %460 = vector.extract_strided_slice %449 {offsets = [8, 0], sizes = [8, 16], strides = [1, 1]} : vector<32x16xf32> to vector<8x16xf32>
    %cst_65 = arith.constant dense<0.000000e+00> : vector<8x16xf32>
    %461 = tpu.matmul %459, %460, %cst_65 {dimension_numbers = #tpu.dot_dimension_numbers<[1], [0], [0], [1], [0, 0, 1, 1], [], []>} : vector<8x8xf32>, vector<8x16xf32>, vector<8x16xf32> -> vector<8x16xf32>
    %462 = arith.addf %456, %461 : vector<8x16xf32>
    %463 = vector.extract_strided_slice %448 {offsets = [0, 0, 1, 0, 0, 0], sizes = [2, 2, 1, 2, 1, 8], strides = [1, 1, 1, 1, 1, 1]} : vector<2x2x2x2x2x8xf32> to vector<2x2x1x2x1x8xf32>
    %464 = vector.shape_cast %463 : vector<2x2x1x2x1x8xf32> to vector<2x2x2x8xf32>
    %465 = vector.shape_cast %464 : vector<2x2x2x8xf32> to vector<8x8xf32>
    %466 = vector.extract_strided_slice %449 {offsets = [16, 0], sizes = [8, 16], strides = [1, 1]} : vector<32x16xf32> to vector<8x16xf32>
    %cst_66 = arith.constant dense<0.000000e+00> : vector<8x16xf32>
    %467 = tpu.matmul %465, %466, %cst_66 {dimension_numbers = #tpu.dot_dimension_numbers<[1], [0], [0], [1], [0, 0, 1, 1], [], []>} : vector<8x8xf32>, vector<8x16xf32>, vector<8x16xf32> -> vector<8x16xf32>
    %468 = arith.addf %462, %467 : vector<8x16xf32>
    %469 = vector.extract_strided_slice %448 {offsets = [0, 0, 1, 0, 1, 0], sizes = [2, 2, 1, 2, 1, 8], strides = [1, 1, 1, 1, 1, 1]} : vector<2x2x2x2x2x8xf32> to vector<2x2x1x2x1x8xf32>
    %470 = vector.shape_cast %469 : vector<2x2x1x2x1x8xf32> to vector<2x2x2x8xf32>
    %471 = vector.shape_cast %470 : vector<2x2x2x8xf32> to vector<8x8xf32>
    %472 = vector.extract_strided_slice %449 {offsets = [24, 0], sizes = [8, 16], strides = [1, 1]} : vector<32x16xf32> to vector<8x16xf32>
    %cst_67 = arith.constant dense<0.000000e+00> : vector<8x16xf32>
    %473 = tpu.matmul %471, %472, %cst_67 {dimension_numbers = #tpu.dot_dimension_numbers<[1], [0], [0], [1], [0, 0, 1, 1], [], []>} : vector<8x8xf32>, vector<8x16xf32>, vector<8x16xf32> -> vector<8x16xf32>
    %474 = arith.addf %468, %473 : vector<8x16xf32>
    %c0_68 = arith.constant 0 : index
    %c168 = arith.constant 168 : index
    %475 = vector.load %arg2[%c0_68, %c168] : memref<1x440xf32, #tpu.memory_space<vmem>>, vector<1x16xf32>
    %476 = vector.broadcast %475 : vector<1x16xf32> to vector<8x16xf32>
    %477 = arith.addf %474, %476 : vector<8x16xf32>
    %cst_69 = arith.constant 0.000000e+00 : f32
    %478 = vector.broadcast %cst_69 : f32 to vector<2x8x8x16xf32>
    %c0_70 = arith.constant 0 : index
    %c0_71 = arith.constant 0 : index
    %c0_72 = arith.constant 0 : index
    %c0_73 = arith.constant 0 : index
    %479 = vector.load %arg6[%c0_70, %c0_71, %c0_72, %c0_73] : memref<2x8x8x16xf32, #tpu.memory_space<vmem>>, vector<2x8x8x16xf32>
    tpu.vector_store %arg6[%c0_70, %c0_71, %c0_72, %c0_73], %478 {strides = array<i32>} : memref<2x8x8x16xf32, #tpu.memory_space<vmem>>, vector<2x8x8x16xf32>,
    %480 = tpu.iota {dimensions = array<i32: 0>} : vector<8x2xi32>
    %481 = tpu.iota {dimensions = array<i32: 1>} : vector<8x2xi32>
    %c4_i32 = arith.constant 4 : i32
    %482 = vector.broadcast %c4_i32 : i32 to vector<8x2xi32>
    %483 = arith.muli %481, %482 : vector<8x2xi32>
    %484 = arith.cmpi sge, %480, %483 : vector<8x2xi32>
    %c1_i32_74 = arith.constant 1 : i32
    %485 = vector.broadcast %c1_i32_74 : i32 to vector<8x2xi32>
    %486 = arith.addi %481, %485 : vector<8x2xi32>
    %c4_i32_75 = arith.constant 4 : i32
    %487 = vector.broadcast %c4_i32_75 : i32 to vector<8x2xi32>
    %488 = arith.muli %486, %487 : vector<8x2xi32>
    %489 = arith.cmpi slt, %480, %488 : vector<8x2xi32>
    %490 = arith.andi %484, %489 : vector<8x2xi1>
    %491 = arith.extui %490 : vector<8x2xi1> to vector<8x2xi32>
    %492 = arith.sitofp %491 : vector<8x2xi32> to vector<8x2xf32>
    %493 = tpu.iota {dimensions = array<i32: 1>} : vector<2x8xi32>
    %494 = tpu.iota {dimensions = array<i32: 0>} : vector<2x8xi32>
    %c4_i32_76 = arith.constant 4 : i32
    %495 = vector.broadcast %c4_i32_76 : i32 to vector<2x8xi32>
    %496 = arith.muli %494, %495 : vector<2x8xi32>
    %497 = arith.cmpi sge, %493, %496 : vector<2x8xi32>
    %c1_i32_77 = arith.constant 1 : i32
    %498 = vector.broadcast %c1_i32_77 : i32 to vector<2x8xi32>
    %499 = arith.addi %494, %498 : vector<2x8xi32>
    %c4_i32_78 = arith.constant 4 : i32
    %500 = vector.broadcast %c4_i32_78 : i32 to vector<2x8xi32>
    %501 = arith.muli %499, %500 : vector<2x8xi32>
    %502 = arith.cmpi slt, %493, %501 : vector<2x8xi32>
    %503 = arith.andi %497, %502 : vector<2x8xi1>
    %504 = arith.extui %503 : vector<2x8xi1> to vector<2x8xi32>
    %505 = arith.sitofp %504 : vector<2x8xi32> to vector<2x8xf32>
    %506 = vector.shape_cast %477 : vector<8x16xf32> to vector<2x2x2x16xf32>
    %c0_79 = arith.constant 0 : index
    %c3_80 = arith.constant 3 : index
    %c3_81 = arith.constant 3 : index
    %c0_82 = arith.constant 0 : index
    %507 = vector.load %arg6[%c0_79, %c3_80, %c3_81, %c0_82] : memref<2x8x8x16xf32, #tpu.memory_space<vmem>>, vector<2x2x2x16xf32>
    tpu.vector_store %arg6[%c0_79, %c3_80, %c3_81, %c0_82], %506 {strides = array<i32>} : memref<2x8x8x16xf32, #tpu.memory_space<vmem>>, vector<2x2x2x16xf32>,
    %c0_83 = arith.constant 0 : index
    %c0_84 = arith.constant 0 : index
    %c0_85 = arith.constant 0 : index
    %c0_86 = arith.constant 0 : index
    %508 = vector.load %arg6[%c0_83, %c0_84, %c0_85, %c0_86] : memref<2x8x8x16xf32, #tpu.memory_space<vmem>>, vector<2x8x8x16xf32>
    %c169 = arith.constant 169 : index
    %c0_87 = arith.constant 0 : index
    %509 = vector.load %arg3[%c169, %c0_87] : memref<298x64xf32, #tpu.memory_space<vmem>>, vector<49x16xf32>
    %cst_88 = arith.constant 0.000000e+00 : f32
    %510 = vector.broadcast %cst_88 : f32 to vector<2x2x2x16xf32>
    %511 = vector.extract_strided_slice %508 {offsets = [0, 0, 0, 0], sizes = [2, 2, 2, 16], strides = [1, 1, 1, 1]} : vector<2x8x8x16xf32> to vector<2x2x2x16xf32>
    %512 = vector.extract_strided_slice %509 {offsets = [0, 0], sizes = [1, 16], strides = [1, 1]} : vector<49x16xf32> to vector<1x16xf32>
    %513 = vector.shape_cast %512 : vector<1x16xf32> to vector<1x1x1x16xf32>
    %514 = vector.broadcast %513 : vector<1x1x1x16xf32> to vector<2x2x2x16xf32>
    %515 = arith.mulf %511, %514 : vector<2x2x2x16xf32>
    %516 = arith.addf %510, %515 : vector<2x2x2x16xf32>
    %517 = vector.extract_strided_slice %508 {offsets = [0, 0, 1, 0], sizes = [2, 2, 2, 16], strides = [1, 1, 1, 1]} : vector<2x8x8x16xf32> to vector<2x2x2x16xf32>
    %518 = vector.extract_strided_slice %509 {offsets = [1, 0], sizes = [1, 16], strides = [1, 1]} : vector<49x16xf32> to vector<1x16xf32>
    %519 = vector.shape_cast %518 : vector<1x16xf32> to vector<1x1x1x16xf32>
    %520 = vector.broadcast %519 : vector<1x1x1x16xf32> to vector<2x2x2x16xf32>
    %521 = arith.mulf %517, %520 : vector<2x2x2x16xf32>
    %522 = arith.addf %516, %521 : vector<2x2x2x16xf32>
    %523 = vector.extract_strided_slice %508 {offsets = [0, 0, 2, 0], sizes = [2, 2, 2, 16], strides = [1, 1, 1, 1]} : vector<2x8x8x16xf32> to vector<2x2x2x16xf32>
    %524 = vector.extract_strided_slice %509 {offsets = [2, 0], sizes = [1, 16], strides = [1, 1]} : vector<49x16xf32> to vector<1x16xf32>
    %525 = vector.shape_cast %524 : vector<1x16xf32> to vector<1x1x1x16xf32>
    %526 = vector.broadcast %525 : vector<1x1x1x16xf32> to vector<2x2x2x16xf32>
    %527 = arith.mulf %523, %526 : vector<2x2x2x16xf32>
    %528 = arith.addf %522, %527 : vector<2x2x2x16xf32>
    %529 = vector.extract_strided_slice %508 {offsets = [0, 0, 3, 0], sizes = [2, 2, 2, 16], strides = [1, 1, 1, 1]} : vector<2x8x8x16xf32> to vector<2x2x2x16xf32>
    %530 = vector.extract_strided_slice %509 {offsets = [3, 0], sizes = [1, 16], strides = [1, 1]} : vector<49x16xf32> to vector<1x16xf32>
    %531 = vector.shape_cast %530 : vector<1x16xf32> to vector<1x1x1x16xf32>
    %532 = vector.broadcast %531 : vector<1x1x1x16xf32> to vector<2x2x2x16xf32>
    %533 = arith.mulf %529, %532 : vector<2x2x2x16xf32>
    %534 = arith.addf %528, %533 : vector<2x2x2x16xf32>
    %535 = vector.extract_strided_slice %508 {offsets = [0, 0, 4, 0], sizes = [2, 2, 2, 16], strides = [1, 1, 1, 1]} : vector<2x8x8x16xf32> to vector<2x2x2x16xf32>
    %536 = vector.extract_strided_slice %509 {offsets = [4, 0], sizes = [1, 16], strides = [1, 1]} : vector<49x16xf32> to vector<1x16xf32>
    %537 = vector.shape_cast %536 : vector<1x16xf32> to vector<1x1x1x16xf32>
    %538 = vector.broadcast %537 : vector<1x1x1x16xf32> to vector<2x2x2x16xf32>
    %539 = arith.mulf %535, %538 : vector<2x2x2x16xf32>
    %540 = arith.addf %534, %539 : vector<2x2x2x16xf32>
    %541 = vector.extract_strided_slice %508 {offsets = [0, 0, 5, 0], sizes = [2, 2, 2, 16], strides = [1, 1, 1, 1]} : vector<2x8x8x16xf32> to vector<2x2x2x16xf32>
    %542 = vector.extract_strided_slice %509 {offsets = [5, 0], sizes = [1, 16], strides = [1, 1]} : vector<49x16xf32> to vector<1x16xf32>
    %543 = vector.shape_cast %542 : vector<1x16xf32> to vector<1x1x1x16xf32>
    %544 = vector.broadcast %543 : vector<1x1x1x16xf32> to vector<2x2x2x16xf32>
    %545 = arith.mulf %541, %544 : vector<2x2x2x16xf32>
    %546 = arith.addf %540, %545 : vector<2x2x2x16xf32>
    %547 = vector.extract_strided_slice %508 {offsets = [0, 0, 6, 0], sizes = [2, 2, 2, 16], strides = [1, 1, 1, 1]} : vector<2x8x8x16xf32> to vector<2x2x2x16xf32>
    %548 = vector.extract_strided_slice %509 {offsets = [6, 0], sizes = [1, 16], strides = [1, 1]} : vector<49x16xf32> to vector<1x16xf32>
    %549 = vector.shape_cast %548 : vector<1x16xf32> to vector<1x1x1x16xf32>
    %550 = vector.broadcast %549 : vector<1x1x1x16xf32> to vector<2x2x2x16xf32>
    %551 = arith.mulf %547, %550 : vector<2x2x2x16xf32>
    %552 = arith.addf %546, %551 : vector<2x2x2x16xf32>
    %553 = vector.extract_strided_slice %508 {offsets = [0, 1, 0, 0], sizes = [2, 2, 2, 16], strides = [1, 1, 1, 1]} : vector<2x8x8x16xf32> to vector<2x2x2x16xf32>
    %554 = vector.extract_strided_slice %509 {offsets = [7, 0], sizes = [1, 16], strides = [1, 1]} : vector<49x16xf32> to vector<1x16xf32>
    %555 = vector.shape_cast %554 : vector<1x16xf32> to vector<1x1x1x16xf32>
    %556 = vector.broadcast %555 : vector<1x1x1x16xf32> to vector<2x2x2x16xf32>
    %557 = arith.mulf %553, %556 : vector<2x2x2x16xf32>
    %558 = arith.addf %552, %557 : vector<2x2x2x16xf32>
    %559 = vector.extract_strided_slice %508 {offsets = [0, 1, 1, 0], sizes = [2, 2, 2, 16], strides = [1, 1, 1, 1]} : vector<2x8x8x16xf32> to vector<2x2x2x16xf32>
    %560 = vector.extract_strided_slice %509 {offsets = [8, 0], sizes = [1, 16], strides = [1, 1]} : vector<49x16xf32> to vector<1x16xf32>
    %561 = vector.shape_cast %560 : vector<1x16xf32> to vector<1x1x1x16xf32>
    %562 = vector.broadcast %561 : vector<1x1x1x16xf32> to vector<2x2x2x16xf32>
    %563 = arith.mulf %559, %562 : vector<2x2x2x16xf32>
    %564 = arith.addf %558, %563 : vector<2x2x2x16xf32>
    %565 = vector.extract_strided_slice %508 {offsets = [0, 1, 2, 0], sizes = [2, 2, 2, 16], strides = [1, 1, 1, 1]} : vector<2x8x8x16xf32> to vector<2x2x2x16xf32>
    %566 = vector.extract_strided_slice %509 {offsets = [9, 0], sizes = [1, 16], strides = [1, 1]} : vector<49x16xf32> to vector<1x16xf32>
    %567 = vector.shape_cast %566 : vector<1x16xf32> to vector<1x1x1x16xf32>
    %568 = vector.broadcast %567 : vector<1x1x1x16xf32> to vector<2x2x2x16xf32>
    %569 = arith.mulf %565, %568 : vector<2x2x2x16xf32>
    %570 = arith.addf %564, %569 : vector<2x2x2x16xf32>
    %571 = vector.extract_strided_slice %508 {offsets = [0, 1, 3, 0], sizes = [2, 2, 2, 16], strides = [1, 1, 1, 1]} : vector<2x8x8x16xf32> to vector<2x2x2x16xf32>
    %572 = vector.extract_strided_slice %509 {offsets = [10, 0], sizes = [1, 16], strides = [1, 1]} : vector<49x16xf32> to vector<1x16xf32>
    %573 = vector.shape_cast %572 : vector<1x16xf32> to vector<1x1x1x16xf32>
    %574 = vector.broadcast %573 : vector<1x1x1x16xf32> to vector<2x2x2x16xf32>
    %575 = arith.mulf %571, %574 : vector<2x2x2x16xf32>
    %576 = arith.addf %570, %575 : vector<2x2x2x16xf32>
    %577 = vector.extract_strided_slice %508 {offsets = [0, 1, 4, 0], sizes = [2, 2, 2, 16], strides = [1, 1, 1, 1]} : vector<2x8x8x16xf32> to vector<2x2x2x16xf32>
    %578 = vector.extract_strided_slice %509 {offsets = [11, 0], sizes = [1, 16], strides = [1, 1]} : vector<49x16xf32> to vector<1x16xf32>
    %579 = vector.shape_cast %578 : vector<1x16xf32> to vector<1x1x1x16xf32>
    %580 = vector.broadcast %579 : vector<1x1x1x16xf32> to vector<2x2x2x16xf32>
    %581 = arith.mulf %577, %580 : vector<2x2x2x16xf32>
    %582 = arith.addf %576, %581 : vector<2x2x2x16xf32>
    %583 = vector.extract_strided_slice %508 {offsets = [0, 1, 5, 0], sizes = [2, 2, 2, 16], strides = [1, 1, 1, 1]} : vector<2x8x8x16xf32> to vector<2x2x2x16xf32>
    %584 = vector.extract_strided_slice %509 {offsets = [12, 0], sizes = [1, 16], strides = [1, 1]} : vector<49x16xf32> to vector<1x16xf32>
    %585 = vector.shape_cast %584 : vector<1x16xf32> to vector<1x1x1x16xf32>
    %586 = vector.broadcast %585 : vector<1x1x1x16xf32> to vector<2x2x2x16xf32>
    %587 = arith.mulf %583, %586 : vector<2x2x2x16xf32>
    %588 = arith.addf %582, %587 : vector<2x2x2x16xf32>
    %589 = vector.extract_strided_slice %508 {offsets = [0, 1, 6, 0], sizes = [2, 2, 2, 16], strides = [1, 1, 1, 1]} : vector<2x8x8x16xf32> to vector<2x2x2x16xf32>
    %590 = vector.extract_strided_slice %509 {offsets = [13, 0], sizes = [1, 16], strides = [1, 1]} : vector<49x16xf32> to vector<1x16xf32>
    %591 = vector.shape_cast %590 : vector<1x16xf32> to vector<1x1x1x16xf32>
    %592 = vector.broadcast %591 : vector<1x1x1x16xf32> to vector<2x2x2x16xf32>
    %593 = arith.mulf %589, %592 : vector<2x2x2x16xf32>
    %594 = arith.addf %588, %593 : vector<2x2x2x16xf32>
    %595 = vector.extract_strided_slice %508 {offsets = [0, 2, 0, 0], sizes = [2, 2, 2, 16], strides = [1, 1, 1, 1]} : vector<2x8x8x16xf32> to vector<2x2x2x16xf32>
    %596 = vector.extract_strided_slice %509 {offsets = [14, 0], sizes = [1, 16], strides = [1, 1]} : vector<49x16xf32> to vector<1x16xf32>
    %597 = vector.shape_cast %596 : vector<1x16xf32> to vector<1x1x1x16xf32>
    %598 = vector.broadcast %597 : vector<1x1x1x16xf32> to vector<2x2x2x16xf32>
    %599 = arith.mulf %595, %598 : vector<2x2x2x16xf32>
    %600 = arith.addf %594, %599 : vector<2x2x2x16xf32>
    %601 = vector.extract_strided_slice %508 {offsets = [0, 2, 1, 0], sizes = [2, 2, 2, 16], strides = [1, 1, 1, 1]} : vector<2x8x8x16xf32> to vector<2x2x2x16xf32>
    %602 = vector.extract_strided_slice %509 {offsets = [15, 0], sizes = [1, 16], strides = [1, 1]} : vector<49x16xf32> to vector<1x16xf32>
    %603 = vector.shape_cast %602 : vector<1x16xf32> to vector<1x1x1x16xf32>
    %604 = vector.broadcast %603 : vector<1x1x1x16xf32> to vector<2x2x2x16xf32>
    %605 = arith.mulf %601, %604 : vector<2x2x2x16xf32>
    %606 = arith.addf %600, %605 : vector<2x2x2x16xf32>
    %607 = vector.extract_strided_slice %508 {offsets = [0, 2, 2, 0], sizes = [2, 2, 2, 16], strides = [1, 1, 1, 1]} : vector<2x8x8x16xf32> to vector<2x2x2x16xf32>
    %608 = vector.extract_strided_slice %509 {offsets = [16, 0], sizes = [1, 16], strides = [1, 1]} : vector<49x16xf32> to vector<1x16xf32>
    %609 = vector.shape_cast %608 : vector<1x16xf32> to vector<1x1x1x16xf32>
    %610 = vector.broadcast %609 : vector<1x1x1x16xf32> to vector<2x2x2x16xf32>
    %611 = arith.mulf %607, %610 : vector<2x2x2x16xf32>
    %612 = arith.addf %606, %611 : vector<2x2x2x16xf32>
    %613 = vector.extract_strided_slice %508 {offsets = [0, 2, 3, 0], sizes = [2, 2, 2, 16], strides = [1, 1, 1, 1]} : vector<2x8x8x16xf32> to vector<2x2x2x16xf32>
    %614 = vector.extract_strided_slice %509 {offsets = [17, 0], sizes = [1, 16], strides = [1, 1]} : vector<49x16xf32> to vector<1x16xf32>
    %615 = vector.shape_cast %614 : vector<1x16xf32> to vector<1x1x1x16xf32>
    %616 = vector.broadcast %615 : vector<1x1x1x16xf32> to vector<2x2x2x16xf32>
    %617 = arith.mulf %613, %616 : vector<2x2x2x16xf32>
    %618 = arith.addf %612, %617 : vector<2x2x2x16xf32>
    %619 = vector.extract_strided_slice %508 {offsets = [0, 2, 4, 0], sizes = [2, 2, 2, 16], strides = [1, 1, 1, 1]} : vector<2x8x8x16xf32> to vector<2x2x2x16xf32>
    %620 = vector.extract_strided_slice %509 {offsets = [18, 0], sizes = [1, 16], strides = [1, 1]} : vector<49x16xf32> to vector<1x16xf32>
    %621 = vector.shape_cast %620 : vector<1x16xf32> to vector<1x1x1x16xf32>
    %622 = vector.broadcast %621 : vector<1x1x1x16xf32> to vector<2x2x2x16xf32>
    %623 = arith.mulf %619, %622 : vector<2x2x2x16xf32>
    %624 = arith.addf %618, %623 : vector<2x2x2x16xf32>
    %625 = vector.extract_strided_slice %508 {offsets = [0, 2, 5, 0], sizes = [2, 2, 2, 16], strides = [1, 1, 1, 1]} : vector<2x8x8x16xf32> to vector<2x2x2x16xf32>
    %626 = vector.extract_strided_slice %509 {offsets = [19, 0], sizes = [1, 16], strides = [1, 1]} : vector<49x16xf32> to vector<1x16xf32>
    %627 = vector.shape_cast %626 : vector<1x16xf32> to vector<1x1x1x16xf32>
    %628 = vector.broadcast %627 : vector<1x1x1x16xf32> to vector<2x2x2x16xf32>
    %629 = arith.mulf %625, %628 : vector<2x2x2x16xf32>
    %630 = arith.addf %624, %629 : vector<2x2x2x16xf32>
    %631 = vector.extract_strided_slice %508 {offsets = [0, 2, 6, 0], sizes = [2, 2, 2, 16], strides = [1, 1, 1, 1]} : vector<2x8x8x16xf32> to vector<2x2x2x16xf32>
    %632 = vector.extract_strided_slice %509 {offsets = [20, 0], sizes = [1, 16], strides = [1, 1]} : vector<49x16xf32> to vector<1x16xf32>
    %633 = vector.shape_cast %632 : vector<1x16xf32> to vector<1x1x1x16xf32>
    %634 = vector.broadcast %633 : vector<1x1x1x16xf32> to vector<2x2x2x16xf32>
    %635 = arith.mulf %631, %634 : vector<2x2x2x16xf32>
    %636 = arith.addf %630, %635 : vector<2x2x2x16xf32>
    %637 = vector.extract_strided_slice %508 {offsets = [0, 3, 0, 0], sizes = [2, 2, 2, 16], strides = [1, 1, 1, 1]} : vector<2x8x8x16xf32> to vector<2x2x2x16xf32>
    %638 = vector.extract_strided_slice %509 {offsets = [21, 0], sizes = [1, 16], strides = [1, 1]} : vector<49x16xf32> to vector<1x16xf32>
    %639 = vector.shape_cast %638 : vector<1x16xf32> to vector<1x1x1x16xf32>
    %640 = vector.broadcast %639 : vector<1x1x1x16xf32> to vector<2x2x2x16xf32>
    %641 = arith.mulf %637, %640 : vector<2x2x2x16xf32>
    %642 = arith.addf %636, %641 : vector<2x2x2x16xf32>
    %643 = vector.extract_strided_slice %508 {offsets = [0, 3, 1, 0], sizes = [2, 2, 2, 16], strides = [1, 1, 1, 1]} : vector<2x8x8x16xf32> to vector<2x2x2x16xf32>
    %644 = vector.extract_strided_slice %509 {offsets = [22, 0], sizes = [1, 16], strides = [1, 1]} : vector<49x16xf32> to vector<1x16xf32>
    %645 = vector.shape_cast %644 : vector<1x16xf32> to vector<1x1x1x16xf32>
    %646 = vector.broadcast %645 : vector<1x1x1x16xf32> to vector<2x2x2x16xf32>
    %647 = arith.mulf %643, %646 : vector<2x2x2x16xf32>
    %648 = arith.addf %642, %647 : vector<2x2x2x16xf32>
    %649 = vector.extract_strided_slice %508 {offsets = [0, 3, 2, 0], sizes = [2, 2, 2, 16], strides = [1, 1, 1, 1]} : vector<2x8x8x16xf32> to vector<2x2x2x16xf32>
    %650 = vector.extract_strided_slice %509 {offsets = [23, 0], sizes = [1, 16], strides = [1, 1]} : vector<49x16xf32> to vector<1x16xf32>
    %651 = vector.shape_cast %650 : vector<1x16xf32> to vector<1x1x1x16xf32>
    %652 = vector.broadcast %651 : vector<1x1x1x16xf32> to vector<2x2x2x16xf32>
    %653 = arith.mulf %649, %652 : vector<2x2x2x16xf32>
    %654 = arith.addf %648, %653 : vector<2x2x2x16xf32>
    %655 = vector.extract_strided_slice %508 {offsets = [0, 3, 3, 0], sizes = [2, 2, 2, 16], strides = [1, 1, 1, 1]} : vector<2x8x8x16xf32> to vector<2x2x2x16xf32>
    %656 = vector.extract_strided_slice %509 {offsets = [24, 0], sizes = [1, 16], strides = [1, 1]} : vector<49x16xf32> to vector<1x16xf32>
    %657 = vector.shape_cast %656 : vector<1x16xf32> to vector<1x1x1x16xf32>
    %658 = vector.broadcast %657 : vector<1x1x1x16xf32> to vector<2x2x2x16xf32>
    %659 = arith.mulf %655, %658 : vector<2x2x2x16xf32>
    %660 = arith.addf %654, %659 : vector<2x2x2x16xf32>
    %661 = vector.extract_strided_slice %508 {offsets = [0, 3, 4, 0], sizes = [2, 2, 2, 16], strides = [1, 1, 1, 1]} : vector<2x8x8x16xf32> to vector<2x2x2x16xf32>
    %662 = vector.extract_strided_slice %509 {offsets = [25, 0], sizes = [1, 16], strides = [1, 1]} : vector<49x16xf32> to vector<1x16xf32>
    %663 = vector.shape_cast %662 : vector<1x16xf32> to vector<1x1x1x16xf32>
    %664 = vector.broadcast %663 : vector<1x1x1x16xf32> to vector<2x2x2x16xf32>
    %665 = arith.mulf %661, %664 : vector<2x2x2x16xf32>
    %666 = arith.addf %660, %665 : vector<2x2x2x16xf32>
    %667 = vector.extract_strided_slice %508 {offsets = [0, 3, 5, 0], sizes = [2, 2, 2, 16], strides = [1, 1, 1, 1]} : vector<2x8x8x16xf32> to vector<2x2x2x16xf32>
    %668 = vector.extract_strided_slice %509 {offsets = [26, 0], sizes = [1, 16], strides = [1, 1]} : vector<49x16xf32> to vector<1x16xf32>
    %669 = vector.shape_cast %668 : vector<1x16xf32> to vector<1x1x1x16xf32>
    %670 = vector.broadcast %669 : vector<1x1x1x16xf32> to vector<2x2x2x16xf32>
    %671 = arith.mulf %667, %670 : vector<2x2x2x16xf32>
    %672 = arith.addf %666, %671 : vector<2x2x2x16xf32>
    %673 = vector.extract_strided_slice %508 {offsets = [0, 3, 6, 0], sizes = [2, 2, 2, 16], strides = [1, 1, 1, 1]} : vector<2x8x8x16xf32> to vector<2x2x2x16xf32>
    %674 = vector.extract_strided_slice %509 {offsets = [27, 0], sizes = [1, 16], strides = [1, 1]} : vector<49x16xf32> to vector<1x16xf32>
    %675 = vector.shape_cast %674 : vector<1x16xf32> to vector<1x1x1x16xf32>
    %676 = vector.broadcast %675 : vector<1x1x1x16xf32> to vector<2x2x2x16xf32>
    %677 = arith.mulf %673, %676 : vector<2x2x2x16xf32>
    %678 = arith.addf %672, %677 : vector<2x2x2x16xf32>
    %679 = vector.extract_strided_slice %508 {offsets = [0, 4, 0, 0], sizes = [2, 2, 2, 16], strides = [1, 1, 1, 1]} : vector<2x8x8x16xf32> to vector<2x2x2x16xf32>
    %680 = vector.extract_strided_slice %509 {offsets = [28, 0], sizes = [1, 16], strides = [1, 1]} : vector<49x16xf32> to vector<1x16xf32>
    %681 = vector.shape_cast %680 : vector<1x16xf32> to vector<1x1x1x16xf32>
    %682 = vector.broadcast %681 : vector<1x1x1x16xf32> to vector<2x2x2x16xf32>
    %683 = arith.mulf %679, %682 : vector<2x2x2x16xf32>
    %684 = arith.addf %678, %683 : vector<2x2x2x16xf32>
    %685 = vector.extract_strided_slice %508 {offsets = [0, 4, 1, 0], sizes = [2, 2, 2, 16], strides = [1, 1, 1, 1]} : vector<2x8x8x16xf32> to vector<2x2x2x16xf32>
    %686 = vector.extract_strided_slice %509 {offsets = [29, 0], sizes = [1, 16], strides = [1, 1]} : vector<49x16xf32> to vector<1x16xf32>
    %687 = vector.shape_cast %686 : vector<1x16xf32> to vector<1x1x1x16xf32>
    %688 = vector.broadcast %687 : vector<1x1x1x16xf32> to vector<2x2x2x16xf32>
    %689 = arith.mulf %685, %688 : vector<2x2x2x16xf32>
    %690 = arith.addf %684, %689 : vector<2x2x2x16xf32>
    %691 = vector.extract_strided_slice %508 {offsets = [0, 4, 2, 0], sizes = [2, 2, 2, 16], strides = [1, 1, 1, 1]} : vector<2x8x8x16xf32> to vector<2x2x2x16xf32>
    %692 = vector.extract_strided_slice %509 {offsets = [30, 0], sizes = [1, 16], strides = [1, 1]} : vector<49x16xf32> to vector<1x16xf32>
    %693 = vector.shape_cast %692 : vector<1x16xf32> to vector<1x1x1x16xf32>
    %694 = vector.broadcast %693 : vector<1x1x1x16xf32> to vector<2x2x2x16xf32>
    %695 = arith.mulf %691, %694 : vector<2x2x2x16xf32>
    %696 = arith.addf %690, %695 : vector<2x2x2x16xf32>
    %697 = vector.extract_strided_slice %508 {offsets = [0, 4, 3, 0], sizes = [2, 2, 2, 16], strides = [1, 1, 1, 1]} : vector<2x8x8x16xf32> to vector<2x2x2x16xf32>
    %698 = vector.extract_strided_slice %509 {offsets = [31, 0], sizes = [1, 16], strides = [1, 1]} : vector<49x16xf32> to vector<1x16xf32>
    %699 = vector.shape_cast %698 : vector<1x16xf32> to vector<1x1x1x16xf32>
    %700 = vector.broadcast %699 : vector<1x1x1x16xf32> to vector<2x2x2x16xf32>
    %701 = arith.mulf %697, %700 : vector<2x2x2x16xf32>
    %702 = arith.addf %696, %701 : vector<2x2x2x16xf32>
    %703 = vector.extract_strided_slice %508 {offsets = [0, 4, 4, 0], sizes = [2, 2, 2, 16], strides = [1, 1, 1, 1]} : vector<2x8x8x16xf32> to vector<2x2x2x16xf32>
    %704 = vector.extract_strided_slice %509 {offsets = [32, 0], sizes = [1, 16], strides = [1, 1]} : vector<49x16xf32> to vector<1x16xf32>
    %705 = vector.shape_cast %704 : vector<1x16xf32> to vector<1x1x1x16xf32>
    %706 = vector.broadcast %705 : vector<1x1x1x16xf32> to vector<2x2x2x16xf32>
    %707 = arith.mulf %703, %706 : vector<2x2x2x16xf32>
    %708 = arith.addf %702, %707 : vector<2x2x2x16xf32>
    %709 = vector.extract_strided_slice %508 {offsets = [0, 4, 5, 0], sizes = [2, 2, 2, 16], strides = [1, 1, 1, 1]} : vector<2x8x8x16xf32> to vector<2x2x2x16xf32>
    %710 = vector.extract_strided_slice %509 {offsets = [33, 0], sizes = [1, 16], strides = [1, 1]} : vector<49x16xf32> to vector<1x16xf32>
    %711 = vector.shape_cast %710 : vector<1x16xf32> to vector<1x1x1x16xf32>
    %712 = vector.broadcast %711 : vector<1x1x1x16xf32> to vector<2x2x2x16xf32>
    %713 = arith.mulf %709, %712 : vector<2x2x2x16xf32>
    %714 = arith.addf %708, %713 : vector<2x2x2x16xf32>
    %715 = vector.extract_strided_slice %508 {offsets = [0, 4, 6, 0], sizes = [2, 2, 2, 16], strides = [1, 1, 1, 1]} : vector<2x8x8x16xf32> to vector<2x2x2x16xf32>
    %716 = vector.extract_strided_slice %509 {offsets = [34, 0], sizes = [1, 16], strides = [1, 1]} : vector<49x16xf32> to vector<1x16xf32>
    %717 = vector.shape_cast %716 : vector<1x16xf32> to vector<1x1x1x16xf32>
    %718 = vector.broadcast %717 : vector<1x1x1x16xf32> to vector<2x2x2x16xf32>
    %719 = arith.mulf %715, %718 : vector<2x2x2x16xf32>
    %720 = arith.addf %714, %719 : vector<2x2x2x16xf32>
    %721 = vector.extract_strided_slice %508 {offsets = [0, 5, 0, 0], sizes = [2, 2, 2, 16], strides = [1, 1, 1, 1]} : vector<2x8x8x16xf32> to vector<2x2x2x16xf32>
    %722 = vector.extract_strided_slice %509 {offsets = [35, 0], sizes = [1, 16], strides = [1, 1]} : vector<49x16xf32> to vector<1x16xf32>
    %723 = vector.shape_cast %722 : vector<1x16xf32> to vector<1x1x1x16xf32>
    %724 = vector.broadcast %723 : vector<1x1x1x16xf32> to vector<2x2x2x16xf32>
    %725 = arith.mulf %721, %724 : vector<2x2x2x16xf32>
    %726 = arith.addf %720, %725 : vector<2x2x2x16xf32>
    %727 = vector.extract_strided_slice %508 {offsets = [0, 5, 1, 0], sizes = [2, 2, 2, 16], strides = [1, 1, 1, 1]} : vector<2x8x8x16xf32> to vector<2x2x2x16xf32>
    %728 = vector.extract_strided_slice %509 {offsets = [36, 0], sizes = [1, 16], strides = [1, 1]} : vector<49x16xf32> to vector<1x16xf32>
    %729 = vector.shape_cast %728 : vector<1x16xf32> to vector<1x1x1x16xf32>
    %730 = vector.broadcast %729 : vector<1x1x1x16xf32> to vector<2x2x2x16xf32>
    %731 = arith.mulf %727, %730 : vector<2x2x2x16xf32>
    %732 = arith.addf %726, %731 : vector<2x2x2x16xf32>
    %733 = vector.extract_strided_slice %508 {offsets = [0, 5, 2, 0], sizes = [2, 2, 2, 16], strides = [1, 1, 1, 1]} : vector<2x8x8x16xf32> to vector<2x2x2x16xf32>
    %734 = vector.extract_strided_slice %509 {offsets = [37, 0], sizes = [1, 16], strides = [1, 1]} : vector<49x16xf32> to vector<1x16xf32>
    %735 = vector.shape_cast %734 : vector<1x16xf32> to vector<1x1x1x16xf32>
    %736 = vector.broadcast %735 : vector<1x1x1x16xf32> to vector<2x2x2x16xf32>
    %737 = arith.mulf %733, %736 : vector<2x2x2x16xf32>
    %738 = arith.addf %732, %737 : vector<2x2x2x16xf32>
    %739 = vector.extract_strided_slice %508 {offsets = [0, 5, 3, 0], sizes = [2, 2, 2, 16], strides = [1, 1, 1, 1]} : vector<2x8x8x16xf32> to vector<2x2x2x16xf32>
    %740 = vector.extract_strided_slice %509 {offsets = [38, 0], sizes = [1, 16], strides = [1, 1]} : vector<49x16xf32> to vector<1x16xf32>
    %741 = vector.shape_cast %740 : vector<1x16xf32> to vector<1x1x1x16xf32>
    %742 = vector.broadcast %741 : vector<1x1x1x16xf32> to vector<2x2x2x16xf32>
    %743 = arith.mulf %739, %742 : vector<2x2x2x16xf32>
    %744 = arith.addf %738, %743 : vector<2x2x2x16xf32>
    %745 = vector.extract_strided_slice %508 {offsets = [0, 5, 4, 0], sizes = [2, 2, 2, 16], strides = [1, 1, 1, 1]} : vector<2x8x8x16xf32> to vector<2x2x2x16xf32>
    %746 = vector.extract_strided_slice %509 {offsets = [39, 0], sizes = [1, 16], strides = [1, 1]} : vector<49x16xf32> to vector<1x16xf32>
    %747 = vector.shape_cast %746 : vector<1x16xf32> to vector<1x1x1x16xf32>
    %748 = vector.broadcast %747 : vector<1x1x1x16xf32> to vector<2x2x2x16xf32>
    %749 = arith.mulf %745, %748 : vector<2x2x2x16xf32>
    %750 = arith.addf %744, %749 : vector<2x2x2x16xf32>
    %751 = vector.extract_strided_slice %508 {offsets = [0, 5, 5, 0], sizes = [2, 2, 2, 16], strides = [1, 1, 1, 1]} : vector<2x8x8x16xf32> to vector<2x2x2x16xf32>
    %752 = vector.extract_strided_slice %509 {offsets = [40, 0], sizes = [1, 16], strides = [1, 1]} : vector<49x16xf32> to vector<1x16xf32>
    %753 = vector.shape_cast %752 : vector<1x16xf32> to vector<1x1x1x16xf32>
    %754 = vector.broadcast %753 : vector<1x1x1x16xf32> to vector<2x2x2x16xf32>
    %755 = arith.mulf %751, %754 : vector<2x2x2x16xf32>
    %756 = arith.addf %750, %755 : vector<2x2x2x16xf32>
    %757 = vector.extract_strided_slice %508 {offsets = [0, 5, 6, 0], sizes = [2, 2, 2, 16], strides = [1, 1, 1, 1]} : vector<2x8x8x16xf32> to vector<2x2x2x16xf32>
    %758 = vector.extract_strided_slice %509 {offsets = [41, 0], sizes = [1, 16], strides = [1, 1]} : vector<49x16xf32> to vector<1x16xf32>
    %759 = vector.shape_cast %758 : vector<1x16xf32> to vector<1x1x1x16xf32>
    %760 = vector.broadcast %759 : vector<1x1x1x16xf32> to vector<2x2x2x16xf32>
    %761 = arith.mulf %757, %760 : vector<2x2x2x16xf32>
    %762 = arith.addf %756, %761 : vector<2x2x2x16xf32>
    %763 = vector.extract_strided_slice %508 {offsets = [0, 6, 0, 0], sizes = [2, 2, 2, 16], strides = [1, 1, 1, 1]} : vector<2x8x8x16xf32> to vector<2x2x2x16xf32>
    %764 = vector.extract_strided_slice %509 {offsets = [42, 0], sizes = [1, 16], strides = [1, 1]} : vector<49x16xf32> to vector<1x16xf32>
    %765 = vector.shape_cast %764 : vector<1x16xf32> to vector<1x1x1x16xf32>
    %766 = vector.broadcast %765 : vector<1x1x1x16xf32> to vector<2x2x2x16xf32>
    %767 = arith.mulf %763, %766 : vector<2x2x2x16xf32>
    %768 = arith.addf %762, %767 : vector<2x2x2x16xf32>
    %769 = vector.extract_strided_slice %508 {offsets = [0, 6, 1, 0], sizes = [2, 2, 2, 16], strides = [1, 1, 1, 1]} : vector<2x8x8x16xf32> to vector<2x2x2x16xf32>
    %770 = vector.extract_strided_slice %509 {offsets = [43, 0], sizes = [1, 16], strides = [1, 1]} : vector<49x16xf32> to vector<1x16xf32>
    %771 = vector.shape_cast %770 : vector<1x16xf32> to vector<1x1x1x16xf32>
    %772 = vector.broadcast %771 : vector<1x1x1x16xf32> to vector<2x2x2x16xf32>
    %773 = arith.mulf %769, %772 : vector<2x2x2x16xf32>
    %774 = arith.addf %768, %773 : vector<2x2x2x16xf32>
    %775 = vector.extract_strided_slice %508 {offsets = [0, 6, 2, 0], sizes = [2, 2, 2, 16], strides = [1, 1, 1, 1]} : vector<2x8x8x16xf32> to vector<2x2x2x16xf32>
    %776 = vector.extract_strided_slice %509 {offsets = [44, 0], sizes = [1, 16], strides = [1, 1]} : vector<49x16xf32> to vector<1x16xf32>
    %777 = vector.shape_cast %776 : vector<1x16xf32> to vector<1x1x1x16xf32>
    %778 = vector.broadcast %777 : vector<1x1x1x16xf32> to vector<2x2x2x16xf32>
    %779 = arith.mulf %775, %778 : vector<2x2x2x16xf32>
    %780 = arith.addf %774, %779 : vector<2x2x2x16xf32>
    %781 = vector.extract_strided_slice %508 {offsets = [0, 6, 3, 0], sizes = [2, 2, 2, 16], strides = [1, 1, 1, 1]} : vector<2x8x8x16xf32> to vector<2x2x2x16xf32>
    %782 = vector.extract_strided_slice %509 {offsets = [45, 0], sizes = [1, 16], strides = [1, 1]} : vector<49x16xf32> to vector<1x16xf32>
    %783 = vector.shape_cast %782 : vector<1x16xf32> to vector<1x1x1x16xf32>
    %784 = vector.broadcast %783 : vector<1x1x1x16xf32> to vector<2x2x2x16xf32>
    %785 = arith.mulf %781, %784 : vector<2x2x2x16xf32>
    %786 = arith.addf %780, %785 : vector<2x2x2x16xf32>
    %787 = vector.extract_strided_slice %508 {offsets = [0, 6, 4, 0], sizes = [2, 2, 2, 16], strides = [1, 1, 1, 1]} : vector<2x8x8x16xf32> to vector<2x2x2x16xf32>
    %788 = vector.extract_strided_slice %509 {offsets = [46, 0], sizes = [1, 16], strides = [1, 1]} : vector<49x16xf32> to vector<1x16xf32>
    %789 = vector.shape_cast %788 : vector<1x16xf32> to vector<1x1x1x16xf32>
    %790 = vector.broadcast %789 : vector<1x1x1x16xf32> to vector<2x2x2x16xf32>
    %791 = arith.mulf %787, %790 : vector<2x2x2x16xf32>
    %792 = arith.addf %786, %791 : vector<2x2x2x16xf32>
    %793 = vector.extract_strided_slice %508 {offsets = [0, 6, 5, 0], sizes = [2, 2, 2, 16], strides = [1, 1, 1, 1]} : vector<2x8x8x16xf32> to vector<2x2x2x16xf32>
    %794 = vector.extract_strided_slice %509 {offsets = [47, 0], sizes = [1, 16], strides = [1, 1]} : vector<49x16xf32> to vector<1x16xf32>
    %795 = vector.shape_cast %794 : vector<1x16xf32> to vector<1x1x1x16xf32>
    %796 = vector.broadcast %795 : vector<1x1x1x16xf32> to vector<2x2x2x16xf32>
    %797 = arith.mulf %793, %796 : vector<2x2x2x16xf32>
    %798 = arith.addf %792, %797 : vector<2x2x2x16xf32>
    %799 = vector.extract_strided_slice %508 {offsets = [0, 6, 6, 0], sizes = [2, 2, 2, 16], strides = [1, 1, 1, 1]} : vector<2x8x8x16xf32> to vector<2x2x2x16xf32>
    %800 = vector.extract_strided_slice %509 {offsets = [48, 0], sizes = [1, 16], strides = [1, 1]} : vector<49x16xf32> to vector<1x16xf32>
    %801 = vector.shape_cast %800 : vector<1x16xf32> to vector<1x1x1x16xf32>
    %802 = vector.broadcast %801 : vector<1x1x1x16xf32> to vector<2x2x2x16xf32>
    %803 = arith.mulf %799, %802 : vector<2x2x2x16xf32>
    %804 = arith.addf %798, %803 : vector<2x2x2x16xf32>
    %805 = vector.shape_cast %804 : vector<2x2x2x16xf32> to vector<8x16xf32>
    %c0_89 = arith.constant 0 : index
    %c184 = arith.constant 184 : index
    %806 = vector.load %arg2[%c0_89, %c184] : memref<1x440xf32, #tpu.memory_space<vmem>>, vector<1x16xf32>
    %807 = vector.broadcast %806 : vector<1x16xf32> to vector<8x16xf32>
    %808 = arith.addf %805, %807 : vector<8x16xf32>
    %c0_90 = arith.constant 0 : index
    %c200 = arith.constant 200 : index
    %809 = vector.load %arg2[%c0_90, %c200] : memref<1x440xf32, #tpu.memory_space<vmem>>, vector<1x16xf32>
    %c0_91 = arith.constant 0 : index
    %c216 = arith.constant 216 : index
    %810 = vector.load %arg2[%c0_91, %c216] : memref<1x440xf32, #tpu.memory_space<vmem>>, vector<1x16xf32>
    %cst_92 = arith.constant dense<0.000000e+00> : vector<8xf32>
    %811 = vector.multi_reduction <add>, %808, %cst_92 [1] : vector<8x16xf32> to vector<8xf32>
    %812 = vector.shape_cast %811 : vector<8xf32> to vector<8x1xf32>
    %cst_93 = arith.constant 1.600000e+01 : f32
    %813 = vector.broadcast %cst_93 : f32 to vector<8x1xf32>
    %814 = arith.divf %812, %813 : vector<8x1xf32>
    %815 = vector.broadcast %814 : vector<8x1xf32> to vector<8x16xf32>
    %816 = arith.subf %808, %815 : vector<8x16xf32>
    %817 = arith.mulf %816, %816 : vector<8x16xf32>
    %cst_94 = arith.constant dense<0.000000e+00> : vector<8xf32>
    %818 = vector.multi_reduction <add>, %817, %cst_94 [1] : vector<8x16xf32> to vector<8xf32>
    %819 = vector.shape_cast %818 : vector<8xf32> to vector<8x1xf32>
    %cst_95 = arith.constant 1.600000e+01 : f32
    %820 = vector.broadcast %cst_95 : f32 to vector<8x1xf32>
    %821 = arith.divf %819, %820 : vector<8x1xf32>
    %822 = vector.broadcast %814 : vector<8x1xf32> to vector<8x16xf32>
    %823 = arith.subf %808, %822 : vector<8x16xf32>
    %cst_96 = arith.constant 9.99999997E-7 : f32
    %824 = vector.broadcast %cst_96 : f32 to vector<8x1xf32>
    %825 = arith.addf %821, %824 : vector<8x1xf32>
    %826 = math.rsqrt %825 : vector<8x1xf32>
    %827 = vector.broadcast %826 : vector<8x1xf32> to vector<8x16xf32>
    %828 = arith.mulf %823, %827 : vector<8x16xf32>
    %829 = vector.broadcast %809 : vector<1x16xf32> to vector<8x16xf32>
    %830 = arith.mulf %828, %829 : vector<8x16xf32>
    %831 = vector.broadcast %810 : vector<1x16xf32> to vector<8x16xf32>
    %832 = arith.addf %830, %831 : vector<8x16xf32>
    %c218 = arith.constant 218 : index
    %c0_97 = arith.constant 0 : index
    %833 = vector.load %arg3[%c218, %c0_97] : memref<298x64xf32, #tpu.memory_space<vmem>>, vector<16x64xf32>
    %cst_98 = arith.constant dense<0.000000e+00> : vector<8x64xf32>
    %834 = tpu.matmul %832, %833, %cst_98 {dimension_numbers = #tpu.dot_dimension_numbers<[1], [0], [0], [1], [0, 0, 1, 1], [], []>} : vector<8x16xf32>, vector<16x64xf32>, vector<8x64xf32> -> vector<8x64xf32>
    %c0_99 = arith.constant 0 : index
    %c232 = arith.constant 232 : index
    %835 = vector.load %arg2[%c0_99, %c232] : memref<1x440xf32, #tpu.memory_space<vmem>>, vector<1x64xf32>
    %836 = vector.broadcast %835 : vector<1x64xf32> to vector<8x64xf32>
    %837 = arith.addf %834, %836 : vector<8x64xf32>
    %cst_100 = arith.constant 5.000000e-01 : f32
    %838 = vector.broadcast %cst_100 : f32 to vector<8x64xf32>
    %839 = arith.mulf %838, %837 : vector<8x64xf32>
    %cst_101 = arith.constant 0.707106769 : f32
    %840 = vector.broadcast %cst_101 : f32 to vector<8x64xf32>
    %841 = arith.mulf %837, %840 : vector<8x64xf32>
    %842 = math.erf %841 : vector<8x64xf32>
    %cst_102 = arith.constant 1.000000e+00 : f32
    %843 = vector.broadcast %cst_102 : f32 to vector<8x64xf32>
    %844 = arith.addf %843, %842 : vector<8x64xf32>
    %845 = arith.mulf %839, %844 : vector<8x64xf32>
    %846 = arith.mulf %845, %845 : vector<8x64xf32>
    %cst_103 = arith.constant dense<0.000000e+00> : vector<2x64xf32>
    %847 = tpu.matmul %505, %846, %cst_103 {dimension_numbers = #tpu.dot_dimension_numbers<[1], [0], [0], [1], [0, 0, 1, 1], [], []>} : vector<2x8xf32>, vector<8x64xf32>, vector<2x64xf32> -> vector<2x64xf32>
    %848 = math.sqrt %847 : vector<2x64xf32>
    %cst_104 = arith.constant dense<0.000000e+00> : vector<2xf32>
    %849 = vector.multi_reduction <add>, %848, %cst_104 [1] : vector<2x64xf32> to vector<2xf32>
    %850 = vector.shape_cast %849 : vector<2xf32> to vector<2x1xf32>
    %cst_105 = arith.constant 6.400000e+01 : f32
    %851 = vector.broadcast %cst_105 : f32 to vector<2x1xf32>
    %852 = arith.divf %850, %851 : vector<2x1xf32>
    %cst_106 = arith.constant 9.99999997E-7 : f32
    %853 = vector.broadcast %cst_106 : f32 to vector<2x1xf32>
    %854 = arith.addf %852, %853 : vector<2x1xf32>
    %855 = vector.broadcast %854 : vector<2x1xf32> to vector<2x64xf32>
    %856 = arith.divf %848, %855 : vector<2x64xf32>
    %cst_107 = arith.constant dense<0.000000e+00> : vector<8x64xf32>
    %857 = tpu.matmul %492, %856, %cst_107 {dimension_numbers = #tpu.dot_dimension_numbers<[1], [0], [0], [1], [0, 0, 1, 1], [], []>} : vector<8x2xf32>, vector<2x64xf32>, vector<8x64xf32> -> vector<8x64xf32>
    %c0_108 = arith.constant 0 : index
    %c296 = arith.constant 296 : index
    %858 = vector.load %arg2[%c0_108, %c296] : memref<1x440xf32, #tpu.memory_space<vmem>>, vector<1x64xf32>
    %859 = arith.mulf %845, %857 : vector<8x64xf32>
    %860 = vector.broadcast %858 : vector<1x64xf32> to vector<8x64xf32>
    %861 = arith.mulf %860, %859 : vector<8x64xf32>
    %c0_109 = arith.constant 0 : index
    %c360 = arith.constant 360 : index
    %862 = vector.load %arg2[%c0_109, %c360] : memref<1x440xf32, #tpu.memory_space<vmem>>, vector<1x64xf32>
    %863 = vector.broadcast %862 : vector<1x64xf32> to vector<8x64xf32>
    %864 = arith.addf %861, %863 : vector<8x64xf32>
    %865 = arith.addf %864, %845 : vector<8x64xf32>
    %c234 = arith.constant 234 : index
    %c0_110 = arith.constant 0 : index
    %866 = vector.load %arg3[%c234, %c0_110] : memref<298x64xf32, #tpu.memory_space<vmem>>, vector<64x16xf32>
    %cst_111 = arith.constant dense<0.000000e+00> : vector<8x16xf32>
    %867 = tpu.matmul %865, %866, %cst_111 {dimension_numbers = #tpu.dot_dimension_numbers<[1], [0], [0], [1], [0, 0, 1, 1], [], []>} : vector<8x64xf32>, vector<64x16xf32>, vector<8x16xf32> -> vector<8x16xf32>
    %c0_112 = arith.constant 0 : index
    %c424 = arith.constant 424 : index
    %868 = vector.load %arg2[%c0_112, %c424] : memref<1x440xf32, #tpu.memory_space<vmem>>, vector<1x16xf32>
    %869 = vector.broadcast %868 : vector<1x16xf32> to vector<8x16xf32>
    %870 = arith.addf %867, %869 : vector<8x16xf32>
    %871 = arith.addf %870, %477 : vector<8x16xf32>
    %c0_113 = arith.constant 0 : index
    %c0_114 = arith.constant 0 : index
    %872 = vector.load %arg4[%c0_113, %c0_114] : memref<8x16xf32, #tpu.memory_space<vmem>>, vector<8x16xf32>
    tpu.vector_store %arg4[%c0_113, %c0_114], %871 {strides = array<i32>} : memref<8x16xf32, #tpu.memory_space<vmem>>, vector<8x16xf32>,
    return
  }
  func.func @transform_0(%arg0: i32) -> (i32, i32) {
    %c0_i32 = arith.constant 0 : i32
    %c0_i32_0 = arith.constant 0 : i32
    return %arg0, %c0_i32 : i32, i32
  }
  func.func @transform_1(%arg0: i32) -> (i32, i32) {
    %c0_i32 = arith.constant 0 : i32
    %c0_i32_0 = arith.constant 0 : i32
    %c0_i32_1 = arith.constant 0 : i32
    return %c0_i32, %c0_i32_0 : i32, i32
  }
  func.func @transform_2(%arg0: i32) -> (i32, i32) {
    %c0_i32 = arith.constant 0 : i32
    %c0_i32_0 = arith.constant 0 : i32
    %c0_i32_1 = arith.constant 0 : i32
    return %c0_i32, %c0_i32_0 : i32, i32
  }
  func.func @transform_3(%arg0: i32) -> (i32, i32) {
    %c0_i32 = arith.constant 0 : i32
    %c0_i32_0 = arith.constant 0 : i32
    return %arg0, %c0_i32 : i32, i32
  }
}

</mosaic_0001>

<bundles_post_ra>
// kernel: convnext_forward.1
= control target key start
LH: loop header
LB: loop body
LE: loop exit
PB: predicated region body
PF: predicated region fallthrough
CT: control target
= control target key end

     0   :  { %8 = vsyncpa [#allocation5], 0  ;;  %s10056_s0 = inlined_call_operand.vmem [shape: f32[64,48], index: 0, kind: input, shape index: {}]   ;;  %s10057_s1 = inlined_call_operand.vmem [shape: f32[1,440], index: 1, kind: input, shape index: {}]   ;;  %s10058_s2 = inlined_call_operand.vmem [shape: f32[298,64], index: 2, kind: input, shape index: {}]   ;;  %s10059_s3 = inlined_call_operand.hbm [shape: f32[16,16], index: 3, kind: output, shape index: {}]  }
   0x1   :  { %10 = vsyncpa [#allocation5 + $0x1], 0  ;;  %s6662_s12 = smov 0   ;;  %s6664_s13 = smov 0  }
   0x2   :  { %s6666_s14 = smov 0   ;;  %s6668_s15 = smov 0  }
   0x3 LB: > { %s6683_s16 = sadd.s32 4294967295, %s6618_s15   ;;  %s6208_s17 = sadd.s32 4294967294, %s6618_s15   ;;  %s6618_s15 = sphi %s6668_s15, %s10850_s15   ;;  %s6614_s14 = sphi %s6666_s14, %s10849_s14   ;;  %s6610_s13 = sphi %s6664_s13, %s10848_s13   ;;  %s6606_s12 = sphi %s6662_s12, %s10847_s12  }
   0x4   : > { %s6687_s18 = sadd.s32 1, %s6618_s15   ;;  %s91_s19 = sadd.s32 1, %s6614_s14 }
   0x5   : > { %s88_s20 = ssub.s32 %s6618_s15, %s6687_s18  ;;  %p101_p0 = scmp.ne.s32.totalorder %s6614_s14, %s6610_s13 }
   0x6   : > { %p89_p1 = scmp.eq.s32.totalorder %s88_s20, 0  ;;  %p102_p2 = scmp.eq.s32.totalorder %s6683_s16, 1 }
   0x7   : > { %p107_p3 = scmp.ne.s32.totalorder %s6610_s13, %s6606_s12  ;;  %p108_p4 = scmp.eq.s32.totalorder %s6208_s17, 1 }
   0x8   : > { %s6698_s21 = scalar_select %p89_p1, %s6614_s14, %s91_s19  }
   0x9   : > { %p6700_p5 = por %p102_p2, %p101_p0  ;;  %p6704_p6 = por %p108_p4, %p107_p3 }
   0xa   : > { %p6211_p7 = scmp.ge.s32.totalorder %s6618_s15, 1  ;;  %p141_p8 = scmp.lt.s32.totalorder %s6618_s15, 3 }
   0xc   : > { %p142_p9 = pnand %p6211_p7, %p141_p8 }
   0xe   : > { %145 = sbr.rel (%p142_p9) target bundleno = 4581 (0x11e5), region = 32 }
  0x13   : > { %v180_v0 = vld [vmem:[%s10058_s2 + $0x28] sm:$0xff]  ;;  %v179_v1 = vld [vmem:[%s10058_s2 + $0x20] sm:$0xff]  ;;  %s6213_s28 = sshll.u32 %s6683_s16, 2  ;;  %v178_v2 = vld [vmem:[%s10058_s2 + $0x18] sm:$0xff]  ;;  %vm188_vm0 = vcmask 392192   ;;  %vm10269_vm1 = vcmask 64512   ;;  %v10060_v27 = vlaneseq }
  0x14   : > { %6320 = vmatprep.subr.mxu0 %v180_v0  ;;  %p166_p10 = scmp.lt.s32.totalorder %s6213_s28, 7  ;;  %v177_v3 = vld [vmem:[%s10058_s2 + $0x10] sm:$0xff]  ;;  %v176_v4 = vld [vmem:[%s10058_s2 + $0x8] sm:$0xff]  ;;  %v175_v6 = vld [vmem:[%s10058_s2] sm:$0xff]  ;;  %v10061_v26 = vmov 0.0   ;;  %vm355_vm2 = vcmask 58368  }
  0x15   : > { %6321 = vmatpush3.msra.mxu0 %v180_v0  ;;  %v6739_v10 = vld [vmem:[%s10057_s1] ss:$0 sm:$0xff]  ;;  %361 = vst.msk [vmem:[#allocation2 + $0x30] sm:$0xff] %vm10269_vm1, %v10061_v26  ;;  %363 = vst.msk [vmem:[#allocation2 + $0x40] sm:$0xff] %vm10269_vm1, %v10061_v26  ;;  %v6794_v33 = vshrl.u32 %v10060_v27, 7  ;;  %v495_v43 = vld [vmem:[%s10058_s2 + $0x30] sm:$0xff] }
  0x16   : > { %6322 = vmatprep.subr.mxu0 %v179_v1  ;;  %s10852_s28 = smov (!%p166_p10, %s6213_s28), 7  ;;  %365 = vst.msk [vmem:[#allocation2 + $0x50] sm:$0xff] %vm10269_vm1, %v10061_v26  ;;  %367 = vst.msk [vmem:[#allocation2 + $0x60] sm:$0xff] %vm10269_vm1, %v10061_v26  ;;  %s6621_s27 = smov 112   ;;  %vm734_vm3 = vcmask 1042432   ;;  %vm811_vm4 = vcmask 1041408  }
  0x17   : > { %6323 = vmatpush3.msra.mxu0 %v179_v1  ;;  %s6214_s6 = sshll.u32 %s10852_s28, 3  ;;  %381 = vst.msk [vmem:[#allocation2 + $0xd0] sm:$0xff] %vm10269_vm1, %v10061_v26  ;;  %383 = vst.msk [vmem:[#allocation2 + $0xe0] sm:$0xff] %vm10269_vm1, %v10061_v26  ;;  %v6824_v42 = vsub.s32 1, %v6794_v33  ;;  %v6857_v46 = vsub.s32 0, %v6794_v33  ;;  %v6864_v49 = vsub.s32 2, %v6794_v33 }
  0x18   : > { %6324 = vmatprep.subr.mxu0 %v178_v2  ;;  %s169_s11 = scalar_lea.vmem %s10056_s0, %s6214_s6  ;;  %385 = vst.msk [vmem:[#allocation2 + $0xf0] sm:$0xff] %vm10269_vm1, %v10061_v26  ;;  %387 = vst.msk [vmem:[#allocation2 + $0x100] sm:$0xff] %vm10269_vm1, %v10061_v26  ;;  %v6875_v55 = vsub.s32 3, %v6794_v33  ;;  %v6883_v60 = vsub.s32 4, %v6794_v33  ;;  %v6886_v61 = vsub.s32 5, %v6794_v33  ;;  %s6622_s28 = smov 120  }
  0x19   : > { %6325 = vmatpush3.msra.mxu0 %v178_v2  ;;  %v171_v5 = vld [vmem:[%s169_s11] sm:$0xff]  ;;  %v172_v7 = vld [vmem:[%s169_s11 + $0x8] sm:$0xff]  ;;  %v173_v8 = vld [vmem:[%s169_s11 + $0x10] sm:$0xff]  ;;  %354 = vst.msk [vmem:[#allocation2] sm:$0xff] %vm10269_vm1, %v10061_v26  ;;  %v6861_v48 = vrot.slane %v495_v43, %v6824_v42  ;;  %v6868_v52 = vrot.slane %v495_v43, %v6857_v46  ;;  %v6872_v54 = vrot.slane %v495_v43, %v6864_v49  ;;  %s6623_s29 = smov 104   ;;  %vm446_vm5 = vcmask 60416  }
  0x1a   : > { %6326 = vmatprep.subr.mxu0 %v177_v3  ;;  %6332 = vmatprep.mubr.msk.f32.mxu0 %vm188_vm0, %v171_v5  ;;  %v174_v9 = vld [vmem:[%s169_s11 + $0x18] sm:$0xff]  ;;  %357 = vst.msk [vmem:[#allocation2 + $0x10] sm:$0xff] %vm10269_vm1, %v10061_v26  ;;  %359 = vst.msk [vmem:[#allocation2 + $0x20] sm:$0xff] %vm10269_vm1, %v10061_v26  ;;  %v6880_v59 = vrot.slane %v495_v43, %v6875_v55  ;;  %v6890_v1 = vrot.slane %v495_v43, %v6883_v60  ;;  %s6624_s26 = smov 96   ;;  %s6625_s4 = smov 88   ;;  %vm6629_vm6 = vmmov 0  }
  0x1b   : > { %6327 = vmatpush3.msra.mxu0 %v177_v3  ;;  %369 = vst.msk [vmem:[#allocation2 + $0x70] sm:$0xff] %vm10269_vm1, %v10061_v26  ;;  %371 = vst.msk [vmem:[#allocation2 + $0x80] sm:$0xff] %vm10269_vm1, %v10061_v26  ;;  %v6893_v2 = vrot.slane %v495_v43, %v6886_v61  ;;  %v6896_v3 = vsub.s32 6, %v6794_v33  ;;  %s6628_s9 = smov 80   ;;  %vm3354_vm10 = vcmask 261120   ;;  %vm3435_vm12 = vcmask 254976  }
  0x1c   : > { %6328 = vmatprep.subr.mxu0 %v176_v4  ;;  %373 = vst.msk [vmem:[#allocation2 + $0x90] sm:$0xff] %vm10269_vm1, %v10061_v26  ;;  %375 = vst.msk [vmem:[#allocation2 + $0xa0] sm:$0xff] %vm10269_vm1, %v10061_v26  ;;  %vm3444_vm15 = vcmask 15360   ;;  %s6630_s8 = smov 48   ;;  %s6260_s24 = sshll.u32 %s6683_s16, 7 }
  0x1d   : > { %6329 = vmatpush3.msra.mxu0 %v176_v4  ;;  %377 = vst.msk [vmem:[#allocation2 + $0xb0] sm:$0xff] %vm10269_vm1, %v10061_v26  ;;  %379 = vst.msk [vmem:[#allocation2 + $0xc0] sm:$0xff] %vm10269_vm1, %v10061_v26  ;;  %s6147_s6 = scalar_lea.hbm %s10059_s3, %s6260_s24  ;;  %s6641_s16 = smov [#allocation4]  }
  0x1e   : > { %6330 = vmatprep.subr.mxu0 %v175_v6  ;;  %389 = vst.msk [vmem:[#allocation2 + $0x110] sm:$0xff] %vm10269_vm1, %v10061_v26  ;;  %391 = vst.msk [vmem:[#allocation2 + $0x120] sm:$0xff] %vm10269_vm1, %v10061_v26 }
  0x1f   : > { %6331 = vmatpush3.msra.mxu0 %v175_v6  ;;  %393 = vst.msk [vmem:[#allocation2 + $0x130] sm:$0xff] %vm10269_vm1, %v10061_v26  ;;  %10329 = vst [vmem:[#allocation9_spill] sm:$0xff] %v6794_v33 }
  0x20   : > { %6333 = vmatmul.mubr.msk.f32.vlgmr.msra.gmra.mxu0 %vm188_vm0, %v172_v7  ;;  %356 = vst.msk [vmem:[#allocation2 + $0x8] sm:$0x3] %vm355_vm2, %v10061_v26  ;;  %358 = vst.msk [vmem:[#allocation2 + $0x18] sm:$0x3] %vm355_vm2, %v10061_v26  ;;  %v455_v50 = vld [vmem:[#allocation2] sm:$0xff] }
  0x21   : > { %6335 = vmatprep.mubr.msk.f32.mxu0 %vm188_vm0, %v173_v8  ;;  %360 = vst.msk [vmem:[#allocation2 + $0x28] sm:$0x3] %vm355_vm2, %v10061_v26  ;;  %362 = vst.msk [vmem:[#allocation2 + $0x38] sm:$0x3] %vm355_vm2, %v10061_v26  ;;  %v526_v53 = vmul.f32 %v6861_v48, %v455_v50  ;;  %v506_v56 = vmul.f32 %v6868_v52, %v455_v50  ;;  %v570_v58 = vmul.f32 %v6872_v54, %v455_v50 }
  0x22   : > { %364 = vst.msk [vmem:[#allocation2 + $0x48] sm:$0x3] %vm355_vm2, %v10061_v26  ;;  %366 = vst.msk [vmem:[#allocation2 + $0x58] sm:$0x3] %vm355_vm2, %v10061_v26  ;;  %v614_v0 = vmul.f32 %v6880_v59, %v455_v50  ;;  %v658_v7 = vmul.f32 %v6890_v1, %v455_v50  ;;  %v702_v8 = vmul.f32 %v6893_v2, %v455_v50 }
  0x23   : > { %368 = vst.msk [vmem:[#allocation2 + $0x68] sm:$0x3] %vm355_vm2, %v10061_v26  ;;  %370 = vst.msk [vmem:[#allocation2 + $0x78] sm:$0x3] %vm355_vm2, %v10061_v26  ;;  %v542_v57 = vrot.slane %v526_v53, 1  ;;  %v586_v63 = vrot.slane %v570_v58, 2 }
  0x24   : > { %6336 = vmatmul.mubr.msk.f32.gmra.mxu0 %vm188_vm0, %v174_v9  ;;  %10332 = vst [vmem:[#allocation12_spill] sm:$0xff] %v6824_v42  ;;  %372 = vst.msk [vmem:[#allocation2 + $0x88] sm:$0x3] %vm355_vm2, %v10061_v26  ;;  %v630_v6 = vrot.slane %v614_v0, 3 }
  0x25   : > { %374 = vst.msk [vmem:[#allocation2 + $0x98] sm:$0x3] %vm355_vm2, %v10061_v26  ;;  %376 = vst.msk [vmem:[#allocation2 + $0xa8] sm:$0x3] %vm355_vm2, %v10061_v26  ;;  %v558_v62 = vadd.f32 %v542_v57, %v506_v56 }
  0x26   : > { %378 = vst.msk [vmem:[#allocation2 + $0xb8] sm:$0x3] %vm355_vm2, %v10061_v26  ;;  %380 = vst.msk [vmem:[#allocation2 + $0xc8] sm:$0x3] %vm355_vm2, %v10061_v26 }
  0x27   : > { %382 = vst.msk [vmem:[#allocation2 + $0xd8] sm:$0x3] %vm355_vm2, %v10061_v26  ;;  %384 = vst.msk [vmem:[#allocation2 + $0xe8] sm:$0x3] %vm355_vm2, %v10061_v26  ;;  %v456_v4 = vld [vmem:[#allocation2 + $0x8] sm:$0x3]  ;;  %v602_v5 = vadd.f32 %v586_v63, %v558_v62 }
  0x28   : > { %386 = vst.msk [vmem:[#allocation2 + $0xf8] sm:$0x3] %vm355_vm2, %v10061_v26  ;;  %388 = vst.msk [vmem:[#allocation2 + $0x108] sm:$0x3] %vm355_vm2, %v10061_v26  ;;  %v703_v9 = vmul.f32 %v6893_v2, %v456_v4  ;;  %v7068_v27 = vld [vmem:[#allocation2 + $0x38] sm:$0x3] }
  0x29   : > { %390 = vst.msk [vmem:[#allocation2 + $0x118] sm:$0x3] %vm355_vm2, %v10061_v26  ;;  %392 = vst.msk [vmem:[#allocation2 + $0x128] sm:$0x3] %vm355_vm2, %v10061_v26 }
  0x2a   : > { %394 = vst.msk [vmem:[#allocation2 + $0x138] sm:$0x3] %vm355_vm2, %v10061_v26  ;;  %10333 = vst [vmem:[#allocation13_spill] sm:$0xff] %v6857_v46 }
  0x2b   : > { %10334 = vst [vmem:[#allocation14_spill] sm:$0xff] %v6861_v48  ;;  %10335 = vst [vmem:[#allocation15_spill] sm:$0xff] %v6864_v49 }
  0x2c   : > { %10336 = vst [vmem:[#allocation16_spill] sm:$0xff] %v6868_v52  ;;  %10337 = vst [vmem:[#allocation17_spill] sm:$0xff] %v6872_v54 }
  0x2d   : > { %10338 = vst [vmem:[#allocation18_spill] sm:$0xff] %v6875_v55  ;;  %10339 = vst [vmem:[#allocation19_spill] sm:$0xff] %v6880_v59 }
  0x2e   : > { %10340 = vst [vmem:[#allocation20_spill] sm:$0xff] %v6883_v60  ;;  %10341 = vst [vmem:[#allocation21_spill] sm:$0xff] %v6886_v61 }
  0x2f   : > { %10342 = vst [vmem:[#allocation22_spill] sm:$0xff] %v6890_v1  ;;  %10343 = vst [vmem:[#allocation23_spill] sm:$0xff] %v6896_v3 }
  0xe0   : > { %v6334_v11 = vpop.f32.mrf.mxu0 }
  0xe1   : > { %v273_v12 = vadd.f32 %v6334_v11, %v6739_v10  ;;  %v6902_v11 = vrot.slane %v495_v43, %v6896_v3 }
  0xe2   : > { %v267_v13 = vpop.f32.mrf.mxu0 }
  0xe3   : > { %v268_v14 = vadd.f32 %v6739_v10, %v267_v13  ;;  %v290_v15 = vsel %vm10269_vm1, %v273_v12, 0.0  ;;  %10344 = vst [vmem:[#allocation24_spill] sm:$0xff] %v6902_v11  ;;  %v674_v13 = vrot.slane %v658_v7, 4 }
  0xe4   : > { %291 = vadd.xlane.f32.xlu1 %v290_v15  ;;  %v6337_v16 = vpop.f32.mrf.mxu0  ;;  %v736_v15 = vrot.slane %v703_v9, 5 }
  0xe5   : > { %v283_v17 = vadd.f32 %v6337_v16, %v6739_v10  ;;  %v287_v18 = vsel %vm10269_vm1, %v268_v14, 0.0  ;;  %v779_v16 = vmul.f32 %v6902_v11, %v455_v50 }
  0xe6   : > { %v277_v19 = vpop.f32.mrf.mxu0  ;;  %288 = vadd.xlane.f32.xlu0 %v287_v18  ;;  %v6908_v18 = vld [vmem:[#allocation2 + $0x10] sm:$0xff] }
  0xe7   : > { %v278_v20 = vadd.f32 %v6739_v10, %v277_v19  ;;  %v296_v21 = vsel %vm10269_vm1, %v283_v17, 0.0  ;;  %v6915_v19 = vcombine.high %v6739_v10, %v6739_v10  ;;  %v615_v50 = vmul.f32 %v6880_v59, %v6908_v18 }
  0xe8   : > { %297 = vadd.xlane.f32.xlu1 %v296_v21  ;;  %v6918_v21 = vsub.s32 7, %v6794_v33  ;;  %v659_v63 = vmul.f32 %v6890_v1, %v6908_v18 }
  0xe9   : > { %v293_v22 = vsel %vm10269_vm1, %v278_v20, 0.0  ;;  %10345 = vst [vmem:[#allocation25_spill] sm:$0xff] %v6915_v19  ;;  %v631_v62 = vrot.slane %v615_v50, 3  ;;  %v6986_v50 = vld [vmem:[#allocation2 + $0x20] sm:$0xff] }
  0xea   : > { %294 = vadd.xlane.f32.xlu0 %v293_v22  ;;  %10346 = vst [vmem:[#allocation26_spill] sm:$0xff] %v6918_v21  ;;  %v6923_v22 = vld [vmem:[%s10058_s2 + $0x38] sm:$0xff] }
  0xeb   : > { %v6958_v0 = vrot.slane %v6923_v22, %v6864_v49 }
  0xed   : > { %10350 = vst [vmem:[#allocation30_spill] sm:$0xff] %v6958_v0 }
 0x16d   : > { %v292_v23 = vpop.xlane.xlu1 %291 }
 0x16e   : > { %v301_v24 = vmul.f32 0.125, %v292_v23  ;;  %v527_v23 = vmul.f32 %v6861_v48, %v6908_v18 }
 0x16f   : > { %v289_v25 = vpop.xlane.xlu0 %288 }
 0x170   : > { %v300_v28 = vmul.f32 0.125, %v289_v25  ;;  %v6789_v29 = vsub.f32 %v273_v12, %v301_v24  ;;  %v646_v12 = vadd.f32 %v630_v6, %v602_v5  ;;  %v812_v25 = vrot.slane %v779_v16, 6 }
 0x171   : > { %v298_v30 = vpop.xlane.xlu1 %297 }
 0x172   : > { %10327 = vst [vmem:[#allocation7_spill] sm:$0xff] %v6789_v29  ;;  %v6791_v31 = vsub.f32 %v268_v14, %v300_v28  ;;  %v303_v32 = vmul.f32 0.125, %v298_v30  ;;  %v309_v38 = vmul.f32 %v6789_v29, %v6789_v29  ;;  %v735_v14 = vrot.slane %v702_v8, 5 }
 0x173   : > { %v295_v34 = vpop.xlane.xlu0 %294  ;;  %v6931_v30 = vrot.slane %v495_v43, %v6918_v21  ;;  %v6965_v8 = vrot.slane %v6923_v22, %v6875_v55 }
 0x174   : > { %10328 = vst [vmem:[#allocation8_spill] sm:$0xff] %v6791_v31  ;;  %v6796_v35 = vsub.f32 %v283_v17, %v303_v32  ;;  %v302_v36 = vmul.f32 0.125, %v295_v34  ;;  %v308_v37 = vmul.f32 %v6791_v31, %v6791_v31  ;;  %v315_v47 = vsel %vm10269_vm1, %v309_v38, 0.0 }
 0x175   : > { %v780_v17 = vmul.f32 %v6902_v11, %v456_v4  ;;  %v737_v24 = vsel %vm734_vm3, %v735_v14, %v736_v15  ;;  %10347 = vst [vmem:[#allocation27_spill] sm:$0xff] %v6931_v30  ;;  %v6935_v32 = vrot.slane %v6923_v22, %v6857_v46  ;;  %v507_v34 = vmul.f32 %v6868_v52, %v6908_v18 }
 0x176   : > { %10330 = vst [vmem:[#allocation10_spill] sm:$0xff] %v6796_v35  ;;  %v6802_v39 = vsub.f32 %v278_v20, %v302_v36  ;;  %v312_v40 = vsel %vm10269_vm1, %v308_v37, 0.0  ;;  %v311_v41 = vmul.f32 %v6796_v35, %v6796_v35  ;;  %v690_v20 = vadd.f32 %v674_v13, %v646_v12  ;;  %10351 = vst [vmem:[#allocation31_spill] sm:$0xff] %v6965_v8 }
 0x177   : > { %313 = vadd.xlane.f32.xlu0 %v312_v40  ;;  %v813_v28 = vrot.slane %v780_v17, 6  ;;  %10348 = vst [vmem:[#allocation28_spill] sm:$0xff] %v6935_v32  ;;  %v543_v36 = vrot.slane %v527_v23, 1  ;;  %v571_v37 = vmul.f32 %v6872_v54, %v6908_v18  ;;  %v876_v43 = vmul.f32 %v6935_v32, %v6908_v18 }
 0x178   : > { %10331 = vst [vmem:[#allocation11_spill] sm:$0xff] %v6802_v39  ;;  %v321_v44 = vsel %vm10269_vm1, %v311_v41, 0.0  ;;  %v310_v45 = vmul.f32 %v6802_v39, %v6802_v39  ;;  %v856_v41 = vmul.f32 %v6931_v30, %v6908_v18  ;;  %v704_v4 = vmul.f32 %v6893_v2, %v6908_v18 }
 0x179   : > { %322 = vadd.xlane.f32.xlu1 %v321_v44  ;;  %v814_v38 = vsel %vm811_vm4, %v812_v25, %v813_v28  ;;  %v6948_v44 = vrot.slane %v6923_v22, %v6824_v42  ;;  %v892_v56 = vrot.slane %v876_v43, 1  ;;  %v675_v12 = vrot.slane %v659_v63, 4 }
 0x17a   : > { %v318_v51 = vsel %vm10269_vm1, %v310_v45, 0.0  ;;  %v559_v45 = vadd.f32 %v543_v36, %v507_v34  ;;  %v964_v13 = vmul.f32 %v6958_v0, %v6908_v18  ;;  %v6971_v14 = vrot.slane %v6923_v22, %v6883_v60 }
 0x17b   : > { %316 = vadd.xlane.f32.xlu0 %v315_v47  ;;  %10349 = vst [vmem:[#allocation29_spill] sm:$0xff] %v6948_v44  ;;  %v587_v47 = vrot.slane %v571_v37, 2  ;;  %v920_v57 = vmul.f32 %v6948_v44, %v6908_v18  ;;  %v738_v15 = vrot.slane %v704_v4, 5  ;;  %v781_v17 = vmul.f32 %v6902_v11, %v6908_v18 }
 0x17c   : > { %10352 = vst [vmem:[#allocation32_spill] sm:$0xff] %v6971_v14  ;;  %v980_v28 = vrot.slane %v964_v13, 3  ;;  %v857_v63 = vmul.f32 %v6931_v30, %v6986_v50  ;;  %v877_v4 = vmul.f32 %v6935_v32, %v6986_v50 }
 0x17d   : > { %319 = vadd.xlane.f32.xlu1 %v318_v51  ;;  %v458_v51 = vld [vmem:[#allocation2 + $0x18] sm:$0x3]  ;;  %v603_v58 = vadd.f32 %v587_v47, %v559_v45  ;;  %v936_v7 = vrot.slane %v920_v57, 2  ;;  %v815_v37 = vrot.slane %v781_v17, 6 }
 0x17e   : > { %v705_v5 = vmul.f32 %v6893_v2, %v458_v51  ;;  %v1053_v34 = vmul.f32 %v6971_v14, %v458_v51 }
 0x17f   : > { %v647_v9 = vadd.f32 %v631_v62, %v603_v58 }
 0x180   : > { %v739_v16 = vrot.slane %v705_v5, 5 }
 0x181   : > { %v691_v25 = vadd.f32 %v675_v12, %v647_v9  ;;  %v6999_v12 = vrot.slane %v6923_v22, %v6896_v3 }
 0x182   : > { %v740_v36 = vsel %vm734_vm3, %v738_v15, %v739_v16  ;;  %v893_v15 = vrot.slane %v877_v4, 1  ;;  %v921_v16 = vmul.f32 %v6948_v44, %v6986_v50 }
 0x18e   : > { %347 = vrot.lane.b32.xlu1 %v6739_v10, %s6621_s27 }
 0x191   : > { %340 = vrot.lane.b32.xlu0 %v6739_v10, %s6622_s28 }
 0x192   : > { %2947 = vrot.lane.b32.xlu1 %v6739_v10, %s6623_s29  ;;  %v767_v10 = vadd.f32 %v737_v24, %v690_v20  ;;  %v782_v20 = vmul.f32 %v6902_v11, %v458_v51  ;;  %v1008_v24 = vmul.f32 %v6965_v8, %v6908_v18 }
 0x194   : > { %v844_v40 = vadd.f32 %v814_v38, %v767_v10  ;;  %v1052_v10 = vmul.f32 %v6971_v14, %v6908_v18  ;;  %v816_v38 = vrot.slane %v782_v20, 6  ;;  %v1024_v45 = vrot.slane %v1008_v24, 4 }
 0x196   : > { %2949 = vrot.lane.b32.xlu1 %v6915_v19, %s6623_s29  ;;  %v864_v53 = vadd.f32 %v856_v41, %v844_v40  ;;  %v6984_v40 = vrot.slane %v6923_v22, %v6886_v61  ;;  %v768_v41 = vadd.f32 %v740_v36, %v691_v25  ;;  %v1084_v47 = vrot.slane %v1052_v10, 5  ;;  %v7023_v36 = vld [vmem:[#allocation2 + $0x28] sm:$0x3] }
 0x197   : > { %v965_v10 = vmul.f32 %v6958_v0, %v6986_v50  ;;  %v707_v4 = vmul.f32 %v6893_v2, %v7023_v36 }
 0x198   : > { %v908_v6 = vadd.f32 %v892_v56, %v864_v53  ;;  %10353 = vst [vmem:[#allocation33_spill] sm:$0xff] %v6984_v40  ;;  %v817_v53 = vsel %vm811_vm4, %v815_v37, %v816_v38  ;;  %v1085_v56 = vrot.slane %v1053_v34, 5  ;;  %v1128_v57 = vmul.f32 %v6984_v40, %v6908_v18 }
 0x199   : > { %v1129_v58 = vmul.f32 %v6984_v40, %v458_v51  ;;  %v845_v62 = vadd.f32 %v817_v53, %v768_v41  ;;  %v7003_v18 = vrot.slane %v6923_v22, %v6918_v21  ;;  %v7008_v51 = vld [vmem:[%s10058_s2 + $0x40] sm:$0xff]  ;;  %v1009_v53 = vmul.f32 %v6965_v8, %v6986_v50 }
 0x19a   : > { %v952_v23 = vadd.f32 %v936_v7, %v908_v6  ;;  %v1086_v6 = vsel %vm734_vm3, %v1084_v47, %v1085_v56  ;;  %v1160_v7 = vrot.slane %v1128_v57, 6  ;;  %v7019_v24 = vrot.slane %v7008_v51, %v6857_v46 }
 0x19b   : > { %v1161_v9 = vrot.slane %v1129_v58, 6  ;;  %v865_v13 = vadd.f32 %v857_v63, %v845_v62  ;;  %v1224_v22 = vmul.f32 %v7003_v18, %v6986_v50  ;;  %v7029_v41 = vrot.slane %v7008_v51, %v6824_v42 }
 0x19c   : > { %v996_v43 = vadd.f32 %v980_v28, %v952_v23  ;;  %v1204_v23 = vmul.f32 %v6999_v12, %v6986_v50  ;;  %v937_v28 = vrot.slane %v921_v16, 2  ;;  %v1268_v38 = vmul.f32 %v7019_v24, %v6986_v50 }
 0x19d   : > { %v1162_v20 = vsel %vm811_vm4, %v1160_v7, %v1161_v9  ;;  %v909_v25 = vadd.f32 %v893_v15, %v865_v13  ;;  %v1240_v37 = vrot.slane %v1224_v22, 1  ;;  %v981_v47 = vrot.slane %v965_v10, 3 }
 0x19e   : > { %v1040_v5 = vadd.f32 %v1024_v45, %v996_v43  ;;  %v7031_v43 = vld [vmem:[#allocation2 + $0xa0] sm:$0xff]  ;;  %v1054_v57 = vmul.f32 %v6971_v14, %v6986_v50  ;;  %v1055_v58 = vmul.f32 %v6971_v14, %v7023_v36  ;;  %v706_v63 = vmul.f32 %v6893_v2, %v6986_v50 }
 0x19f   : > { %v953_v45 = vadd.f32 %v937_v28, %v909_v25  ;;  %v530_v62 = vmul.f32 %v6861_v48, %v7031_v43  ;;  %v1025_v7 = vrot.slane %v1009_v53, 4  ;;  %v1284_v13 = vrot.slane %v1268_v38, 2 }
 0x1a0   : > { %v1116_v17 = vadd.f32 %v1086_v6, %v1040_v5  ;;  %v1312_v5 = vmul.f32 %v7029_v41, %v6986_v50  ;;  %v1087_v15 = vrot.slane %v1054_v57, 5  ;;  %v1088_v16 = vrot.slane %v1055_v58, 5  ;;  %v7064_v58 = vld [vmem:[#allocation2 + $0xb0] sm:$0xff] }
 0x1a1   : > { %v997_v6 = vadd.f32 %v981_v47, %v953_v45  ;;  %v546_v22 = vrot.slane %v530_v62, 1  ;;  %v574_v25 = vmul.f32 %v6872_v54, %v7031_v43  ;;  %v741_v28 = vrot.slane %v706_v63, 5 }
 0x1a2   : > { %v1192_v34 = vadd.f32 %v1162_v20, %v1116_v17  ;;  %v1130_v17 = vmul.f32 %v6984_v40, %v6986_v50  ;;  %v1131_v20 = vmul.f32 %v6984_v40, %v7023_v36  ;;  %v742_v10 = vrot.slane %v707_v4, 5 }
 0x1a3   : > { %v1089_v45 = vsel %vm734_vm3, %v1087_v15, %v1088_v16  ;;  %v7062_v57 = vrot.slane %v7008_v51, %v6864_v49  ;;  %v590_v63 = vrot.slane %v574_v25, 2  ;;  %v618_v4 = vmul.f32 %v6880_v59, %v7031_v43 }
 0x1a4   : > { %v1212_v56 = vadd.f32 %v1204_v23, %v1192_v34  ;;  %v510_v23 = vmul.f32 %v6868_v52, %v7031_v43  ;;  %v7057_v34 = vmul.f32 %v6902_v11, %v7023_v36  ;;  %v1163_v47 = vrot.slane %v1130_v17, 6 }
 0x1a5   : > { %v1164_v53 = vrot.slane %v1131_v20, 6  ;;  %v531_v17 = vmul.f32 %v6861_v48, %v7064_v58  ;;  %v1356_v20 = vmul.f32 %v7062_v57, %v6986_v50  ;;  %v662_v25 = vmul.f32 %v6890_v1, %v7031_v43 }
 0x1a6   : > { %v1256_v9 = vadd.f32 %v1240_v37, %v1212_v56  ;;  %10354 = vst [vmem:[#allocation34_spill] sm:$0xff] %v7057_v34  ;;  %v1041_v37 = vadd.f32 %v1025_v7, %v997_v6  ;;  %v1328_v56 = vrot.slane %v1312_v5, 3  ;;  %v562_v62 = vadd.f32 %v546_v22, %v510_v23 }
 0x1a7   : > { %v7071_v6 = vsel %vm734_vm3, %v741_v28, %v742_v10  ;;  %v7075_v5 = vrot.slane %v7008_v51, %v6875_v55  ;;  %v1165_v15 = vsel %vm811_vm4, %v1163_v47, %v1164_v53  ;;  %v634_v22 = vrot.slane %v618_v4, 3  ;;  %v7085_v28 = vld [vmem:[#allocation2 + $0x48] sm:$0x3] }
 0x1a8   : > { %v1300_v38 = vadd.f32 %v1284_v13, %v1256_v9  ;;  %10355 = vst [vmem:[#allocation35_spill] sm:$0xff] %v7071_v6  ;;  %v1117_v7 = vadd.f32 %v1089_v45, %v1041_v37  ;;  %v476_v9 = vld [vmem:[#allocation2 + $0xa8] sm:$0x3]  ;;  %v606_v23 = vadd.f32 %v590_v63, %v562_v62  ;;  %v7089_v10 = vmul.f32 %v6893_v2, %v7068_v27 }
 0x1a9   : > { %10356 = vst [vmem:[#allocation36_spill] sm:$0xff] %v7075_v5  ;;  %v7093_v37 = vrot.slane %v7008_v51, %v6883_v60  ;;  %v711_v45 = vmul.f32 %v6893_v2, %v476_v9  ;;  %v7100_v47 = vmul.f32 %v6902_v11, %v7068_v27  ;;  %v1401_v62 = vmul.f32 %v7075_v5, %v7023_v36 }
 0x1aa   : > { %v1344_v16 = vadd.f32 %v1328_v56, %v1300_v38  ;;  %10357 = vst [vmem:[#allocation37_spill] sm:$0xff] %v7089_v10  ;;  %v710_v38 = vmul.f32 %v6893_v2, %v7031_v43  ;;  %v7102_v53 = vadd.f32 %v1165_v15, %v1117_v7  ;;  %v1400_v56 = vmul.f32 %v7075_v5, %v6986_v50 }
 0x1ab   : > { %10358 = vst [vmem:[#allocation38_spill] sm:$0xff] %v7100_v47  ;;  %v7110_v63 = vmul.f32 %v7075_v5, %v7068_v27  ;;  %v511_v4 = vmul.f32 %v6868_v52, %v7064_v58  ;;  %v547_v26 = vrot.slane %v531_v17, 1  ;;  %v575_v13 = vmul.f32 %v6872_v54, %v7064_v58  ;;  %v7147_v47 = vld [vmem:[%s10058_s2 + $0x48] sm:$0xff] }
 0x1ac   : > { %10359 = vst [vmem:[#allocation39_spill] sm:$0xff] %v7102_v53  ;;  %v7118_v7 = vmul.f32 %v6971_v14, %v7085_v28  ;;  %v1372_v15 = vrot.slane %v1356_v20, 4  ;;  %v650_v33 = vadd.f32 %v634_v22, %v606_v23  ;;  %v678_v19 = vrot.slane %v662_v25, 4 }
 0x1ad   : > { %10360 = vst [vmem:[#allocation40_spill] sm:$0xff] %v7110_v63  ;;  %v747_v53 = vrot.slane %v710_v38, 5  ;;  %v748_v34 = vrot.slane %v711_v45, 5  ;;  %v787_v39 = vmul.f32 %v6902_v11, %v7031_v43  ;;  %v788_v6 = vmul.f32 %v6902_v11, %v476_v9  ;;  %v7136_v38 = vld [vmem:[#allocation2 + $0xb8] sm:$0x3] }
 0x1ae   : > { %10361 = vst [vmem:[#allocation41_spill] sm:$0xff] %v7118_v7  ;;  %v1432_v29 = vrot.slane %v1400_v56, 5  ;;  %v1433_v35 = vrot.slane %v1401_v62, 5  ;;  %v1476_v17 = vmul.f32 %v7093_v37, %v6986_v50  ;;  %v1477_v31 = vmul.f32 %v7093_v37, %v7023_v36  ;;  %v7138_v56 = vld [vmem:[#allocation2 + $0x58] sm:$0x3] }
 0x1af   : > { %v563_v20 = vadd.f32 %v547_v26, %v511_v4  ;;  %v591_v23 = vrot.slane %v575_v13, 2  ;;  %v619_v22 = vmul.f32 %v6880_v59, %v7064_v58  ;;  %v7134_v9 = vmul.f32 %v6984_v40, %v7085_v28  ;;  %10363 = vst [vmem:[#allocation43_spill] sm:$0xff] %v7138_v56 }
 0x1b0   : > { %v694_v45 = vadd.f32 %v678_v19, %v650_v33  ;;  %v1388_v36 = vadd.f32 %v1372_v15, %v1344_v16  ;;  %v749_v26 = vsel %vm734_vm3, %v747_v53, %v748_v34  ;;  %v824_v13 = vrot.slane %v787_v39, 6 }
 0x1b1   : > { %10362 = vst [vmem:[#allocation42_spill] sm:$0xff] %v7134_v9  ;;  %v825_v62 = vrot.slane %v788_v6, 6  ;;  %v1434_v4 = vsel %vm734_vm3, %v1432_v29, %v1433_v35  ;;  %v1508_v54 = vrot.slane %v1476_v17, 6  ;;  %v1509_v25 = vrot.slane %v1477_v31, 6 }
 0x1b2   : > { %v663_v43 = vmul.f32 %v6890_v1, %v7064_v58  ;;  %v607_v33 = vadd.f32 %v591_v23, %v563_v20  ;;  %v635_v19 = vrot.slane %v619_v22, 3  ;;  %v712_v16 = vmul.f32 %v6893_v2, %v7064_v58 }
 0x1b3   : > { %v713_v39 = vmul.f32 %v6893_v2, %v7136_v38  ;;  %v7156_v31 = vmul.f32 %v7075_v5, %v7138_v56  ;;  %v771_v34 = vadd.f32 %v749_v26, %v694_v45  ;;  %v7161_v6 = vmul.f32 %v7093_v37, %v7068_v27 }
 0x1b4   : > { %v7165_v53 = vmul.f32 %v7093_v37, %v7138_v56  ;;  %v7169_v15 = vrot.slane %v7008_v51, %v6886_v61  ;;  %v826_v17 = vsel %vm811_vm4, %v824_v13, %v825_v62  ;;  %v1464_v20 = vadd.f32 %v1434_v4, %v1388_v36 }
 0x1b5   : > { %10364 = vst [vmem:[#allocation44_spill] sm:$0xff] %v7156_v31  ;;  %10365 = vst [vmem:[#allocation45_spill] sm:$0xff] %v7161_v6  ;;  %v1510_v23 = vsel %vm811_vm4, %v1508_v54, %v1509_v25  ;;  %v7175_v22 = vrot.slane %v7147_v47, %v6864_v49  ;;  %v679_v45 = vrot.slane %v663_v43, 4  ;;  %v651_v26 = vadd.f32 %v635_v19, %v607_v33 }
 0x1b6   : > { %10366 = vst [vmem:[#allocation46_spill] sm:$0xff] %v7165_v53  ;;  %10367 = vst [vmem:[#allocation47_spill] sm:$0xff] %v7169_v15  ;;  %v750_v29 = vrot.slane %v712_v16, 5  ;;  %v751_v35 = vrot.slane %v713_v39, 5  ;;  %v789_v9 = vmul.f32 %v6902_v11, %v7064_v58  ;;  %v790_v7 = vmul.f32 %v6902_v11, %v7136_v38  ;;  %v7206_v39 = vld [vmem:[#allocation2 + $0x68] sm:$0x3] }
 0x1b7   : > { %10368 = vst [vmem:[#allocation48_spill] sm:$0xff] %v7175_v22  ;;  %v848_v10 = vadd.f32 %v826_v17, %v771_v34  ;;  %v860_v36 = vmul.f32 %v6931_v30, %v7064_v58  ;;  %v880_v54 = vmul.f32 %v6935_v32, %v7064_v58  ;;  %v7190_v62 = vrot.slane %v7147_v47, %v6875_v55  ;;  %v7211_v34 = vld [vmem:[%s10058_s2 + $0x50] sm:$0xff] }
 0x1b8   : > { %v7192_v4 = vadd.f32 %v1510_v23, %v1464_v20  ;;  %v7196_v33 = vrot.slane %v7008_v51, %v6896_v3  ;;  %v7200_v19 = vrot.slane %v7008_v51, %v6918_v21  ;;  %v7204_v16 = vrot.slane %v7147_v47, %v6857_v46 }
 0x1b9   : > { %10369 = vst [vmem:[#allocation49_spill] sm:$0xff] %v7190_v62  ;;  %v7215_v17 = vmul.f32 %v7175_v22, %v7068_v27  ;;  %v695_v20 = vadd.f32 %v679_v45, %v651_v26  ;;  %v752_v23 = vsel %vm734_vm3, %v750_v29, %v751_v35  ;;  %v827_v51 = vrot.slane %v789_v9, 6 }
 0x1ba   : > { %10370 = vst [vmem:[#allocation50_spill] sm:$0xff] %v7192_v4  ;;  %10371 = vst [vmem:[#allocation51_spill] sm:$0xff] %v7196_v33  ;;  %v828_v13 = vrot.slane %v790_v7, 6  ;;  %v868_v25 = vadd.f32 %v860_v36, %v848_v10  ;;  %v896_v43 = vrot.slane %v880_v54, 1  ;;  %v924_v53 = vmul.f32 %v6948_v44, %v7064_v58 }
 0x1bb   : > { %10372 = vst [vmem:[#allocation52_spill] sm:$0xff] %v7200_v19  ;;  %10373 = vst [vmem:[#allocation53_spill] sm:$0xff] %v7204_v16  ;;  %v7222_v31 = vrot.slane %v7147_v47, %v6824_v42  ;;  %v7226_v6 = vmul.f32 %v7175_v22, %v7085_v28  ;;  %v7230_v45 = vmul.f32 %v7190_v62, %v7068_v27 }
 0x1bc   : > { %10374 = vst [vmem:[#allocation54_spill] sm:$0xff] %v7215_v17  ;;  %v7234_v7 = vrot.slane %v7147_v47, %v6883_v60  ;;  %v7238_v10 = vmul.f32 %v7175_v22, %v7206_v39  ;;  %v7242_v9 = vmul.f32 %v7190_v62, %v7085_v28  ;;  %v7246_v29 = vrot.slane %v7147_v47, %v6886_v61 }
 0x1bd   : > { %10375 = vst [vmem:[#allocation55_spill] sm:$0xff] %v7222_v31  ;;  %10376 = vst [vmem:[#allocation56_spill] sm:$0xff] %v7226_v6  ;;  %v7250_v35 = vrot.slane %v7211_v34, %v6824_v42  ;;  %v7255_v36 = vmul.f32 %v7190_v62, %v7206_v39  ;;  %v7259_v54 = vrot.slane %v7211_v34, %v6864_v49  ;;  %v7261_v31 = vld [vmem:[#allocation2 + $0xc0] sm:$0xff]  ;;  %v940_v16 = vrot.slane %v924_v53, 2 }
 0x1be   : > { %10377 = vst [vmem:[#allocation57_spill] sm:$0xff] %v7230_v45  ;;  %10378 = vst [vmem:[#allocation58_spill] sm:$0xff] %v7234_v7  ;;  %v772_v7 = vadd.f32 %v752_v23, %v695_v20  ;;  %v829_v63 = vsel %vm811_vm4, %v827_v51, %v828_v13  ;;  %v968_v19 = vmul.f32 %v6958_v0, %v7064_v58  ;;  %v500_v13 = vld [vmem:[%s10058_s2 + $0x58] sm:$0xff] }
 0x1bf   : > { %10379 = vst [vmem:[#allocation59_spill] sm:$0xff] %v7238_v10  ;;  %10380 = vst [vmem:[#allocation60_spill] sm:$0xff] %v7242_v9  ;;  %v7270_v4 = vrot.slane %v7147_v47, %v6896_v3  ;;  %v7274_v20 = vrot.slane %v7147_v47, %v6918_v21  ;;  %v7280_v53 = vrot.slane %v7211_v34, %v6857_v46 }
 0x1c0   : > { %10381 = vst [vmem:[#allocation61_spill] sm:$0xff] %v7246_v29  ;;  %10382 = vst [vmem:[#allocation62_spill] sm:$0xff] %v7250_v35  ;;  %v912_v29 = vadd.f32 %v896_v43, %v868_v25  ;;  %v7284_v43 = vmul.f32 %v7250_v35, %v7085_v28  ;;  %v849_v51 = vadd.f32 %v829_v63, %v772_v7  ;;  %v984_v17 = vrot.slane %v968_v19, 3 }
 0x1c1   : > { %10383 = vst [vmem:[#allocation63_spill] sm:$0xff] %v7255_v36  ;;  %10384 = vst [vmem:[#allocation64_spill] sm:$0xff] %v7259_v54  ;;  %v861_v26 = vmul.f32 %v6931_v30, %v7261_v31  ;;  %v881_v47 = vmul.f32 %v6935_v32, %v7261_v31  ;;  %v7293_v25 = vmul.f32 %v7259_v54, %v7085_v28 }
 0x1c2   : > { %10385 = vst [vmem:[#allocation65_spill] sm:$0xff] %v7270_v4  ;;  %10386 = vst [vmem:[#allocation66_spill] sm:$0xff] %v7274_v20  ;;  %v956_v23 = vadd.f32 %v940_v16, %v912_v29  ;;  %v1012_v9 = vmul.f32 %v6965_v8, %v7064_v58  ;;  %v7302_v63 = vrot.slane %v7211_v34, %v6875_v55 }
 0x1c3   : > { %10387 = vst [vmem:[#allocation67_spill] sm:$0xff] %v7280_v53  ;;  %10388 = vst [vmem:[#allocation68_spill] sm:$0xff] %v7284_v43  ;;  %v7306_v7 = vrot.slane %v7211_v34, %v6883_v60  ;;  %v1060_v36 = vmul.f32 %v6971_v14, %v7064_v58  ;;  %v1061_v19 = vmul.f32 %v6971_v14, %v7136_v38  ;;  %v897_v53 = vrot.slane %v881_v47, 1 }
 0x1c4   : > { %10389 = vst [vmem:[#allocation69_spill] sm:$0xff] %v7293_v25  ;;  %10390 = vst [vmem:[#allocation70_spill] sm:$0xff] %v7302_v63  ;;  %v7314_v16 = vmul.f32 %v7250_v35, %v7138_v56  ;;  %v7319_v32 = vrot.slane %v7211_v34, %v6886_v61  ;;  %v7323_v30 = vrot.slane %v7211_v34, %v6896_v3 }
 0x1c5   : > { %10391 = vst [vmem:[#allocation71_spill] sm:$0xff] %v7306_v7  ;;  %v7327_v7 = vmul.f32 %v7259_v54, %v7138_v56  ;;  %v869_v63 = vadd.f32 %v861_v26, %v849_v51  ;;  %v925_v20 = vmul.f32 %v6948_v44, %v7261_v31  ;;  %v7333_v29 = vrot.slane %v500_v13, %v6857_v46 }
 0x1c6   : > { %10392 = vst [vmem:[#allocation72_spill] sm:$0xff] %v7314_v16  ;;  %10393 = vst [vmem:[#allocation73_spill] sm:$0xff] %v7319_v32  ;;  %v1000_v43 = vadd.f32 %v984_v17, %v956_v23  ;;  %v1028_v32 = vrot.slane %v1012_v9, 4  ;;  %v1096_v4 = vrot.slane %v1060_v36, 5  ;;  %v1097_v6 = vrot.slane %v1061_v19, 5 }
 0x1c7   : > { %10394 = vst [vmem:[#allocation74_spill] sm:$0xff] %v7323_v30  ;;  %10395 = vst [vmem:[#allocation75_spill] sm:$0xff] %v7327_v7  ;;  %v1136_v30 = vmul.f32 %v6984_v40, %v7064_v58  ;;  %v1137_v45 = vmul.f32 %v6984_v40, %v7136_v38  ;;  %v7342_v51 = vrot.slane %v7211_v34, %v6918_v21  ;;  %v941_v58 = vrot.slane %v925_v20, 2 }
 0x1c8   : > { %10396 = vst [vmem:[#allocation76_spill] sm:$0xff] %v7333_v29  ;;  %v7346_v47 = vmul.f32 %v7333_v29, %v7138_v56  ;;  %v7349_v17 = vrot.slane %v500_v13, %v6824_v42  ;;  %v913_v36 = vadd.f32 %v897_v53, %v869_v63  ;;  %v969_v38 = vmul.f32 %v6958_v0, %v7261_v31  ;;  %v7368_v53 = vld [vmem:[#allocation2 + $0xc8] sm:$0x3] }
 0x1c9   : > { %10397 = vst [vmem:[#allocation77_spill] sm:$0xff] %v7342_v51  ;;  %v7359_v34 = vrot.slane %v500_v13, %v6864_v49  ;;  %v7362_v19 = vrot.slane %v500_v13, %v6875_v55  ;;  %v1044_v10 = vadd.f32 %v1028_v32, %v1000_v43  ;;  %v7366_v26 = vmul.f32 %v7333_v29, %v7206_v39  ;;  %v7380_v43 = vld [vmem:[#allocation2 + $0x78] sm:$0x3] }
 0x1ca   : > { %10398 = vst [vmem:[#allocation78_spill] sm:$0xff] %v7346_v47  ;;  %10399 = vst [vmem:[#allocation79_spill] sm:$0xff] %v7349_v17  ;;  %v7356_v23 = vmul.f32 %v7349_v17, %v7138_v56  ;;  %v1098_v20 = vsel %vm734_vm3, %v1096_v4, %v1097_v6  ;;  %v1172_v63 = vrot.slane %v1136_v30, 6  ;;  %v1173_v9 = vrot.slane %v1137_v45, 6 }
 0x1cb   : > { %10401 = vst [vmem:[#allocation81_spill] sm:$0xff] %v7359_v34  ;;  %10402 = vst [vmem:[#allocation82_spill] sm:$0xff] %v7362_v19  ;;  %v7373_v46 = vrot.slane %v500_v13, %v6883_v60  ;;  %v7376_v49 = vrot.slane %v500_v13, %v6886_v61  ;;  %v1013_v32 = vmul.f32 %v6965_v8, %v7261_v31  ;;  %v985_v6 = vrot.slane %v969_v38, 3  ;;  %v7394_v60 = vld [vmem:[#allocation2 + $0x70] sm:$0xff] }
 0x1cc   : > { %10400 = vst [vmem:[#allocation80_spill] sm:$0xff] %v7356_v23  ;;  %10403 = vst [vmem:[#allocation83_spill] sm:$0xff] %v7366_v26  ;;  %v7383_v55 = vrot.slane %v500_v13, %v6896_v3  ;;  %v957_v0 = vadd.f32 %v941_v58, %v913_v36  ;;  %v1062_v30 = vmul.f32 %v6971_v14, %v7261_v31 }
 0x1cd   : > { %10404 = vst [vmem:[#allocation84_spill] sm:$0xff] %v7373_v46  ;;  %10405 = vst [vmem:[#allocation85_spill] sm:$0xff] %v7376_v49  ;;  %v7389_v4 = vmul.f32 %v7349_v17, %v7206_v39  ;;  %v1063_v42 = vmul.f32 %v6971_v14, %v7368_v53  ;;  %v1120_v61 = vadd.f32 %v1098_v20, %v1044_v10  ;;  %v1029_v20 = vrot.slane %v1013_v32, 4 }
 0x1ce   : > { %10406 = vst [vmem:[#allocation86_spill] sm:$0xff] %v7383_v55  ;;  %v7398_v36 = vrot.slane %v500_v13, %v6918_v21  ;;  %v714_v58 = vmul.f32 %v6893_v2, %v7261_v31  ;;  %v1174_v38 = vsel %vm811_vm4, %v1172_v63, %v1173_v9  ;;  %v2102_v8 = vmul.f32 %v7250_v35, %v7394_v60  ;;  %v7416_v9 = vld [vmem:[%s10058_s2 + $0x60] ss:$0 sm:$0xff] }
 0x1cf   : > { %10407 = vst [vmem:[#allocation87_spill] sm:$0xff] %v7389_v4  ;;  %v2103_v45 = vmul.f32 %v7250_v35, %v7380_v43  ;;  %v715_v10 = vmul.f32 %v6893_v2, %v7368_v53  ;;  %v1001_v44 = vadd.f32 %v985_v6, %v957_v0  ;;  %v1099_v3 = vrot.slane %v1062_v30, 5  ;;  %v7441_v4 = vld [vmem:[#allocation2 + $0xe8] sm:$0x3] }
 0x1d0   : > { %10408 = vst [vmem:[#allocation88_spill] sm:$0xff] %v7398_v36  ;;  %v1138_v13 = vmul.f32 %v6984_v40, %v7261_v31  ;;  %v1139_v21 = vmul.f32 %v6984_v40, %v7368_v53  ;;  %v1100_v63 = vrot.slane %v1063_v42, 5  ;;  %v1196_v23 = vadd.f32 %v1174_v38, %v1120_v61  ;;  %v7431_v61 = vld [vmem:[#allocation2 + $0xd8] sm:$0x3] }
 0x1d1   : > { %v1208_v26 = vmul.f32 %v6999_v12, %v7261_v31  ;;  %v1228_v0 = vmul.f32 %v7003_v18, %v7261_v31  ;;  %v7425_v6 = vmul.f32 %v7398_v36, %v7206_v39  ;;  %v7429_v30 = vmul.f32 %v7416_v9, %v7206_v39 }
 0x1d2   : > { %v753_v47 = vrot.slane %v714_v58, 5  ;;  %v2137_v51 = vrot.slane %v2102_v8, 5  ;;  %v2138_v42 = vrot.slane %v2103_v45, 5  ;;  %v754_v38 = vrot.slane %v715_v10, 5 }
 0x1d3   : > { %10409 = vst [vmem:[#allocation89_spill] sm:$0xff] %v7425_v6  ;;  %10410 = vst [vmem:[#allocation90_spill] sm:$0xff] %v7429_v30  ;;  %v7435_v7 = vmul.f32 %v6902_v11, %v7368_v53  ;;  %v7439_v32 = vmul.f32 %v7259_v54, %v7380_v43  ;;  %v1045_v25 = vadd.f32 %v1029_v20, %v1001_v44  ;;  %v1175_v16 = vrot.slane %v1138_v13, 6  ;;  %v7471_v13 = vld [vmem:[#allocation2 + $0xf8] sm:$0x3] }
 0x1d4   : > { %v1176_v39 = vrot.slane %v1139_v21, 6  ;;  %v1101_v58 = vsel %vm734_vm3, %v1099_v3, %v1100_v63  ;;  %v1216_v8 = vadd.f32 %v1208_v26, %v1196_v23  ;;  %v1244_v45 = vrot.slane %v1228_v0, 1 }
 0x1d5   : > { %10411 = vst [vmem:[#allocation91_spill] sm:$0xff] %v7435_v7  ;;  %10412 = vst [vmem:[#allocation92_spill] sm:$0xff] %v7439_v32  ;;  %v1272_v10 = vmul.f32 %v7019_v24, %v7261_v31  ;;  %v7450_v15 = vmul.f32 %v6893_v2, %v7431_v61  ;;  %v7454_v44 = vmul.f32 %v6902_v11, %v7431_v61 }
 0x1d6   : > { %v7457_v21 = vsel %vm734_vm3, %v753_v47, %v754_v38  ;;  %v7462_v26 = vmul.f32 %v6971_v14, %v7441_v4  ;;  %v7466_v23 = vmul.f32 %v6984_v40, %v7441_v4  ;;  %v7469_v20 = vsel %vm734_vm3, %v2137_v51, %v2138_v42 }
 0x1d7   : > { %10413 = vst [vmem:[#allocation93_spill] sm:$0xff] %v7450_v15  ;;  %10414 = vst [vmem:[#allocation94_spill] sm:$0xff] %v7454_v44  ;;  %v1121_v63 = vadd.f32 %v1101_v58, %v1045_v25  ;;  %v1177_v0 = vsel %vm811_vm4, %v1175_v16, %v1176_v39  ;;  %v1316_v47 = vmul.f32 %v7029_v41, %v7261_v31  ;;  %v1288_v3 = vrot.slane %v1272_v10, 2 }
 0x1d8   : > { %10415 = vst [vmem:[#allocation95_spill] sm:$0xff] %v7457_v21  ;;  %10416 = vst [vmem:[#allocation96_spill] sm:$0xff] %v7462_v26  ;;  %v1260_v38 = vadd.f32 %v1244_v45, %v1216_v8  ;;  %v1360_v33 = vmul.f32 %v7062_v57, %v7261_v31  ;;  %v1408_v56 = vmul.f32 %v7075_v5, %v7261_v31 }
 0x1d9   : > { %10417 = vst [vmem:[#allocation97_spill] sm:$0xff] %v7466_v23  ;;  %10418 = vst [vmem:[#allocation98_spill] sm:$0xff] %v7469_v20  ;;  %v1409_v25 = vmul.f32 %v7075_v5, %v7368_v53  ;;  %v7489_v58 = vmul.f32 %v7075_v5, %v7431_v61  ;;  %v7493_v8 = vmul.f32 %v7075_v5, %v7471_v13  ;;  %v1332_v21 = vrot.slane %v1316_v47, 3 }
 0x1da   : > { %v7497_v10 = vmul.f32 %v7359_v34, %v7394_v60  ;;  %v7499_v42 = vadd.f32 %v1177_v0, %v1121_v63  ;;  %v528_v16 = vmul.f32 %v6861_v48, %v6986_v50  ;;  %v1304_v51 = vadd.f32 %v1288_v3, %v1260_v38 }
 0x1db   : > { %10419 = vst [vmem:[#allocation99_spill] sm:$0xff] %v7489_v58  ;;  %10420 = vst [vmem:[#allocation100_spill] sm:$0xff] %v7493_v8  ;;  %v1376_v23 = vrot.slane %v1360_v33, 4  ;;  %v1444_v26 = vrot.slane %v1408_v56, 5  ;;  %v7505_v7 = vmul.f32 %v7362_v19, %v7394_v60  ;;  %v1445_v20 = vrot.slane %v1409_v25, 5 }
 0x1dc   : > { %10421 = vst [vmem:[#allocation101_spill] sm:$0xff] %v7497_v10  ;;  %v1484_v32 = vmul.f32 %v7093_v37, %v7261_v31  ;;  %v1485_v63 = vmul.f32 %v7093_v37, %v7368_v53  ;;  %v7515_v56 = vmul.f32 %v7093_v37, %v7431_v61  ;;  %v508_v38 = vmul.f32 %v6868_v52, %v6986_v50 }
 0x1dd   : > { %10422 = vst [vmem:[#allocation102_spill] sm:$0xff] %v7505_v7  ;;  %v544_v25 = vrot.slane %v528_v16, 1  ;;  %v7524_v3 = vmul.f32 %v7373_v46, %v7394_v60  ;;  %v1446_v8 = vsel %vm734_vm3, %v1444_v26, %v1445_v20  ;;  %v2794_v26 = vmul.f32 %v7398_v36, %v7394_v60  ;;  %v10505_v7 = vld [vmem:[#allocation68_spill] sm:$0xff] }
 0x1de   : > { %v1520_v58 = vrot.slane %v1484_v32, 6  ;;  %v1521_v6 = vrot.slane %v1485_v63, 6  ;;  %v7536_v32 = vmul.f32 %v7383_v55, %v7394_v60  ;;  %v2795_v20 = vmul.f32 %v7398_v36, %v7380_v43 }
 0x1df   : > { %10424 = vst [vmem:[#allocation103_spill] sm:$0xff] %v7524_v3  ;;  %v7556_v63 = vmul.f32 %v7190_v62, %v7431_v61 }
 0x1e0   : > { %10426 = vst [vmem:[#allocation105_spill] sm:$0xff] %v7536_v32 }
 0x1e1   : > { %10429 = vst [vmem:[#allocation108_spill] sm:$0xff] %v7556_v63 }
 0x200   : > { %v314_v45 = vpop.xlane.xlu0 %313 }
 0x201   : > { %v324_v39 = vmul.f32 0.125, %v314_v45  ;;  %v10423_v45 = vld [vmem:[#allocation17_spill] sm:$0xff] }
 0x202   : > { %v323_v44 = vpop.xlane.xlu1 %322  ;;  %v572_v15 = vmul.f32 %v10423_v45, %v6986_v50 }
 0x203   : > { %v328_v0 = vadd.f32 1e-06, %v324_v39  ;;  %v327_v47 = vmul.f32 0.125, %v323_v44  ;;  %v1348_v44 = vadd.f32 %v1332_v21, %v1304_v51  ;;  %v616_v21 = vmul.f32 %v6880_v59, %v6986_v50 }
 0x204   : > { %v317_v33 = vpop.xlane.xlu0 %316 }
 0x205   : > { %6495 = vrsqrt.f32 %v328_v0  ;;  %v331_v53 = vadd.f32 1e-06, %v327_v47  ;;  %v325_v39 = vmul.f32 0.125, %v317_v33  ;;  %v560_v0 = vadd.f32 %v544_v25, %v508_v38 }
 0x206   : > { %v320_v10 = vpop.xlane.xlu1 %319  ;;  %v588_v47 = vrot.slane %v572_v15, 2  ;;  %v7532_v33 = vmul.f32 %v7376_v49, %v7394_v60  ;;  %v1392_v48 = vadd.f32 %v1376_v23, %v1348_v44  ;;  %v7542_v15 = vmul.f32 %v7175_v22, %v7431_v61 }
 0x207   : > { %6497 = vrsqrt.f32 %v331_v53  ;;  %v329_v30 = vadd.f32 1e-06, %v325_v39  ;;  %v326_v16 = vmul.f32 0.125, %v320_v10  ;;  %v2870_v23 = vmul.f32 %v7416_v9, %v7394_v60 }
 0x208   : > { %10425 = vst [vmem:[#allocation104_spill] sm:$0xff] %v7532_v33  ;;  %10427 = vst [vmem:[#allocation106_spill] sm:$0xff] %v7542_v15  ;;  %v2871_v10 = vmul.f32 %v7416_v9, %v7380_v43  ;;  %v604_v38 = vadd.f32 %v588_v47, %v560_v0  ;;  %v632_v25 = vrot.slane %v616_v21, 3  ;;  %v660_v53 = vmul.f32 %v6890_v1, %v6986_v50 }
 0x209   : > { %6499 = vrsqrt.f32 %v329_v30  ;;  %v330_v51 = vadd.f32 1e-06, %v326_v16  ;;  %v7546_v30 = vmul.f32 %v7175_v22, %v7441_v4  ;;  %v1468_v44 = vadd.f32 %v1446_v8, %v1392_v48  ;;  %v488_v48 = vld [vmem:[#allocation2 + $0x108] sm:$0x3] }
 0x20a   : > { %v1522_v16 = vsel %vm811_vm4, %v1520_v58, %v1521_v6  ;;  %v7564_v60 = vmul.f32 %v7190_v62, %v7441_v4  ;;  %v2827_v21 = vrot.slane %v2794_v26, 5  ;;  %v2903_v45 = vrot.slane %v2870_v23, 6  ;;  %v341_v23 = vpop.permute.xlu0 %340  ;;  %v348_v59 = vpop.permute.xlu1 %347 }
 0x20b   : > { %10428 = vst [vmem:[#allocation107_spill] sm:$0xff] %v7546_v30  ;;  %6501 = vrsqrt.f32 %v330_v51  ;;  %v2828_v51 = vrot.slane %v2795_v20, 5  ;;  %v2904_v39 = vrot.slane %v2871_v10, 6  ;;  %v7573_v58 = vmul.f32 %v7250_v35, %v7471_v13 }
 0x20c   : > { %10430 = vst [vmem:[#allocation109_spill] sm:$0xff] %v7564_v60  ;;  %v648_v8 = vadd.f32 %v632_v25, %v604_v38  ;;  %v676_v1 = vrot.slane %v660_v53, 4  ;;  %v7575_v43 = vadd.f32 %v1522_v16, %v1468_v44  ;;  %v7580_v47 = vmul.f32 %v7250_v35, %v7441_v4  ;;  %v10437_v44 = vld [vmem:[#allocation8_spill] sm:$0xff]  ;;  %v10448_v60 = vld [vmem:[#allocation11_spill] sm:$0xff] }
 0x20d   : > { %10431 = vst [vmem:[#allocation110_spill] sm:$0xff] %v7573_v58  ;;  %v7584_v26 = vmul.f32 %v7259_v54, %v7471_v13  ;;  %v7588_v10 = vmul.f32 %v7259_v54, %v7441_v4  ;;  %v7592_v38 = vmul.f32 %v7333_v29, %v7471_v13  ;;  %v7595_v25 = vmul.f32 %v7333_v29, %v488_v48 }
 0x20e   : > { %10432 = vst [vmem:[#allocation111_spill] sm:$0xff] %v7580_v47  ;;  %v783_v53 = vmul.f32 %v6902_v11, %v6986_v50  ;;  %v7601_v61 = vsel %vm734_vm3, %v2827_v21, %v2828_v51  ;;  %v7604_v6 = vsel %vm811_vm4, %v2903_v45, %v2904_v39  ;;  %v7608_v4 = vmul.f32 %v7349_v17, %v7471_v13  ;;  %v10443_v21 = vld [vmem:[#allocation10_spill] sm:$0xff] }
 0x20f   : > { %10433 = vst [vmem:[#allocation112_spill] sm:$0xff] %v7584_v26  ;;  %10434 = vst [vmem:[#allocation113_spill] sm:$0xff] %v7588_v10  ;;  %v7612_v30 = vmul.f32 %v7349_v17, %v488_v48  ;;  %v7615_v50 = vmul.f32 %v7398_v36, %v488_v48  ;;  %v7630_v39 = vmul.f32 %v7416_v9, %v488_v48 }
 0x210   : > { %10435 = vst [vmem:[#allocation114_spill] sm:$0xff] %v7592_v38  ;;  %10436 = vst [vmem:[#allocation115_spill] sm:$0xff] %v7595_v25  ;;  %v818_v58 = vrot.slane %v783_v53, 6 }
 0x211   : > { %10438 = vst [vmem:[#allocation8_spill] sm:$0xff] %v7601_v61  ;;  %10439 = vst [vmem:[#allocation116_spill] sm:$0xff] %v7604_v6  ;;  %v10444_v61 = vld [vmem:[#allocation7_spill] sm:$0xff] }
 0x212   : > { %v6496_v20 = vpop.eup %6495  ;;  %10440 = vst [vmem:[#allocation117_spill] sm:$0xff] %v7608_v4  ;;  %10441 = vst [vmem:[#allocation118_spill] sm:$0xff] %v7612_v30  ;;  %v10447_v6 = vld [vmem:[#allocation35_spill] sm:$0xff] }
 0x213   : > { %v336_v16 = vmul.f32 %v6496_v20, %v10437_v44  ;;  %10442 = vst [vmem:[#allocation119_spill] sm:$0xff] %v7615_v50  ;;  %v692_v20 = vadd.f32 %v676_v1, %v648_v8  ;;  %v489_v1 = vld [vmem:[#allocation2 + $0x110] sm:$0xff]  ;;  %10446 = vst [vmem:[#allocation7_spill] sm:$0xff] %v7630_v39 }
 0x214   : > { %v6498_v0 = vpop.eup %6497  ;;  %v7644_v48 = vmul.f32 %v7373_v46, %v489_v1 }
 0x215   : > { %v339_v51 = vmul.f32 %v6498_v0, %v10443_v21  ;;  %v343_v44 = vmul.f32 %v341_v23, %v336_v16  ;;  %v769_v11 = vadd.f32 %v10447_v6, %v692_v20  ;;  %v10452_v21 = vld [vmem:[#allocation34_spill] sm:$0xff]  ;;  %v2802_v16 = vmul.f32 %v7398_v36, %v489_v1 }
 0x216   : > { %v6500_v13 = vpop.eup %6499  ;;  %10451 = vst [vmem:[#allocation120_spill] sm:$0xff] %v7644_v48  ;;  %v10453_v6 = vrot.slane %v10452_v21, 6 }
 0x217   : > { %v337_v63 = vmul.f32 %v6500_v13, %v10444_v61  ;;  %v346_v32 = vmul.f32 %v341_v23, %v339_v51  ;;  %v7624_v33 = vadd.f32 %v348_v59, %v343_v44  ;;  %v490_v44 = vld [vmem:[#allocation2 + $0x118] sm:$0x3]  ;;  %v7641_v13 = vmul.f32 %v7362_v19, %v489_v1 }
 0x218   : > { %v6502_v8 = vpop.eup %6501  ;;  %v2803_v21 = vmul.f32 %v7398_v36, %v490_v44 }
 0x219   : > { %10445 = vst [vmem:[#allocation10_spill] sm:$0xff] %v7624_v33  ;;  %v338_v53 = vmul.f32 %v6502_v8, %v10448_v60  ;;  %v344_v45 = vmul.f32 %v341_v23, %v337_v63  ;;  %v7634_v61 = vadd.f32 %v348_v59, %v346_v32  ;;  %v437_v51 = vcombine.high %v7624_v33, %v7624_v33 }
 0x21a   : > { %447 = vst.msk [vmem:[#allocation2 + $0x33] sm:$0xf] %vm446_vm5, %v7624_v33  ;;  %10450 = vst [vmem:[#allocation11_spill] sm:$0xff] %v7641_v13  ;;  %v820_v60 = vsel %vm811_vm4, %v818_v58, %v10453_v6  ;;  %v7651_v32 = vmul.f32 %v6971_v14, %v7068_v27  ;;  %v2878_v58 = vmul.f32 %v7416_v9, %v489_v1 }
 0x21b   : > { %10449 = vst [vmem:[#allocation35_spill] sm:$0xff] %v7634_v61  ;;  %v345_v63 = vmul.f32 %v341_v23, %v338_v53  ;;  %v7653_v20 = vadd.f32 %v348_v59, %v344_v45  ;;  %v440_v8 = vcombine.high %v7634_v61, %v7634_v61  ;;  %448 = vst.msk [vmem:[#allocation2 + $0x43] sm:$0xf] %vm446_vm5, %v437_v51 }
 0x21c   : > { %10454 = vst [vmem:[#allocation34_spill] sm:$0xff] %v7651_v32  ;;  %453 = vst.msk [vmem:[#allocation2 + $0xf3] sm:$0xf] %vm446_vm5, %v7634_v61  ;;  %v2879_v6 = vmul.f32 %v7416_v9, %v490_v44  ;;  %v7673_v51 = vmul.f32 %v7376_v49, %v489_v1  ;;  %v7675_v0 = vadd.f32 %v820_v60, %v769_v11  ;;  %v2839_v60 = vrot.slane %v2802_v16, 5 }
 0x21d   : > { %10455 = vst [vmem:[#allocation121_spill] sm:$0xff] %v7653_v20  ;;  %v7665_v45 = vadd.f32 %v348_v59, %v345_v63  ;;  %v438_v53 = vcombine.high %v7653_v20, %v7653_v20  ;;  %449 = vst.msk [vmem:[#allocation2 + $0x53] sm:$0xf] %vm446_vm5, %v7653_v20  ;;  %v7678_v61 = vmul.f32 %v7359_v34, %v489_v1  ;;  %v2840_v59 = vrot.slane %v2803_v21, 5 }
 0x21e   : > { %454 = vst.msk [vmem:[#allocation2 + $0x103] sm:$0xf] %vm446_vm5, %v440_v8  ;;  %10457 = vst [vmem:[#allocation123_spill] sm:$0xff] %v7673_v51  ;;  %v7684_v63 = vmul.f32 %v6984_v40, %v7068_v27  ;;  %v7692_v11 = vmul.f32 %v7383_v55, %v489_v1  ;;  %v2915_v33 = vrot.slane %v2878_v58, 6  ;;  %v2916_v27 = vrot.slane %v2879_v6, 6 }
 0x21f   : > { %10456 = vst [vmem:[#allocation122_spill] sm:$0xff] %v7665_v45  ;;  %10458 = vst [vmem:[#allocation124_spill] sm:$0xff] %v7675_v0  ;;  %v439_v23 = vcombine.high %v7665_v45, %v7665_v45  ;;  %v7699_v20 = vmul.f32 %v7075_v5, %v7085_v28  ;;  %v7725_v13 = vsel %vm734_vm3, %v2839_v60, %v2840_v59  ;;  %v10470_v59 = vld [vmem:[#allocation51_spill] sm:$0xff]  ;;  %v10474_v0 = vld [vmem:[#allocation52_spill] sm:$0xff] }
 0x220   : > { %10459 = vst [vmem:[#allocation125_spill] sm:$0xff] %v7678_v61  ;;  %10460 = vst [vmem:[#allocation126_spill] sm:$0xff] %v7684_v63  ;;  %v7728_v6 = vsel %vm811_vm4, %v2915_v33, %v2916_v27  ;;  %v7753_v33 = vmul.f32 %v6868_v52, %v7261_v31 }
 0x221   : > { %450 = vst.msk [vmem:[#allocation2 + $0x63] sm:$0xf] %vm446_vm5, %v438_v53  ;;  %451 = vst.msk [vmem:[#allocation2 + $0xd3] sm:$0xf] %vm446_vm5, %v7665_v45  ;;  %v7695_v44 = vld [vmem:[#allocation2 + $0x30] sm:$0xff] }
 0x222   : > { %10461 = vst [vmem:[#allocation127_spill] sm:$0xff] %v7692_v11  ;;  %10462 = vst [vmem:[#allocation128_spill] sm:$0xff] %v7695_v44  ;;  %v1205_v53 = vmul.f32 %v6999_v12, %v7695_v44  ;;  %v1225_v1 = vmul.f32 %v7003_v18, %v7695_v44  ;;  %v1269_v16 = vmul.f32 %v7019_v24, %v7695_v44  ;;  %v10465_v45 = vld [vmem:[#allocation39_spill] sm:$0xff] }
 0x223   : > { %10463 = vst [vmem:[#allocation129_spill] sm:$0xff] %v7699_v20  ;;  %452 = vst.msk [vmem:[#allocation2 + $0xe3] sm:$0xf] %vm446_vm5, %v439_v23  ;;  %v1402_v21 = vmul.f32 %v7075_v5, %v7695_v44  ;;  %v1478_v58 = vmul.f32 %v7093_v37, %v7695_v44  ;;  %v7716_v23 = vmul.f32 %v7093_v37, %v7085_v28  ;;  %v10471_v28 = vld [vmem:[#allocation50_spill] sm:$0xff]  ;;  %v7745_v20 = vld [vmem:[#allocation2 + $0x40] sm:$0xff] }
 0x224   : > { %v1213_v32 = vadd.f32 %v1205_v53, %v10465_v45  ;;  %v1241_v40 = vrot.slane %v1225_v1, 1  ;;  %v1313_v48 = vmul.f32 %v7029_v41, %v7695_v44  ;;  %v708_v51 = vmul.f32 %v6893_v2, %v7695_v44  ;;  %10466 = vst [vmem:[#allocation39_spill] sm:$0xff] %v7725_v13  ;;  %10467 = vst [vmem:[#allocation131_spill] sm:$0xff] %v7728_v6  ;;  %v10468_v53 = vld [vmem:[#allocation47_spill] sm:$0xff] }
 0x225   : > { %10464 = vst [vmem:[#allocation130_spill] sm:$0xff] %v7716_v23  ;;  %v1285_v61 = vrot.slane %v1269_v16, 2  ;;  %v1357_v45 = vmul.f32 %v7062_v57, %v7695_v44  ;;  %v1552_v1 = vmul.f32 %v10468_v53, %v7695_v44  ;;  %v7735_v8 = vld [vmem:[#allocation2 + $0x50] sm:$0xff]  ;;  %v1435_v11 = vrot.slane %v1402_v21, 5  ;;  %10476 = vst [vmem:[#allocation50_spill] sm:$0xff] %v7753_v33  ;;  %v10480_v23 = vld [vmem:[#allocation45_spill] sm:$0xff] }
 0x226   : > { %v1257_v63 = vadd.f32 %v1241_v40, %v1213_v32  ;;  %10469 = vst [vmem:[#allocation132_spill] sm:$0xff] %v7735_v8  ;;  %v1511_v39 = vrot.slane %v1478_v58, 6  ;;  %v1572_v60 = vmul.f32 %v10470_v59, %v7695_v44  ;;  %v1329_v6 = vrot.slane %v1313_v48, 3  ;;  %v10472_v32 = vld [vmem:[#allocation43_spill] sm:$0xff]  ;;  %v10475_v58 = vld [vmem:[#allocation53_spill] sm:$0xff] }
 0x227   : > { %v1560_v40 = vadd.f32 %v1552_v1, %v10471_v28  ;;  %v7743_v16 = vmul.f32 %v7175_v22, %v10472_v32  ;;  %v1616_v21 = vmul.f32 %v10474_v0, %v7695_v44  ;;  %v1660_v50 = vmul.f32 %v10475_v58, %v7695_v44  ;;  %v10478_v32 = vld [vmem:[#allocation40_spill] sm:$0xff] }
 0x228   : > { %v1301_v27 = vadd.f32 %v1285_v61, %v1257_v63  ;;  %v1588_v13 = vrot.slane %v1572_v60, 1  ;;  %v744_v61 = vrot.slane %v708_v51, 5  ;;  %v1373_v63 = vrot.slane %v1357_v45, 4  ;;  %v7757_v1 = vld [vmem:[#allocation2 + $0x60] sm:$0xff]  ;;  %v10482_v45 = vld [vmem:[#allocation55_spill] sm:$0xff] }
 0x229   : > { %10473 = vst [vmem:[#allocation51_spill] sm:$0xff] %v7743_v16  ;;  %v1406_v28 = vmul.f32 %v7075_v5, %v7735_v8  ;;  %10477 = vst [vmem:[#allocation43_spill] sm:$0xff] %v7757_v1  ;;  %v10479_v60 = vrot.slane %v10478_v32, 5  ;;  %v10481_v30 = vrot.slane %v10480_v23, 6  ;;  %v1632_v38 = vrot.slane %v1616_v21, 2 }
 0x22a   : > { %v1345_v48 = vadd.f32 %v1329_v6, %v1301_v27  ;;  %v1604_v25 = vadd.f32 %v1588_v13, %v1560_v40  ;;  %v1553_v51 = vmul.f32 %v10468_v53, %v7745_v20  ;;  %v1573_v6 = vmul.f32 %v10470_v59, %v7745_v20 }
 0x22b   : > { %v1437_v16 = vsel %vm734_vm3, %v1435_v11, %v10479_v60  ;;  %v1513_v4 = vsel %vm811_vm4, %v1511_v39, %v10481_v30  ;;  %v1704_v27 = vmul.f32 %v10482_v45, %v7695_v44  ;;  %v1676_v32 = vrot.slane %v1660_v50, 3  ;;  %v10483_v60 = vld [vmem:[#allocation37_spill] sm:$0xff] }
 0x22c   : > { %v1389_v31 = vadd.f32 %v1373_v63, %v1345_v48  ;;  %v1648_v33 = vadd.f32 %v1632_v38, %v1604_v25  ;;  %v1748_v11 = vmul.f32 %v7175_v22, %v7695_v44  ;;  %v1750_v30 = vmul.f32 %v7175_v22, %v7745_v20 }
 0x22d   : > { %v1441_v39 = vrot.slane %v1406_v28, 5  ;;  %v1754_v23 = vmul.f32 %v7175_v22, %v7757_v1  ;;  %v1824_v40 = vmul.f32 %v7190_v62, %v7695_v44  ;;  %v1617_v21 = vmul.f32 %v10474_v0, %v7745_v20 }
 0x22e   : > { %v1465_v13 = vadd.f32 %v1437_v16, %v1389_v31  ;;  %v1692_v48 = vadd.f32 %v1676_v32, %v1648_v33  ;;  %v1720_v38 = vrot.slane %v1704_v27, 4  ;;  %v1780_v25 = vrot.slane %v1748_v11, 5  ;;  %v10486_v33 = vld [vmem:[#allocation54_spill] sm:$0xff] }
 0x22f   : > { %v1661_v63 = vmul.f32 %v10475_v58, %v7745_v20  ;;  %v1705_v28 = vmul.f32 %v10482_v45, %v7745_v20  ;;  %v1856_v16 = vrot.slane %v1824_v40, 6  ;;  %v10484_v31 = vrot.slane %v10483_v60, 5 }
 0x230   : > { %v1541_v50 = vadd.f32 %v1513_v4, %v1465_v13  ;;  %v1589_v44 = vrot.slane %v1573_v6, 1  ;;  %v1736_v26 = vadd.f32 %v1720_v38, %v1692_v48  ;;  %v1783_v10 = vrot.slane %v1750_v30, 5  ;;  %v10488_v13 = vld [vmem:[#allocation44_spill] sm:$0xff]  ;;  %v10491_v6 = vld [vmem:[#allocation61_spill] sm:$0xff] }
 0x231   : > { %v7788_v52 = vsel %vm734_vm3, %v744_v61, %v10484_v31  ;;  %v10487_v27 = vrot.slane %v10486_v33, 5  ;;  %v1789_v32 = vrot.slane %v1754_v23, 5  ;;  %v1826_v11 = vmul.f32 %v7190_v62, %v7745_v20 }
 0x232   : > { %10485 = vst [vmem:[#allocation40_spill] sm:$0xff] %v7788_v52  ;;  %v1561_v47 = vadd.f32 %v1553_v51, %v1541_v50  ;;  %v10489_v15 = vrot.slane %v10488_v13, 5  ;;  %v1633_v60 = vrot.slane %v1617_v21, 2  ;;  %v1920_v48 = vmul.f32 %v10491_v6, %v7745_v20  ;;  %v10492_v50 = vld [vmem:[#allocation57_spill] sm:$0xff]  ;;  %v10503_v52 = vld [vmem:[#allocation60_spill] sm:$0xff] }
 0x233   : > { %v1782_v4 = vsel %vm734_vm3, %v1780_v25, %v10487_v27  ;;  %v1677_v51 = vrot.slane %v1661_v63, 3  ;;  %v1721_v38 = vrot.slane %v1705_v28, 4  ;;  %v10493_v31 = vrot.slane %v10492_v50, 6  ;;  %v10494_v25 = vld [vmem:[#allocation56_spill] sm:$0xff] }
 0x234   : > { %v7798_v40 = vsel %vm734_vm3, %v1441_v39, %v10489_v15  ;;  %v1812_v61 = vadd.f32 %v1782_v4, %v1736_v26  ;;  %v1605_v30 = vadd.f32 %v1589_v44, %v1561_v47  ;;  %v10495_v33 = vrot.slane %v10494_v25, 5  ;;  %v10496_v15 = vld [vmem:[#allocation58_spill] sm:$0xff]  ;;  %v10497_v26 = vld [vmem:[#allocation65_spill] sm:$0xff]  ;;  %v10502_v25 = vld [vmem:[#allocation67_spill] sm:$0xff] }
 0x235   : > { %10490 = vst [vmem:[#allocation45_spill] sm:$0xff] %v7798_v40  ;;  %v1858_v23 = vsel %vm811_vm4, %v1856_v16, %v10493_v31  ;;  %v1900_v39 = vmul.f32 %v10496_v15, %v7745_v20  ;;  %v1964_v21 = vmul.f32 %v10497_v26, %v7745_v20  ;;  %v10498_v40 = vld [vmem:[#allocation59_spill] sm:$0xff]  ;;  %v1859_v63 = vrot.slane %v1826_v11, 6 }
 0x236   : > { %v1785_v27 = vsel %vm734_vm3, %v1783_v10, %v10495_v33  ;;  %v1888_v13 = vadd.f32 %v1858_v23, %v1812_v61  ;;  %v1649_v4 = vadd.f32 %v1633_v60, %v1605_v30  ;;  %v10499_v47 = vrot.slane %v10498_v40, 5  ;;  %v10501_v10 = vld [vmem:[#allocation66_spill] sm:$0xff] }
 0x237   : > { %v1921_v28 = vmul.f32 %v10491_v6, %v7735_v8  ;;  %v1936_v50 = vrot.slane %v1920_v48, 1  ;;  %v2008_v61 = vmul.f32 %v10501_v10, %v7745_v20  ;;  %v2096_v31 = vmul.f32 %v7250_v35, %v7745_v20 }
 0x238   : > { %v7815_v44 = vsel %vm734_vm3, %v1789_v32, %v10499_v47  ;;  %v1908_v16 = vadd.f32 %v1900_v39, %v1888_v13  ;;  %v1693_v23 = vadd.f32 %v1677_v51, %v1649_v4  ;;  %v1965_v60 = vmul.f32 %v10497_v26, %v7735_v8 }
 0x239   : > { %10500 = vst [vmem:[#allocation37_spill] sm:$0xff] %v7815_v44  ;;  %v2098_v32 = vmul.f32 %v7250_v35, %v7735_v8  ;;  %v2172_v11 = vmul.f32 %v7259_v54, %v7745_v20  ;;  %v1980_v30 = vrot.slane %v1964_v21, 2  ;;  %v2009_v48 = vmul.f32 %v10501_v10, %v7735_v8 }
 0x23a   : > { %v1952_v40 = vadd.f32 %v1936_v50, %v1908_v16  ;;  %v2052_v33 = vmul.f32 %v10502_v25, %v7745_v20  ;;  %v1737_v13 = vadd.f32 %v1721_v38, %v1693_v23  ;;  %v2053_v51 = vmul.f32 %v10502_v25, %v7735_v8 }
 0x23b   : > { %v2128_v39 = vrot.slane %v2096_v31, 5  ;;  %v2174_v4 = vmul.f32 %v7259_v54, %v7735_v8  ;;  %v1901_v47 = vmul.f32 %v10496_v15, %v7735_v8  ;;  %v2024_v16 = vrot.slane %v2008_v61, 3 }
 0x23c   : > { %v1996_v44 = vadd.f32 %v1980_v30, %v1952_v40  ;;  %v2131_v21 = vrot.slane %v2098_v32, 5  ;;  %v1813_v50 = vadd.f32 %v1785_v27, %v1737_v13  ;;  %v10504_v35 = vrot.slane %v10503_v52, 6  ;;  %v10507_v32 = vld [vmem:[#allocation72_spill] sm:$0xff]  ;;  %v10515_v13 = vld [vmem:[#allocation73_spill] sm:$0xff] }
 0x23d   : > { %v1937_v26 = vrot.slane %v1921_v28, 1  ;;  %v2204_v38 = vrot.slane %v2172_v11, 6  ;;  %v1981_v23 = vrot.slane %v1965_v60, 2  ;;  %v2068_v25 = vrot.slane %v2052_v33, 4  ;;  %v10510_v60 = vld [vmem:[#allocation69_spill] sm:$0xff] }
 0x23e   : > { %v1861_v10 = vsel %vm811_vm4, %v1859_v63, %v10504_v35  ;;  %v2040_v6 = vadd.f32 %v2024_v16, %v1996_v44  ;;  %v2207_v31 = vrot.slane %v2174_v4, 6  ;;  %v2025_v3 = vrot.slane %v2009_v48, 3  ;;  %v10509_v35 = vld [vmem:[#allocation70_spill] sm:$0xff]  ;;  %v10513_v48 = vld [vmem:[#allocation75_spill] sm:$0xff] }
 0x23f   : > { %v1889_v62 = vadd.f32 %v1861_v10, %v1813_v50  ;;  %v2069_v54 = vrot.slane %v2053_v51, 4  ;;  %v10506_v22 = vrot.slane %v10505_v7, 5  ;;  %v10508_v27 = vrot.slane %v10507_v32, 5  ;;  %v10512_v7 = vld [vmem:[#allocation71_spill] sm:$0xff]  ;;  %v10516_v4 = vld [vmem:[#allocation74_spill] sm:$0xff] }
 0x240   : > { %v2084_v61 = vadd.f32 %v2068_v25, %v2040_v6  ;;  %v2248_v63 = vmul.f32 %v10509_v35, %v7735_v8  ;;  %v2249_v44 = vmul.f32 %v10509_v35, %v7757_v1  ;;  %v10511_v10 = vrot.slane %v10510_v60, 6 }
 0x241   : > { %v2130_v40 = vsel %vm734_vm3, %v2128_v39, %v10506_v22  ;;  %v2133_v52 = vsel %vm734_vm3, %v2131_v21, %v10508_v27  ;;  %v1909_v28 = vadd.f32 %v1901_v47, %v1889_v62  ;;  %v2268_v30 = vmul.f32 %v10512_v7, %v7735_v8 }
 0x242   : > { %v2206_v11 = vsel %vm811_vm4, %v2204_v38, %v10511_v10  ;;  %v7859_v22 = vmul.f32 %v10512_v7, %v7757_v1  ;;  %v2160_v6 = vadd.f32 %v2130_v40, %v2084_v61  ;;  %v10514_v25 = vrot.slane %v10513_v48, 6  ;;  %v10517_v38 = vld [vmem:[#allocation77_spill] sm:$0xff] }
 0x243   : > { %v2312_v51 = vmul.f32 %v10515_v13, %v7735_v8  ;;  %v7868_v62 = vmul.f32 %v10515_v13, %v7757_v1  ;;  %v1953_v39 = vadd.f32 %v1937_v26, %v1909_v28  ;;  %v2356_v47 = vmul.f32 %v10516_v4, %v7735_v8 }
 0x244   : > { %v2209_v33 = vsel %vm811_vm4, %v2207_v31, %v10514_v25  ;;  %v7874_v16 = vmul.f32 %v10516_v4, %v7757_v1  ;;  %v2444_v21 = vmul.f32 %v7333_v29, %v7735_v8  ;;  %v2236_v50 = vadd.f32 %v2206_v11, %v2160_v6 }
 0x245   : > { %v2400_v31 = vmul.f32 %v10517_v38, %v7735_v8  ;;  %v2446_v40 = vmul.f32 %v7333_v29, %v7757_v1  ;;  %v2520_v26 = vmul.f32 %v7349_v17, %v7735_v8  ;;  %v1997_v61 = vadd.f32 %v1981_v23, %v1953_v39 }
 0x246   : > { %v2284_v32 = vrot.slane %v2268_v30, 1  ;;  %v7886_v27 = vmul.f32 %v10517_v38, %v7757_v1  ;;  %v2522_v28 = vmul.f32 %v7349_v17, %v7757_v1  ;;  %v2256_v60 = vadd.f32 %v2248_v63, %v2236_v50 }
 0x247   : > { %v2285_v10 = vrot.slane %v7859_v22, 1  ;;  %v2328_v11 = vrot.slane %v2312_v51, 2  ;;  %v2329_v6 = vrot.slane %v7868_v62, 2  ;;  %v2041_v48 = vadd.f32 %v2025_v3, %v1997_v61  ;;  %v7896_v22 = vld [vmem:[#allocation2 + $0xd0] sm:$0xff] }
 0x248   : > { %v2372_v25 = vrot.slane %v2356_v47, 3  ;;  %v2373_v29 = vrot.slane %v7874_v16, 3  ;;  %v2476_v8 = vrot.slane %v2444_v21, 5  ;;  %v2300_v23 = vadd.f32 %v2284_v32, %v2256_v60  ;;  %v10518_v16 = vld [vmem:[#allocation78_spill] sm:$0xff]  ;;  %v10520_v61 = vld [vmem:[#allocation83_spill] sm:$0xff] }
 0x249   : > { %v2416_v30 = vrot.slane %v2400_v31, 4  ;;  %v2479_v39 = vrot.slane %v2446_v40, 5  ;;  %v2552_v4 = vrot.slane %v2520_v26, 6  ;;  %v2085_v38 = vadd.f32 %v2069_v54, %v2041_v48 }
 0x24a   : > { %v2417_v13 = vrot.slane %v7886_v27, 4  ;;  %v2555_v7 = vrot.slane %v2522_v28, 6  ;;  %v2616_v63 = vmul.f32 %v7362_v19, %v7757_v1  ;;  %v2344_v51 = vadd.f32 %v2328_v11, %v2300_v23  ;;  %v10522_v28 = vld [vmem:[#allocation80_spill] sm:$0xff] }
 0x24b   : > { %v2660_v3 = vmul.f32 %v7373_v46, %v7757_v1  ;;  %v7902_v62 = vmul.f32 %v7376_v49, %v7757_v1  ;;  %v7906_v47 = vmul.f32 %v7383_v55, %v7757_v1  ;;  %v2161_v54 = vadd.f32 %v2133_v52, %v2085_v38 }
 0x24c   : > { %v10519_v21 = vrot.slane %v10518_v16, 5  ;;  %v2596_v31 = vmul.f32 %v7359_v34, %v7757_v1  ;;  %v2792_v40 = vmul.f32 %v7398_v36, %v7757_v1  ;;  %v2388_v26 = vadd.f32 %v2372_v25, %v2344_v51 }
 0x24d   : > { %v10521_v32 = vrot.slane %v10520_v61, 5  ;;  %v10523_v60 = vrot.slane %v10522_v28, 6  ;;  %v2868_v52 = vmul.f32 %v7416_v9, %v7757_v1  ;;  %v2237_v38 = vadd.f32 %v2209_v33, %v2161_v54 }
 0x24e   : > { %v2478_v50 = vsel %vm734_vm3, %v2476_v8, %v10519_v21  ;;  %v10524_v8 = vld [vmem:[#allocation87_spill] sm:$0xff]  ;;  %v2632_v16 = vrot.slane %v2616_v63, 1  ;;  %v1209_v25 = vmul.f32 %v6999_v12, %v7896_v22  ;;  %v2432_v51 = vadd.f32 %v2416_v30, %v2388_v26 }
 0x24f   : > { %v2481_v27 = vsel %vm734_vm3, %v2479_v39, %v10521_v32  ;;  %v2554_v11 = vsel %vm811_vm4, %v2552_v4, %v10523_v60  ;;  %v10525_v48 = vrot.slane %v10524_v8, 6  ;;  %v2676_v21 = vrot.slane %v2660_v3, 2  ;;  %v7930_v32 = vld [vmem:[#allocation2 + $0xe0] sm:$0xff] }
 0x250   : > { %v2720_v39 = vrot.slane %v7902_v62, 3  ;;  %v2764_v61 = vrot.slane %v7906_v47, 4  ;;  %v2257_v4 = vadd.f32 %v2249_v44, %v2237_v38  ;;  %v2824_v28 = vrot.slane %v2792_v40, 5  ;;  %v10527_v60 = vld [vmem:[#allocation89_spill] sm:$0xff] }
 0x251   : > { %v2557_v23 = vsel %vm811_vm4, %v2555_v7, %v10525_v48  ;;  %v1217_v9 = vadd.f32 %v1209_v25, %v7499_v42  ;;  %v1229_v33 = vmul.f32 %v7003_v18, %v7896_v22  ;;  %v2508_v7 = vadd.f32 %v2478_v50, %v2432_v51  ;;  %v10529_v25 = vld [vmem:[#allocation90_spill] sm:$0xff] }
 0x252   : > { %v2900_v63 = vrot.slane %v2868_v52, 6  ;;  %v7937_v54 = vmul.f32 %v6971_v14, %v7745_v20  ;;  %v1273_v30 = vmul.f32 %v7019_v24, %v7896_v22  ;;  %v2301_v3 = vadd.f32 %v2285_v10, %v2257_v4 }
 0x253   : > { %v7943_v62 = vmul.f32 %v6893_v2, %v7896_v22  ;;  %v1245_v44 = vrot.slane %v1229_v33, 1  ;;  %v1317_v42 = vmul.f32 %v7029_v41, %v7896_v22  ;;  %v2584_v47 = vadd.f32 %v2554_v11, %v2508_v7 }
 0x254   : > { %v7949_v50 = vmul.f32 %v6971_v14, %v7930_v32  ;;  %v1361_v40 = vmul.f32 %v7062_v57, %v7896_v22  ;;  %v1410_v26 = vmul.f32 %v7075_v5, %v7896_v22  ;;  %v2345_v10 = vadd.f32 %v2329_v6, %v2301_v3 }
 0x255   : > { %v10528_v52 = vrot.slane %v10527_v60, 5  ;;  %v1261_v38 = vadd.f32 %v1245_v44, %v1217_v9  ;;  %v1289_v8 = vrot.slane %v1273_v30, 2  ;;  %v2604_v48 = vadd.f32 %v2596_v31, %v2584_v47 }
 0x256   : > { %10526 = vst [vmem:[#allocation54_spill] sm:$0xff] %v7949_v50  ;;  %v10530_v11 = vrot.slane %v10529_v25, 6  ;;  %v1093_v4 = vrot.slane %v7937_v54, 5  ;;  %v1486_v33 = vmul.f32 %v7093_v37, %v7896_v22  ;;  %v2389_v7 = vadd.f32 %v2373_v29, %v2345_v10 }
 0x257   : > { %v2826_v2 = vsel %vm734_vm3, %v2824_v28, %v10528_v52  ;;  %v1305_v1 = vadd.f32 %v1289_v8, %v1261_v38  ;;  %v1333_v5 = vrot.slane %v1317_v42, 3  ;;  %v1556_v6 = vmul.f32 %v10468_v53, %v7896_v22 }
 0x258   : > { %v2902_v51 = vsel %vm811_vm4, %v2900_v63, %v10530_v11  ;;  %v2648_v3 = vadd.f32 %v2632_v16, %v2604_v48  ;;  %v756_v28 = vrot.slane %v7943_v62, 5  ;;  %v1377_v9 = vrot.slane %v1361_v40, 4 }
 0x259   : > { %v1447_v31 = vrot.slane %v1410_v26, 5  ;;  %v2433_v30 = vadd.f32 %v2417_v13, %v2389_v7  ;;  %v1349_v44 = vadd.f32 %v1333_v5, %v1305_v1  ;;  %v1564_v63 = vadd.f32 %v1556_v6, %v7575_v43  ;;  %v10531_v1 = vld [vmem:[#allocation99_spill] sm:$0xff]  ;;  %v10534_v7 = vld [vmem:[#allocation101_spill] sm:$0xff] }
 0x25a   : > { %v1576_v54 = vmul.f32 %v10470_v59, %v7896_v22  ;;  %v2692_v47 = vadd.f32 %v2676_v21, %v2648_v3  ;;  %v1523_v60 = vrot.slane %v1486_v33, 6  ;;  %v1577_v29 = vmul.f32 %v10470_v59, %v7930_v32 }
 0x25b   : > { %v1620_v42 = vmul.f32 %v10474_v0, %v7896_v22  ;;  %v2509_v16 = vadd.f32 %v2481_v27, %v2433_v30  ;;  %v1393_v10 = vadd.f32 %v1377_v9, %v1349_v44  ;;  %v1557_v62 = vmul.f32 %v10468_v53, %v7930_v32 }
 0x25c   : > { %v1592_v13 = vrot.slane %v1576_v54, 1  ;;  %v2736_v5 = vadd.f32 %v2720_v39, %v2692_v47  ;;  %v10532_v43 = vrot.slane %v10531_v1, 5  ;;  %v1621_v21 = vmul.f32 %v10474_v0, %v7930_v32 }
 0x25d   : > { %v1664_v26 = vmul.f32 %v10475_v58, %v7896_v22  ;;  %v2585_v52 = vadd.f32 %v2557_v23, %v2509_v16  ;;  %v1636_v27 = vrot.slane %v1620_v42, 2  ;;  %v10533_v25 = vrot.slane %v7515_v56, 6  ;;  %v10536_v56 = vld [vmem:[#allocation102_spill] sm:$0xff] }
 0x25e   : > { %v1449_v40 = vsel %vm734_vm3, %v1447_v31, %v10532_v43  ;;  %v1608_v8 = vadd.f32 %v1592_v13, %v1564_v63  ;;  %v2780_v48 = vadd.f32 %v2764_v61, %v2736_v5  ;;  %v1593_v39 = vrot.slane %v1577_v29, 1  ;;  %v10535_v61 = vld [vmem:[#allocation48_spill] sm:$0xff]  ;;  %v10538_v5 = vld [vmem:[#allocation103_spill] sm:$0xff] }
 0x25f   : > { %v1469_v38 = vadd.f32 %v1449_v40, %v1393_v10  ;;  %v1525_v11 = vsel %vm811_vm4, %v1523_v60, %v10533_v25  ;;  %v1708_v33 = vmul.f32 %v10482_v45, %v7896_v22  ;;  %v2605_v6 = vadd.f32 %v10534_v7, %v2585_v52  ;;  %v10543_v25 = vld [vmem:[#allocation106_spill] sm:$0xff]  ;;  %v8014_v7 = vld [vmem:[#allocation2 + $0xf0] sm:$0xff] }
 0x260   : > { %v1652_v9 = vadd.f32 %v1636_v27, %v1608_v8  ;;  %v1680_v31 = vrot.slane %v1664_v26, 3  ;;  %v2856_v30 = vadd.f32 %v2826_v2, %v2780_v48  ;;  %v1637_v44 = vrot.slane %v1621_v21, 2  ;;  %v10540_v26 = vld [vmem:[#allocation49_spill] sm:$0xff]  ;;  %v10568_v27 = vld [vmem:[#allocation71_spill] sm:$0xff] }
 0x261   : > { %v1545_v3 = vadd.f32 %v1525_v11, %v1469_v38  ;;  %v1665_v23 = vmul.f32 %v10475_v58, %v7930_v32  ;;  %v1756_v63 = vmul.f32 %v10535_v61, %v7896_v22  ;;  %v10537_v54 = vrot.slane %v10536_v56, 1  ;;  %v8003_v38 = vpop.permute.xlu1 %2947 }
 0x262   : > { %v1696_v29 = vadd.f32 %v1680_v31, %v1652_v9  ;;  %v1724_v42 = vrot.slane %v1708_v33, 4  ;;  %v2932_v16 = vadd.f32 %v2902_v51, %v2856_v30  ;;  %v1709_v10 = vmul.f32 %v10482_v45, %v7930_v32  ;;  %v10547_v30 = vld [vmem:[#allocation93_spill] sm:$0xff] }
 0x263   : > { %v2649_v47 = vadd.f32 %v10537_v54, %v2605_v6  ;;  %v1565_v60 = vadd.f32 %v1557_v62, %v1545_v3  ;;  %v1758_v2 = vmul.f32 %v10535_v61, %v7930_v32  ;;  %v1792_v13 = vrot.slane %v1756_v63, 5  ;;  %v10541_v62 = vld [vmem:[#allocation41_spill] sm:$0xff] }
 0x264   : > { %v10539_v1 = vrot.slane %v10538_v5, 2  ;;  %v1740_v21 = vadd.f32 %v1724_v42, %v1696_v29  ;;  %v1832_v52 = vmul.f32 %v10540_v26, %v7896_v22  ;;  %v10542_v8 = vrot.slane %v10541_v62, 5  ;;  %v10553_v5 = vld [vmem:[#allocation108_spill] sm:$0xff] }
 0x265   : > { %v1609_v40 = vadd.f32 %v1593_v39, %v1565_v60  ;;  %v1681_v48 = vrot.slane %v1665_v23, 3  ;;  %v10544_v11 = vrot.slane %v10543_v25, 5  ;;  %v10545_v39 = vld [vmem:[#allocation104_spill] sm:$0xff]  ;;  %v1834_v31 = vmul.f32 %v10540_v26, %v7930_v32  ;;  %v8042_v25 = vpop.permute.xlu1 %2949 }
 0x266   : > { %v2693_v43 = vadd.f32 %v10539_v1, %v2649_v47  ;;  %v8008_v51 = vsel %vm734_vm3, %v1093_v4, %v10542_v8  ;;  %v10546_v6 = vrot.slane %v10545_v39, 3  ;;  %v10548_v4 = vrot.slane %v10547_v30, 5  ;;  %v10550_v47 = vld [vmem:[#allocation105_spill] sm:$0xff] }
 0x267   : > { %v1794_v33 = vsel %vm734_vm3, %v1792_v13, %v10544_v11  ;;  %v1653_v22 = vadd.f32 %v1637_v44, %v1609_v40  ;;  %v1725_v23 = vrot.slane %v1709_v10, 4  ;;  %v1795_v56 = vrot.slane %v1758_v2, 5  ;;  %v10555_v40 = vld [vmem:[#allocation61_spill] sm:$0xff]  ;;  %v10558_v11 = vld [vmem:[#allocation107_spill] sm:$0xff] }
 0x268   : > { %v2737_v3 = vadd.f32 %v10546_v6, %v2693_v43  ;;  %v1816_v9 = vadd.f32 %v1794_v33, %v1740_v21  ;;  %v8023_v63 = vsel %vm734_vm3, %v756_v28, %v10548_v4  ;;  %v1868_v54 = vrot.slane %v1832_v52, 6  ;;  %v10556_v10 = vld [vmem:[#allocation65_spill] sm:$0xff]  ;;  %v10557_v52 = vld [vmem:[#allocation8_spill] sm:$0xff] }
 0x269   : > { %10549 = vst [vmem:[#allocation44_spill] sm:$0xff] %v8023_v63  ;;  %v10551_v60 = vrot.slane %v10550_v47, 4  ;;  %v8028_v42 = vadd.f32 %v8003_v38, %v2932_v16  ;;  %v1697_v13 = vadd.f32 %v1681_v48, %v1653_v22  ;;  %v1871_v44 = vrot.slane %v1834_v31, 6  ;;  %v10560_v31 = vld [vmem:[#allocation116_spill] sm:$0xff]  ;;  %v10562_v47 = vld [vmem:[#allocation109_spill] sm:$0xff]  ;;  %v10578_v63 = vld [vmem:[#allocation74_spill] sm:$0xff] }
 0x26a   : > { %v10554_v1 = vrot.slane %v10553_v5, 6  ;;  %v1924_v21 = vmul.f32 %v10555_v40, %v7930_v32  ;;  %v1925_v28 = vmul.f32 %v10555_v40, %v8014_v7  ;;  %v1968_v2 = vmul.f32 %v10556_v10, %v7930_v32  ;;  %v10564_v5 = vld [vmem:[#allocation67_spill] sm:$0xff] }
 0x26b   : > { %v2781_v29 = vadd.f32 %v10551_v60, %v2737_v3  ;;  %10552 = vst [vmem:[#allocation57_spill] sm:$0xff] %v8028_v42  ;;  %v1741_v8 = vadd.f32 %v1725_v23, %v1697_v13  ;;  %v1904_v48 = vmul.f32 %v10496_v15, %v7930_v32  ;;  %v10559_v33 = vrot.slane %v10558_v11, 5  ;;  %v10561_v23 = vld [vmem:[#allocation66_spill] sm:$0xff] }
 0x26c   : > { %v1870_v43 = vsel %vm811_vm4, %v1868_v54, %v10554_v1  ;;  %v1905_v6 = vmul.f32 %v10496_v15, %v8014_v7  ;;  %v1940_v3 = vrot.slane %v1924_v21, 1  ;;  %v1969_v22 = vmul.f32 %v10556_v10, %v8014_v7 }
 0x26d   : > { %v2857_v62 = vadd.f32 %v10557_v52, %v2781_v29  ;;  %v1892_v16 = vadd.f32 %v1870_v43, %v1816_v9  ;;  %v1797_v39 = vsel %vm734_vm3, %v1795_v56, %v10559_v33  ;;  %v2012_v54 = vmul.f32 %v10561_v23, %v7930_v32 }
 0x26e   : > { %v1817_v4 = vadd.f32 %v1797_v39, %v1741_v8  ;;  %v10563_v60 = vrot.slane %v10562_v47, 6  ;;  %v1941_v13 = vrot.slane %v1925_v28, 1  ;;  %v1984_v56 = vrot.slane %v1968_v2, 2 }
 0x26f   : > { %v2933_v30 = vadd.f32 %v10560_v31, %v2857_v62  ;;  %v1912_v9 = vadd.f32 %v1904_v48, %v1892_v16  ;;  %v2056_v1 = vmul.f32 %v10564_v5, %v7930_v32  ;;  %v1985_v62 = vrot.slane %v1969_v22, 2  ;;  %v10567_v31 = vld [vmem:[#allocation64_spill] sm:$0xff] }
 0x270   : > { %v1873_v29 = vsel %vm811_vm4, %v1871_v44, %v10563_v60  ;;  %v2013_v8 = vmul.f32 %v10561_v23, %v8014_v7  ;;  %v2028_v16 = vrot.slane %v2012_v54, 3  ;;  %v2057_v48 = vmul.f32 %v10564_v5, %v8014_v7  ;;  %v10566_v44 = vld [vmem:[#allocation62_spill] sm:$0xff] }
 0x271   : > { %v8060_v43 = vadd.f32 %v8042_v25, %v2933_v30  ;;  %v1893_v21 = vadd.f32 %v1873_v29, %v1817_v4  ;;  %v1956_v52 = vadd.f32 %v1940_v3, %v1912_v9  ;;  %v2104_v28 = vmul.f32 %v10566_v44, %v7930_v32  ;;  %v8076_v9 = vld [vmem:[#allocation2 + $0x100] sm:$0xff] }
 0x272   : > { %v2106_v39 = vmul.f32 %v10566_v44, %v8014_v7  ;;  %v2072_v3 = vrot.slane %v2056_v1, 4  ;;  %v2180_v30 = vmul.f32 %v10567_v31, %v7930_v32  ;;  %v2182_v4 = vmul.f32 %v10567_v31, %v8014_v7 }
 0x273   : > { %10565 = vst [vmem:[#allocation56_spill] sm:$0xff] %v8060_v43  ;;  %v2969_v2 = vcombine.low %v8028_v42, %v8060_v43  ;;  %v1913_v11 = vadd.f32 %v1905_v6, %v1893_v21  ;;  %v2000_v33 = vadd.f32 %v1984_v56, %v1956_v52  ;;  %v2140_v22 = vrot.slane %v2104_v28, 5  ;;  %v10569_v42 = vld [vmem:[#allocation111_spill] sm:$0xff] }
 0x274   : > { %v2143_v29 = vrot.slane %v2106_v39, 5  ;;  %v2029_v6 = vrot.slane %v2013_v8, 3  ;;  %v2073_v56 = vrot.slane %v2057_v48, 4  ;;  %v2216_v21 = vrot.slane %v2180_v30, 6  ;;  %v10574_v30 = vld [vmem:[#allocation113_spill] sm:$0xff] }
 0x275   : > { %v2977_v54 = vsel %vm10269_vm1, %v2969_v2, 0.0  ;;  %v1957_v47 = vadd.f32 %v1941_v13, %v1913_v11  ;;  %v2044_v60 = vadd.f32 %v2028_v16, %v2000_v33  ;;  %v2219_v52 = vrot.slane %v2182_v4, 6  ;;  %v10571_v16 = vld [vmem:[#allocation73_spill] sm:$0xff]  ;;  %v10572_v11 = vld [vmem:[#allocation110_spill] sm:$0xff]  ;;  %v10576_v4 = vld [vmem:[#allocation112_spill] sm:$0xff] }
 0x276   : > { %2978 = vadd.xlane.f32.xlu0 %v2977_v54  ;;  %v2252_v32 = vmul.f32 %v10509_v35, %v8014_v7  ;;  %v2272_v43 = vmul.f32 %v10568_v27, %v8014_v7  ;;  %v10570_v50 = vrot.slane %v10569_v42, 5  ;;  %v2253_v13 = vmul.f32 %v10509_v35, %v8076_v9 }
 0x277   : > { %v2001_v1 = vadd.f32 %v1985_v62, %v1957_v47  ;;  %v2088_v28 = vadd.f32 %v2072_v3, %v2044_v60  ;;  %v2273_v8 = vmul.f32 %v10568_v27, %v8076_v9  ;;  %v2316_v62 = vmul.f32 %v10571_v16, %v8014_v7 }
 0x278   : > { %v2142_v2 = vsel %vm734_vm3, %v2140_v22, %v10570_v50  ;;  %v10573_v33 = vrot.slane %v10572_v11, 5  ;;  %v2317_v42 = vmul.f32 %v10571_v16, %v8076_v9  ;;  %v10575_v50 = vrot.slane %v10574_v30, 6 }
 0x279   : > { %v2045_v48 = vadd.f32 %v2029_v6, %v2001_v1  ;;  %v2164_v3 = vadd.f32 %v2142_v2, %v2088_v28  ;;  %v10577_v54 = vrot.slane %v10576_v4, 6  ;;  %v2288_v60 = vrot.slane %v2272_v43, 1 }
 0x27a   : > { %v2145_v39 = vsel %vm734_vm3, %v2143_v29, %v10573_v33  ;;  %v2218_v22 = vsel %vm811_vm4, %v2216_v21, %v10575_v50  ;;  %v2360_v6 = vmul.f32 %v10578_v63, %v8014_v7  ;;  %v2289_v35 = vrot.slane %v2273_v8, 1  ;;  %v10579_v33 = vld [vmem:[#allocation77_spill] sm:$0xff]  ;;  %v10580_v21 = vld [vmem:[#allocation76_spill] sm:$0xff] }
 0x27b   : > { %v2221_v47 = vsel %vm811_vm4, %v2219_v52, %v10577_v54  ;;  %v2089_v1 = vadd.f32 %v2073_v56, %v2045_v48  ;;  %v2240_v11 = vadd.f32 %v2218_v22, %v2164_v3  ;;  %v2361_v29 = vmul.f32 %v10578_v63, %v8076_v9 }
 0x27c   : > { %v2332_v28 = vrot.slane %v2316_v62, 2  ;;  %v2333_v2 = vrot.slane %v2317_v42, 2  ;;  %v2404_v30 = vmul.f32 %v10579_v33, %v8014_v7  ;;  %v2452_v50 = vmul.f32 %v10580_v21, %v8014_v7 }
 0x27d   : > { %v2165_v4 = vadd.f32 %v2145_v39, %v2089_v1  ;;  %v2260_v52 = vadd.f32 %v2252_v32, %v2240_v11  ;;  %v2405_v43 = vmul.f32 %v10579_v33, %v8076_v9  ;;  %v2454_v56 = vmul.f32 %v10580_v21, %v8076_v9 }
 0x27e   : > { %v2376_v8 = vrot.slane %v2360_v6, 3  ;;  %v2488_v48 = vrot.slane %v2452_v50, 5  ;;  %v2528_v62 = vmul.f32 %v7349_v17, %v8014_v7  ;;  %v2530_v3 = vmul.f32 %v7349_v17, %v8076_v9  ;;  %v10581_v7 = vld [vmem:[#allocation114_spill] sm:$0xff] }
 0x27f   : > { %v2241_v42 = vadd.f32 %v2221_v47, %v2165_v4  ;;  %v2304_v22 = vadd.f32 %v2288_v60, %v2260_v52  ;;  %v2377_v54 = vrot.slane %v2361_v29, 3  ;;  %v2491_v63 = vrot.slane %v2454_v56, 5  ;;  %v10583_v47 = vld [vmem:[#allocation115_spill] sm:$0xff]  ;;  %v10585_v52 = vld [vmem:[#allocation117_spill] sm:$0xff] }
 0x280   : > { %v2420_v39 = vrot.slane %v2404_v30, 4  ;;  %v2564_v32 = vrot.slane %v2528_v62, 6  ;;  %v2567_v1 = vrot.slane %v2530_v3, 6  ;;  %v2620_v11 = vmul.f32 %v7362_v19, %v8076_v9  ;;  %v10587_v62 = vld [vmem:[#allocation118_spill] sm:$0xff] }
 0x281   : > { %v2261_v33 = vadd.f32 %v2253_v13, %v2241_v42  ;;  %v2348_v21 = vadd.f32 %v2332_v28, %v2304_v22  ;;  %v2421_v6 = vrot.slane %v2405_v43, 4  ;;  %v2664_v50 = vmul.f32 %v7373_v46, %v8076_v9 }
 0x282   : > { %v10582_v16 = vrot.slane %v10581_v7, 5  ;;  %v10584_v60 = vrot.slane %v10583_v47, 5  ;;  %v2600_v30 = vmul.f32 %v7359_v34, %v8076_v9  ;;  %v2708_v4 = vmul.f32 %v7376_v49, %v8076_v9 }
 0x283   : > { %v2305_v13 = vadd.f32 %v2289_v35, %v2261_v33  ;;  %v2392_v28 = vadd.f32 %v2376_v8, %v2348_v21  ;;  %v10586_v43 = vrot.slane %v10585_v52, 6  ;;  %v10588_v3 = vrot.slane %v10587_v62, 6  ;;  %v8146_v35 = vld [vmem:[%s10058_s2 + $0x60] ss:$0 sm:$0xff] }
 0x284   : > { %v2490_v17 = vsel %vm734_vm3, %v2488_v48, %v10582_v16  ;;  %v2493_v29 = vsel %vm734_vm3, %v2491_v63, %v10584_v60  ;;  %v2636_v48 = vrot.slane %v2620_v11, 1  ;;  %v2752_v63 = vmul.f32 %v7383_v55, %v8076_v9  ;;  %10589 = vst [vmem:[#allocation59_spill] sm:$0xff] %v8146_v35  ;;  %v10592_v60 = vld [vmem:[#allocation17_spill] sm:$0xff] }
 0x285   : > { %v2566_v56 = vsel %vm811_vm4, %v2564_v32, %v10586_v43  ;;  %v2569_v16 = vsel %vm811_vm4, %v2567_v1, %v10588_v3  ;;  %v2800_v42 = vmul.f32 %v7398_v36, %v8076_v9  ;;  %v2876_v33 = vmul.f32 %v8146_v35, %v8076_v9  ;;  %v10590_v32 = vld [vmem:[#allocation128_spill] sm:$0xff]  ;;  %v10591_v1 = vld [vmem:[#allocation14_spill] sm:$0xff]  ;;  %v10593_v43 = vld [vmem:[#allocation19_spill] sm:$0xff] }
 0x286   : > { %v2349_v21 = vadd.f32 %v2333_v2, %v2305_v13  ;;  %v2436_v8 = vadd.f32 %v2420_v39, %v2392_v28  ;;  %v2680_v22 = vrot.slane %v2664_v50, 2  ;;  %v529_v11 = vmul.f32 %v10591_v1, %v10590_v32  ;;  %v10594_v36 = vld [vmem:[#allocation16_spill] sm:$0xff]  ;;  %v10595_v39 = vld [vmem:[#allocation119_spill] sm:$0xff] }
 0x287   : > { %v2724_v7 = vrot.slane %v2708_v4, 3  ;;  %v2836_v47 = vrot.slane %v2800_v42, 5  ;;  %v573_v52 = vmul.f32 %v10592_v60, %v10590_v32  ;;  %v617_v62 = vmul.f32 %v10593_v43, %v10590_v32  ;;  %v10597_v4 = vld [vmem:[#allocation22_spill] sm:$0xff] }
 0x288   : > { %v2393_v3 = vadd.f32 %v2377_v54, %v2349_v21  ;;  %v2512_v55 = vadd.f32 %v2490_v17, %v2436_v8  ;;  %v509_v49 = vmul.f32 %v10594_v36, %v10590_v32  ;;  %v545_v9 = vrot.slane %v529_v11, 1  ;;  %v10598_v17 = vld [vmem:[#allocation24_spill] sm:$0xff]  ;;  %v10599_v21 = vld [vmem:[#allocation27_spill] sm:$0xff] }
 0x289   : > { %v2768_v2 = vrot.slane %v2752_v63, 4  ;;  %v10596_v50 = vrot.slane %v10595_v39, 5  ;;  %v2912_v28 = vrot.slane %v2876_v33, 6  ;;  %v661_v42 = vmul.f32 %v10597_v4, %v10590_v32  ;;  %v10600_v63 = vld [vmem:[#allocation28_spill] sm:$0xff]  ;;  %v10603_v36 = vld [vmem:[#allocation7_spill] sm:$0xff] }
 0x28a   : > { %v2437_v1 = vadd.f32 %v2421_v6, %v2393_v3  ;;  %v2588_v60 = vadd.f32 %v2566_v56, %v2512_v55  ;;  %v561_v35 = vadd.f32 %v545_v9, %v509_v49  ;;  %v589_v46 = vrot.slane %v573_v52, 2  ;;  %v10601_v55 = vld [vmem:[#allocation124_spill] sm:$0xff]  ;;  %v10602_v52 = vld [vmem:[#allocation29_spill] sm:$0xff] }
 0x28b   : > { %v2838_v13 = vsel %vm734_vm3, %v2836_v47, %v10596_v50  ;;  %v633_v43 = vrot.slane %v617_v62, 3  ;;  %v785_v54 = vmul.f32 %v10598_v17, %v10590_v32  ;;  %v858_v8 = vmul.f32 %v10599_v21, %v10590_v32 }
 0x28c   : > { %v878_v11 = vmul.f32 %v10600_v63, %v10590_v32  ;;  %v2513_v39 = vadd.f32 %v2493_v29, %v2437_v1  ;;  %v2608_v47 = vadd.f32 %v2600_v30, %v2588_v60  ;;  %v605_v33 = vadd.f32 %v589_v46, %v561_v35  ;;  %v10605_v1 = vld [vmem:[#allocation125_spill] sm:$0xff] }
 0x28d   : > { %v879_v50 = vmul.f32 %v10600_v63, %v7745_v20  ;;  %v821_v6 = vrot.slane %v785_v54, 6  ;;  %v866_v49 = vadd.f32 %v858_v8, %v10601_v55  ;;  %v922_v62 = vmul.f32 %v10602_v52, %v10590_v32 }
 0x28e   : > { %v894_v56 = vrot.slane %v878_v11, 1  ;;  %v2589_v3 = vadd.f32 %v2569_v16, %v2513_v39  ;;  %v2652_v9 = vadd.f32 %v2636_v48, %v2608_v47  ;;  %v649_v17 = vadd.f32 %v633_v43, %v605_v33  ;;  %v10606_v11 = vld [vmem:[#allocation30_spill] sm:$0xff]  ;;  %v10610_v39 = vld [vmem:[#allocation11_spill] sm:$0xff] }
 0x28f   : > { %v677_v4 = vrot.slane %v661_v42, 4  ;;  %v10604_v34 = vrot.slane %v10603_v36, 6  ;;  %v859_v46 = vmul.f32 %v10599_v21, %v7745_v20  ;;  %v938_v35 = vrot.slane %v922_v62, 2  ;;  %v10607_v16 = vld [vmem:[#allocation38_spill] sm:$0xff] }
 0x290   : > { %v910_v30 = vadd.f32 %v894_v56, %v866_v49  ;;  %v2609_v60 = vadd.f32 %v10605_v1, %v2589_v3  ;;  %v2696_v54 = vadd.f32 %v2680_v22, %v2652_v9  ;;  %v966_v55 = vmul.f32 %v10606_v11, %v10590_v32  ;;  %v10612_v56 = vld [vmem:[#allocation40_spill] sm:$0xff] }
 0x291   : > { %v2914_v29 = vsel %vm811_vm4, %v2912_v28, %v10604_v34  ;;  %v693_v8 = vadd.f32 %v677_v4, %v649_v17  ;;  %v10608_v48 = vrot.slane %v10607_v16, 6  ;;  %v895_v42 = vrot.slane %v879_v50, 1  ;;  %v10609_v34 = vld [vmem:[#allocation31_spill] sm:$0xff] }
 0x292   : > { %v954_v36 = vadd.f32 %v938_v35, %v910_v30  ;;  %v1010_v28 = vmul.f32 %v10609_v34, %v10590_v32  ;;  %v10611_v47 = vrot.slane %v10610_v39, 1  ;;  %v2740_v49 = vadd.f32 %v2724_v7, %v2696_v54 }
 0x293   : > { %v823_v43 = vsel %vm811_vm4, %v821_v6, %v10608_v48  ;;  %v770_v62 = vadd.f32 %v10612_v56, %v693_v8  ;;  %v982_v22 = vrot.slane %v966_v55, 3  ;;  %v923_v4 = vmul.f32 %v10602_v52, %v7745_v20  ;;  %v10613_v6 = vld [vmem:[#allocation120_spill] sm:$0xff]  ;;  %v10615_v8 = vld [vmem:[#allocation33_spill] sm:$0xff]  ;;  %v10616_v48 = vld [vmem:[#allocation123_spill] sm:$0xff] }
 0x294   : > { %v2653_v33 = vadd.f32 %v10611_v47, %v2609_v60  ;;  %v967_v17 = vmul.f32 %v10606_v11, %v7745_v20  ;;  %v1026_v3 = vrot.slane %v1010_v28, 4  ;;  %v1056_v50 = vmul.f32 %v6971_v14, %v10590_v32 }
 0x295   : > { %v10614_v9 = vrot.slane %v10613_v6, 2  ;;  %v2784_v35 = vadd.f32 %v2768_v2, %v2740_v49  ;;  %v847_v1 = vadd.f32 %v823_v43, %v770_v62  ;;  %v998_v60 = vadd.f32 %v982_v22, %v954_v36  ;;  %v10618_v2 = vld [vmem:[#allocation34_spill] sm:$0xff]  ;;  %v10620_v22 = vld [vmem:[#allocation127_spill] sm:$0xff] }
 0x296   : > { %v1011_v7 = vmul.f32 %v10609_v34, %v7745_v20  ;;  %v1090_v54 = vrot.slane %v1056_v50, 5  ;;  %v1132_v55 = vmul.f32 %v10615_v8, %v10590_v32  ;;  %v1134_v16 = vmul.f32 %v10615_v8, %v7745_v20 }
 0x297   : > { %v2697_v30 = vadd.f32 %v10614_v9, %v2653_v33  ;;  %v10617_v28 = vrot.slane %v10616_v48, 3  ;;  %v2860_v47 = vadd.f32 %v2838_v13, %v2784_v35  ;;  %v867_v56 = vadd.f32 %v859_v46, %v847_v1  ;;  %v10622_v48 = vld [vmem:[#allocation126_spill] sm:$0xff] }
 0x298   : > { %v1042_v6 = vadd.f32 %v1026_v3, %v998_v60  ;;  %v939_v33 = vrot.slane %v923_v4, 2  ;;  %v10619_v43 = vrot.slane %v10618_v2, 5  ;;  %v1166_v49 = vrot.slane %v1132_v55, 6  ;;  %v10624_v4 = vld [vmem:[#allocation39_spill] sm:$0xff] }
 0x299   : > { %v2741_v39 = vadd.f32 %v10617_v28, %v2697_v30  ;;  %v1169_v62 = vrot.slane %v1134_v16, 6  ;;  %v10621_v50 = vrot.slane %v10620_v22, 4  ;;  %v911_v32 = vadd.f32 %v895_v42, %v867_v56  ;;  %v10628_v28 = vld [vmem:[#allocation131_spill] sm:$0xff] }
 0x29a   : > { %v1092_v36 = vsel %vm734_vm3, %v1090_v54, %v10619_v43  ;;  %v983_v14 = vrot.slane %v967_v17, 3  ;;  %v2936_v8 = vadd.f32 %v2914_v29, %v2860_v47  ;;  %v1027_v11 = vrot.slane %v1011_v7, 4  ;;  %v10625_v54 = vld [vmem:[#allocation42_spill] sm:$0xff]  ;;  %v10627_v29 = vld [vmem:[#allocation132_spill] sm:$0xff] }
 0x29b   : > { %v2785_v9 = vadd.f32 %v10621_v50, %v2741_v39  ;;  %v1118_v34 = vadd.f32 %v1092_v36, %v1042_v6  ;;  %v10623_v30 = vrot.slane %v10622_v48, 6  ;;  %v1226_v46 = vmul.f32 %v7003_v18, %v7745_v20 }
 0x29c   : > { %v955_v35 = vadd.f32 %v939_v33, %v911_v32  ;;  %v1206_v60 = vmul.f32 %v6999_v12, %v7745_v20  ;;  %v10626_v42 = vrot.slane %v10625_v54, 6  ;;  %v1207_v7 = vmul.f32 %v6999_v12, %v10627_v29 }
 0x29d   : > { %v1168_v13 = vsel %vm811_vm4, %v1166_v49, %v10623_v30  ;;  %v2861_v3 = vadd.f32 %v10624_v4, %v2785_v9  ;;  %v1242_v55 = vrot.slane %v1226_v46, 1  ;;  %v1270_v16 = vmul.f32 %v7019_v24, %v7745_v20  ;;  %v10631_v9 = vld [vmem:[#allocation36_spill] sm:$0xff] }
 0x29e   : > { %v1194_v1 = vadd.f32 %v1168_v13, %v1118_v34  ;;  %v1171_v17 = vsel %vm811_vm4, %v1169_v62, %v10626_v42  ;;  %v999_v47 = vadd.f32 %v983_v14, %v955_v35  ;;  %v1314_v34 = vmul.f32 %v7029_v41, %v7745_v20 }
 0x29f   : > { %v2937_v39 = vadd.f32 %v10628_v28, %v2861_v3  ;;  %v8230_v6 = vadd.f32 %v8003_v38, %v2936_v8  ;;  %v1227_v33 = vmul.f32 %v7003_v18, %v10627_v29  ;;  %v1271_v2 = vmul.f32 %v7019_v24, %v10627_v29 }
 0x2a0   : > { %v1214_v56 = vadd.f32 %v1206_v60, %v1194_v1  ;;  %v1286_v43 = vrot.slane %v1270_v16, 2  ;;  %v1043_v49 = vadd.f32 %v1027_v11, %v999_v47  ;;  %v1315_v14 = vmul.f32 %v7029_v41, %v10627_v29 }
 0x2a1   : > { %10629 = vst [vmem:[#allocation60_spill] sm:$0xff] %v8230_v6  ;;  %v8237_v36 = vadd.f32 %v8042_v25, %v2937_v39  ;;  %v1330_v22 = vrot.slane %v1314_v34, 3  ;;  %v1358_v8 = vmul.f32 %v7062_v57, %v7745_v20  ;;  %v1359_v50 = vmul.f32 %v7062_v57, %v10627_v29 }
 0x2a2   : > { %v1258_v62 = vadd.f32 %v1242_v55, %v1214_v56  ;;  %v1404_v32 = vmul.f32 %v10631_v9, %v7745_v20  ;;  %v1119_v30 = vadd.f32 %v8008_v51, %v1043_v49  ;;  %v1480_v13 = vmul.f32 %v7093_v37, %v7745_v20  ;;  %v10632_v56 = vld [vmem:[#allocation129_spill] sm:$0xff] }
 0x2a3   : > { %10630 = vst [vmem:[#allocation68_spill] sm:$0xff] %v8237_v36  ;;  %v2971_v48 = vcombine.low %v8230_v6, %v8237_v36  ;;  %v1243_v46 = vrot.slane %v1227_v33, 1  ;;  %v1287_v4 = vrot.slane %v1271_v2, 2  ;;  %v1482_v35 = vmul.f32 %v7093_v37, %v10627_v29 }
 0x2a4   : > { %v1302_v11 = vadd.f32 %v1286_v43, %v1258_v62  ;;  %v1438_v3 = vrot.slane %v1404_v32, 5  ;;  %v1195_v60 = vadd.f32 %v1171_v17, %v1119_v30  ;;  %v1374_v42 = vrot.slane %v1358_v8, 4  ;;  %v10634_v17 = vld [vmem:[#allocation43_spill] sm:$0xff]  ;;  %v10637_v30 = vld [vmem:[#allocation46_spill] sm:$0xff] }
 0x2a5   : > { %v2983_v1 = vsel %vm10269_vm1, %v2971_v48, 0.0  ;;  %v1331_v55 = vrot.slane %v1315_v14, 3  ;;  %v1375_v16 = vrot.slane %v1359_v50, 4  ;;  %v1514_v28 = vrot.slane %v1480_v13, 6  ;;  %v10635_v50 = vld [vmem:[#allocation130_spill] sm:$0xff] }
 0x2a6   : > { %v1346_v54 = vadd.f32 %v1330_v22, %v1302_v11  ;;  %2984 = vadd.xlane.f32.xlu0 %v2983_v1  ;;  %v1517_v51 = vrot.slane %v1482_v35, 6  ;;  %v1215_v39 = vadd.f32 %v1207_v7, %v1195_v60  ;;  %v10633_v20 = vrot.slane %v10632_v56, 5 }
 0x2a7   : > { %v1574_v33 = vmul.f32 %v10470_v59, %v10627_v29  ;;  %v1554_v2 = vmul.f32 %v10468_v53, %v10627_v29  ;;  %v8264_v43 = vmul.f32 %v10470_v59, %v10634_v17  ;;  %v1618_v49 = vmul.f32 %v10474_v0, %v10627_v29 }
 0x2a8   : > { %v1390_v47 = vadd.f32 %v1374_v42, %v1346_v54  ;;  %v1440_v34 = vsel %vm734_vm3, %v1438_v3, %v10633_v20  ;;  %v8270_v7 = vmul.f32 %v10474_v0, %v10634_v17  ;;  %v1259_v62 = vadd.f32 %v1243_v46, %v1215_v39 }
 0x2a9   : > { %v1555_v22 = vmul.f32 %v10468_v53, %v10634_v17  ;;  %v1662_v8 = vmul.f32 %v10475_v58, %v10627_v29  ;;  %v10636_v32 = vrot.slane %v10635_v50, 6  ;;  %v10638_v11 = vrot.slane %v10637_v30, 6 }
 0x2aa   : > { %v1466_v14 = vadd.f32 %v1440_v34, %v1390_v47  ;;  %v1590_v3 = vrot.slane %v1574_v33, 1  ;;  %v1591_v35 = vrot.slane %v8264_v43, 1  ;;  %v1303_v1 = vadd.f32 %v1287_v4, %v1259_v62  ;;  %v10639_v33 = vld [vmem:[#allocation51_spill] sm:$0xff] }
 0x2ab   : > { %v1516_v48 = vsel %vm811_vm4, %v1514_v28, %v10636_v32  ;;  %v1519_v13 = vsel %vm811_vm4, %v1517_v51, %v10638_v11  ;;  %v1634_v60 = vrot.slane %v1618_v49, 2  ;;  %v8285_v54 = vmul.f32 %v10475_v58, %v10634_v17  ;;  %v6540_v49 = vld [vmem:[#allocation2 + $0x58] sm:$0x3]  ;;  %v10672_v58 = vld [vmem:[#allocation22_spill] sm:$0xff] }
 0x2ac   : > { %v1542_v46 = vadd.f32 %v1516_v48, %v1466_v14  ;;  %v1635_v42 = vrot.slane %v8270_v7, 2  ;;  %v1706_v39 = vmul.f32 %v10482_v45, %v10627_v29  ;;  %v8292_v28 = vmul.f32 %v10482_v45, %v10634_v17 }
 0x2ad   : > { %v1752_v51 = vmul.f32 %v10535_v61, %v10627_v29  ;;  %v1347_v47 = vadd.f32 %v1331_v55, %v1303_v1  ;;  %v1678_v56 = vrot.slane %v1662_v8, 3  ;;  %v1828_v20 = vmul.f32 %v10540_v26, %v10627_v29  ;;  %v10640_v29 = vld [vmem:[#allocation45_spill] sm:$0xff] }
 0x2ae   : > { %v1562_v4 = vadd.f32 %v1554_v2, %v1542_v46  ;;  %v1787_v43 = vrot.slane %v10639_v33, 5  ;;  %v1829_v7 = vmul.f32 %v6540_v49, %v10540_v26  ;;  %v1830_v62 = vmul.f32 %v10540_v26, %v10634_v17  ;;  %v10641_v33 = vld [vmem:[#allocation63_spill] sm:$0xff] }
 0x2af   : > { %v1786_v34 = vrot.slane %v1752_v51, 5  ;;  %v1391_v14 = vadd.f32 %v1375_v16, %v1347_v47  ;;  %v1679_v32 = vrot.slane %v8285_v54, 3  ;;  %v1862_v48 = vrot.slane %v1828_v20, 6  ;;  %v8307_v51 = vld [vmem:[#allocation2 + $0x70] sm:$0xff] }
 0x2b0   : > { %v1606_v50 = vadd.f32 %v1590_v3, %v1562_v4  ;;  %v1722_v55 = vrot.slane %v1706_v39, 4  ;;  %v1723_v2 = vrot.slane %v8292_v28, 4  ;;  %v1863_v8 = vrot.slane %v1829_v7, 6  ;;  %v6542_v7 = vld [vmem:[#allocation2 + $0x60] sm:$0xff] }
 0x2b1   : > { %v1865_v30 = vrot.slane %v1830_v62, 6  ;;  %v1467_v11 = vadd.f32 %v10640_v29, %v1391_v14  ;;  %v1922_v46 = vmul.f32 %v10555_v40, %v10634_v17  ;;  %v8311_v16 = vmul.f32 %v8307_v51, %v10555_v40  ;;  %v6543_v29 = vld [vmem:[#allocation2 + $0x68] sm:$0x3] }
 0x2b2   : > { %v1650_v1 = vadd.f32 %v1634_v60, %v1606_v50  ;;  %v1788_v3 = vsel %vm734_vm3, %v1786_v34, %v1787_v43  ;;  %v1902_v54 = vmul.f32 %v10496_v15, %v10634_v17  ;;  %v8318_v39 = vmul.f32 %v8307_v51, %v10496_v15  ;;  %v473_v15 = vld [vmem:[#allocation2 + $0x90] sm:$0xff] }
 0x2b3   : > { %v1966_v60 = vmul.f32 %v10556_v10, %v10634_v17  ;;  %v1543_v28 = vadd.f32 %v1519_v13, %v1467_v11  ;;  %v1864_v4 = vsel %vm811_vm4, %v1862_v48, %v1863_v8  ;;  %v8325_v20 = vmul.f32 %v8307_v51, %v10556_v10 }
 0x2b4   : > { %v1694_v47 = vadd.f32 %v1678_v56, %v1650_v1  ;;  %v10642_v34 = vrot.slane %v10641_v33, 6  ;;  %v1938_v49 = vrot.slane %v1922_v46, 1  ;;  %v2010_v62 = vmul.f32 %v6542_v7, %v10561_v23  ;;  %v10647_v33 = vld [vmem:[#allocation74_spill] sm:$0xff] }
 0x2b5   : > { %v8333_v14 = vmul.f32 %v8307_v51, %v10561_v23  ;;  %v1563_v17 = vadd.f32 %v1555_v22, %v1543_v28  ;;  %v1982_v50 = vrot.slane %v1966_v60, 2  ;;  %v2054_v48 = vmul.f32 %v6542_v7, %v10564_v5 }
 0x2b6   : > { %v1867_v43 = vsel %vm811_vm4, %v1865_v30, %v10642_v34  ;;  %v1738_v13 = vadd.f32 %v1722_v55, %v1694_v47  ;;  %v8339_v8 = vmul.f32 %v8307_v51, %v10564_v5  ;;  %v2100_v30 = vmul.f32 %v6542_v7, %v10566_v44  ;;  %v8347_v34 = vld [vmem:[#allocation2 + $0x80] sm:$0xff] }
 0x2b7   : > { %v2101_v11 = vmul.f32 %v6543_v29, %v10566_v44  ;;  %v1607_v1 = vadd.f32 %v1591_v35, %v1563_v17  ;;  %v2026_v22 = vrot.slane %v2010_v62, 3  ;;  %v2176_v60 = vmul.f32 %v6542_v7, %v10567_v31 }
 0x2b8   : > { %v1814_v46 = vadd.f32 %v1788_v3, %v1738_v13  ;;  %v2134_v28 = vrot.slane %v2100_v30, 5  ;;  %v2177_v47 = vmul.f32 %v6543_v29, %v10567_v31  ;;  %v2178_v5 = vmul.f32 %v8307_v51, %v10567_v31  ;;  %v10643_v29 = vld [vmem:[#allocation70_spill] sm:$0xff] }
 0x2b9   : > { %v1651_v56 = vadd.f32 %v1635_v42, %v1607_v1  ;;  %v2135_v6 = vrot.slane %v2101_v11, 5  ;;  %v2070_v35 = vrot.slane %v2054_v48, 4  ;;  %v2210_v17 = vrot.slane %v2176_v60, 6  ;;  %v10644_v11 = vld [vmem:[#allocation73_spill] sm:$0xff] }
 0x2ba   : > { %v1890_v36 = vadd.f32 %v1864_v4, %v1814_v46  ;;  %v2211_v62 = vrot.slane %v2177_v47, 6  ;;  %v2213_v30 = vrot.slane %v2178_v5, 6  ;;  %v8354_v7 = vmul.f32 %v8307_v51, %v10568_v27  ;;  %v10645_v46 = vld [vmem:[#allocation92_spill] sm:$0xff] }
 0x2bb   : > { %v1695_v13 = vadd.f32 %v1679_v32, %v1651_v56  ;;  %v2250_v42 = vmul.f32 %v8307_v51, %v10643_v29  ;;  %v8360_v4 = vmul.f32 %v10568_v27, %v8347_v34  ;;  %v8364_v48 = vmul.f32 %v8307_v51, %v10644_v11 }
 0x2bc   : > { %v1910_v55 = vadd.f32 %v1902_v54, %v1890_v36  ;;  %v8368_v32 = vmul.f32 %v10644_v11, %v8347_v34  ;;  %v2136_v54 = vsel %vm734_vm3, %v2134_v28, %v2135_v6  ;;  %v8373_v56 = vmul.f32 %v10643_v29, %v8347_v34  ;;  %v10648_v6 = vld [vmem:[#allocation37_spill] sm:$0xff] }
 0x2bd   : > { %v1739_v5 = vadd.f32 %v1723_v2, %v1695_v13  ;;  %v2212_v1 = vsel %vm811_vm4, %v2210_v17, %v2211_v62  ;;  %v10646_v60 = vrot.slane %v10645_v46, 6  ;;  %v2286_v3 = vrot.slane %v8354_v7, 1  ;;  %v8386_v2 = vld [vmem:[#allocation2 + $0x88] sm:$0x3]  ;;  %v6544_v46 = vld [vmem:[#allocation2 + $0x78] sm:$0x3] }
 0x2be   : > { %v1954_v36 = vadd.f32 %v1938_v49, %v1910_v55  ;;  %v8384_v11 = vmul.f32 %v8307_v51, %v10647_v33  ;;  %v2330_v17 = vrot.slane %v8364_v48, 2  ;;  %v8394_v13 = vmul.f32 %v10647_v33, %v8347_v34 }
 0x2bf   : > { %v8379_v47 = vsel %vm811_vm4, %v2213_v30, %v10646_v60  ;;  %v1815_v49 = vadd.f32 %v10648_v6, %v1739_v5  ;;  %v10649_v30 = vld [vmem:[#allocation76_spill] sm:$0xff]  ;;  %v10650_v5 = vld [vmem:[#allocation77_spill] sm:$0xff]  ;;  %v10652_v40 = vrot.slane %v8311_v16, 1 }
 0x2c0   : > { %v1998_v55 = vadd.f32 %v1982_v50, %v1954_v36  ;;  %v2448_v7 = vmul.f32 %v8307_v51, %v10649_v30  ;;  %v2449_v60 = vmul.f32 %v6544_v46, %v10649_v30  ;;  %v2374_v50 = vrot.slane %v8384_v11, 3  ;;  %v10651_v11 = vld [vmem:[#allocation79_spill] sm:$0xff] }
 0x2c1   : > { %v1891_v29 = vadd.f32 %v1867_v43, %v1815_v49  ;;  %v8402_v36 = vmul.f32 %v8307_v51, %v10650_v5  ;;  %v8406_v48 = vmul.f32 %v10650_v5, %v8347_v34  ;;  %v2450_v6 = vmul.f32 %v10649_v30, %v8347_v34 }
 0x2c2   : > { %v2042_v27 = vadd.f32 %v2026_v22, %v1998_v55  ;;  %v2451_v62 = vmul.f32 %v10649_v30, %v8386_v2  ;;  %v2482_v28 = vrot.slane %v2448_v7, 5  ;;  %v2483_v49 = vrot.slane %v2449_v60, 5 }
 0x2c3   : > { %v1911_v43 = vadd.f32 %v8318_v39, %v1891_v29  ;;  %v2524_v55 = vmul.f32 %v8307_v51, %v10651_v11  ;;  %v2485_v33 = vrot.slane %v2450_v6, 5  ;;  %v2525_v10 = vmul.f32 %v6544_v46, %v10651_v11  ;;  %v10659_v51 = vld [vmem:[#allocation98_spill] sm:$0xff] }
 0x2c4   : > { %v2086_v22 = vadd.f32 %v2070_v35, %v2042_v27  ;;  %v2486_v23 = vrot.slane %v2451_v62, 5  ;;  %v2526_v5 = vmul.f32 %v10651_v11, %v8347_v34  ;;  %v2527_v27 = vmul.f32 %v10651_v11, %v8386_v2 }
 0x2c5   : > { %v1955_v31 = vadd.f32 %v10652_v40, %v1911_v43  ;;  %v2418_v39 = vrot.slane %v8402_v36, 4  ;;  %v2558_v35 = vrot.slane %v2524_v55, 6  ;;  %v2559_v29 = vrot.slane %v2525_v10, 6 }
 0x2c6   : > { %v2162_v30 = vadd.f32 %v2136_v54, %v2086_v22  ;;  %v10653_v62 = vrot.slane %v8325_v20, 2  ;;  %v2561_v6 = vrot.slane %v2526_v5, 6  ;;  %v2562_v45 = vrot.slane %v2527_v27, 6  ;;  %v10657_v22 = vld [vmem:[#allocation85_spill] sm:$0xff] }
 0x2c7   : > { %v2484_v40 = vsel %vm734_vm3, %v2482_v28, %v2483_v49  ;;  %v8429_v16 = vsel %vm734_vm3, %v2485_v33, %v2486_v23  ;;  %v8433_v54 = vmul.f32 %v7362_v19, %v8347_v34  ;;  %v8436_v36 = vmul.f32 %v7362_v19, %v473_v15 }
 0x2c8   : > { %v1999_v46 = vadd.f32 %v10653_v62, %v1955_v31  ;;  %v2238_v60 = vadd.f32 %v2212_v1, %v2162_v30  ;;  %v10654_v10 = vrot.slane %v8333_v14, 3  ;;  %v10655_v31 = vld [vmem:[#allocation81_spill] sm:$0xff]  ;;  %v10656_v30 = vld [vmem:[#allocation84_spill] sm:$0xff]  ;;  %v2560_v23 = vsel %vm811_vm4, %v2558_v35, %v2559_v29 }
 0x2c9   : > { %v2598_v1 = vmul.f32 %v10655_v31, %v8347_v34  ;;  %v8444_v28 = vmul.f32 %v10656_v30, %v8347_v34  ;;  %v8448_v33 = vmul.f32 %v10655_v31, %v473_v15  ;;  %v8451_v5 = vmul.f32 %v10656_v30, %v473_v15  ;;  %v474_v35 = vld [vmem:[#allocation2 + $0x98] sm:$0x3] }
 0x2ca   : > { %v2043_v43 = vadd.f32 %v10654_v10, %v1999_v46  ;;  %v2258_v20 = vadd.f32 %v2250_v42, %v2238_v60  ;;  %v8455_v14 = vmul.f32 %v10657_v22, %v8347_v34  ;;  %v10658_v42 = vrot.slane %v8339_v8, 4 }
 0x2cb   : > { %v8460_v27 = vsel %vm811_vm4, %v2561_v6, %v2562_v45  ;;  %v2634_v62 = vrot.slane %v8433_v54, 1  ;;  %v2678_v46 = vrot.slane %v8444_v28, 2  ;;  %v8467_v10 = vmul.f32 %v10657_v22, %v473_v15  ;;  %v10660_v45 = vld [vmem:[#allocation88_spill] sm:$0xff]  ;;  %v10661_v54 = vld [vmem:[#allocation86_spill] sm:$0xff] }
 0x2cc   : > { %v2087_v49 = vadd.f32 %v10658_v42, %v2043_v43  ;;  %v2302_v55 = vadd.f32 %v2286_v3, %v2258_v20  ;;  %v2796_v6 = vmul.f32 %v10660_v45, %v8347_v34  ;;  %v8475_v43 = vmul.f32 %v10661_v54, %v8347_v34  ;;  %v10662_v3 = vld [vmem:[#allocation59_spill] sm:$0xff] }
 0x2cd   : > { %v8478_v20 = vmul.f32 %v10661_v54, %v473_v15  ;;  %v2797_v28 = vmul.f32 %v10660_v45, %v8386_v2  ;;  %v2798_v42 = vmul.f32 %v10660_v45, %v473_v15  ;;  %v2872_v22 = vmul.f32 %v10662_v3, %v8347_v34 }
 0x2ce   : > { %v2163_v7 = vadd.f32 %v10659_v51, %v2087_v49  ;;  %v2346_v8 = vadd.f32 %v2330_v17, %v2302_v55  ;;  %v2799_v49 = vmul.f32 %v10660_v45, %v474_v35  ;;  %v2830_v55 = vrot.slane %v2796_v6, 5 }
 0x2cf   : > { %v2831_v60 = vrot.slane %v2797_v28, 5  ;;  %v2833_v29 = vrot.slane %v2798_v42, 5  ;;  %v2873_v54 = vmul.f32 %v10662_v3, %v8386_v2  ;;  %v8491_v11 = vmul.f32 %v10662_v3, %v473_v15 }
 0x2d0   : > { %v2239_v51 = vadd.f32 %v8379_v47, %v2163_v7  ;;  %v2390_v17 = vadd.f32 %v2374_v50, %v2346_v8  ;;  %v2834_v19 = vrot.slane %v2799_v49, 5  ;;  %v2766_v50 = vrot.slane %v8475_v43, 4 }
 0x2d1   : > { %v2832_v8 = vsel %vm734_vm3, %v2830_v55, %v2831_v60  ;;  %v10663_v34 = vrot.slane %v8360_v4, 1  ;;  %v2875_v2 = vmul.f32 %v10662_v3, %v474_v35  ;;  %v2907_v15 = vrot.slane %v2873_v54, 6  ;;  %v8507_v55 = vld [vmem:[#allocation2 + $0xd0] sm:$0xff] }
 0x2d2   : > { %v2259_v31 = vadd.f32 %v8373_v56, %v2239_v51  ;;  %v2434_v30 = vadd.f32 %v2418_v39, %v2390_v17  ;;  %v2906_v56 = vrot.slane %v2872_v22, 6  ;;  %v8501_v39 = vsel %vm734_vm3, %v2833_v29, %v2834_v19  ;;  %v6545_v51 = vld [vmem:[#allocation2 + $0xc0] sm:$0xff]  ;;  %v10664_v17 = vld [vmem:[#allocation14_spill] sm:$0xff]  ;;  %v10668_v35 = vld [vmem:[#allocation19_spill] sm:$0xff] }
 0x2d3   : > { %v2909_v42 = vrot.slane %v8491_v11, 6  ;;  %v532_v43 = vmul.f32 %v6545_v51, %v10664_v17  ;;  %v10665_v49 = vrot.slane %v8368_v32, 2  ;;  %v533_v4 = vmul.f32 %v8507_v55, %v10664_v17 }
 0x2d4   : > { %v2303_v6 = vadd.f32 %v10663_v34, %v2259_v31  ;;  %v2510_v28 = vadd.f32 %v2484_v40, %v2434_v30  ;;  %v10666_v40 = vld [vmem:[#allocation17_spill] sm:$0xff]  ;;  %v10667_v30 = vld [vmem:[#allocation16_spill] sm:$0xff]  ;;  %v620_v29 = vmul.f32 %v6545_v51, %v10668_v35  ;;  %v10669_v32 = vrot.slane %v8394_v13, 3 }
 0x2d5   : > { %v576_v31 = vmul.f32 %v6545_v51, %v10666_v40  ;;  %v513_v19 = vmul.f32 %v8507_v55, %v10667_v30  ;;  %v548_v22 = vrot.slane %v532_v43, 1  ;;  %v577_v11 = vmul.f32 %v8507_v55, %v10666_v40 }
 0x2d6   : > { %v2347_v7 = vadd.f32 %v10665_v49, %v2303_v6  ;;  %v2586_v60 = vadd.f32 %v2560_v23, %v2510_v28  ;;  %v549_v54 = vrot.slane %v533_v4, 1  ;;  %v10670_v6 = vld [vmem:[#allocation50_spill] sm:$0xff]  ;;  %v621_v49 = vmul.f32 %v8507_v55, %v10668_v35 }
 0x2d7   : > { %v592_v34 = vrot.slane %v576_v31, 2  ;;  %v564_v28 = vadd.f32 %v548_v22, %v10670_v6  ;;  %v593_v17 = vrot.slane %v577_v11, 2  ;;  %v636_v47 = vrot.slane %v620_v29, 3 }
 0x2d8   : > { %v2391_v3 = vadd.f32 %v10669_v32, %v2347_v7  ;;  %v2606_v23 = vadd.f32 %v2598_v1, %v2586_v60  ;;  %v10671_v43 = vrot.slane %v8406_v48, 4  ;;  %v565_v40 = vadd.f32 %v549_v54, %v513_v19  ;;  %v10673_v7 = vld [vmem:[#allocation24_spill] sm:$0xff] }
 0x2d9   : > { %v664_v53 = vmul.f32 %v6545_v51, %v10672_v58  ;;  %v608_v0 = vadd.f32 %v592_v34, %v564_v28  ;;  %v637_v13 = vrot.slane %v621_v49, 3  ;;  %v665_v1 = vmul.f32 %v8507_v55, %v10672_v58  ;;  %v10677_v34 = vld [vmem:[#allocation95_spill] sm:$0xff]  ;;  %v8544_v28 = vld [vmem:[#allocation2 + $0xe0] sm:$0xff] }
 0x2da   : > { %v2435_v30 = vadd.f32 %v10671_v43, %v2391_v3  ;;  %v2650_v45 = vadd.f32 %v2634_v62, %v2606_v23  ;;  %v791_v60 = vmul.f32 %v6545_v51, %v10673_v7  ;;  %v609_v22 = vadd.f32 %v593_v17, %v565_v40  ;;  %v10679_v43 = vld [vmem:[#allocation44_spill] sm:$0xff]  ;;  %v10680_v40 = vld [vmem:[#allocation94_spill] sm:$0xff] }
 0x2db   : > { %v680_v11 = vrot.slane %v664_v53, 4  ;;  %v2910_v35 = vrot.slane %v2875_v2, 6  ;;  %v652_v29 = vadd.f32 %v636_v47, %v608_v0  ;;  %v793_v48 = vmul.f32 %v8507_v55, %v10673_v7 }
 0x2dc   : > { %v2511_v4 = vadd.f32 %v8429_v16, %v2435_v30  ;;  %v2694_v31 = vadd.f32 %v2678_v46, %v2650_v45  ;;  %v830_v62 = vrot.slane %v791_v60, 6  ;;  %v10674_v32 = vrot.slane %v8455_v14, 3  ;;  %v10675_v16 = vld [vmem:[#allocation91_spill] sm:$0xff] }
 0x2dd   : > { %v653_v23 = vadd.f32 %v637_v13, %v609_v22  ;;  %v681_v58 = vrot.slane %v665_v1, 4  ;;  %v2908_v51 = vsel %vm811_vm4, %v2906_v56, %v2907_v15  ;;  %v696_v54 = vadd.f32 %v680_v11, %v652_v29 }
 0x2de   : > { %v2587_v19 = vadd.f32 %v8460_v27, %v2511_v4  ;;  %v2738_v3 = vadd.f32 %v10674_v32, %v2694_v31  ;;  %v10676_v46 = vrot.slane %v10675_v16, 6  ;;  %v833_v45 = vrot.slane %v793_v48, 6 }
 0x2df   : > { %v697_v2 = vadd.f32 %v681_v58, %v653_v23  ;;  %v882_v27 = vmul.f32 %v8507_v55, %v10600_v63  ;;  %v773_v14 = vadd.f32 %v10677_v34, %v696_v54  ;;  %v862_v6 = vmul.f32 %v8507_v55, %v10599_v21  ;;  %v10685_v58 = vld [vmem:[#allocation31_spill] sm:$0xff] }
 0x2e0   : > { %v832_v53 = vsel %vm811_vm4, %v830_v62, %v10676_v46  ;;  %v2607_v0 = vadd.f32 %v8448_v33, %v2587_v19  ;;  %v2782_v47 = vadd.f32 %v2766_v50, %v2738_v3  ;;  %v883_v56 = vmul.f32 %v8544_v28, %v10600_v63 }
 0x2e1   : > { %v926_v15 = vmul.f32 %v8507_v55, %v10602_v52  ;;  %v10678_v33 = vrot.slane %v8436_v36, 1  ;;  %v2911_v49 = vsel %vm811_vm4, %v2909_v42, %v2910_v35  ;;  %v774_v30 = vadd.f32 %v10679_v43, %v697_v2 }
 0x2e2   : > { %v2858_v17 = vadd.f32 %v2832_v8, %v2782_v47  ;;  %v10681_v13 = vrot.slane %v10680_v40, 6  ;;  %v850_v7 = vadd.f32 %v832_v53, %v773_v14  ;;  %v898_v60 = vrot.slane %v882_v27, 1  ;;  %v10683_v8 = vld [vmem:[#allocation30_spill] sm:$0xff]  ;;  %v10688_v27 = vld [vmem:[#allocation33_spill] sm:$0xff] }
 0x2e3   : > { %v2651_v50 = vadd.f32 %v10678_v33, %v2607_v0  ;;  %v927_v63 = vmul.f32 %v8544_v28, %v10602_v52  ;;  %v10682_v4 = vrot.slane %v8451_v5, 2  ;;  %v863_v36 = vmul.f32 %v8544_v28, %v10599_v21 }
 0x2e4   : > { %v835_v1 = vsel %vm811_vm4, %v833_v45, %v10681_v13  ;;  %v970_v42 = vmul.f32 %v8507_v55, %v10683_v8  ;;  %v870_v11 = vadd.f32 %v862_v6, %v850_v7  ;;  %v899_v35 = vrot.slane %v883_v56, 1  ;;  %v10687_v45 = vld [vmem:[#allocation32_spill] sm:$0xff] }
 0x2e5   : > { %v2695_v31 = vadd.f32 %v10682_v4, %v2651_v50  ;;  %v851_v22 = vadd.f32 %v835_v1, %v774_v30  ;;  %v942_v29 = vrot.slane %v926_v15, 2  ;;  %v971_v48 = vmul.f32 %v8544_v28, %v10683_v8  ;;  %v8584_v7 = vld [vmem:[#allocation2 + $0xf8] sm:$0x3] }
 0x2e6   : > { %v10684_v62 = vrot.slane %v8467_v10, 3  ;;  %v2934_v52 = vadd.f32 %v2908_v51, %v2858_v17  ;;  %v943_v5 = vrot.slane %v927_v63, 2  ;;  %v914_v3 = vadd.f32 %v898_v60, %v870_v11  ;;  %v6548_v10 = vld [vmem:[#allocation2 + $0xd8] sm:$0x3]  ;;  %v10691_v11 = vld [vmem:[#allocation54_spill] sm:$0xff] }
 0x2e7   : > { %v871_v32 = vadd.f32 %v863_v36, %v851_v22  ;;  %v986_v23 = vrot.slane %v970_v42, 3  ;;  %v1014_v21 = vmul.f32 %v8507_v55, %v10685_v58  ;;  %v1015_v54 = vmul.f32 %v8544_v28, %v10685_v58  ;;  %v10689_v8 = vld [vmem:[#allocation96_spill] sm:$0xff]  ;;  %v10693_v58 = vld [vmem:[#allocation97_spill] sm:$0xff] }
 0x2e8   : > { %v2739_v19 = vadd.f32 %v10684_v62, %v2695_v31  ;;  %v10686_v16 = vrot.slane %v8478_v20, 4  ;;  %v1064_v0 = vmul.f32 %v8507_v55, %v10687_v45  ;;  %v1065_v51 = vmul.f32 %v6548_v10, %v10687_v45 }
 0x2e9   : > { %v915_v53 = vadd.f32 %v899_v35, %v871_v32  ;;  %v958_v47 = vadd.f32 %v942_v29, %v914_v3  ;;  %v987_v2 = vrot.slane %v971_v48, 3  ;;  %v1140_v34 = vmul.f32 %v8507_v55, %v10688_v27 }
 0x2ea   : > { %v2783_v46 = vadd.f32 %v10686_v16, %v2739_v19  ;;  %v1141_v14 = vmul.f32 %v6548_v10, %v10688_v27  ;;  %v1102_v15 = vrot.slane %v1064_v0, 5  ;;  %v1103_v20 = vrot.slane %v1065_v51, 5  ;;  %v8610_v19 = vld [vmem:[#allocation2 + $0xf0] sm:$0xff] }
 0x2eb   : > { %v959_v56 = vadd.f32 %v943_v5, %v915_v53  ;;  %v1002_v33 = vadd.f32 %v986_v23, %v958_v47  ;;  %v1030_v50 = vrot.slane %v1014_v21, 4  ;;  %v1031_v17 = vrot.slane %v1015_v54, 4 }
 0x2ec   : > { %v2859_v6 = vadd.f32 %v8501_v39, %v2783_v46  ;;  %v1142_v43 = vmul.f32 %v8544_v28, %v10688_v27  ;;  %v1178_v13 = vrot.slane %v1140_v34, 6  ;;  %v1179_v1 = vrot.slane %v1141_v14, 6  ;;  %v8590_v39 = vld [vmem:[#allocation2 + $0x108] sm:$0x3] }
 0x2ed   : > { %v1003_v40 = vadd.f32 %v987_v2, %v959_v56  ;;  %v8588_v55 = vmul.f32 %v8584_v7, %v7093_v37  ;;  %v8594_v60 = vmul.f32 %v8590_v39, %v10535_v61  ;;  %v1046_v63 = vadd.f32 %v1030_v50, %v1002_v33 }
 0x2ee   : > { %v2935_v30 = vadd.f32 %v2911_v49, %v2859_v6  ;;  %v1181_v4 = vrot.slane %v1142_v43, 6  ;;  %v8597_v31 = vadd.f32 %v8003_v38, %v2934_v52  ;;  %v1104_v36 = vsel %vm734_vm3, %v1102_v15, %v1103_v20  ;;  %v6552_v6 = vld [vmem:[#allocation2 + $0xe8] sm:$0x3] }
 0x2ef   : > { %v1047_v22 = vadd.f32 %v1031_v17, %v1003_v40  ;;  %v10690_v42 = vrot.slane %v10689_v8, 5  ;;  %v10692_v35 = vrot.slane %v10691_v11, 5  ;;  %v1122_v48 = vadd.f32 %v1104_v36, %v1046_v63 }
 0x2f0   : > { %v8600_v49 = vadd.f32 %v8042_v25, %v2935_v30  ;;  %v1230_v62 = vmul.f32 %v8544_v28, %v7003_v18  ;;  %v1231_v52 = vmul.f32 %v8610_v19, %v7003_v18  ;;  %v1180_v3 = vsel %vm811_vm4, %v1178_v13, %v1179_v1 }
 0x2f1   : > { %v1107_v29 = vsel %vm734_vm3, %v10692_v35, %v10690_v42  ;;  %v1210_v23 = vmul.f32 %v8544_v28, %v6999_v12  ;;  %v10694_v21 = vrot.slane %v10693_v58, 6  ;;  %v1198_v16 = vadd.f32 %v1180_v3, %v1122_v48 }
 0x2f2   : > { %v2970_v32 = vcombine.low %v8597_v31, %v8600_v49  ;;  %v1123_v5 = vadd.f32 %v1107_v29, %v1047_v22  ;;  %v1274_v46 = vmul.f32 %v8544_v28, %v7019_v24  ;;  %v1275_v18 = vmul.f32 %v8610_v19, %v7019_v24 }
 0x2f3   : > { %v1183_v54 = vsel %vm811_vm4, %v1181_v4, %v10694_v21  ;;  %v1414_v53 = vmul.f32 %v8610_v19, %v10631_v9  ;;  %v1211_v10 = vmul.f32 %v8610_v19, %v6999_v12  ;;  %v1218_v51 = vadd.f32 %v1210_v23, %v1198_v16  ;;  %v10695_v21 = vld [vmem:[#allocation100_spill] sm:$0xff] }
 0x2f4   : > { %v2980_v45 = vsel %vm10269_vm1, %v2970_v32, 0.0  ;;  %v1199_v0 = vadd.f32 %v1183_v54, %v1123_v5  ;;  %v1246_v47 = vrot.slane %v1230_v62, 1  ;;  %v1247_v2 = vrot.slane %v1231_v52, 1 }
 0x2f5   : > { %2981 = vadd.xlane.f32.xlu1 %v2980_v45  ;;  %v1318_v27 = vmul.f32 %v8544_v28, %v7029_v41  ;;  %v1319_v24 = vmul.f32 %v8610_v19, %v7029_v41  ;;  %v1412_v14 = vmul.f32 %v8544_v28, %v10631_v9  ;;  %v1413_v56 = vmul.f32 %v6552_v6, %v10631_v9 }
 0x2f6   : > { %v1219_v34 = vadd.f32 %v1211_v10, %v1199_v0  ;;  %v1262_v15 = vadd.f32 %v1246_v47, %v1218_v51  ;;  %v1290_v20 = vrot.slane %v1274_v46, 2  ;;  %v1291_v12 = vrot.slane %v1275_v18, 2  ;;  %v8666_v18 = vld [vmem:[#allocation2 + $0x100] sm:$0xff]  ;;  %v8672_v0 = vld [vmem:[#allocation2 + $0x118] sm:$0x3] }
 0x2f7   : > { %v1362_v33 = vmul.f32 %v8544_v28, %v7062_v57  ;;  %v1363_v17 = vmul.f32 %v8610_v19, %v7062_v57  ;;  %v1488_v43 = vmul.f32 %v8544_v28, %v7093_v37  ;;  %v1489_v41 = vmul.f32 %v6552_v6, %v7093_v37  ;;  %v8651_v57 = vld [vmem:[#allocation2 + $0x110] sm:$0xff] }
 0x2f8   : > { %v1263_v50 = vadd.f32 %v1247_v2, %v1219_v34  ;;  %v8647_v30 = vmul.f32 %v8590_v39, %v10540_v26  ;;  %v1306_v9 = vadd.f32 %v1290_v20, %v1262_v15  ;;  %v1334_v40 = vrot.slane %v1318_v27, 3 }
 0x2f9   : > { %v1490_v13 = vmul.f32 %v8610_v19, %v7093_v37  ;;  %v1335_v63 = vrot.slane %v1319_v24, 3  ;;  %v1450_v4 = vrot.slane %v1412_v14, 5  ;;  %v1451_v22 = vrot.slane %v1413_v56, 5  ;;  %v10698_v24 = vld [vmem:[#allocation47_spill] sm:$0xff] }
 0x2fa   : > { %v1307_v1 = vadd.f32 %v1291_v12, %v1263_v50  ;;  %v1453_v36 = vrot.slane %v1414_v53, 5  ;;  %v8655_v28 = vmul.f32 %v8651_v57, %v10566_v44  ;;  %v1350_v8 = vadd.f32 %v1334_v40, %v1306_v9  ;;  %v10697_v53 = vld [vmem:[#allocation52_spill] sm:$0xff] }
 0x2fb   : > { %v1378_v42 = vrot.slane %v1362_v33, 4  ;;  %v1379_v35 = vrot.slane %v1363_v17, 4  ;;  %v1526_v29 = vrot.slane %v1488_v43, 6  ;;  %v1527_v48 = vrot.slane %v1489_v41, 6  ;;  %v10699_v17 = vld [vmem:[#allocation53_spill] sm:$0xff] }
 0x2fc   : > { %v1351_v11 = vadd.f32 %v1335_v63, %v1307_v1  ;;  %v1530_v62 = vrot.slane %v8588_v55, 6  ;;  %v1802_v37 = vrot.slane %v8594_v60, 5  ;;  %v1529_v32 = vrot.slane %v1490_v13, 6  ;;  %v10700_v63 = vld [vmem:[#allocation55_spill] sm:$0xff] }
 0x2fd   : > { %v1394_v52 = vadd.f32 %v1378_v42, %v1350_v8  ;;  %v1878_v5 = vrot.slane %v8647_v30, 6  ;;  %v1452_v23 = vsel %vm734_vm3, %v1450_v4, %v1451_v22  ;;  %v1578_v58 = vmul.f32 %v8610_v19, %v10470_v59 }
 0x2fe   : > { %v1395_v3 = vadd.f32 %v1379_v35, %v1351_v11  ;;  %v10696_v54 = vrot.slane %v10695_v21, 5  ;;  %v1579_v55 = vmul.f32 %v8666_v18, %v10470_v59  ;;  %v1622_v45 = vmul.f32 %v8610_v19, %v10697_v53 }
 0x2ff   : > { %v1470_v46 = vadd.f32 %v1452_v23, %v1394_v52  ;;  %v8676_v10 = vmul.f32 %v8672_v0, %v10566_v44  ;;  %v2149_v51 = vrot.slane %v8655_v28, 5  ;;  %v1528_v2 = vsel %vm811_vm4, %v1526_v29, %v1527_v48  ;;  %v10702_v48 = vld [vmem:[#allocation64_spill] sm:$0xff] }
 0x300   : > { %v1455_v16 = vsel %vm734_vm3, %v1453_v36, %v10696_v54  ;;  %v1762_v27 = vmul.f32 %v8666_v18, %v10535_v61  ;;  %v1531_v34 = vsel %vm811_vm4, %v1529_v32, %v1530_v62  ;;  %v1558_v14 = vmul.f32 %v8610_v19, %v10698_v24 }
 0x301   : > { %v1471_v47 = vadd.f32 %v1455_v16, %v1395_v3  ;;  %v1546_v59 = vadd.f32 %v1528_v2, %v1470_v46  ;;  %v1559_v56 = vmul.f32 %v8666_v18, %v10698_v24  ;;  %v1594_v15 = vrot.slane %v1578_v58, 1 }
 0x302   : > { %v1623_v20 = vmul.f32 %v8666_v18, %v10697_v53  ;;  %v1595_v33 = vrot.slane %v1579_v55, 1  ;;  %v1638_v50 = vrot.slane %v1622_v45, 2  ;;  %v1666_v43 = vmul.f32 %v8610_v19, %v10699_v17  ;;  %v10703_v53 = vld [vmem:[#allocation61_spill] sm:$0xff] }
 0x303   : > { %v1547_v6 = vadd.f32 %v1531_v34, %v1471_v47  ;;  %v1566_v12 = vadd.f32 %v1558_v14, %v1546_v59  ;;  %v1667_v9 = vmul.f32 %v8666_v18, %v10699_v17  ;;  %v1760_v40 = vmul.f32 %v8610_v19, %v10535_v61  ;;  %v8718_v47 = vld [vmem:[%s10057_s1] ss:$0 sm:$0xff] }
 0x304   : > { %v1761_v13 = vmul.f32 %v8584_v7, %v10535_v61  ;;  %v1710_v4 = vmul.f32 %v8610_v19, %v10700_v63  ;;  %v1836_v22 = vmul.f32 %v8610_v19, %v10540_v26  ;;  %v1837_v36 = vmul.f32 %v8584_v7, %v10540_v26  ;;  %v10701_v61 = vld [vmem:[#allocation25_spill] sm:$0xff] }
 0x305   : > { %v1567_v41 = vadd.f32 %v1559_v56, %v1547_v6  ;;  %v1610_v1 = vadd.f32 %v1594_v15, %v1566_v12  ;;  %v1639_v42 = vrot.slane %v1623_v20, 2  ;;  %v1711_v11 = vmul.f32 %v8666_v18, %v10700_v63  ;;  %v10704_v6 = vld [vmem:[#allocation58_spill] sm:$0xff] }
 0x306   : > { %v1838_v35 = vmul.f32 %v8666_v18, %v10540_v26  ;;  %3195 = vrot.lane.b32.xlu1 %v10701_v61, %s6624_s26  ;;  %v1801_v29 = vrot.slane %v1762_v27, 5  ;;  %v8711_v62 = vmul.f32 %v8672_v0, %v10702_v48  ;;  %v1682_v52 = vrot.slane %v1666_v43, 3 }
 0x307   : > { %v1611_v8 = vadd.f32 %v1595_v33, %v1567_v41  ;;  %v1654_v19 = vadd.f32 %v1638_v50, %v1610_v1  ;;  %v1683_v32 = vrot.slane %v1667_v9, 3  ;;  %v1798_v3 = vrot.slane %v1760_v40, 5  ;;  %v10706_v9 = vld [vmem:[#allocation66_spill] sm:$0xff]  ;;  %v10707_v1 = vld [vmem:[#allocation67_spill] sm:$0xff] }
 0x308   : > { %v1799_v23 = vrot.slane %v1761_v13, 5  ;;  %v1726_v21 = vrot.slane %v1710_v4, 4  ;;  %v1874_v54 = vrot.slane %v1836_v22, 6  ;;  %v1875_v16 = vrot.slane %v1837_v36, 6 }
 0x309   : > { %v1655_v7 = vadd.f32 %v1639_v42, %v1611_v8  ;;  %v1698_v58 = vadd.f32 %v1682_v52, %v1654_v19  ;;  %v1727_v46 = vrot.slane %v1711_v11, 4  ;;  %v1877_v55 = vrot.slane %v1838_v35, 6  ;;  %v8760_v52 = vld [vmem:[#allocation2 + $0x120] sm:$0xff] }
 0x30a   : > { %v1927_v45 = vmul.f32 %v8651_v57, %v10703_v53  ;;  %3207 = vrot.lane.b32.xlu1 %v8718_v47, %s6625_s4  ;;  %v1803_v2 = vsel %vm734_vm3, %v1801_v29, %v1802_v37  ;;  %v2150_v27 = vrot.slane %v8676_v10, 5  ;;  %v2226_v34 = vrot.slane %v8711_v62, 6  ;;  %v10705_v37 = vld [vmem:[#allocation65_spill] sm:$0xff] }
 0x30b   : > { %v1699_v26 = vadd.f32 %v1683_v32, %v1655_v7  ;;  %v1742_v59 = vadd.f32 %v1726_v21, %v1698_v58  ;;  %v1800_v14 = vsel %vm734_vm3, %v1798_v3, %v1799_v23  ;;  %v1906_v56 = vmul.f32 %v8666_v18, %v10704_v6 }
 0x30c   : > { %v1907_v15 = vmul.f32 %v8651_v57, %v10704_v6  ;;  %v1876_v12 = vsel %vm811_vm4, %v1874_v54, %v1875_v16  ;;  %v1926_v60 = vmul.f32 %v8666_v18, %v10703_v53  ;;  %v1970_v10 = vmul.f32 %v8666_v18, %v10705_v37  ;;  %v10709_v53 = vld [vmem:[#allocation73_spill] sm:$0xff] }
 0x30d   : > { %v1743_v24 = vadd.f32 %v1727_v46, %v1699_v26  ;;  %v1818_v20 = vadd.f32 %v1800_v14, %v1742_v59  ;;  %v1879_v50 = vsel %vm811_vm4, %v1877_v55, %v1878_v5  ;;  %v1943_v17 = vrot.slane %v1927_v45, 1 }
 0x30e   : > { %v1971_v43 = vmul.f32 %v8651_v57, %v10705_v37  ;;  %v2014_v40 = vmul.f32 %v8666_v18, %v10706_v9  ;;  %v2015_v13 = vmul.f32 %v8651_v57, %v10706_v9  ;;  %v2059_v63 = vmul.f32 %v8651_v57, %v10707_v1 }
 0x30f   : > { %v1819_v33 = vadd.f32 %v1803_v2, %v1743_v24  ;;  %v1894_v41 = vadd.f32 %v1876_v12, %v1818_v20  ;;  %v2108_v30 = vmul.f32 %v8666_v18, %v10566_v44  ;;  %v2109_v5 = vmul.f32 %v8590_v39, %v10566_v44 }
 0x310   : > { %v2184_v22 = vmul.f32 %v8666_v18, %v10702_v48  ;;  %v1942_v8 = vrot.slane %v1926_v60, 1  ;;  %v2185_v42 = vmul.f32 %v8590_v39, %v10702_v48  ;;  %v2186_v11 = vmul.f32 %v8651_v57, %v10702_v48  ;;  %v10708_v48 = vld [vmem:[#allocation71_spill] sm:$0xff]  ;;  %v8778_v60 = vld [vmem:[#allocation2 + $0x128] sm:$0x3] }
 0x311   : > { %v1895_v4 = vadd.f32 %v1879_v50, %v1819_v33  ;;  %v1914_v36 = vadd.f32 %v1906_v56, %v1894_v41  ;;  %v1986_v29 = vrot.slane %v1970_v10, 2  ;;  %v1987_v62 = vrot.slane %v1971_v43, 2  ;;  %v10711_v41 = vld [vmem:[#allocation74_spill] sm:$0xff] }
 0x312   : > { %v2058_v19 = vmul.f32 %v8666_v18, %v10707_v1  ;;  %v2030_v7 = vrot.slane %v2014_v40, 3  ;;  %v2031_v32 = vrot.slane %v2015_v13, 3  ;;  %v2075_v3 = vrot.slane %v2059_v63, 4  ;;  %v10712_v13 = vld [vmem:[#allocation76_spill] sm:$0xff] }
 0x313   : > { %v1915_v35 = vadd.f32 %v1907_v15, %v1895_v4  ;;  %v1958_v44 = vadd.f32 %v1942_v8, %v1914_v36  ;;  %v2146_v58 = vrot.slane %v2108_v30, 5  ;;  %v2147_v21 = vrot.slane %v2109_v5, 5  ;;  %v10710_v15 = vld [vmem:[#allocation70_spill] sm:$0xff]  ;;  %v10714_v8 = vld [vmem:[#allocation79_spill] sm:$0xff] }
 0x314   : > { %v2222_v54 = vrot.slane %v2184_v22, 6  ;;  %v2223_v16 = vrot.slane %v2185_v42, 6  ;;  %v2225_v26 = vrot.slane %v2186_v11, 6  ;;  %v2274_v46 = vmul.f32 %v8651_v57, %v10708_v48  ;;  %v10713_v22 = vld [vmem:[#allocation77_spill] sm:$0xff] }
 0x315   : > { %v1959_v23 = vadd.f32 %v1943_v17, %v1915_v35  ;;  %v2002_v39 = vadd.f32 %v1986_v29, %v1958_v44  ;;  %v2275_v18 = vmul.f32 %v10708_v48, %v8760_v52  ;;  %v2318_v45 = vmul.f32 %v8651_v57, %v10709_v53 }
 0x316   : > { %v2319_v2 = vmul.f32 %v10709_v53, %v8760_v52  ;;  %v2151_v59 = vsel %vm734_vm3, %v2149_v51, %v2150_v27  ;;  %v2074_v14 = vrot.slane %v2058_v19, 4  ;;  %v2148_v56 = vsel %vm734_vm3, %v2146_v58, %v2147_v21 }
 0x317   : > { %v2003_v55 = vadd.f32 %v1987_v62, %v1959_v23  ;;  %v2046_v24 = vadd.f32 %v2030_v7, %v2002_v39  ;;  %v2254_v20 = vmul.f32 %v8651_v57, %v10710_v15  ;;  %v2255_v12 = vmul.f32 %v10710_v15, %v8760_v52  ;;  %v8806_v23 = vld [vmem:[#allocation2 + $0x130] sm:$0xff] }
 0x318   : > { %v2224_v10 = vsel %vm811_vm4, %v2222_v54, %v2223_v16  ;;  %v2227_v28 = vsel %vm811_vm4, %v2225_v26, %v2226_v34  ;;  %v2290_v33 = vrot.slane %v2274_v46, 1  ;;  %v2291_v27 = vrot.slane %v2275_v18, 1 }
 0x319   : > { %v2047_v6 = vadd.f32 %v2031_v32, %v2003_v55  ;;  %v2090_v37 = vadd.f32 %v2074_v14, %v2046_v24  ;;  %v2334_v50 = vrot.slane %v2318_v45, 2  ;;  %v2335_v17 = vrot.slane %v2319_v2, 2  ;;  %v10715_v45 = vld [vmem:[#allocation82_spill] sm:$0xff]  ;;  %v10716_v24 = vld [vmem:[#allocation84_spill] sm:$0xff] }
 0x31a   : > { %v2362_v9 = vmul.f32 %v8651_v57, %v10711_v41  ;;  %v2363_v40 = vmul.f32 %v10711_v41, %v8760_v52  ;;  %v2456_v1 = vmul.f32 %v8651_v57, %v10712_v13  ;;  %v2457_v4 = vmul.f32 %v8672_v0, %v10712_v13 }
 0x31b   : > { %v2091_v51 = vadd.f32 %v2075_v3, %v2047_v6  ;;  %v2166_v43 = vadd.f32 %v2148_v56, %v2090_v37  ;;  %v2458_v34 = vmul.f32 %v10712_v13, %v8760_v52  ;;  %v2459_v30 = vmul.f32 %v10712_v13, %v8778_v60 }
 0x31c   : > { %v2406_v36 = vmul.f32 %v8651_v57, %v10713_v22  ;;  %v2532_v42 = vmul.f32 %v8651_v57, %v10714_v8  ;;  %v2533_v11 = vmul.f32 %v8672_v0, %v10714_v8  ;;  %v2407_v29 = vmul.f32 %v10713_v22, %v8760_v52 }
 0x31d   : > { %v2167_v63 = vadd.f32 %v2151_v59, %v2091_v51  ;;  %v2242_v5 = vadd.f32 %v2224_v10, %v2166_v43  ;;  %v2534_v62 = vmul.f32 %v10714_v8, %v8760_v52  ;;  %v2535_v19 = vmul.f32 %v10714_v8, %v8778_v60  ;;  %v10717_v10 = vld [vmem:[#allocation81_spill] sm:$0xff] }
 0x31e   : > { %v2378_v7 = vrot.slane %v2362_v9, 3  ;;  %v2379_v32 = vrot.slane %v2363_v40, 3  ;;  %v2494_v3 = vrot.slane %v2456_v1, 5  ;;  %v2495_v58 = vrot.slane %v2457_v4, 5  ;;  %v494_v4 = vld [vmem:[#allocation2 + $0x138] sm:$0x3] }
 0x31f   : > { %v2243_v35 = vadd.f32 %v2227_v28, %v2167_v63  ;;  %v2262_v44 = vadd.f32 %v2254_v20, %v2242_v5  ;;  %v2497_v21 = vrot.slane %v2458_v34, 5  ;;  %v2498_v0 = vrot.slane %v2459_v30, 5 }
 0x320   : > { %v2422_v39 = vrot.slane %v2406_v36, 4  ;;  %v2570_v16 = vrot.slane %v2532_v42, 6  ;;  %v2571_v26 = vrot.slane %v2533_v11, 6  ;;  %v2423_v46 = vrot.slane %v2407_v29, 4 }
 0x321   : > { %v2263_v57 = vadd.f32 %v2255_v12, %v2243_v35  ;;  %v2306_v54 = vadd.f32 %v2290_v33, %v2262_v44  ;;  %v2573_v55 = vrot.slane %v2534_v62, 6  ;;  %v2574_v18 = vrot.slane %v2535_v19, 6  ;;  %v10718_v33 = vld [vmem:[#allocation85_spill] sm:$0xff]  ;;  %v10719_v35 = vld [vmem:[#allocation86_spill] sm:$0xff]  ;;  %v10720_v62 = vld [vmem:[#allocation88_spill] sm:$0xff]  ;;  %v2979_v44 = vpop.xlane.xlu0 %2978 }
 0x322   : > { %v2622_v2 = vmul.f32 %v10715_v45, %v8760_v52  ;;  %v2623_v59 = vmul.f32 %v10715_v45, %v8806_v23  ;;  %v2666_v14 = vmul.f32 %v10716_v24, %v8760_v52  ;;  %v2496_v56 = vsel %vm734_vm3, %v2494_v3, %v2495_v58 }
 0x323   : > { %v2307_v48 = vadd.f32 %v2291_v27, %v2263_v57  ;;  %v2350_v53 = vadd.f32 %v2334_v50, %v2306_v54  ;;  %v2499_v15 = vsel %vm734_vm3, %v2497_v21, %v2498_v0  ;;  %v2667_v20 = vmul.f32 %v10716_v24, %v8806_v23  ;;  %v6557_v54 = vld [vmem:[%s10058_s2 + $0x60] ss:$0 sm:$0xff] }
 0x324   : > { %v2572_v37 = vsel %vm811_vm4, %v2570_v16, %v2571_v26  ;;  %v2602_v28 = vmul.f32 %v10717_v10, %v8760_v52  ;;  %v2710_v51 = vmul.f32 %v10718_v33, %v8760_v52  ;;  %v2575_v50 = vsel %vm811_vm4, %v2573_v55, %v2574_v18 }
 0x325   : > { %v2351_v6 = vadd.f32 %v2335_v17, %v2307_v48  ;;  %v2394_v12 = vadd.f32 %v2378_v7, %v2350_v53  ;;  %v2603_v17 = vmul.f32 %v10717_v10, %v8806_v23  ;;  %v2711_v43 = vmul.f32 %v10718_v33, %v8806_v23  ;;  %v10721_v48 = vld [vmem:[#allocation9_spill] sm:$0xff] }
 0x326   : > { %v2638_v9 = vrot.slane %v2622_v2, 1  ;;  %v2639_v40 = vrot.slane %v2623_v59, 1  ;;  %v2682_v13 = vrot.slane %v2666_v14, 2  ;;  %v2683_v63 = vrot.slane %v2667_v20, 2 }
 0x327   : > { %v2395_v27 = vadd.f32 %v2379_v32, %v2351_v6  ;;  %v2438_v41 = vadd.f32 %v2422_v39, %v2394_v12  ;;  %v2726_v30 = vrot.slane %v2710_v51, 3  ;;  %v6626_v5 = vmov 839922192  }
 0x328   : > { %v2998_v22 = vunpack.c.l.s4 %v6626_v5  ;;  %v6627_v36 = vmov 1985246804   ;;  %v2727_v11 = vrot.slane %v2711_v43, 3  ;;  %v2754_v29 = vmul.f32 %v10719_v35, %v8760_v52  ;;  %v10723_v5 = vld [vmem:[#allocation56_spill] sm:$0xff] }
 0x329   : > { %v2439_v1 = vadd.f32 %v2423_v46, %v2395_v27  ;;  %v2514_v34 = vadd.f32 %v2496_v56, %v2438_v41  ;;  %v3005_v8 = vunpack.c.l.s4 %v6627_v36  ;;  %v2804_v19 = vmul.f32 %v10720_v62, %v8760_v52 }
 0x32a   : > { %v2805_v32 = vmul.f32 %v10720_v62, %v8778_v60  ;;  %v2999_v3 = vunpack.c.0.s8 %v2998_v22  ;;  %v2806_v21 = vmul.f32 %v10720_v62, %v8806_v23  ;;  %v2807_v0 = vmul.f32 %v10720_v62, %v494_v4 }
 0x32b   : > { %v2515_v42 = vadd.f32 %v2499_v15, %v2439_v1  ;;  %v2590_v7 = vadd.f32 %v2572_v37, %v2514_v34  ;;  %v3006_v57 = vunpack.c.0.s8 %v3005_v8  ;;  %v2880_v39 = vmul.f32 %v6557_v54, %v8760_v52 }
 0x32c   : > { %v2881_v26 = vmul.f32 %v6557_v54, %v8778_v60  ;;  %v8843_v46 = vsub.s32 %v2999_v3, %v10721_v48  ;;  %v2989_v55 = vmul.f32 0.125, %v2979_v44  ;;  %v2755_v53 = vmul.f32 %v10719_v35, %v8806_v23 }
 0x32d   : > { %v2591_v58 = vadd.f32 %v2575_v50, %v2515_v42  ;;  %v2610_v16 = vadd.f32 %v2602_v28, %v2590_v7  ;;  %v2770_v45 = vrot.slane %v2754_v29, 4  ;;  %v8848_v2 = vsub.s32 %v3006_v57, %v10721_v48  ;;  %v10725_v7 = vld [vmem:[#allocation68_spill] sm:$0xff] }
 0x32e   : > { %v2842_v24 = vrot.slane %v2804_v19, 5  ;;  %v2882_v14 = vmul.f32 %v6557_v54, %v8806_v23  ;;  %v2883_v52 = vmul.f32 %v6557_v54, %v494_v4  ;;  %v2843_v56 = vrot.slane %v2805_v32, 5  ;;  %v10722_v4 = vld [vmem:[#allocation57_spill] sm:$0xff]  ;;  %v10724_v19 = vld [vmem:[#allocation60_spill] sm:$0xff] }
 0x32f   : > { %v2611_v18 = vadd.f32 %v2603_v17, %v2591_v58  ;;  %v2654_v59 = vadd.f32 %v2638_v9, %v2610_v16  ;;  %v2845_v60 = vrot.slane %v2806_v21, 5  ;;  %v2846_v15 = vrot.slane %v2807_v0, 5  ;;  %v2985_v27 = vpop.xlane.xlu0 %2984 }
 0x330   : > { %v2918_v12 = vrot.slane %v2880_v39, 6  ;;  %v2919_v37 = vrot.slane %v2881_v26, 6  ;;  %v3003_v10 = vrot.slane %v2989_v55, %v8843_v46  ;;  %v2771_v33 = vrot.slane %v2755_v53, 4 }
 0x331   : > { %v2655_v6 = vadd.f32 %v2639_v40, %v2611_v18  ;;  %v2698_v20 = vadd.f32 %v2682_v13, %v2654_v59  ;;  %v3010_v51 = vrot.slane %v2989_v55, %v8848_v2  ;;  %v2921_v17 = vrot.slane %v2882_v14, 6 }
 0x332   : > { %v2922_v43 = vrot.slane %v2883_v52, 6  ;;  %v2991_v41 = vmul.f32 0.125, %v2985_v27  ;;  %v2844_v9 = vsel %vm734_vm3, %v2842_v24, %v2843_v56  ;;  %v2847_v1 = vsel %vm734_vm3, %v2845_v60, %v2846_v15 }
 0x333   : > { %v2699_v28 = vadd.f32 %v2683_v63, %v2655_v6  ;;  %v2742_v50 = vadd.f32 %v2726_v30, %v2698_v20  ;;  %v2920_v13 = vsel %vm811_vm4, %v2918_v12, %v2919_v37  ;;  %v8857_v34 = vsub.f32 %v10722_v4, %v3003_v10 }
 0x334   : > { %v8860_v22 = vsub.f32 %v10723_v5, %v3010_v51  ;;  %v3031_v30 = vrot.slane %v2991_v41, %v8843_v46  ;;  %v3038_v36 = vrot.slane %v2991_v41, %v8848_v2  ;;  %v2923_v42 = vsel %vm811_vm4, %v2921_v17, %v2922_v43  ;;  %v3221_v51 = vld [vmem:[%s10058_s2 + $0x61] sm:$0xff] }
 0x335   : > { %v2743_v23 = vadd.f32 %v2727_v11, %v2699_v28  ;;  %v2786_v40 = vadd.f32 %v2770_v45, %v2742_v50  ;;  %v3069_v29 = vmul.f32 %v8857_v34, %v8857_v34  ;;  %6338 = vmatprep.subr.mxu1 %v3221_v51  ;;  %v10726_v27 = vmov 0.0  }
 0x336   : > { %v8868_v44 = vsub.f32 %v10724_v19, %v3031_v30  ;;  %v8871_v32 = vsub.f32 %v10725_v7, %v3038_v36  ;;  %v3070_v3 = vmul.f32 %v8860_v22, %v8860_v22  ;;  %6339 = vmatpush3.msra.mxu1 %v3221_v51  ;;  %v10727_v51 = vld [vmem:[#allocation13_spill] sm:$0xff] }
 0x337   : > { %v2787_v63 = vadd.f32 %v2771_v33, %v2743_v23  ;;  %v2862_v8 = vadd.f32 %v2844_v9, %v2786_v40  ;;  %6346 = vmatprep.subr.mxu1 %v10726_v27 }
 0x338   : > { %v3085_v0 = vcombine.low %v3069_v29, %v3070_v3  ;;  %v3073_v54 = vmul.f32 %v8868_v44, %v8868_v44  ;;  %v3074_v39 = vmul.f32 %v8871_v32, %v8871_v32 }
 0x339   : > { %v2863_v11 = vadd.f32 %v2847_v1, %v2787_v63  ;;  %v2938_v35 = vadd.f32 %v2920_v13, %v2862_v8 }
 0x33a   : > { %v3093_v26 = vsel %vm10269_vm1, %v3085_v0, 0.0  ;;  %v3087_v55 = vcombine.low %v3073_v54, %v3074_v39 }
 0x33b   : > { %v2939_v62 = vadd.f32 %v2923_v42, %v2863_v11  ;;  %v2959_v57 = vadd.f32 %v8003_v38, %v2938_v35 }
 0x33c   : > { %v3099_v18 = vsel %vm10269_vm1, %v3087_v55, 0.0 }
 0x33d   : > { %v2960_v58 = vadd.f32 %v8042_v25, %v2939_v62 }
 0x33f   : > { %v2972_v21 = vcombine.low %v2959_v57, %v2960_v58 }
 0x341   : > { %v2986_v16 = vsel %vm10269_vm1, %v2972_v21, 0.0 }
 0x342   : > { %2987 = vadd.xlane.f32.xlu0 %v2986_v16 }
 0x346   : > { %3094 = vadd.xlane.f32.xlu0 %v3093_v26 }
 0x34a   : > { %3100 = vadd.xlane.f32.xlu0 %v3099_v18 }
 0x360   : > { %3193 = vrot.lane.b32.xlu0 %v8718_v47, %s6624_s26 }
 0x364   : > { %3234 = vrot.lane.b32.xlu0 %v8718_v47, %s6628_s9 }
 0x37e   : > { %v2982_v38 = vpop.xlane.xlu1 %2981 }
 0x37f   : > { %v2990_v25 = vmul.f32 0.125, %v2982_v38 }
 0x381   : > { %v3017_v53 = vrot.slane %v2990_v25, %v8843_v46  ;;  %v3024_v45 = vrot.slane %v2990_v25, %v8848_v2 }
 0x382   : > { %v3196_v50 = vpop.permute.xlu1 %3195 }
 0x383   : > { %v3063_v59 = vsub.f32 %v8597_v31, %v3017_v53  ;;  %v3064_v24 = vsub.f32 %v8600_v49, %v3024_v45 }
 0x385   : > { %v3071_v14 = vmul.f32 %v3063_v59, %v3063_v59  ;;  %v3072_v52 = vmul.f32 %v3064_v24, %v3064_v24 }
 0x386   : > { %v3208_v17 = vpop.permute.xlu1 %3207 }
 0x387   : > { %v3086_v6 = vcombine.low %v3071_v14, %v3072_v52 }
 0x389   : > { %v3096_v56 = vsel %vm10269_vm1, %v3086_v6, 0.0 }
 0x38a   : > { %3097 = vadd.xlane.f32.xlu1 %v3096_v56 }
 0x3cb   : > { %v2988_v60 = vpop.xlane.xlu0 %2987 }
 0x3cc   : > { %v2992_v15 = vmul.f32 0.125, %v2988_v60 }
 0x3ce   : > { %v3045_v20 = vrot.slane %v2992_v15, %v8843_v46  ;;  %v3052_v12 = vrot.slane %v2992_v15, %v8848_v2 }
 0x3cf   : > { %v3095_v43 = vpop.xlane.xlu0 %3094 }
 0x3d0   : > { %v8893_v37 = vsub.f32 %v2959_v57, %v3045_v20  ;;  %v8895_v10 = vsub.f32 %v2960_v58, %v3052_v12  ;;  %v3105_v40 = vmul.f32 0.125, %v3095_v43 }
 0x3d2   : > { %v3075_v31 = vmul.f32 %v8893_v37, %v8893_v37  ;;  %v3076_v49 = vmul.f32 %v8895_v10, %v8895_v10  ;;  %v3109_v13 = vadd.f32 1e-06, %v3105_v40 }
 0x3d3   : > { %v3101_v23 = vpop.xlane.xlu0 %3100 }
 0x3d4   : > { %v3088_v28 = vcombine.low %v3075_v31, %v3076_v49 }
 0x3d6   : > { %v3102_v33 = vsel %vm10269_vm1, %v3088_v28, 0.0 }
 0x3d7   : > { %3103 = vadd.xlane.f32.xlu1 %v3102_v33  ;;  %v3194_v19 = vpop.permute.xlu0 %3193  ;;  %v3576_v33 = vld [vmem:[%s10057_s1] sm:$0x3] }
 0x3d8   : > { %v3581_v43 = vrot.slane %v3576_v33, %v10727_v51 }
 0x3da   : > { %3586 = vrot.lane.b32.xlu0 %v3581_v43, %s6624_s26 }
 0x3e8   : > { %3209 = vrot.lane.b32.xlu1 %v10701_v61, %s6625_s4  ;;  %v3107_v61 = vmul.f32 0.125, %v3101_v23 }
 0x3ea   : > { %v3111_v4 = vadd.f32 1e-06, %v3107_v61 }
 0x413   : > { %v3098_v41 = vpop.xlane.xlu1 %3097 }
 0x414   : > { %v3106_v9 = vmul.f32 0.125, %v3098_v41 }
 0x416   : > { %v3110_v1 = vadd.f32 1e-06, %v3106_v9 }
 0x418   : > { %6503 = vrsqrt.f32 %v3110_v1 }
 0x419   : > { %6505 = vrsqrt.f32 %v3109_v13 }
 0x41a   : > { %6507 = vrsqrt.f32 %v3111_v4 }
 0x425   : > { %v6504_v63 = vpop.eup %6503 }
 0x426   : > { %v6506_v5 = vpop.eup %6505  ;;  %v3141_v36 = vrot.slane %v6504_v63, %v8843_v46  ;;  %v3148_v8 = vrot.slane %v6504_v63, %v8848_v2 }
 0x427   : > { %v6508_v30 = vpop.eup %6507  ;;  %v3127_v47 = vrot.slane %v6506_v5, %v8843_v46  ;;  %v3134_v35 = vrot.slane %v6506_v5, %v8848_v2 }
 0x428   : > { %v3155_v42 = vrot.slane %v6508_v30, %v8843_v46  ;;  %v3162_v11 = vrot.slane %v6508_v30, %v8848_v2  ;;  %v3187_v29 = vmul.f32 %v3141_v36, %v3063_v59  ;;  %v3188_v7 = vmul.f32 %v3148_v8, %v3064_v24 }
 0x429   : > { %v3185_v62 = vmul.f32 %v3127_v47, %v8857_v34  ;;  %v3186_v58 = vmul.f32 %v3134_v35, %v8860_v22 }
 0x42a   : > { %v3189_v3 = vmul.f32 %v3155_v42, %v8868_v44  ;;  %v3190_v57 = vmul.f32 %v3162_v11, %v8871_v32  ;;  %v3201_v21 = vmul.f32 %v3194_v19, %v3187_v29  ;;  %v3202_v16 = vmul.f32 %v3196_v50, %v3188_v7 }
 0x42b   : > { %v3199_v54 = vmul.f32 %v3194_v19, %v3185_v62  ;;  %v3200_v38 = vmul.f32 %v3196_v50, %v3186_v58  ;;  %v8946_v29 = vadd.s32 1, %v10721_v48  ;;  %v425_v58 = vmul.u32 16, %v10721_v48 }
 0x42c   : > { %v3203_v26 = vmul.f32 %v3194_v19, %v3189_v3  ;;  %v3204_v18 = vmul.f32 %v3196_v50, %v3190_v57  ;;  %v3215_v25 = vadd.f32 %v3208_v17, %v3201_v21 }
 0x42d   : > { %v3213_v34 = vadd.f32 %v3208_v17, %v3199_v54  ;;  %10729 = vst [vmem:[#allocation72_spill] sm:$0xff] %v8946_v29  ;;  %v428_v21 = vmul.u32 16, %v8946_v29 }
 0x42e   : > { %v3217_v24 = vadd.f32 %v3208_v17, %v3203_v26 }
 0x460   : > { %v3104_v0 = vpop.xlane.xlu1 %3103 }
 0x461   : > { %v3108_v39 = vmul.f32 0.125, %v3104_v0 }
 0x463   : > { %v3112_v55 = vadd.f32 1e-06, %v3108_v39 }
 0x464   : > { %v3210_v53 = vpop.permute.xlu1 %3209 }
 0x465   : > { %6509 = vrsqrt.f32 %v3112_v55  ;;  %v3216_v45 = vadd.f32 %v3210_v53, %v3202_v16  ;;  %v3218_v59 = vadd.f32 %v3210_v53, %v3204_v18  ;;  %v3214_v44 = vadd.f32 %v3210_v53, %v3200_v38 }
 0x467   : > { %v3230_v32 = vcombine.low %v3213_v34, %v3214_v44  ;;  %v3231_v14 = vcombine.low %v3215_v25, %v3216_v45  ;;  %v3232_v22 = vcombine.low %v3217_v24, %v3218_v59 }
 0x469   : > { %6340 = vmatprep.mubr.msk.f32.mxu1 %vm10269_vm1, %v3230_v32 }
 0x46a   : > { %6341 = vmatmul.mubr.msk.f32.vlgmr.msra.gmra.mxu1 %vm10269_vm1, %v3231_v14 }
 0x46b   : > { %6343 = vmatprep.mubr.msk.f32.mxu1 %vm10269_vm1, %v3232_v22 }
 0x472   : > { %v6510_v52 = vpop.eup %6509 }
 0x473   : > { %v3176_v6 = vrot.slane %v6510_v52, %v8848_v2  ;;  %v3169_v56 = vrot.slane %v6510_v52, %v8843_v46  ;;  %v10728_v46 = vld [vmem:[#allocation12_spill] sm:$0xff] }
 0x474   : > { %v3585_v2 = vrot.slane %v3576_v33, %v10728_v46 }
 0x475   : > { %v3192_v60 = vmul.f32 %v3176_v6, %v8895_v10  ;;  %v3191_v15 = vmul.f32 %v3169_v56, %v8893_v37  ;;  %v3235_v37 = vpop.permute.xlu0 %3234  ;;  %v397_v56 = vadd.s32 8, %v10721_v48 }
 0x476   : > { %3588 = vrot.lane.b32.xlu0 %v3585_v2, %s6624_s26 }
 0x477   : > { %v3206_v20 = vmul.f32 %v3196_v50, %v3192_v60  ;;  %v3205_v12 = vmul.f32 %v3194_v19, %v3191_v15  ;;  %v10730_v19 = vlaneseq  ;;  %v398_v60 = vadd.s32 16, %v10721_v48 }
 0x479   : > { %v3220_v31 = vadd.f32 %v3210_v53, %v3206_v20  ;;  %v3219_v49 = vadd.f32 %v3208_v17, %v3205_v12  ;;  %v8949_v7 = vand.u32 127, %v10730_v19  ;;  %v399_v20 = vadd.s32 24, %v10721_v48 }
 0x47b   : > { %v3233_v28 = vcombine.low %v3219_v49, %v3220_v31  ;;  %10731 = vst [vmem:[#allocation69_spill] sm:$0xff] %v8949_v7  ;;  %vm426_vm7 = vcmp.ge.s32.totalorder %v8949_v7, %v425_v58  ;;  %vm429_vm8 = vcmp.lt.s32.totalorder %v8949_v7, %v428_v21  ;;  %v402_v52 = vmul.u32 16, %v8949_v7 }
 0x47c   : > { %vm430_vm9 = vmand %vm426_vm7, %vm429_vm8  ;;  %v8979_v6 = vadd.s32 1, %v8949_v7 }
 0x47d   : > { %6344 = vmatmul.mubr.msk.f32.gmra.mxu1 %vm10269_vm1, %v3233_v28  ;;  %v6224_v53 = vsel %vm430_vm9, 1.0, %v10726_v27  ;;  %vm403_vm14 = vcmp.ge.s32.totalorder %v10721_v48, %v402_v52  ;;  %vm404_vm0 = vcmp.ge.s32.totalorder %v397_v56, %v402_v52  ;;  %vm405_vm5 = vcmp.ge.s32.totalorder %v398_v60, %v402_v52 }
 0x47e   : > { %6354 = vmatprep.mubr.msk.f32.mxu1 %vm6629_vm6, %v10726_v27  ;;  %10732 = vst [vmem:[#allocation75_spill] sm:$0xff] %v8979_v6  ;;  %v408_v15 = vmul.u32 16, %v8979_v6  ;;  %vm406_vm9 = vcmp.ge.s32.totalorder %v399_v20, %v402_v52 }
 0x480   : > { %vm409_vm2 = vcmp.lt.s32.totalorder %v10721_v48, %v408_v15  ;;  %vm410_vm3 = vcmp.lt.s32.totalorder %v397_v56, %v408_v15  ;;  %vm411_vm7 = vcmp.lt.s32.totalorder %v398_v60, %v408_v15 }
 0x481   : > { %vm413_vm8 = vmand %vm403_vm14, %vm409_vm2  ;;  %vm10734_vm14 = vcmask 64512  }
 0x482   : > { %v6220_v12 = vsel %vm413_vm8, 1.0, %v10726_v27 }
 0x483   : > { %6359 = vmatprep.mubr.msk.f32.mxu0 %vm3444_vm15, %v6220_v12 }
 0x52a   : > { %v6342_v10 = vpop.f32.mrf.mxu1 }
 0x52b   : > { %v3317_v50 = vadd.f32 %v6342_v10, %v3235_v37 }
 0x52c   : > { %v3311_v17 = vpop.f32.mrf.mxu1 }
 0x52d   : > { %v3335_v41 = vmul.f32 0.70710677, %v3317_v50  ;;  %v3312_v23 = vadd.f32 %v3311_v17, %v3235_v37  ;;  %v3331_v11 = vmul.f32 0.5, %v3317_v50 }
 0x52f   : > { %v3334_v9 = vmul.f32 0.70710677, %v3312_v23  ;;  %6511 = verf.f32 %v3335_v41  ;;  %v3330_v4 = vmul.f32 0.5, %v3312_v23 }
 0x531   : > { %6513 = verf.f32 %v3334_v9 }
 0x53c   : > { %v6512_v40 = vpop.eup %6511 }
 0x53d   : > { %v6345_v61 = vpop.f32.mrf.mxu1  ;;  %v3343_v8 = vadd.f32 1.0, %v6512_v40 }
 0x53e   : > { %v6514_v1 = vpop.eup %6513  ;;  %v3327_v13 = vadd.f32 %v6345_v61, %v3235_v37 }
 0x53f   : > { %v3321_v63 = vpop.f32.mrf.mxu1  ;;  %v3342_v5 = vadd.f32 1.0, %v6514_v1  ;;  %v8941_v35 = vmul.f32 %v3343_v8, %v3331_v11  ;;  %v3620_v1 = vld [vmem:[%s10058_s2 + $0x81] sm:$0xff] }
 0x540   : > { %v3337_v30 = vmul.f32 0.70710677, %v3327_v13  ;;  %v3322_v36 = vadd.f32 %v3321_v63, %v3235_v37  ;;  %v3333_v3 = vmul.f32 0.5, %v3327_v13  ;;  %v3619_v13 = vld [vmem:[%s10058_s2 + $0x79] sm:$0xff]  ;;  %v3587_v63 = vpop.permute.xlu0 %3586 }
 0x541   : > { %v8937_v47 = vmul.f32 %v3342_v5, %v3330_v4  ;;  %v3351_v38 = vmul.f32 %v8941_v35, %v8941_v35 }
 0x542   : > { %6515 = verf.f32 %v3337_v30  ;;  %v3336_v42 = vmul.f32 0.70710677, %v3322_v36  ;;  %v3332_v39 = vmul.f32 0.5, %v3322_v36  ;;  %v3618_v36 = vld [vmem:[%s10058_s2 + $0x71] sm:$0xff] }
 0x543   : > { %3601 = vrot.lane.b32.xlu0 %v8937_v47, %s6628_s9  ;;  %v3350_v25 = vmul.f32 %v8937_v47, %v8937_v47 }
 0x544   : > { %6517 = verf.f32 %v3336_v42  ;;  %v3589_v5 = vpop.permute.xlu0 %3588  ;;  %v6237_v42 = vld [vmem:[%s10057_s1] ss:$0 sm:$0xff] }
 0x547   : > { %3603 = vrot.lane.b32.xlu0 %v8941_v35, %s6628_s9 }
 0x54f   : > { %v6516_v62 = vpop.eup %6515 }
 0x550   : > { %v3345_v57 = vadd.f32 1.0, %v6516_v62 }
 0x551   : > { %v6518_v0 = vpop.eup %6517 }
 0x552   : > { %v8953_v54 = vmul.f32 %v3345_v57, %v3333_v3  ;;  %v3344_v16 = vadd.f32 1.0, %v6518_v0 }
 0x554   : > { %v8955_v26 = vmul.f32 %v3344_v16, %v3332_v39  ;;  %v3353_v55 = vmul.f32 %v8953_v54, %v8953_v54 }
 0x556   : > { %6347 = vmatpush3.msra.mxu1 %v3353_v55  ;;  %v3352_v18 = vmul.f32 %v8955_v26, %v8955_v26 }
 0x557   : > { %6348 = vmatprep.subr.mxu1 %v10726_v27 }
 0x558   : > { %6349 = vmatpush3.msra.mxu1 %v3352_v18 }
 0x559   : > { %6350 = vmatprep.subr.mxu1 %v10726_v27 }
 0x55a   : > { %6351 = vmatpush3.msra.mxu1 %v3351_v38 }
 0x55b   : > { %6352 = vmatprep.subr.mxu1 %v10726_v27 }
 0x55c   : > { %6353 = vmatpush3.msra.mxu1 %v3350_v25 }
 0x55d   : > { %6355 = vmatmul.mubr.msk.f32.vlgmr.msra.gmra.mxu1 %vm3354_vm10, %v6224_v53  ;;  %6379 = vmatprep.subr.mxu1 %v10726_v27 }
 0x55e   : > { %6381 = vmatprep.mubr.msk.f32.mxu1 %vm6629_vm6, %v10726_v27 }
 0x5b5   : > { %v3602_v30 = vpop.permute.xlu0 %3601 }
 0x5b9   : > { %v3604_v8 = vpop.permute.xlu0 %3603 }
 0x61d   : > { %v3424_v34 = vpop.f32.mrf.mxu1 }
 0x61e   : > { %6519 = vrsqrt.f32 %v3424_v34  ;;  %vm3430_vm11 = vcmp.eq.f32.partialorder %v3424_v34, inf  ;;  %v3433_v24 = vand.u32 2147483648, %v3424_v34  ;;  %vm3432_vm13 = vcmp.eq.f32.partialorder %v3424_v34, 0.0 }
 0x61f   : > { %v6356_v45 = vpop.f32.mrf.mxu1 }
 0x620   : > { %v9026_v45 = vld [vmem:[%s10057_s1 + $0x1] ss:$0 sm:$0xff] }
 0x62b   : > { %v6520_v59 = vpop.eup %6519 }
 0x62c   : > { %v3429_v44 = vmul.f32 %v6520_v59, %v3424_v34 }
 0x62e   : > { %v3431_v32 = vsel %vm3430_vm11, %v3424_v34, %v3429_v44  ;;  %vm412_vm11 = vcmp.lt.s32.totalorder %v399_v20, %v408_v15  ;;  %v10733_v15 = vld [vmem:[#allocation121_spill] sm:$0xff] }
 0x62f   : > { %v3434_v14 = vsel %vm3432_vm13, %v3433_v24, %v3431_v32  ;;  %vm415_vm13 = vmand %vm405_vm5, %vm411_vm7 }
 0x630   : > { %v3436_v22 = vsel %vm3435_vm12, %v3434_v14, 0.0  ;;  %vm414_vm12 = vmand %vm404_vm0, %vm410_vm3  ;;  %v6222_v37 = vsel %vm415_vm13, 1.0, %v10726_v27  ;;  %vm3919_vm13 = vcmask 1044484  }
 0x631   : > { %3437 = vadd.xlane.f32.xlu1 %v3436_v22  ;;  %vm416_vm1 = vmand %vm406_vm9, %vm412_vm11  ;;  %v6221_v2 = vsel %vm414_vm12, 1.0, %v10726_v27  ;;  %vm3913_vm9 = vcmask 1041409   ;;  %vm3915_vm11 = vcmask 1042434   ;;  %vm3917_vm12 = vcmask 1043459  }
 0x632   : > { %v6223_v10 = vsel %vm416_vm1, 1.0, %v10726_v27  ;;  %vm3590_vm1 = vcmask 785408   ;;  %vm10736_vm0 = vmmov %vm10734_vm14 }
 0x633   : > { %v3591_v62 = vsel %vm3590_vm1, %v3587_v63, %v3589_v5  ;;  %vm10740_vm2 = vmmov %vm10736_vm0  ;;  %vm3921_vm1 = vcmask 1045509  }
 0x634   : > { %vm10741_vm3 = vmmov %vm10736_vm0 }
 0x635   : > { %vm10742_vm5 = vmmov %vm10736_vm0 }
 0x636   : > { %vm10743_vm7 = vmmov %vm10736_vm0 }
 0x637   : > { %vm10744_vm8 = vmmov %vm10736_vm0 }
 0x642   : > { %3607 = vrot.lane.b32.xlu1 %v8953_v54, %s6628_s9 }
 0x6ba   : > { %v3438_v31 = vpop.xlane.xlu1 %3437 }
 0x6bb   : > { %v3440_v49 = vmul.f32 0.03125, %v3438_v31  ;;  %v10735_v31 = vld [vmem:[#allocation10_spill] sm:$0xff] }
 0x6bd   : > { %v3441_v28 = vadd.f32 1e-06, %v3440_v49 }
 0x6be   : > { %v3608_v53 = vpop.permute.xlu1 %3607 }
 0x6bf   : > { %6521 = vrcp.f32 %v3441_v28 }
 0x6cc   : > { %v6522_v33 = vpop.eup %6521 }
 0x6cd   : > { %v3443_v43 = vmul.f32 %v6522_v33, %v3434_v14 }
 0x6cf   : > { %6357 = vmatprep.subr.msk.mxu0 %vm811_vm4, %v3443_v43 }
 0x6d0   : > { %6358 = vmatpush3.msk.msra.mxu0 %vm811_vm4, %v3443_v43 }
 0x6d1   : > { %6360 = vmatmul.mubr.msk.f32.vlgmr.msra.gmra.mxu0 %vm3444_vm15, %v6221_v2  ;;  %6365 = vmatprep.subr.mxu0 %v3620_v1 }
 0x6d2   : > { %6362 = vmatprep.mubr.msk.f32.mxu0 %vm3444_vm15, %v6222_v37  ;;  %6366 = vmatpush3.msra.mxu0 %v3620_v1 }
 0x6d3   : > { %6367 = vmatprep.subr.mxu0 %v3619_v13 }
 0x6d4   : > { %6368 = vmatpush3.msra.mxu0 %v3619_v13 }
 0x6d5   : > { %6363 = vmatmul.mubr.msk.f32.gmra.mxu0 %vm3444_vm15, %v6223_v10  ;;  %6369 = vmatprep.subr.mxu0 %v3618_v36  ;;  %v10737_v10 = vld [vmem:[#allocation35_spill] sm:$0xff] }
 0x6d6   : > { %6370 = vmatpush3.msra.mxu0 %v3618_v36 }
 0x791   : > { %v6361_v50 = vpop.f32.mrf.mxu0 }
 0x792   : > { %v3547_v17 = vmul.f32 %v6361_v50, %v8941_v35 }
 0x793   : > { %v3526_v41 = vpop.f32.mrf.mxu0 }
 0x794   : > { %3562 = vrot.lane.b32.xlu0 %v3547_v17, %s6628_s9  ;;  %v3546_v23 = vmul.f32 %v3526_v41, %v8937_v47  ;;  %v3617_v47 = vld [vmem:[%s10058_s2 + $0x69] sm:$0xff] }
 0x795   : > { %v6364_v9 = vpop.f32.mrf.mxu0  ;;  %6371 = vmatprep.subr.mxu0 %v3617_v47  ;;  %v10739_v41 = vld [vmem:[#allocation122_spill] sm:$0xff] }
 0x796   : > { %v3549_v40 = vmul.f32 %v6364_v9, %v8953_v54  ;;  %6372 = vmatpush3.msra.mxu0 %v3617_v47 }
 0x797   : > { %v3536_v61 = vpop.f32.mrf.mxu0  ;;  %6389 = vmatprep.subr.mxu0 %v10726_v27 }
 0x798   : > { %3560 = vrot.lane.b32.xlu0 %v3546_v23, %s6628_s9  ;;  %v3548_v4 = vmul.f32 %v3536_v61, %v8955_v26 }
 0x79c   : > { %3566 = vrot.lane.b32.xlu0 %v3549_v40, %s6628_s9 }
 0x7a0   : > { %3564 = vrot.lane.b32.xlu0 %v3548_v4, %s6628_s9 }
 0x7a4   : > { %3605 = vrot.lane.b32.xlu0 %v8955_v26, %s6628_s9 }
 0x806   : > { %v3563_v11 = vpop.permute.xlu0 %3562 }
 0x807   : > { %v3573_v35 = vmul.f32 %v6237_v42, %v3563_v11 }
 0x809   : > { %v3594_v19 = vadd.f32 %v3591_v62, %v3573_v35 }
 0x80a   : > { %v3561_v3 = vpop.permute.xlu0 %3560 }
 0x80b   : > { %v3572_v57 = vmul.f32 %v6237_v42, %v3561_v3  ;;  %v3614_v58 = vadd.f32 %v3604_v8, %v3594_v19 }
 0x80d   : > { %v3593_v21 = vadd.f32 %v3591_v62, %v3572_v57  ;;  %3633 = vrot.lane.b32.xlu0 %v3614_v58, %s6630_s8 }
 0x80e   : > { %v3567_v0 = vpop.permute.xlu0 %3566 }
 0x80f   : > { %v3613_v54 = vadd.f32 %v3602_v30, %v3593_v21  ;;  %v3575_v16 = vmul.f32 %v6237_v42, %v3567_v0  ;;  %v3878_v0 = vld [vmem:[%s10058_s2 + $0x91] sm:$0xff] }
 0x810   : > { %6380 = vmatpush3.msra.mxu1 %v3878_v0 }
 0x811   : > { %3631 = vrot.lane.b32.xlu0 %v3613_v54, %s6630_s8  ;;  %v3596_v38 = vadd.f32 %v3591_v62, %v3575_v16  ;;  %v6631_v54 = vmov 1983009808   ;;  %6384 = vmatprep.subr.mxu1 %v10726_v27  ;;  %v3879_v16 = vld [vmem:[%s10058_s2 + $0x99] sm:$0xff] }
 0x812   : > { %v3565_v39 = vpop.permute.xlu0 %3564 }
 0x813   : > { %v3574_v26 = vmul.f32 %v6237_v42, %v3565_v39  ;;  %v3616_v34 = vadd.f32 %v3608_v53, %v3596_v38  ;;  %v3811_v39 = vunpack.c.l.s4 %v6631_v54  ;;  %v5524_v38 = vcombine.high %v9026_v45, %v9026_v45 }
 0x815   : > { %v3595_v55 = vadd.f32 %v3591_v62, %v3574_v26  ;;  %v3812_v26 = vunpack.c.0.s8 %v3811_v39 }
 0x816   : > { %v3606_v18 = vpop.permute.xlu0 %3605 }
 0x817   : > { %v3615_v25 = vadd.f32 %v3606_v18, %v3595_v55  ;;  %v9075_v55 = vsub.s32 %v3812_v26, %v10721_v48 }
 0x819   : > { %3635 = vrot.lane.b32.xlu0 %v3615_v25, %s6630_s8  ;;  %10745 = vst [vmem:[#allocation78_spill] sm:$0xff] %v9075_v55  ;;  %v9079_v18 = vrot.slane %v9026_v45, %v9075_v55  ;;  %v9085_v25 = vrot.slane %v5524_v38, %v9075_v55 }
 0x81b   : > { %10746 = vst [vmem:[#allocation83_spill] sm:$0xff] %v9079_v18  ;;  %10747 = vst [vmem:[#allocation80_spill] sm:$0xff] %v9085_v25  ;;  %v9089_v53 = vcombine.high %v9079_v18, %v9079_v18 }
 0x81d   : > { %3637 = vrot.lane.b32.xlu0 %v3616_v34, %s6630_s8  ;;  %v9094_v34 = vcombine.high %v9085_v25, %v9085_v25  ;;  %s6639_s8 = smov 24  }
 0x81f   : > { %10748 = vst [vmem:[#allocation87_spill] sm:$0xff] %v9094_v34 }
 0x821   : > { %3639 = vrot.lane.b32.xlu0 %v9026_v45, %s6621_s27  ;;  %s6640_s27 = smov 64  }
 0x87f   : > { %v3634_v59 = vpop.permute.xlu0 %3633 }
 0x883   : > { %v3632_v44 = vpop.permute.xlu0 %3631 }
 0x884   : > { %6373 = vmatprep.mubr.msk.f32.mxu0 %vm3354_vm10, %v3632_v44 }
 0x885   : > { %6374 = vmatmul.mubr.msk.f32.vlgmr.msra.gmra.mxu0 %vm3354_vm10, %v3634_v59 }
 0x886   : > { %6390 = vmatpush3.msra.mxu0 %v3879_v16 }
 0x887   : > { %6399 = vmatprep.subr.mxu0 %v10726_v27 }
 0x88b   : > { %v3636_v24 = vpop.permute.xlu0 %3635 }
 0x88c   : > { %6376 = vmatprep.mubr.msk.f32.mxu0 %vm3354_vm10, %v3636_v24 }
 0x88f   : > { %v3638_v32 = vpop.permute.xlu0 %3637 }
 0x890   : > { %6377 = vmatmul.mubr.msk.f32.gmra.mxu0 %vm3354_vm10, %v3638_v32  ;;  %vm10738_vm10 = vmmov %vm10736_vm0 }
 0x891   : > { %6391 = vmatprep.mubr.msk.f32.mxu0 %vm6629_vm6, %v10726_v27 }
 0x893   : > { %v3640_v14 = vpop.permute.xlu0 %3639 }
 0x945   : > { %v6375_v22 = vpop.f32.mrf.mxu0 }
 0x946   : > { %v3722_v52 = vadd.f32 %v6375_v22, %v3640_v14 }
 0x947   : > { %v3716_v56 = vpop.f32.mrf.mxu0 }
 0x948   : > { %v3717_v60 = vadd.f32 %v3716_v56, %v3640_v14  ;;  %v3736_v20 = vadd.f32 %v3722_v52, %v10733_v15 }
 0x94a   : > { %v3742_v12 = vsel %vm10734_vm14, %v3736_v20, 0.0  ;;  %v3735_v49 = vadd.f32 %v3717_v60, %v10735_v31  ;;  %vm3923_vm14 = vcmask 1046534  }
 0x94b   : > { %3743 = vadd.xlane.f32.xlu0 %v3742_v12 }
 0x94c   : > { %v3739_v28 = vsel %vm10736_vm0, %v3735_v49, 0.0  ;;  %vm3925_vm0 = vcmask 1047559  }
 0x94d   : > { %3740 = vadd.xlane.f32.xlu1 %v3739_v28 }
 0x950   : > { %v6378_v33 = vpop.f32.mrf.mxu0 }
 0x951   : > { %v3732_v43 = vadd.f32 %v6378_v33, %v3640_v14 }
 0x952   : > { %v3726_v2 = vpop.f32.mrf.mxu0 }
 0x953   : > { %v3727_v37 = vadd.f32 %v3726_v2, %v3640_v14  ;;  %v3738_v50 = vadd.f32 %v3732_v43, %v10737_v10 }
 0x955   : > { %v3748_v17 = vsel %vm10738_vm10, %v3738_v50, 0.0  ;;  %v3737_v23 = vadd.f32 %v3727_v37, %v10739_v41  ;;  %vm10749_vm10 = vmmov %vm10740_vm2 }
 0x956   : > { %3749 = vadd.xlane.f32.xlu1 %v3748_v17 }
 0x957   : > { %v3745_v9 = vsel %vm10740_vm2, %v3737_v23, 0.0 }
 0x958   : > { %3746 = vadd.xlane.f32.xlu0 %v3745_v9 }
 0x9d4   : > { %v3744_v40 = vpop.xlane.xlu0 %3743 }
 0x9d5   : > { %v3752_v61 = vmul.f32 0.125, %v3744_v40 }
 0x9d6   : > { %v3741_v1 = vpop.xlane.xlu1 %3740 }
 0x9d7   : > { %v3756_v13 = vsub.f32 %v3736_v20, %v3752_v61  ;;  %v3751_v4 = vmul.f32 0.125, %v3741_v1 }
 0x9d9   : > { %v9044_v63 = vsub.f32 %v3735_v49, %v3751_v4  ;;  %v3760_v5 = vmul.f32 %v3756_v13, %v3756_v13 }
 0x9db   : > { %v3766_v30 = vsel %vm10741_vm3, %v3760_v5, 0.0  ;;  %v3759_v36 = vmul.f32 %v9044_v63, %v9044_v63  ;;  %vm10750_vm3 = vmmov %vm10740_vm2 }
 0x9dc   : > { %3767 = vadd.xlane.f32.xlu1 %v3766_v30 }
 0x9dd   : > { %v3763_v47 = vsel %vm10742_vm5, %v3759_v36, 0.0  ;;  %vm10751_vm5 = vmmov %vm10740_vm2 }
 0x9de   : > { %3764 = vadd.xlane.f32.xlu0 %v3763_v47 }
 0x9df   : > { %v3750_v8 = vpop.xlane.xlu1 %3749 }
 0x9e0   : > { %v3754_v42 = vmul.f32 0.125, %v3750_v8 }
 0x9e1   : > { %v3747_v11 = vpop.xlane.xlu0 %3746 }
 0x9e2   : > { %v9050_v35 = vsub.f32 %v3738_v50, %v3754_v42  ;;  %v3753_v62 = vmul.f32 0.125, %v3747_v11 }
 0x9e4   : > { %v9052_v19 = vsub.f32 %v3737_v23, %v3753_v62  ;;  %v3762_v3 = vmul.f32 %v9050_v35, %v9050_v35 }
 0x9e6   : > { %v3772_v57 = vsel %vm10743_vm7, %v3762_v3, 0.0  ;;  %v3761_v58 = vmul.f32 %v9052_v19, %v9052_v19  ;;  %vm4344_vm7 = vcmask 130048  }
 0x9e7   : > { %3773 = vadd.xlane.f32.xlu1 %v3772_v57  ;;  %4348 = vst.msk [vmem:[#allocation3 + $0x18] sm:$0xff] %vm4344_vm7, %v10726_v27  ;;  %4349 = vst.msk [vmem:[#allocation3 + $0x20] sm:$0xff] %vm4344_vm7, %v10726_v27 }
 0x9e8   : > { %v3769_v21 = vsel %vm10744_vm8, %v3761_v58, 0.0  ;;  %4356 = vst.msk [vmem:[#allocation3 + $0x58] sm:$0xff] %vm4344_vm7, %v10726_v27  ;;  %4357 = vst.msk [vmem:[#allocation3 + $0x60] sm:$0xff] %vm4344_vm7, %v10726_v27  ;;  %vm4398_vm8 = vcmask 123904  }
 0x9e9   : > { %3770 = vadd.xlane.f32.xlu0 %v3769_v21  ;;  %4345 = vst.msk [vmem:[#allocation3] sm:$0xff] %vm4344_vm7, %v10726_v27  ;;  %4346 = vst.msk [vmem:[#allocation3 + $0x8] sm:$0xff] %vm4344_vm7, %v10726_v27 }
 0x9ea   : > { %4347 = vst.msk [vmem:[#allocation3 + $0x10] sm:$0xff] %vm4344_vm7, %v10726_v27  ;;  %4350 = vst.msk [vmem:[#allocation3 + $0x28] sm:$0xff] %vm4344_vm7, %v10726_v27 }
 0x9eb   : > { %4351 = vst.msk [vmem:[#allocation3 + $0x30] sm:$0xff] %vm4344_vm7, %v10726_v27  ;;  %4352 = vst.msk [vmem:[#allocation3 + $0x38] sm:$0xff] %vm4344_vm7, %v10726_v27 }
 0x9ec   : > { %4353 = vst.msk [vmem:[#allocation3 + $0x40] sm:$0xff] %vm4344_vm7, %v10726_v27  ;;  %4354 = vst.msk [vmem:[#allocation3 + $0x48] sm:$0xff] %vm4344_vm7, %v10726_v27 }
 0x9ed   : > { %4355 = vst.msk [vmem:[#allocation3 + $0x50] sm:$0xff] %vm4344_vm7, %v10726_v27  ;;  %4358 = vst.msk [vmem:[#allocation3 + $0x68] sm:$0xff] %vm4344_vm7, %v10726_v27 }
 0x9ee   : > { %4359 = vst.msk [vmem:[#allocation3 + $0x70] sm:$0xff] %vm4344_vm7, %v10726_v27  ;;  %4360 = vst.msk [vmem:[#allocation3 + $0x78] sm:$0xff] %vm4344_vm7, %v10726_v27 }
 0x9f8   : > { %3798 = vrot.lane.b32.xlu1 %v9026_v45, %s6624_s26  ;;  %s6634_s26 = smov 40  }
 0x9fc   : > { %4340 = vrot.lane.b32.xlu1 %v9026_v45, %s6625_s4 }
 0x9ff   : > { %3791 = vrot.lane.b32.xlu0 %v9026_v45, %s6623_s29  ;;  %s6632_s29 = smov 72  }
 0xa00   : > { %5543 = vrot.lane.b32.xlu1 %v9089_v53, %s6632_s29 }
 0xa03   : > { %5541 = vrot.lane.b32.xlu0 %v9079_v18, %s6632_s29 }
 0xa04   : > { %5547 = vrot.lane.b32.xlu1 %v9094_v34, %s6632_s29 }
 0xa07   : > { %5545 = vrot.lane.b32.xlu0 %v9085_v25, %s6632_s29  ;;  %s6633_s29 = smov 56  }
 0xa08   : > { %5692 = vrot.lane.b32.xlu1 %v9089_v53, %s6633_s29 }
 0xa0c   : > { %5696 = vrot.lane.b32.xlu1 %v9094_v34, %s6633_s29 }
 0xa10   : > { %5708 = vrot.lane.b32.xlu1 %v9089_v53, %s6634_s26 }
 0xa65   : > { %v3768_v45 = vpop.xlane.xlu1 %3767 }
 0xa66   : > { %v3776_v59 = vmul.f32 0.125, %v3768_v45 }
 0xa67   : > { %v3765_v44 = vpop.xlane.xlu0 %3764 }
 0xa68   : > { %v3780_v24 = vadd.f32 1e-06, %v3776_v59  ;;  %v3775_v32 = vmul.f32 0.125, %v3765_v44 }
 0xa6a   : > { %6523 = vrsqrt.f32 %v3780_v24  ;;  %v3779_v14 = vadd.f32 1e-06, %v3775_v32 }
 0xa6c   : > { %6525 = vrsqrt.f32 %v3779_v14 }
 0xa70   : > { %v3774_v22 = vpop.xlane.xlu1 %3773 }
 0xa71   : > { %v3778_v52 = vmul.f32 0.125, %v3774_v22 }
 0xa72   : > { %v3771_v56 = vpop.xlane.xlu0 %3770 }
 0xa73   : > { %v3782_v60 = vadd.f32 1e-06, %v3778_v52  ;;  %v3777_v15 = vmul.f32 0.125, %v3771_v56 }
 0xa74   : > { %v3799_v33 = vpop.permute.xlu1 %3798 }
 0xa75   : > { %6527 = vrsqrt.f32 %v3782_v60  ;;  %v3781_v20 = vadd.f32 1e-06, %v3777_v15 }
 0xa76   : > { %v3792_v31 = vpop.permute.xlu0 %3791 }
 0xa77   : > { %v6524_v12 = vpop.eup %6523  ;;  %6529 = vrsqrt.f32 %v3781_v20 }
 0xa78   : > { %v3788_v49 = vmul.f32 %v6524_v12, %v3756_v13 }
 0xa79   : > { %v6526_v28 = vpop.eup %6525 }
 0xa7a   : > { %v3787_v43 = vmul.f32 %v6526_v28, %v9044_v63  ;;  %v3795_v2 = vmul.f32 %v3792_v31, %v3788_v49 }
 0xa7c   : > { %v3794_v37 = vmul.f32 %v3792_v31, %v3787_v43  ;;  %v3802_v10 = vadd.f32 %v3799_v33, %v3795_v2 }
 0xa7e   : > { %v3801_v50 = vadd.f32 %v3799_v33, %v3794_v37  ;;  %v3826_v17 = vcombine.high %v3802_v10, %v3802_v10  ;;  %v3833_v41 = vrot.slane %v3802_v10, %v9075_v55 }
 0xa80   : > { %v3809_v23 = vcombine.high %v3801_v50, %v3801_v50  ;;  %v3816_v9 = vrot.slane %v3801_v50, %v9075_v55  ;;  %v3840_v40 = vrot.slane %v3826_v17, %v9075_v55  ;;  %v3841_v4 = vcombine.high %v3833_v41, %v3833_v41 }
 0xa81   : > { %v3892_v5 = vrot.slane %v3833_v41, %v10728_v46  ;;  %v4010_v30 = vrot.slane %v3833_v41, %v10727_v51 }
 0xa82   : > { %v6528_v61 = vpop.eup %6527  ;;  %v3823_v1 = vrot.slane %v3809_v23, %v9075_v55  ;;  %v3824_v13 = vcombine.high %v3816_v9, %v3816_v9  ;;  %v3884_v8 = vrot.slane %v3816_v9, %v10728_v46  ;;  %v9110_v57 = vcombine.high %v3840_v40, %v3840_v40 }
 0xa83   : > { %v3790_v63 = vmul.f32 %v6528_v61, %v9050_v35  ;;  %v4002_v35 = vrot.slane %v3816_v9, %v10727_v51  ;;  %v3896_v58 = vrot.slane %v3841_v4, %v10728_v46  ;;  %v4014_v52 = vrot.slane %v3841_v4, %v10727_v51 }
 0xa84   : > { %v6530_v36 = vpop.eup %6529  ;;  %v3825_v47 = vcombine.high %v3823_v1, %v3823_v1  ;;  %v3888_v42 = vrot.slane %v3824_v13, %v10728_v46  ;;  %v4006_v11 = vrot.slane %v3824_v13, %v10727_v51  ;;  %v4113_v0 = vrot.slane %v3823_v1, %v10727_v51 }
 0xa85   : > { %v3789_v62 = vmul.f32 %v6530_v36, %v9052_v19  ;;  %v3797_v3 = vmul.f32 %v3792_v31, %v3790_v63  ;;  %v4121_v19 = vrot.slane %v3840_v40, %v10727_v51  ;;  %v4225_v59 = vrot.slane %v3823_v1, %v10728_v46 }
 0xa86   : > { %v3914_v21 = vsel %vm3913_vm9, %v3888_v42, %v3884_v8  ;;  %v4117_v54 = vrot.slane %v3825_v47, %v10727_v51  ;;  %v4031_v26 = vsel %vm3913_vm9, %v4006_v11, %v4002_v35  ;;  %v4229_v44 = vrot.slane %v3825_v47, %v10728_v46  ;;  %v3877_v35 = vld [vmem:[%s10058_s2 + $0x89] sm:$0xff] }
 0xa87   : > { %v3796_v39 = vmul.f32 %v3792_v31, %v3789_v62  ;;  %v3804_v16 = vadd.f32 %v3799_v33, %v3797_v3  ;;  %v3916_v38 = vsel %vm3915_vm11, %v3892_v5, %v3914_v21  ;;  %v4032_v56 = vsel %vm3915_vm11, %v4010_v30, %v4031_v26 }
 0xa88   : > { %v4142_v45 = vsel %vm3913_vm9, %v4117_v54, %v4113_v0  ;;  %v4125_v60 = vrot.slane %v9110_v57, %v10727_v51  ;;  %v4233_v15 = vrot.slane %v3840_v40, %v10728_v46  ;;  %v4254_v49 = vsel %vm3913_vm9, %v4229_v44, %v4225_v59  ;;  %v3880_v59 = vld [vmem:[%s10058_s2 + $0xa1] sm:$0xff] }
 0xa89   : > { %v3803_v24 = vadd.f32 %v3799_v33, %v3796_v39  ;;  %v3860_v32 = vcombine.high %v3804_v16, %v3804_v16  ;;  %v3867_v14 = vrot.slane %v3804_v16, %v9075_v55  ;;  %v4143_v22 = vsel %vm3915_vm11, %v4121_v19, %v4142_v45 }
 0xa8a   : > { %v4237_v28 = vrot.slane %v9110_v57, %v10728_v46  ;;  %v3918_v43 = vsel %vm3917_vm12, %v3896_v58, %v3916_v38  ;;  %v4144_v2 = vsel %vm3917_vm12, %v4125_v60, %v4143_v22  ;;  %v4033_v17 = vsel %vm3917_vm12, %v4014_v52, %v4032_v56  ;;  %v4419_v56 = vld [vmem:[%s10058_s2 + $0xa9] sm:$0xff] }
 0xa8b   : > { %v3843_v20 = vcombine.high %v3803_v24, %v3803_v24  ;;  %v3850_v12 = vrot.slane %v3803_v24, %v9075_v55  ;;  %v3874_v31 = vrot.slane %v3860_v32, %v9075_v55  ;;  %v3875_v33 = vcombine.high %v3867_v14, %v3867_v14 }
 0xa8c   : > { %v3908_v23 = vrot.slane %v3867_v14, %v10728_v46  ;;  %v4255_v40 = vsel %vm3915_vm11, %v4233_v15, %v4254_v49  ;;  %v4026_v62 = vrot.slane %v3867_v14, %v10727_v51  ;;  %v9229_v60 = vrot.slane %v4419_v56, %v10728_v46  ;;  %v4403_v15 = vld [vmem:[#allocation3] sm:$0xff] }
 0xa8d   : > { %v3857_v37 = vrot.slane %v3843_v20, %v9075_v55  ;;  %v3858_v10 = vcombine.high %v3850_v12, %v3850_v12  ;;  %v3900_v50 = vrot.slane %v3850_v12, %v10728_v46  ;;  %v3876_v41 = vcombine.high %v3874_v31, %v3874_v31 }
 0xa8e   : > { %v4018_v9 = vrot.slane %v3850_v12, %v10727_v51  ;;  %v3912_v5 = vrot.slane %v3875_v33, %v10728_v46  ;;  %v4137_v3 = vrot.slane %v3874_v31, %v10727_v51  ;;  %v4256_v26 = vsel %vm3917_vm12, %v4237_v28, %v4255_v40  ;;  %v4411_v28 = vld [vmem:[#allocation3 + $0x40] sm:$0xff] }
 0xa8f   : > { %v3859_v61 = vcombine.high %v3857_v37, %v3857_v37  ;;  %v3904_v1 = vrot.slane %v3858_v10, %v10728_v46  ;;  %v4022_v13 = vrot.slane %v3858_v10, %v10727_v51  ;;  %v4129_v4 = vrot.slane %v3857_v37, %v10727_v51 }
 0xa90   : > { %v4241_v63 = vrot.slane %v3857_v37, %v10728_v46  ;;  %v3920_v30 = vsel %vm3919_vm13, %v3900_v50, %v3918_v43  ;;  %v4034_v36 = vsel %vm3919_vm13, %v4018_v9, %v4033_v17  ;;  %v4141_v0 = vrot.slane %v3876_v41, %v10727_v51  ;;  %v10753_v37 = vld [vmem:[#allocation18_spill] sm:$0xff]  ;;  %v10754_v9 = vld [vmem:[#allocation20_spill] sm:$0xff] }
 0xa91   : > { %v4133_v47 = vrot.slane %v3859_v61, %v10727_v51  ;;  %v3922_v8 = vsel %vm3921_vm1, %v3904_v1, %v3920_v30  ;;  %v4145_v42 = vsel %vm3919_vm13, %v4129_v4, %v4144_v2  ;;  %v4035_v11 = vsel %vm3921_vm1, %v4022_v13, %v4034_v36  ;;  %v10755_v30 = vld [vmem:[#allocation21_spill] sm:$0xff] }
 0xa92   : > { %v3924_v57 = vsel %vm3923_vm14, %v3908_v23, %v3922_v8  ;;  %v4245_v58 = vrot.slane %v3859_v61, %v10728_v46  ;;  %v4036_v16 = vsel %vm3923_vm14, %v4026_v62, %v4035_v11  ;;  %v4030_v38 = vrot.slane %v3875_v33, %v10727_v51 }
 0xa93   : > { %v3926_v21 = vsel %vm3925_vm0, %v3912_v5, %v3924_v57  ;;  %v4146_v54 = vsel %vm3921_vm1, %v4133_v47, %v4145_v42  ;;  %v4257_v45 = vsel %vm3919_vm13, %v4241_v63, %v4256_v26  ;;  %v4249_v44 = vrot.slane %v3874_v31, %v10728_v46  ;;  %v10752_v31 = vld [vmem:[#allocation15_spill] sm:$0xff] }
 0xa94   : > { %6382 = vmatmul.mubr.msk.f32.vlgmr.msra.gmra.mxu1 %vm10749_vm10, %v3926_v21  ;;  %v4147_v39 = vsel %vm3923_vm14, %v4137_v3, %v4146_v54  ;;  %v4258_v24 = vsel %vm3921_vm1, %v4245_v58, %v4257_v45  ;;  %v4037_v32 = vsel %vm3925_vm0, %v4030_v38, %v4036_v16  ;;  %v4253_v22 = vrot.slane %v3876_v41, %v10728_v46  ;;  %v10756_v57 = vld [vmem:[#allocation23_spill] sm:$0xff]  ;;  %vm10844_vm1 = vmmov %vm10740_vm2 }
 0xa95   : > { %v4148_v19 = vsel %vm3925_vm0, %v4141_v0, %v4147_v39  ;;  %6385 = vmatpush3.msra.mxu1 %v3877_v35  ;;  %6386 = vmatprep.mubr.msk.f32.mxu1 %vm6629_vm6, %v10726_v27  ;;  %v4259_v14 = vsel %vm3923_vm14, %v4249_v44, %v4258_v24  ;;  %v9232_v20 = vrot.slane %v4419_v56, %v10727_v51  ;;  %v4420_v26 = vld [vmem:[%s10058_s2 + $0xb1] sm:$0xff]  ;;  %v10757_v24 = vld [vmem:[#allocation26_spill] sm:$0xff]  ;;  %vm5759_vm9 = vcmask 195584  }
 0xa96   : > { %6392 = vmatmul.mubr.msk.f32.vlgmr.msra.gmra.mxu0 %vm10740_vm2, %v4148_v19  ;;  %6394 = vmatprep.subr.mxu1 %v10726_v27  ;;  %v4260_v52 = vsel %vm3925_vm0, %v4253_v22, %v4259_v14  ;;  %v4442_v12 = vmul.f32 %v9229_v60, %v4403_v15  ;;  %v9236_v49 = vrot.slane %v4419_v56, %v10752_v31  ;;  %v9271_v22 = vld [vmem:[#allocation3 + $0x8] sm:$0xff]  ;;  %vm5920_vm0 = vcmask 517120  }
 0xa97   : > { %6403 = vmatprep.mubr.msk.f32.mxu0 %vm6629_vm6, %v10726_v27  ;;  %v4430_v33 = vmul.f32 %v9232_v20, %v4403_v15  ;;  %v9241_v10 = vrot.slane %v4419_v56, %v10753_v37  ;;  %v4444_v50 = vmul.f32 %v9229_v60, %v4411_v28  ;;  %v9246_v40 = vrot.slane %v4419_v56, %v10754_v9 }
 0xa98   : > { %6387 = vmatmul.mubr.msk.f32.vlgmr.msra.gmra.mxu1 %vm10750_vm3, %v4037_v32  ;;  %v4450_v43 = vrot.slane %v4442_v12, 1  ;;  %v4466_v2 = vmul.f32 %v9236_v49, %v4403_v15  ;;  %v4432_v61 = vmul.f32 %v9232_v20, %v4411_v28  ;;  %v4468_v13 = vmul.f32 %v9236_v49, %v4411_v28 }
 0xa99   : > { %6395 = vmatpush3.msra.mxu1 %v3880_v59  ;;  %6396 = vmatprep.mubr.msk.f32.mxu1 %vm6629_vm6, %v10726_v27  ;;  %v4490_v23 = vmul.f32 %v9241_v10, %v4403_v15  ;;  %v4452_v1 = vrot.slane %v4444_v50, 1  ;;  %v4514_v5 = vmul.f32 %v9246_v40, %v4403_v15  ;;  %v9252_v36 = vrot.slane %v4419_v56, %v10755_v30 }
 0xa9a   : > { %6406 = vmatprep.subr.mxu1 %v10726_v27  ;;  %v4458_v17 = vadd.f32 %v4450_v43, %v4430_v33  ;;  %v4474_v41 = vrot.slane %v4466_v2, 2  ;;  %v4476_v8 = vrot.slane %v4468_v13, 2  ;;  %v4492_v42 = vmul.f32 %v9241_v10, %v4411_v28 }
 0xa9b   : > { %v4498_v63 = vrot.slane %v4490_v23, 3  ;;  %v4460_v47 = vadd.f32 %v4452_v1, %v4432_v61  ;;  %v4522_v62 = vrot.slane %v4514_v5, 4  ;;  %v4538_v3 = vmul.f32 %v9252_v36, %v4403_v15 }
 0xa9c   : > { %6397 = vmatmul.mubr.msk.f32.vlgmr.msra.gmra.mxu1 %vm10751_vm5, %v4260_v52  ;;  %v4482_v4 = vadd.f32 %v4474_v41, %v4458_v17  ;;  %v9257_v35 = vrot.slane %v4419_v56, %v10756_v57  ;;  %v4500_v21 = vrot.slane %v4492_v42, 3  ;;  %v4516_v0 = vmul.f32 %v9246_v40, %v4411_v28  ;;  %v9281_v41 = vld [vmem:[#allocation3 + $0x48] sm:$0xff] }
 0xa9d   : > { %6408 = vmatprep.mubr.msk.f32.mxu1 %vm6629_vm6, %v10726_v27  ;;  %v4484_v58 = vadd.f32 %v4476_v8, %v4460_v47  ;;  %v4546_v39 = vrot.slane %v4538_v3, 5  ;;  %v4540_v45 = vmul.f32 %v9252_v36, %v4411_v28  ;;  %v9266_v32 = vrot.slane %v4419_v56, %v10757_v24 }
 0xa9e   : > { %v4506_v11 = vadd.f32 %v4498_v63, %v4482_v4  ;;  %v4562_v16 = vmul.f32 %v9257_v35, %v4403_v15  ;;  %v4524_v38 = vrot.slane %v4516_v0, 4  ;;  %v9269_v14 = vrot.slane %v4420_v26, %v10727_v51 }
 0xa9f   : > { %v4508_v19 = vadd.f32 %v4500_v21, %v4484_v58  ;;  %v4548_v15 = vrot.slane %v4540_v45, 5  ;;  %v4564_v12 = vmul.f32 %v9257_v35, %v4411_v28  ;;  %v4586_v43 = vmul.f32 %v9266_v32, %v9271_v22  ;;  %v9306_v58 = vld [vmem:[#allocation3 + $0x10] sm:$0xff] }
 0xaa0   : > { %v4530_v54 = vadd.f32 %v4522_v62, %v4506_v11  ;;  %v4570_v44 = vrot.slane %v4562_v16, 6  ;;  %v4598_v2 = vmul.f32 %v9269_v14, %v9271_v22  ;;  %v9279_v50 = vrot.slane %v4420_v26, %v10728_v46 }
 0xaa1   : > { %v4532_v52 = vadd.f32 %v4524_v38, %v4508_v19  ;;  %v4572_v17 = vrot.slane %v4564_v12, 6  ;;  %v9286_v28 = vrot.slane %v4420_v26, %v10752_v31  ;;  %v9289_v13 = vrot.slane %v4420_v26, %v10753_v37 }
 0xaa2   : > { %v4554_v59 = vadd.f32 %v4546_v39, %v4530_v54  ;;  %v4606_v61 = vrot.slane %v4598_v2, 1  ;;  %v4622_v1 = vmul.f32 %v9279_v50, %v9271_v22  ;;  %v4588_v63 = vmul.f32 %v9266_v32, %v9281_v41 }
 0xaa3   : > { %v4556_v56 = vadd.f32 %v4548_v15, %v4532_v52  ;;  %v4600_v5 = vmul.f32 %v9269_v14, %v9281_v41  ;;  %v9296_v47 = vrot.slane %v4420_v26, %v10754_v9  ;;  %v9299_v8 = vrot.slane %v4420_v26, %v10755_v30  ;;  %v9329_v15 = vld [vmem:[%s10058_s2 + $0xb9] sm:$0xff] }
 0xaa4   : > { %v4578_v33 = vadd.f32 %v4570_v44, %v4554_v59  ;;  %v4630_v11 = vrot.slane %v4622_v1, 2  ;;  %v4646_v62 = vmul.f32 %v9286_v28, %v9271_v22  ;;  %v9304_v3 = vrot.slane %v4420_v26, %v10756_v57 }
 0xaa5   : > { %v4580_v4 = vadd.f32 %v4572_v17, %v4556_v56  ;;  %v4443_v21 = vmul.f32 %v9229_v60, %v9271_v22  ;;  %v4670_v0 = vmul.f32 %v9289_v13, %v9271_v22  ;;  %v4608_v39 = vrot.slane %v4600_v5, 1 }
 0xaa6   : > { %v4590_v23 = vadd.f32 %v4586_v43, %v4578_v33  ;;  %10758 = vst [vmem:[#allocation89_spill] sm:$0xff] %v9304_v3  ;;  %v4624_v16 = vmul.f32 %v9279_v50, %v9281_v41  ;;  %v4694_v19 = vmul.f32 %v9296_v47, %v9271_v22  ;;  %v4445_v38 = vmul.f32 %v9229_v60, %v9281_v41 }
 0xaa7   : > { %v4592_v54 = vadd.f32 %v4588_v63, %v4580_v4  ;;  %v4654_v59 = vrot.slane %v4646_v62, 3  ;;  %v9320_v44 = vmul.f32 %v9299_v8, %v9271_v22  ;;  %v9324_v52 = vmul.f32 %v9304_v3, %v9306_v58 }
 0xaa8   : > { %v4614_v42 = vadd.f32 %v4606_v61, %v4590_v23  ;;  %v9332_v12 = vrot.slane %v4420_v26, %v10757_v24  ;;  %v4431_v60 = vmul.f32 %v9232_v20, %v9271_v22  ;;  %v4451_v33 = vrot.slane %v4443_v21, 1 }
 0xaa9   : > { %v4467_v43 = vmul.f32 %v9236_v49, %v9271_v22  ;;  %v4678_v2 = vrot.slane %v4670_v0, 4  ;;  %v4616_v56 = vadd.f32 %v4608_v39, %v4592_v54  ;;  %v4632_v17 = vrot.slane %v4624_v16, 2 }
 0xaaa   : > { %v4638_v45 = vadd.f32 %v4630_v11, %v4614_v42  ;;  %10759 = vst [vmem:[#allocation90_spill] sm:$0xff] %v9332_v12  ;;  %v4648_v23 = vmul.f32 %v9286_v28, %v9281_v41  ;;  %v4702_v61 = vrot.slane %v4694_v19, 5  ;;  %v4433_v1 = vmul.f32 %v9232_v20, %v9281_v41 }
 0xaab   : > { %v4453_v4 = vrot.slane %v4445_v38, 1  ;;  %v4469_v26 = vmul.f32 %v9236_v49, %v9281_v41  ;;  %v4726_v5 = vrot.slane %v9320_v44, 6  ;;  %v9347_v42 = vrot.slane %v9329_v15, %v10727_v51 }
 0xaac   : > { %v4662_v63 = vadd.f32 %v4654_v59, %v4638_v45  ;;  %v9351_v11 = vrot.slane %v9329_v15, %v10728_v46  ;;  %v9355_v62 = vmul.f32 %v9332_v12, %v9306_v58  ;;  %v4459_v20 = vadd.f32 %v4451_v33, %v4431_v60 }
 0xaad   : > { %v4475_v21 = vrot.slane %v4467_v43, 2  ;;  %v4491_v49 = vmul.f32 %v9241_v10, %v9271_v22  ;;  %v9361_v0 = vrot.slane %v9329_v15, %v10752_v31  ;;  %v4640_v54 = vadd.f32 %v4632_v17, %v4616_v56 }
 0xaae   : > { %v4656_v39 = vrot.slane %v4648_v23, 3  ;;  %v4672_v16 = vmul.f32 %v9289_v13, %v9281_v41  ;;  %v9367_v19 = vrot.slane %v9329_v15, %v10753_v37  ;;  %v4461_v38 = vadd.f32 %v4453_v4, %v4433_v1 }
 0xaaf   : > { %v4477_v45 = vrot.slane %v4469_v26, 2  ;;  %v4493_v59 = vmul.f32 %v9241_v10, %v9281_v41  ;;  %v4686_v44 = vadd.f32 %v4678_v2, %v4662_v63  ;;  %v9373_v60 = vmul.f32 %v9347_v42, %v9306_v58 }
 0xab0   : > { %v9377_v33 = vmul.f32 %v9351_v11, %v9306_v58  ;;  %v9381_v43 = vrot.slane %v9329_v15, %v10754_v9  ;;  %v9385_v56 = vrot.slane %v9329_v15, %v10755_v30  ;;  %v4483_v17 = vadd.f32 %v4475_v21, %v4459_v20 }
 0xab1   : > { %v4499_v23 = vrot.slane %v4491_v49, 3  ;;  %v4515_v10 = vmul.f32 %v9246_v40, %v9271_v22  ;;  %v4762_v2 = vrot.slane %v9355_v62, 1  ;;  %v4664_v1 = vadd.f32 %v4656_v39, %v4640_v54 }
 0xab2   : > { %v4680_v4 = vrot.slane %v4672_v16, 4  ;;  %v4696_v26 = vmul.f32 %v9296_v47, %v9281_v41  ;;  %v9394_v63 = vmul.f32 %v9361_v0, %v9306_v58  ;;  %v4485_v6 = vadd.f32 %v4477_v45, %v4461_v38 }
 0xab3   : > { %v4501_v7 = vrot.slane %v4493_v59, 3  ;;  %v4517_v20 = vmul.f32 %v9246_v40, %v9281_v41  ;;  %v4710_v21 = vadd.f32 %v4702_v61, %v4686_v44  ;;  %v9401_v62 = vmul.f32 %v9367_v19, %v9306_v58  ;;  %v4422_v40 = vld [vmem:[%s10058_s2 + $0xc1] sm:$0xff] }
 0xab4   : > { %v9405_v54 = vmul.f32 %v9381_v43, %v9306_v58  ;;  %v4507_v16 = vadd.f32 %v4499_v23, %v4483_v17  ;;  %v4523_v29 = vrot.slane %v4515_v10, 4  ;;  %v4539_v38 = vmul.f32 %v9252_v36, %v9271_v22 }
 0xab5   : > { %v9415_v61 = vrot.slane %v9329_v15, %v10756_v57  ;;  %v4688_v45 = vadd.f32 %v4680_v4, %v4664_v1  ;;  %v4704_v59 = vrot.slane %v4696_v26, 5  ;;  %v4720_v44 = vmul.f32 %v9299_v8, %v9281_v41 }
 0xab6   : > { %v4509_v17 = vadd.f32 %v4501_v7, %v4485_v6  ;;  %v4525_v23 = vrot.slane %v4517_v20, 4  ;;  %v4541_v10 = vmul.f32 %v9252_v36, %v9281_v41  ;;  %v4734_v49 = vadd.f32 %v4726_v5, %v4710_v21  ;;  %v4423_v6 = vld [vmem:[%s10058_s2 + $0xc9] sm:$0xff] }
 0xab7   : > { %v9426_v25 = vrot.slane %v9329_v15, %v10757_v24  ;;  %v9429_v1 = vrot.slane %v4422_v40, %v10727_v51  ;;  %v4531_v4 = vadd.f32 %v4523_v29, %v4507_v16  ;;  %v4547_v26 = vrot.slane %v4539_v38, 5  ;;  %v9445_v29 = vld [vmem:[#allocation3 + $0x50] sm:$0xff] }
 0xab8   : > { %v4563_v7 = vmul.f32 %v9257_v35, %v9271_v22  ;;  %v9437_v36 = vrot.slane %v4422_v40, %v10728_v46  ;;  %v9440_v5 = vrot.slane %v4422_v40, %v10752_v31  ;;  %v4712_v15 = vadd.f32 %v4704_v59, %v4688_v45 }
 0xab9   : > { %v4728_v20 = vrot.slane %v4720_v44, 6  ;;  %v9443_v21 = vrot.slane %v4422_v40, %v10753_v37  ;;  %v4533_v16 = vadd.f32 %v4525_v23, %v4509_v17  ;;  %v4549_v38 = vrot.slane %v4541_v10, 5 }
 0xaba   : > { %v4565_v22 = vmul.f32 %v9257_v35, %v9281_v41  ;;  %v4746_v48 = vadd.f32 %v9324_v52, %v4734_v49  ;;  %v9451_v27 = vrot.slane %v4422_v40, %v10754_v9  ;;  %v9454_v39 = vrot.slane %v4422_v40, %v10755_v30 }
 0xabb   : > { %10760 = vst [vmem:[#allocation99_spill] sm:$0xff] %v9443_v21  ;;  %v9457_v45 = vrot.slane %v4422_v40, %v10756_v57  ;;  %v9460_v59 = vrot.slane %v4422_v40, %v10757_v24  ;;  %v9463_v44 = vrot.slane %v4423_v6, %v10727_v51  ;;  %v4555_v17 = vadd.f32 %v4547_v26, %v4531_v4  ;;  %v9475_v40 = vld [vmem:[%s10058_s2 + $0xd1] sm:$0xff] }
 0xabc   : > { %10761 = vst [vmem:[#allocation101_spill] sm:$0xff] %v9451_v27  ;;  %10762 = vst [vmem:[#allocation48_spill] sm:$0xff] %v9454_v39  ;;  %v4571_v23 = vrot.slane %v4563_v7, 6  ;;  %v9466_v35 = vrot.slane %v4423_v6, %v10728_v46  ;;  %v4736_v41 = vadd.f32 %v4728_v20, %v4712_v15  ;;  %v4744_v52 = vmul.f32 %v9304_v3, %v9445_v29  ;;  %v9483_v15 = vld [vmem:[#allocation3 + $0x28] sm:$0xff] }
 0xabd   : > { %10763 = vst [vmem:[#allocation102_spill] sm:$0xff] %v9457_v45  ;;  %10764 = vst [vmem:[#allocation103_spill] sm:$0xff] %v9460_v59  ;;  %v4756_v49 = vmul.f32 %v9332_v12, %v9445_v29  ;;  %v9478_v18 = vrot.slane %v4423_v6, %v10752_v31  ;;  %v9481_v4 = vrot.slane %v4423_v6, %v10753_v37  ;;  %v4573_v7 = vrot.slane %v4565_v22, 6 }
 0xabe   : > { %10765 = vst [vmem:[#allocation49_spill] sm:$0xff] %v9463_v44  ;;  %10766 = vst [vmem:[#allocation41_spill] sm:$0xff] %v9466_v35  ;;  %v4557_v26 = vadd.f32 %v4549_v38, %v4533_v16  ;;  %v4770_v20 = vadd.f32 %v4762_v2, %v4746_v48  ;;  %v9486_v35 = vrot.slane %v4423_v6, %v10754_v9  ;;  %v10776_v34 = vrot.slane %v9377_v33, 3 }
 0xabf   : > { %10767 = vst [vmem:[#allocation106_spill] sm:$0xff] %v9478_v18  ;;  %10768 = vst [vmem:[#allocation104_spill] sm:$0xff] %v9481_v4  ;;  %v9489_v12 = vrot.slane %v4423_v6, %v10755_v30  ;;  %v9492_v44 = vrot.slane %v4423_v6, %v10756_v57  ;;  %v9495_v18 = vrot.slane %v4423_v6, %v10757_v24  ;;  %v4764_v22 = vrot.slane %v4756_v49, 1 }
 0xac0   : > { %10769 = vst [vmem:[#allocation93_spill] sm:$0xff] %v9486_v35  ;;  %v4579_v27 = vadd.f32 %v4571_v23, %v4555_v17  ;;  %v4587_v16 = vmul.f32 %v9266_v32, %v9306_v58  ;;  %v4599_v48 = vmul.f32 %v9269_v14, %v9306_v58  ;;  %v9505_v2 = vrot.slane %v9475_v40, %v10727_v51 }
 0xac1   : > { %10770 = vst [vmem:[#allocation105_spill] sm:$0xff] %v9489_v12  ;;  %v4748_v38 = vadd.f32 %v4744_v52, %v4736_v41  ;;  %v4780_v6 = vmul.f32 %v9347_v42, %v9445_v29  ;;  %v9511_v23 = vmul.f32 %v9481_v4, %v9483_v15  ;;  %v4581_v39 = vadd.f32 %v4573_v7, %v4557_v26 }
 0xac2   : > { %10771 = vst [vmem:[#allocation108_spill] sm:$0xff] %v9505_v2  ;;  %v4589_v3 = vmul.f32 %v9266_v32, %v9445_v29  ;;  %v4601_v51 = vmul.f32 %v9269_v14, %v9445_v29  ;;  %v10773_v41 = vrot.slane %v9373_v60, 2  ;;  %v9521_v49 = vmul.f32 %v9486_v35, %v9483_v15 }
 0xac3   : > { %10772 = vst [vmem:[#allocation8_spill] sm:$0xff] %v9511_v23  ;;  %v9529_v26 = vmul.f32 %v9489_v12, %v9483_v15  ;;  %v4591_v32 = vadd.f32 %v4587_v16, %v4579_v27  ;;  %v4607_v7 = vrot.slane %v4599_v48, 1  ;;  %v4623_v14 = vmul.f32 %v9279_v50, %v9306_v58 }
 0xac4   : > { %v4794_v52 = vadd.f32 %v10773_v41, %v4770_v20  ;;  %v4788_v20 = vrot.slane %v4780_v6, 2  ;;  %v4593_v27 = vadd.f32 %v4589_v3, %v4581_v39  ;;  %v4609_v16 = vrot.slane %v4601_v51, 1 }
 0xac5   : > { %v4625_v48 = vmul.f32 %v9279_v50, %v9445_v29  ;;  %v4828_v3 = vmul.f32 %v9361_v0, %v9445_v29  ;;  %v4615_v51 = vadd.f32 %v4607_v7, %v4591_v32  ;;  %v4631_v39 = vrot.slane %v4623_v14, 2 }
 0xac6   : > { %v4647_v50 = vmul.f32 %v9286_v28, %v9306_v58  ;;  %v4649_v7 = vmul.f32 %v9286_v28, %v9445_v29 }
 0xac7   : > { %v4633_v32 = vrot.slane %v4625_v48, 2 }
 0xb54   : > { %v3995_v10 = vpop.f32.mrf.mxu1 }
 0xb56   : > { %v6383_v59 = vpop.f32.mrf.mxu1  ;;  %v4217_v45 = vpop.f32.mrf.mxu0 }
 0xb58   : > { %v4106_v59 = vpop.f32.mrf.mxu1  ;;  %v6393_v17 = vpop.f32.mrf.mxu0 }
 0xb59   : > { %v4107_v21 = vadd.f32 %v4106_v59, %v3995_v10  ;;  %v9525_v17 = vrot.slane %v9475_v40, %v10728_v46  ;;  %v4772_v10 = vadd.f32 %v4764_v22, %v4748_v38  ;;  %v4804_v59 = vmul.f32 %v9351_v11, %v9445_v29 }
 0xb5a   : > { %v6388_v23 = vpop.f32.mrf.mxu1  ;;  %v9539_v46 = vmul.f32 %v9492_v44, %v9483_v15  ;;  %v9551_v38 = vmul.f32 %v9505_v2, %v9483_v15 }
 0xb5b   : > { %10774 = vst [vmem:[#allocation107_spill] sm:$0xff] %v9525_v17  ;;  %v4221_v60 = vadd.f32 %v4217_v45, %v4107_v21  ;;  %v4341_v23 = vpop.permute.xlu1 %4340  ;;  %v4818_v21 = vadd.f32 %v10776_v34, %v4794_v52  ;;  %v9547_v45 = vmul.f32 %v9495_v18, %v9483_v15  ;;  %v4796_v6 = vadd.f32 %v4788_v20, %v4772_v10 }
 0xb5c   : > { %v4329_v41 = vpop.f32.mrf.mxu1  ;;  %10775 = vst [vmem:[#allocation116_spill] sm:$0xff] %v9539_v46  ;;  %10778 = vst [vmem:[#allocation62_spill] sm:$0xff] %v9551_v38  ;;  %v4812_v52 = vrot.slane %v4804_v59, 3  ;;  %v9576_v10 = vrot.slane %v9475_v40, %v10752_v31  ;;  %v4836_v20 = vrot.slane %v4828_v3, 4  ;;  %v4639_v59 = vadd.f32 %v4631_v39, %v4615_v51  ;;  %v9589_v39 = vld [vmem:[#allocation3 + $0x30] sm:$0xff] }
 0xb5d   : > { %v4333_v12 = vadd.f32 %v4329_v41, %v4221_v60  ;;  %10777 = vst [vmem:[#allocation109_spill] sm:$0xff] %v9547_v45  ;;  %v9564_v60 = vmul.f32 %v9525_v17, %v9483_v15  ;;  %v4617_v41 = vadd.f32 %v4609_v16, %v4593_v27  ;;  %v4655_v27 = vrot.slane %v4647_v50, 3  ;;  %10783 = vst [vmem:[#allocation112_spill] sm:$0xff] %v9589_v39 }
 0xb5e   : > { %v6398_v22 = vpop.f32.mrf.mxu1  ;;  %10782 = vst [vmem:[#allocation113_spill] sm:$0xff] %v9576_v10  ;;  %v4671_v16 = vmul.f32 %v9289_v13, %v9306_v58  ;;  %v4657_v31 = vrot.slane %v4649_v7, 3  ;;  %v4673_v3 = vmul.f32 %v9289_v13, %v9445_v29  ;;  %v10784_v50 = vrot.slane %v9401_v62, 5 }
 0xb5f   : > { %v9559_v34 = vadd.f32 %v4341_v23, %v4333_v12  ;;  %10780 = vst [vmem:[#allocation110_spill] sm:$0xff] %v9564_v60  ;;  %v10781_v12 = vrot.slane %v9394_v63, 4  ;;  %v4820_v22 = vadd.f32 %v4812_v52, %v4796_v6  ;;  %v4852_v63 = vmul.f32 %v9367_v19, %v9445_v29 }
 0xb60   : > { %v4679_v7 = vrot.slane %v4671_v16, 4  ;;  %v4695_v13 = vmul.f32 %v9296_v47, %v9306_v58 }
 0xb61   : > { %10779 = vst [vmem:[#allocation111_spill] sm:$0xff] %v9559_v34  ;;  %v4376_v14 = vcombine.high %v9559_v34, %v9559_v34  ;;  %v4383_v53 = vrot.slane %v9559_v34, %v9075_v55  ;;  %v4842_v23 = vadd.f32 %v10781_v12, %v4818_v21  ;;  %v4641_v12 = vadd.f32 %v4633_v32, %v4617_v41  ;;  %v10797_v21 = vld [vmem:[#allocation89_spill] sm:$0xff] }
 0xb62   : > { %v4876_v41 = vmul.f32 %v9381_v43, %v9445_v29  ;;  %v4663_v32 = vadd.f32 %v4655_v27, %v4639_v59  ;;  %v4844_v62 = vadd.f32 %v4836_v20, %v4820_v22  ;;  %v4697_v59 = vmul.f32 %v9296_v47, %v9445_v29 }
 0xb63   : > { %v4390_v28 = vrot.slane %v4376_v14, %v9075_v55  ;;  %v4391_v48 = vcombine.high %v4383_v53, %v4383_v53  ;;  %4399 = vst.msk [vmem:[#allocation3 + $0x1b] sm:$0x3] %vm4398_vm8, %v4383_v53  ;;  %v4866_v6 = vadd.f32 %v10784_v50, %v4842_v23  ;;  %v4860_v23 = vrot.slane %v4852_v63, 5 }
 0xb64   : > { %v4665_v50 = vadd.f32 %v4657_v31, %v4641_v12  ;;  %v4681_v14 = vrot.slane %v4673_v3, 4  ;;  %v10786_v27 = vrot.slane %v9405_v54, 6  ;;  %v9616_v20 = vrot.slane %v9475_v40, %v10754_v9 }
 0xb65   : > { %v4392_v51 = vcombine.high %v4390_v28, %v4390_v28  ;;  %4400 = vst.msk [vmem:[#allocation3 + $0x23] sm:$0x3] %vm4398_vm8, %v4391_v48  ;;  %4401 = vst.msk [vmem:[#allocation3 + $0x5b] sm:$0x3] %vm4398_vm8, %v4390_v28  ;;  %v9604_v48 = vmul.f32 %v9576_v10, %v9589_v39  ;;  %v9620_v22 = vrot.slane %v9475_v40, %v10755_v30  ;;  %v4884_v12 = vrot.slane %v4876_v41, 6 }
 0xb66   : > { %v4890_v16 = vadd.f32 %v10786_v27, %v4866_v6  ;;  %10788 = vst [vmem:[#allocation117_spill] sm:$0xff] %v9616_v20  ;;  %v4687_v31 = vadd.f32 %v4679_v7, %v4663_v32  ;;  %v4703_v47 = vrot.slane %v4695_v13, 5  ;;  %v4719_v54 = vmul.f32 %v9299_v8, %v9306_v58 }
 0xb67   : > { %4402 = vst.msk [vmem:[#allocation3 + $0x63] sm:$0x3] %vm4398_vm8, %v4392_v51  ;;  %10785 = vst [vmem:[#allocation114_spill] sm:$0xff] %v9604_v48  ;;  %v9612_v51 = vrot.slane %v9475_v40, %v10753_v37  ;;  %v4868_v6 = vadd.f32 %v4860_v23, %v4844_v62  ;;  %v9634_v30 = vrot.slane %v9475_v40, %v10756_v57  ;;  %v4705_v32 = vrot.slane %v4697_v59, 5 }
 0xb68   : > { %10789 = vst [vmem:[#allocation118_spill] sm:$0xff] %v9620_v22  ;;  %v4689_v41 = vadd.f32 %v4681_v14, %v4665_v50  ;;  %v4721_v7 = vmul.f32 %v9299_v8, %v9445_v29  ;;  %v9642_v13 = vrot.slane %v9475_v40, %v10757_v24  ;;  %v9652_v14 = vmul.f32 %v9616_v20, %v9589_v39  ;;  %v9656_v40 = vld [vmem:[#allocation3 + $0x68] sm:$0xff] }
 0xb69   : > { %10787 = vst [vmem:[#allocation115_spill] sm:$0xff] %v9612_v51  ;;  %10790 = vst [vmem:[#allocation128_spill] sm:$0xff] %v9634_v30  ;;  %v9648_v57 = vmul.f32 %v9612_v51, %v9589_v39  ;;  %v4727_v29 = vrot.slane %v4719_v54, 6  ;;  %v4892_v50 = vadd.f32 %v4884_v12, %v4868_v6  ;;  %v4711_v59 = vadd.f32 %v4703_v47, %v4687_v31  ;;  %v10796_v47 = vld [vmem:[#allocation99_spill] sm:$0xff] }
 0xb6a   : > { %v9622_v63 = vld [vmem:[#allocation3 + $0x18] sm:$0xff]  ;;  %10791 = vst [vmem:[#allocation119_spill] sm:$0xff] %v9642_v13  ;;  %10793 = vst [vmem:[#allocation28_spill] sm:$0xff] %v9652_v14  ;;  %v4729_v53 = vrot.slane %v4721_v7, 6  ;;  %v9664_v52 = vmul.f32 %v9620_v22, %v9589_v39  ;;  %v10804_v14 = vld [vmem:[#allocation106_spill] sm:$0xff] }
 0xb6b   : > { %v4898_v37 = vmul.f32 %v9385_v56, %v9622_v63  ;;  %v4910_v3 = vmul.f32 %v9415_v61, %v9622_v63  ;;  %v4934_v9 = vmul.f32 %v9426_v25, %v9622_v63  ;;  %v4958_v62 = vmul.f32 %v9429_v1, %v9622_v63  ;;  %10792 = vst [vmem:[#allocation27_spill] sm:$0xff] %v9648_v57 }
 0xb6c   : > { %v9638_v58 = vld [vmem:[#allocation3 + $0x58] sm:$0xff]  ;;  %v4982_v8 = vmul.f32 %v9437_v36, %v9622_v63  ;;  %10794 = vst [vmem:[#allocation124_spill] sm:$0xff] %v9664_v52  ;;  %v9670_v12 = vld [vmem:[#allocation3 + $0x20] sm:$0xff]  ;;  %v5030_v6 = vmul.f32 %v10796_v47, %v9622_v63  ;;  %v4743_v33 = vmul.f32 %v10797_v21, %v9622_v63  ;;  %v4779_v17 = vmul.f32 %v9347_v42, %v9622_v63 }
 0xb6d   : > { %v4902_v27 = vadd.f32 %v4898_v37, %v4890_v16  ;;  %v4918_v28 = vrot.slane %v4910_v3, 1  ;;  %v4942_v24 = vrot.slane %v4934_v9, 2  ;;  %v5006_v16 = vmul.f32 %v9440_v5, %v9622_v63 }
 0xb6e   : > { %v4900_v37 = vmul.f32 %v9385_v56, %v9638_v58  ;;  %v4713_v3 = vadd.f32 %v4705_v32, %v4689_v41  ;;  %v4966_v9 = vrot.slane %v4958_v62, 3  ;;  %v4990_v31 = vrot.slane %v4982_v8, 4 }
 0xb6f   : > { %v4926_v23 = vadd.f32 %v4918_v28, %v4902_v27  ;;  %v9668_v28 = vmul.f32 %v9634_v30, %v9589_v39  ;;  %v9676_v41 = vmul.f32 %v9481_v4, %v9656_v40  ;;  %v9680_v32 = vmul.f32 %v9486_v35, %v9656_v40  ;;  %v10805_v35 = vld [vmem:[#allocation90_spill] sm:$0xff] }
 0xb70   : > { %v4904_v27 = vadd.f32 %v4900_v37, %v4892_v50  ;;  %v4936_v62 = vmul.f32 %v9426_v25, %v9638_v58  ;;  %v5014_v8 = vrot.slane %v5006_v16, 5  ;;  %v9688_v34 = vadd.f32 %v4729_v53, %v4713_v3  ;;  %v10800_v16 = vld [vmem:[#allocation102_spill] sm:$0xff]  ;;  %v10801_v3 = vld [vmem:[#allocation103_spill] sm:$0xff] }
 0xb71   : > { %10795 = vst [vmem:[#allocation29_spill] sm:$0xff] %v9668_v28  ;;  %v4950_v54 = vadd.f32 %v4942_v24, %v4926_v23  ;;  %v4912_v23 = vmul.f32 %v9415_v61, %v9638_v58  ;;  %v4735_v24 = vadd.f32 %v4727_v29, %v4711_v59  ;;  %v10798_v28 = vld [vmem:[#allocation48_spill] sm:$0xff]  ;;  %v4960_v50 = vmul.f32 %v9429_v1, %v9638_v58 }
 0xb72   : > { %v5066_v30 = vmul.f32 %v10798_v28, %v9670_v12  ;;  %v5038_v37 = vrot.slane %v5030_v6, 6  ;;  %v5090_v29 = vmul.f32 %v10800_v16, %v9670_v12  ;;  %v4984_v59 = vmul.f32 %v9437_v36, %v9638_v58  ;;  %v10803_v6 = vld [vmem:[#allocation41_spill] sm:$0xff] }
 0xb73   : > { %v4974_v7 = vadd.f32 %v4966_v9, %v4950_v54  ;;  %v4920_v52 = vrot.slane %v4912_v23, 1  ;;  %v10799_v54 = vld [vmem:[#allocation101_spill] sm:$0xff]  ;;  %v4944_v22 = vrot.slane %v4936_v62, 2  ;;  %v9706_v20 = vmul.f32 %v10803_v6, %v9670_v12 }
 0xb74   : > { %v5054_v9 = vmul.f32 %v10799_v54, %v9670_v12  ;;  %v10802_v23 = vld [vmem:[#allocation49_spill] sm:$0xff]  ;;  %v9710_v51 = vmul.f32 %v10804_v14, %v9670_v12  ;;  %v5008_v60 = vmul.f32 %v9440_v5, %v9638_v58  ;;  %v5074_v10 = vrot.slane %v5066_v30, 1 }
 0xb75   : > { %v4998_v55 = vadd.f32 %v4990_v31, %v4974_v7  ;;  %v5114_v31 = vmul.f32 %v10801_v3, %v9670_v12  ;;  %v4928_v7 = vadd.f32 %v4920_v52, %v4904_v27  ;;  %v5138_v48 = vmul.f32 %v10802_v23, %v9670_v12 }
 0xb76   : > { %v4968_v27 = vrot.slane %v4960_v50, 3  ;;  %v5098_v62 = vrot.slane %v5090_v29, 2  ;;  %v4992_v57 = vrot.slane %v4984_v59, 4  ;;  %v5032_v38 = vmul.f32 %v10796_v47, %v9638_v58 }
 0xb77   : > { %v5022_v53 = vadd.f32 %v5014_v8, %v4998_v55  ;;  %v9714_v55 = vld [vmem:[#allocation3 + $0x60] sm:$0xff]  ;;  %v4952_v52 = vadd.f32 %v4944_v22, %v4928_v7  ;;  %v4747_v13 = vadd.f32 %v4743_v33, %v4735_v24  ;;  %v4755_v39 = vmul.f32 %v10805_v35, %v9622_v63 }
 0xb78   : > { %v5122_v2 = vrot.slane %v5114_v31, 3  ;;  %v5146_v46 = vrot.slane %v5138_v48, 4  ;;  %v5068_v22 = vmul.f32 %v10798_v28, %v9714_v55  ;;  %v4803_v33 = vmul.f32 %v9351_v11, %v9622_v63 }
 0xb79   : > { %v5046_v8 = vadd.f32 %v5038_v37, %v5022_v53  ;;  %v4976_v45 = vadd.f32 %v4968_v27, %v4952_v52  ;;  %v5016_v37 = vrot.slane %v5008_v60, 5  ;;  %v4763_v29 = vrot.slane %v4755_v39, 1 }
 0xb7a   : > { %v5170_v24 = vrot.slane %v9706_v20, 5  ;;  %v5092_v59 = vmul.f32 %v10800_v16, %v9714_v55  ;;  %v4827_v53 = vmul.f32 %v9361_v0, %v9622_v63  ;;  %v4787_v7 = vrot.slane %v4779_v17, 2 }
 0xb7b   : > { %v5058_v4 = vadd.f32 %v5054_v9, %v5046_v8  ;;  %v5000_v50 = vadd.f32 %v4992_v57, %v4976_v45  ;;  %v5040_v9 = vrot.slane %v5032_v38, 6  ;;  %v4771_v31 = vadd.f32 %v4763_v29, %v4747_v13 }
 0xb7c   : > { %v5076_v45 = vrot.slane %v5068_v22, 1  ;;  %v5140_v38 = vmul.f32 %v10802_v23, %v9714_v55  ;;  %v4811_v57 = vrot.slane %v4803_v33, 3  ;;  %v4851_v8 = vmul.f32 %v9367_v19, %v9622_v63 }
 0xb7d   : > { %v5082_v30 = vadd.f32 %v5074_v10, %v5058_v4  ;;  %v5024_v60 = vadd.f32 %v5016_v37, %v5000_v50  ;;  %v5056_v4 = vmul.f32 %v10799_v54, %v9714_v55  ;;  %v5116_v10 = vmul.f32 %v10801_v3, %v9714_v55 }
 0xb7e   : > { %v4795_v20 = vadd.f32 %v4787_v7, %v4771_v31  ;;  %v5100_v27 = vrot.slane %v5092_v59, 2  ;;  %v5164_v17 = vmul.f32 %v10803_v6, %v9714_v55  ;;  %v5188_v13 = vmul.f32 %v10804_v14, %v9714_v55 }
 0xb7f   : > { %v5106_v48 = vadd.f32 %v5098_v62, %v5082_v30  ;;  %v5048_v39 = vadd.f32 %v5040_v9, %v5024_v60  ;;  %v4835_v22 = vrot.slane %v4827_v53, 4  ;;  %v4875_v30 = vmul.f32 %v9381_v43, %v9622_v63 }
 0xb80   : > { %v4819_v37 = vadd.f32 %v4811_v57, %v4795_v20  ;;  %v5124_v50 = vrot.slane %v5116_v10, 3  ;;  %v4745_v29 = vmul.f32 %v10797_v21, %v9638_v58  ;;  %v4781_v33 = vmul.f32 %v9347_v42, %v9638_v58 }
 0xb81   : > { %v5130_v52 = vadd.f32 %v5122_v2, %v5106_v48  ;;  %v5060_v62 = vadd.f32 %v5056_v4, %v5048_v39  ;;  %v4757_v2 = vmul.f32 %v10805_v35, %v9638_v58  ;;  %v5148_v59 = vrot.slane %v5140_v38, 4 }
 0xb82   : > { %v4843_v48 = vadd.f32 %v4835_v22, %v4819_v37  ;;  %v4859_v60 = vrot.slane %v4851_v8, 5  ;;  %v4749_v53 = vadd.f32 %v4745_v29, %v9688_v34  ;;  %v4805_v63 = vmul.f32 %v9351_v11, %v9638_v58 }
 0xb83   : > { %v5084_v9 = vadd.f32 %v5076_v45, %v5060_v62  ;;  %v5154_v31 = vadd.f32 %v5146_v46, %v5130_v52  ;;  %v4765_v7 = vrot.slane %v4757_v2, 1  ;;  %v4883_v21 = vrot.slane %v4875_v30, 6 }
 0xb84   : > { %v4867_v10 = vadd.f32 %v4859_v60, %v4843_v48  ;;  %v4911_v35 = vmul.f32 %v9415_v61, %v9670_v12  ;;  %v5172_v39 = vrot.slane %v5164_v17, 5  ;;  %v4789_v42 = vrot.slane %v4781_v33, 2 }
 0xb85   : > { %v5108_v4 = vadd.f32 %v5100_v27, %v5084_v9  ;;  %v4773_v20 = vadd.f32 %v4765_v7, %v4749_v53  ;;  %v4829_v45 = vmul.f32 %v9361_v0, %v9638_v58  ;;  %v4899_v34 = vmul.f32 %v9385_v56, %v9670_v12 }
 0xb86   : > { %v4891_v46 = vadd.f32 %v4883_v21, %v4867_v10  ;;  %v4935_v11 = vmul.f32 %v9426_v25, %v9670_v12  ;;  %v5178_v57 = vadd.f32 %v5170_v24, %v5154_v31  ;;  %v4813_v52 = vrot.slane %v4805_v63, 3  ;;  %v10806_v31 = vld [vmem:[#allocation105_spill] sm:$0xff] }
 0xb87   : > { %v5132_v38 = vadd.f32 %v5124_v50, %v5108_v4  ;;  %v4797_v8 = vadd.f32 %v4789_v42, %v4773_v20  ;;  %v4853_v27 = vmul.f32 %v9367_v19, %v9638_v58  ;;  %v4919_v37 = vrot.slane %v4911_v35, 1  ;;  %v10807_v20 = vld [vmem:[#allocation8_spill] sm:$0xff] }
 0xb88   : > { %v4903_v62 = vadd.f32 %v4899_v34, %v4891_v46  ;;  %v4959_v0 = vmul.f32 %v9429_v1, %v9670_v12  ;;  %v5194_v22 = vrot.slane %v9710_v51, 6  ;;  %v4837_v50 = vrot.slane %v4829_v45, 4 }
 0xb89   : > { %v5156_v17 = vadd.f32 %v5148_v59, %v5132_v38  ;;  %v4821_v30 = vadd.f32 %v4813_v52, %v4797_v8  ;;  %v4877_v29 = vmul.f32 %v9381_v43, %v9638_v58  ;;  %v4943_v33 = vrot.slane %v4935_v11, 2 }
 0xb8a   : > { %v4927_v24 = vadd.f32 %v4919_v37, %v4903_v62  ;;  %v4983_v9 = vmul.f32 %v9437_v36, %v9670_v12  ;;  %v5202_v19 = vadd.f32 %v5194_v22, %v5178_v57  ;;  %v5196_v59 = vrot.slane %v5188_v13, 6 }
 0xb8b   : > { %v5180_v2 = vadd.f32 %v5172_v39, %v5156_v17  ;;  %v4845_v48 = vadd.f32 %v4837_v50, %v4821_v30  ;;  %v4861_v60 = vrot.slane %v4853_v27, 5  ;;  %v5248_v53 = vmul.f32 %v10806_v31, %v9656_v40 }
 0xb8c   : > { %v4951_v7 = vadd.f32 %v4943_v33, %v4927_v24  ;;  %v4967_v51 = vrot.slane %v4959_v0, 3  ;;  %v5007_v63 = vmul.f32 %v9440_v5, %v9670_v12  ;;  %v4885_v58 = vrot.slane %v4877_v29, 6 }
 0xb8d   : > { %v5204_v4 = vadd.f32 %v5196_v59, %v5180_v2  ;;  %v4869_v43 = vadd.f32 %v4861_v60, %v4845_v48  ;;  %v4913_v10 = vmul.f32 %v9415_v61, %v9714_v55  ;;  %v5272_v21 = vmul.f32 %v9492_v44, %v9656_v40 }
 0xb8e   : > { %v4975_v13 = vadd.f32 %v4967_v51, %v4951_v7  ;;  %v4991_v35 = vrot.slane %v4983_v9, 4  ;;  %v5031_v39 = vmul.f32 %v10796_v47, %v9670_v12  ;;  %v5214_v42 = vadd.f32 %v10807_v20, %v5202_v19 }
 0xb8f   : > { %v4893_v45 = vadd.f32 %v4885_v58, %v4869_v43  ;;  %v4901_v38 = vmul.f32 %v9385_v56, %v9714_v55  ;;  %v4937_v46 = vmul.f32 %v9426_v25, %v9714_v55  ;;  %v5232_v34 = vrot.slane %v9680_v32, 1 }
 0xb90   : > { %v5067_v61 = vmul.f32 %v10798_v28, %v9483_v15  ;;  %v4999_v11 = vadd.f32 %v4991_v35, %v4975_v13  ;;  %v5015_v57 = vrot.slane %v5007_v63, 5  ;;  %v5216_v8 = vadd.f32 %v9676_v41, %v5204_v4 }
 0xb91   : > { %v4905_v52 = vadd.f32 %v4901_v38, %v4893_v45  ;;  %v4921_v12 = vrot.slane %v4913_v10, 1  ;;  %v4961_v27 = vmul.f32 %v9429_v1, %v9714_v55  ;;  %v5055_v56 = vmul.f32 %v10799_v54, %v9483_v15 }
 0xb92   : > { %v5091_v25 = vmul.f32 %v10800_v16, %v9483_v15  ;;  %v5023_v17 = vadd.f32 %v5015_v57, %v4999_v11  ;;  %v5039_v32 = vrot.slane %v5031_v39, 6  ;;  %v10808_v62 = vrot.slane %v9521_v49, 1 }
 0xb93   : > { %v4929_v0 = vadd.f32 %v4921_v12, %v4905_v52  ;;  %v4945_v22 = vrot.slane %v4937_v46, 2  ;;  %v4985_v41 = vmul.f32 %v9437_v36, %v9714_v55  ;;  %v5256_v30 = vrot.slane %v5248_v53, 2  ;;  %v10813_v12 = vld [vmem:[#allocation107_spill] sm:$0xff] }
 0xb94   : > { %v5238_v37 = vadd.f32 %v10808_v62, %v5214_v42  ;;  %v5075_v50 = vrot.slane %v5067_v61, 1  ;;  %v5115_v1 = vmul.f32 %v10801_v3, %v9483_v15  ;;  %v5047_v29 = vadd.f32 %v5039_v32, %v5023_v17  ;;  %v10816_v62 = vld [vmem:[#allocation109_spill] sm:$0xff] }
 0xb95   : > { %v5240_v2 = vadd.f32 %v5232_v34, %v5216_v8  ;;  %v4953_v24 = vadd.f32 %v4945_v22, %v4929_v0  ;;  %v4969_v33 = vrot.slane %v4961_v27, 3  ;;  %v5009_v9 = vmul.f32 %v9440_v5, %v9714_v55 }
 0xb96   : > { %v5296_v49 = vmul.f32 %v9495_v18, %v9656_v40  ;;  %v5099_v19 = vrot.slane %v5091_v25, 2  ;;  %v5139_v59 = vmul.f32 %v10802_v23, %v9483_v15  ;;  %v5059_v36 = vadd.f32 %v5055_v56, %v5047_v29  ;;  %v10814_v25 = vld [vmem:[#allocation112_spill] sm:$0xff] }
 0xb97   : > { %v10809_v48 = vrot.slane %v9529_v26, 2  ;;  %v4977_v53 = vadd.f32 %v4969_v33, %v4953_v24  ;;  %v4993_v7 = vrot.slane %v4985_v41, 4  ;;  %v5033_v51 = vmul.f32 %v10796_v47, %v9714_v55  ;;  %v10810_v55 = vld [vmem:[#allocation116_spill] sm:$0xff] }
 0xb98   : > { %v5280_v63 = vrot.slane %v5272_v21, 3  ;;  %v5123_v4 = vrot.slane %v5115_v1, 3  ;;  %v5163_v5 = vmul.f32 %v10803_v6, %v9483_v15  ;;  %v5083_v43 = vadd.f32 %v5075_v50, %v5059_v36 }
 0xb99   : > { %v5262_v60 = vadd.f32 %v10809_v48, %v5238_v37  ;;  %v5264_v58 = vadd.f32 %v5256_v30, %v5240_v2  ;;  %v5069_v10 = vmul.f32 %v10798_v28, %v9656_v40  ;;  %v5001_v13 = vadd.f32 %v4993_v7, %v4977_v53  ;;  %v10812_v28 = vld [vmem:[#allocation108_spill] sm:$0xff] }
 0xb9a   : > { %v5017_v35 = vrot.slane %v5009_v9, 5  ;;  %v5147_v39 = vrot.slane %v5139_v59, 4  ;;  %v5187_v26 = vmul.f32 %v10804_v14, %v9483_v15  ;;  %v5107_v20 = vadd.f32 %v5099_v19, %v5083_v43  ;;  %v10819_v19 = vld [vmem:[#allocation119_spill] sm:$0xff] }
 0xb9b   : > { %v5057_v47 = vmul.f32 %v10799_v54, %v9656_v40  ;;  %v10811_v21 = vrot.slane %v10810_v55, 3  ;;  %v5093_v45 = vmul.f32 %v10800_v16, %v9656_v40  ;;  %v5041_v46 = vrot.slane %v5033_v51, 6  ;;  %v10815_v16 = vld [vmem:[#allocation93_spill] sm:$0xff]  ;;  %v9850_v51 = vld [vmem:[#allocation3 + $0x70] sm:$0xff] }
 0xb9c   : > { %v5025_v38 = vadd.f32 %v5017_v35, %v5001_v13  ;;  %v5304_v34 = vrot.slane %v5296_v49, 4  ;;  %v5320_v61 = vmul.f32 %v10812_v28, %v9656_v40  ;;  %v5171_v11 = vrot.slane %v5163_v5, 5  ;;  %v10822_v5 = vld [vmem:[#allocation27_spill] sm:$0xff] }
 0xb9d   : > { %v5286_v42 = vadd.f32 %v10811_v21, %v5262_v60  ;;  %v5131_v57 = vadd.f32 %v5123_v4, %v5107_v20  ;;  %v5288_v8 = vadd.f32 %v5280_v63, %v5264_v58  ;;  %v5077_v15 = vrot.slane %v5069_v10, 1  ;;  %v10820_v60 = vld [vmem:[#allocation62_spill] sm:$0xff] }
 0xb9e   : > { %v5117_v52 = vmul.f32 %v10801_v3, %v9656_v40  ;;  %v5049_v54 = vadd.f32 %v5041_v46, %v5025_v38  ;;  %v5344_v27 = vmul.f32 %v10813_v12, %v9656_v40  ;;  %v5195_v56 = vrot.slane %v5187_v26, 6  ;;  %v10818_v3 = vld [vmem:[#allocation104_spill] sm:$0xff] }
 0xb9f   : > { %v5223_v17 = vmul.f32 %v10815_v16, %v10814_v25  ;;  %v5155_v32 = vadd.f32 %v5147_v39, %v5131_v57  ;;  %v10817_v37 = vrot.slane %v10816_v62, 4  ;;  %v5101_v22 = vrot.slane %v5093_v45, 2 }
 0xba0   : > { %v5141_v41 = vmul.f32 %v10802_v23, %v9656_v40  ;;  %v5061_v30 = vadd.f32 %v5057_v47, %v5049_v54  ;;  %v5328_v50 = vrot.slane %v5320_v61, 5  ;;  %v5211_v1 = vmul.f32 %v10818_v3, %v10814_v25  ;;  %v10823_v47 = vld [vmem:[#allocation113_spill] sm:$0xff] }
 0xba1   : > { %v5310_v0 = vadd.f32 %v10817_v37, %v5286_v42  ;;  %v5247_v29 = vmul.f32 %v10806_v31, %v10814_v25  ;;  %v5179_v2 = vadd.f32 %v5171_v11, %v5155_v32  ;;  %v5312_v24 = vadd.f32 %v5304_v34, %v5288_v8  ;;  %v10826_v11 = vld [vmem:[#allocation115_spill] sm:$0xff]  ;;  %v10828_v37 = vld [vmem:[#allocation117_spill] sm:$0xff] }
 0xba2   : > { %v5125_v33 = vrot.slane %v5117_v52, 3  ;;  %v5165_v9 = vmul.f32 %v10803_v6, %v9656_v40  ;;  %v5085_v49 = vadd.f32 %v5077_v15, %v5061_v30  ;;  %v9844_v59 = vmul.f32 %v10819_v19, %v10814_v25  ;;  %v10829_v30 = vld [vmem:[#allocation114_spill] sm:$0xff] }
 0xba3   : > { %v5231_v23 = vrot.slane %v5223_v17, 1  ;;  %v5271_v36 = vmul.f32 %v9492_v44, %v10814_v25  ;;  %v5203_v48 = vadd.f32 %v5195_v56, %v5179_v2  ;;  %v10821_v53 = vrot.slane %v10820_v60, 5 }
 0xba4   : > { %v5149_v63 = vrot.slane %v5141_v41, 4  ;;  %v5189_v4 = vmul.f32 %v10804_v14, %v9656_v40  ;;  %v5109_v6 = vadd.f32 %v5101_v22, %v5085_v49  ;;  %v5386_v43 = vrot.slane %v10822_v5, 1  ;;  %v10824_v40 = vld [vmem:[#allocation110_spill] sm:$0xff] }
 0xba5   : > { %v5334_v7 = vadd.f32 %v10821_v53, %v5310_v0  ;;  %v5255_v58 = vrot.slane %v5247_v29, 2  ;;  %v5295_v10 = vmul.f32 %v9495_v18, %v10814_v25  ;;  %v5215_v13 = vadd.f32 %v5211_v1, %v5203_v48  ;;  %v10830_v48 = vld [vmem:[#allocation118_spill] sm:$0xff] }
 0xba6   : > { %v5352_v35 = vrot.slane %v5344_v27, 6  ;;  %v5336_v39 = vadd.f32 %v5328_v50, %v5312_v24  ;;  %v5173_v26 = vrot.slane %v5165_v9, 5  ;;  %v5133_v20 = vadd.f32 %v5125_v33, %v5109_v6  ;;  %v9869_v27 = vld [vmem:[#allocation3 + $0x38] sm:$0xff] }
 0xba7   : > { %v5368_v55 = vmul.f32 %v10823_v47, %v9850_v51  ;;  %v5279_v21 = vrot.slane %v5271_v36, 3  ;;  %v5319_v42 = vmul.f32 %v10812_v28, %v10814_v25  ;;  %v5239_v14 = vadd.f32 %v5231_v23, %v5215_v13 }
 0xba8   : > { %v10825_v45 = vrot.slane %v10824_v40, 6  ;;  %v5197_v46 = vrot.slane %v5189_v4, 6  ;;  %v5225_v34 = vmul.f32 %v10815_v16, %v9850_v51  ;;  %v5157_v61 = vadd.f32 %v5149_v63, %v5133_v20  ;;  %v10827_v16 = vld [vmem:[#allocation28_spill] sm:$0xff] }
 0xba9   : > { %v5380_v57 = vmul.f32 %v10826_v11, %v9850_v51  ;;  %v5303_v8 = vrot.slane %v5295_v10, 4  ;;  %v5343_v15 = vmul.f32 %v10813_v12, %v10814_v25  ;;  %v5263_v52 = vadd.f32 %v5255_v58, %v5239_v14  ;;  %v4418_v40 = vld [vmem:[#allocation3 + $0x78] sm:$0xff] }
 0xbaa   : > { %v5358_v38 = vadd.f32 %v10825_v45, %v5334_v7  ;;  %v5360_v54 = vadd.f32 %v5352_v35, %v5336_v39  ;;  %v5213_v56 = vmul.f32 %v10818_v3, %v9850_v51  ;;  %v5249_v17 = vmul.f32 %v10806_v31, %v9850_v51 }
 0xbab   : > { %v5181_v32 = vadd.f32 %v5173_v26, %v5157_v61  ;;  %v5410_v62 = vrot.slane %v10827_v16, 2  ;;  %v5404_v0 = vmul.f32 %v10828_v37, %v9850_v51  ;;  %v5327_v22 = vrot.slane %v5319_v42, 5  ;;  %v10832_v42 = vld [vmem:[#allocation128_spill] sm:$0xff] }
 0xbac   : > { %v5287_v41 = vadd.f32 %v5279_v21, %v5263_v52  ;;  %v5370_v50 = vadd.f32 %v10829_v30, %v5358_v38  ;;  %v5233_v1 = vrot.slane %v5225_v34, 1  ;;  %v5273_v29 = vmul.f32 %v9492_v44, %v9850_v51 }
 0xbad   : > { %v5205_v2 = vadd.f32 %v5197_v46, %v5181_v32  ;;  %v5388_v24 = vrot.slane %v5380_v57, 1  ;;  %v5351_v3 = vrot.slane %v5343_v15, 6  ;;  %v5379_v31 = vmul.f32 %v10826_v11, %v9869_v27 }
 0xbae   : > { %v5311_v33 = vadd.f32 %v5303_v8, %v5287_v41  ;;  %v5372_v9 = vadd.f32 %v5368_v55, %v5360_v54  ;;  %v5257_v49 = vrot.slane %v5249_v17, 2  ;;  %v5297_v23 = vmul.f32 %v9495_v18, %v9850_v51  ;;  %v10831_v55 = vld [vmem:[#allocation124_spill] sm:$0xff]  ;;  %v10833_v17 = vld [vmem:[#allocation29_spill] sm:$0xff] }
 0xbaf   : > { %v5217_v36 = vadd.f32 %v5213_v56, %v5205_v2  ;;  %v5428_v60 = vmul.f32 %v10830_v48, %v9850_v51  ;;  %v5367_v53 = vmul.f32 %v10823_v47, %v9869_v27  ;;  %v5403_v44 = vmul.f32 %v10828_v37, %v9869_v27 }
 0xbb0   : > { %v5335_v7 = vadd.f32 %v5327_v22, %v5311_v33  ;;  %v5394_v63 = vadd.f32 %v5386_v43, %v5370_v50  ;;  %v5281_v4 = vrot.slane %v5273_v29, 3  ;;  %v5321_v6 = vmul.f32 %v10812_v28, %v9850_v51  ;;  %v6250_v22 = vld [vmem:[%s10058_s2 + $0xd9] ss:$0 sm:$0xff] }
 0xbb1   : > { %v5241_v5 = vadd.f32 %v5233_v1, %v5217_v36  ;;  %v5412_v58 = vrot.slane %v5404_v0, 2  ;;  %v5387_v10 = vrot.slane %v5379_v31, 1  ;;  %v5427_v18 = vmul.f32 %v10830_v48, %v9869_v27 }
 0xbb2   : > { %v5359_v13 = vadd.f32 %v5351_v3, %v5335_v7  ;;  %v5396_v35 = vadd.f32 %v5388_v24, %v5372_v9  ;;  %v5305_v39 = vrot.slane %v5297_v23, 4  ;;  %v5345_v26 = vmul.f32 %v10813_v12, %v9850_v51 }
 0xbb3   : > { %v5265_v20 = vadd.f32 %v5257_v49, %v5241_v5  ;;  %v5434_v21 = vrot.slane %v10831_v55, 3  ;;  %v5411_v43 = vrot.slane %v5403_v44, 2  ;;  %v5451_v14 = vmul.f32 %v10832_v42, %v9869_v27 }
 0xbb4   : > { %v5371_v28 = vadd.f32 %v5367_v53, %v5359_v13  ;;  %v5418_v45 = vadd.f32 %v5410_v62, %v5394_v63  ;;  %v5452_v38 = vmul.f32 %v10832_v42, %v9850_v51  ;;  %v5329_v46 = vrot.slane %v5321_v6, 5  ;;  %v5542_v13 = vpop.permute.xlu0 %5541 }
 0xbb5   : > { %v5289_v34 = vadd.f32 %v5281_v4, %v5265_v20  ;;  %v5436_v61 = vrot.slane %v5428_v60, 3  ;;  %v5435_v57 = vrot.slane %v5427_v18, 3  ;;  %v5475_v12 = vmul.f32 %v10819_v19, %v9869_v27 }
 0xbb6   : > { %v5395_v8 = vadd.f32 %v5387_v10, %v5371_v28  ;;  %v5420_v15 = vadd.f32 %v5412_v58, %v5396_v35  ;;  %v5353_v52 = vrot.slane %v5345_v26, 6  ;;  %v5381_v54 = vmul.f32 %v10826_v11, %v4418_v40 }
 0xbb7   : > { %v5313_v56 = vadd.f32 %v5305_v39, %v5289_v34  ;;  %v5458_v32 = vrot.slane %v10833_v17, 4  ;;  %v5476_v16 = vmul.f32 %v10819_v19, %v9850_v51  ;;  %v5459_v62 = vrot.slane %v5451_v14, 4  ;;  %v5544_v39 = vpop.permute.xlu1 %5543  ;;  %v10835_v17 = vld [vmem:[#allocation83_spill] sm:$0xff] }
 0xbb8   : > { %v5419_v0 = vadd.f32 %v5411_v43, %v5395_v8  ;;  %v5442_v41 = vadd.f32 %v5434_v21, %v5418_v45  ;;  %v5369_v30 = vmul.f32 %v10823_v47, %v4418_v40  ;;  %v5405_v50 = vmul.f32 %v10828_v37, %v4418_v40  ;;  %v5546_v45 = vpop.permute.xlu0 %5545  ;;  %v10834_v8 = vld [vmem:[#allocation78_spill] sm:$0xff] }
 0xbb9   : > { %v5337_v1 = vadd.f32 %v5329_v46, %v5313_v56  ;;  %v5460_v29 = vrot.slane %v5452_v38, 4  ;;  %v5483_v11 = vrot.slane %v5475_v12, 5  ;;  %v5499_v2 = vmul.f32 %v6250_v22, %v9869_v27 }
 0xbba   : > { %v5443_v24 = vadd.f32 %v5435_v57, %v5419_v0  ;;  %v5444_v3 = vadd.f32 %v5436_v61, %v5420_v15  ;;  %v5389_v31 = vrot.slane %v5381_v54, 1  ;;  %v5429_v33 = vmul.f32 %v10830_v48, %v4418_v40 }
 0xbbb   : > { %v5361_v9 = vadd.f32 %v5353_v52, %v5337_v1  ;;  %v5482_v49 = vrot.slane %v9844_v59, 5  ;;  %v5498_v23 = vmul.f32 %v6250_v22, %v10814_v25  ;;  %v5466_v60 = vadd.f32 %v5458_v32, %v5442_v41  ;;  %v5548_v38 = vpop.permute.xlu1 %5547  ;;  %v10836_v32 = vld [vmem:[#allocation80_spill] sm:$0xff] }
 0xbbc   : > { %v5467_v36 = vadd.f32 %v5459_v62, %v5443_v24  ;;  %v5413_v47 = vrot.slane %v5405_v50, 2  ;;  %v5453_v37 = vmul.f32 %v10832_v42, %v4418_v40  ;;  %v5484_v44 = vrot.slane %v5476_v16, 5 }
 0xbbd   : > { %v5373_v53 = vadd.f32 %v5369_v30, %v5361_v9  ;;  %v5500_v7 = vmul.f32 %v6250_v22, %v9850_v51  ;;  %v5507_v27 = vrot.slane %v5499_v2, 6  ;;  %v5477_v63 = vmul.f32 %v10819_v19, %v4418_v40 }
 0xbbe   : > { %v5468_v4 = vadd.f32 %v5460_v29, %v5444_v3  ;;  %v5491_v6 = vadd.f32 %v5483_v11, %v5467_v36  ;;  %v5437_v48 = vrot.slane %v5429_v33, 3  ;;  %v5506_v58 = vrot.slane %v5498_v23, 6  ;;  %v10837_v3 = vld [vmem:[#allocation9_spill] sm:$0xff] }
 0xbbf   : > { %v5397_v5 = vadd.f32 %v5389_v31, %v5373_v53  ;;  %v5490_v59 = vadd.f32 %v5482_v49, %v5466_v60  ;;  %v5461_v10 = vrot.slane %v5453_v37, 4  ;;  %v5501_v25 = vmul.f32 %v6250_v22, %v4418_v40 }
 0xbc0   : > { %v5508_v35 = vrot.slane %v5500_v7, 6  ;;  %v5492_v26 = vadd.f32 %v5484_v44, %v5468_v4  ;;  %v5515_v20 = vadd.f32 %v5507_v27, %v5491_v6  ;;  %v5485_v55 = vrot.slane %v5477_v63, 5 }
 0xbc1   : > { %v5421_v18 = vadd.f32 %v5413_v47, %v5397_v5  ;;  %v5514_v51 = vadd.f32 %v5506_v58, %v5490_v59  ;;  %v5509_v43 = vrot.slane %v5501_v25, 6  ;;  %v6635_v16 = vmov 269488144  }
 0xbc2   : > { %v5516_v19 = vadd.f32 %v5508_v35, %v5492_v26  ;;  %v5554_v14 = vadd.f32 %v5544_v39, %v5515_v20  ;;  %v5586_v62 = vunpack.c.l.s4 %v6635_v16  ;;  %v6636_v0 = vmov 842150450   ;;  %v10838_v35 = vld [vmem:[#allocation87_spill] sm:$0xff]  ;;  %v5723_v39 = vld [vmem:[%s10058_s2 + $0xe2] sm:$0xff]  ;;  %v5722_v26 = vld [vmem:[%s10058_s2 + $0xda] sm:$0xff] }
 0xbc3   : > { %v5445_v21 = vadd.f32 %v5437_v48, %v5421_v18  ;;  %v5553_v46 = vadd.f32 %v5542_v13, %v5514_v51  ;;  %v5593_v22 = vunpack.c.l.s4 %v6636_v0  ;;  %v6637_v41 = vmov 1414812756   ;;  %6400 = vmatpush3.msra.mxu0 %v5723_v39 }
 0xbc4   : > { %v5555_v61 = vadd.f32 %v5546_v45, %v5516_v19  ;;  %v5600_v30 = vunpack.c.l.s4 %v6637_v41  ;;  %v6638_v50 = vmov 1987475062   ;;  %v5587_v29 = vunpack.c.0.s8 %v5586_v62  ;;  %v5693_v19 = vpop.permute.xlu1 %5692 }
 0xbc5   : > { %v5469_v42 = vadd.f32 %v5461_v10, %v5445_v21  ;;  %v5561_v40 = vcombine.low %v5553_v46, %v5554_v14  ;;  %v5607_v1 = vunpack.c.l.s4 %v6638_v50  ;;  %v5594_v11 = vunpack.c.0.s8 %v5593_v22  ;;  %v10840_v21 = vld [vmem:[#allocation13_spill] sm:$0xff] }
 0xbc6   : > { %v5601_v2 = vunpack.c.0.s8 %v5600_v30  ;;  %v5590_v31 = vsub.s32 %v5587_v29, %v10837_v3  ;;  %v10839_v20 = vmov 0.0  }
 0xbc7   : > { %v5493_v28 = vadd.f32 %v5485_v55, %v5469_v42  ;;  %v5569_v15 = vrot.slane %v5561_v40, %v10834_v8  ;;  %v5608_v24 = vunpack.c.0.s8 %v5607_v1  ;;  %v5597_v33 = vsub.s32 %v5594_v11, %v10837_v3  ;;  %6401 = vmatprep.subr.mxu0 %v10839_v20  ;;  %v5724_v55 = vld [vmem:[%s10057_s1 + $0x1] sm:$0x3] }
 0xbc8   : > { %v5604_v9 = vsub.s32 %v5601_v2, %v10837_v3  ;;  %6402 = vmatpush3.msra.mxu0 %v5722_v26  ;;  %v5729_v51 = vrot.slane %v5724_v55, %v10840_v21 }
 0xbc9   : > { %v5517_v34 = vadd.f32 %v5509_v43, %v5493_v28  ;;  %v5611_v49 = vsub.s32 %v5608_v24, %v10837_v3  ;;  %v10841_v43 = vld [vmem:[#allocation12_spill] sm:$0xff]  ;;  %6411 = vmatprep.subr.mxu0 %v10839_v20 }
 0xbca   : > { %v5733_v42 = vrot.slane %v5724_v55, %v10841_v43 }
 0xbcb   : > { %v5556_v57 = vadd.f32 %v5548_v38, %v5517_v34 }
 0xbcd   : > { %v5562_v12 = vcombine.low %v5555_v61, %v5556_v57 }
 0xbcf   : > { %v5576_v52 = vrot.slane %v5562_v12, %v10834_v8 }
 0xbd1   : > { %v5577_v54 = vcombine.low %v5569_v15, %v5576_v52 }
 0xbd3   : > { %v5579_v56 = vsel %vm4344_vm7, %v5577_v54, 0.0 }
 0xbd4   : > { %5580 = vadd.xlane.f32.xlu0 %v5579_v56 }
 0xbea   : > { %5690 = vrot.lane.b32.xlu0 %v10835_v17, %s6633_s29 }
 0xbee   : > { %5694 = vrot.lane.b32.xlu0 %v10836_v32, %s6633_s29  ;;  %s162_s29 = sand.u32 1, %s6610_s13  }
 0xbef   : > { %s6212_s20 = sshll.u32 %s162_s29, 3 }
 0xbf0   : > { %s164_s25 = scalar_lea.vmem [#allocation4], %s6212_s20 }
 0xbf1   : > { %s6149_s28 = sshll.u32 %s164_s25, 4  ;;  %s6150_s28 = int_to_ptr.vmem [resolvable:$true] %s6149_s28 }
 0xbf2   : > { %5706 = vrot.lane.b32.xlu0 %v10835_v17, %s6634_s26  ;;  %s6558_s7 = scalar_lea.vmem %s6150_s28, 128 }
 0xbf3   : > { %p6559_p11 = scmp.ne.s32.totalorder %s6150_s28, %s6558_s7 }
 0xbf5   : > { %p6560_p12 = pnand %p6559_p11, %p6700_p5 }
 0xbf6   : > { %5710 = vrot.lane.b32.xlu0 %v10836_v32, %s6634_s26 }
 0xbf7   : > { %p6561_p13 = pneg %p6560_p12 }
 0xbfa   : > { %5755 = vrot.lane.b32.xlu0 %v5729_v51, %s6639_s8  ;;  %v6018_v51 = vld [vmem:[%s10057_s1 + $0x2] sm:$0x3] }
 0xc5d   : > { %v5581_v23 = vpop.xlane.xlu0 %5580 }
 0xc5e   : > { %v5583_v36 = vmul.f32 0.0625, %v5581_v23 }
 0xc60   : > { %v5591_v60 = vrot.slane %v5583_v36, %v5590_v31  ;;  %v5598_v47 = vrot.slane %v5583_v36, %v5597_v33  ;;  %v5605_v37 = vrot.slane %v5583_v36, %v5604_v9  ;;  %v5612_v53 = vrot.slane %v5583_v36, %v5611_v49 }
 0xc61   : > { %v5691_v34 = vpop.permute.xlu0 %5690 }
 0xc62   : > { %v5617_v44 = vsub.f32 %v5553_v46, %v5591_v60  ;;  %v5618_v7 = vsub.f32 %v5554_v14, %v5598_v47  ;;  %v5619_v27 = vsub.f32 %v5555_v61, %v5605_v37  ;;  %v5620_v63 = vsub.f32 %v5556_v57, %v5612_v53  ;;  %v5697_v14 = vpop.permute.xlu1 %5696 }
 0xc64   : > { %v5621_v4 = vmul.f32 %v5617_v44, %v5617_v44  ;;  %v5622_v6 = vmul.f32 %v5618_v7, %v5618_v7  ;;  %v5623_v48 = vmul.f32 %v5619_v27, %v5619_v27  ;;  %v5624_v5 = vmul.f32 %v5620_v63, %v5620_v63 }
 0xc65   : > { %v5695_v61 = vpop.permute.xlu0 %5694 }
 0xc66   : > { %v5629_v58 = vcombine.low %v5621_v4, %v5622_v6  ;;  %v5630_v59 = vcombine.low %v5623_v48, %v5624_v5  ;;  %v5709_v28 = vpop.permute.xlu1 %5708 }
 0xc68   : > { %v5637_v10 = vrot.slane %v5629_v58, %v10834_v8  ;;  %v5644_v25 = vrot.slane %v5630_v59, %v10834_v8 }
 0xc69   : > { %v5707_v40 = vpop.permute.xlu0 %5706 }
 0xc6a   : > { %v5645_v18 = vcombine.low %v5637_v10, %v5644_v25 }
 0xc6c   : > { %v5647_v13 = vsel %vm4344_vm7, %v5645_v18, 0.0 }
 0xc6d   : > { %5648 = vadd.xlane.f32.xlu1 %v5647_v13  ;;  %v5711_v0 = vpop.permute.xlu0 %5710 }
 0xc71   : > { %v5756_v36 = vpop.permute.xlu0 %5755 }
 0xc7e   : > { %5712 = vrot.lane.b32.xlu1 %v10838_v35, %s6634_s26 }
 0xc82   : > { %5757 = vrot.lane.b32.xlu1 %v5733_v42, %s6639_s8  ;;  %v6023_v42 = vrot.slane %v6018_v51, %v10840_v21  ;;  %s6562_s8 = sshll.u32 %s6641_s16, 4  ;;  %s6563_s8 = int_to_ptr.vmem [resolvable:$false] %s6562_s8 }
 0xc83   : > { %s6564_s9 = scalar_lea.vmem %s6563_s8, 256  ;;  %p6565_p0 = scmp.lt.s32.totalorder %s6150_s28, %s6563_s8 }
 0xc84   : > { %p6566_p1 = scmp.lt.s32.totalorder %s6564_s9, %s6558_s7 }
 0xc86   : > { %6028 = vrot.lane.b32.xlu1 %v6023_v42, %s6640_s27  ;;  %p6567_p2 = por %p6566_p1, %p6565_p0 }
 0xc88   : > { %p6568_p3 = pnand %p6567_p2, %p6561_p13 }
 0xcf6   : > { %v5649_v45 = vpop.xlane.xlu1 %5648 }
 0xcf7   : > { %v5650_v38 = vmul.f32 0.0625, %v5649_v45 }
 0xcf9   : > { %v5651_v46 = vadd.f32 1e-06, %v5650_v38 }
 0xcfa   : > { %v5713_v62 = vpop.permute.xlu1 %5712 }
 0xcfb   : > { %6531 = vrsqrt.f32 %v5651_v46  ;;  %v10845_v46 = vld [vmem:[#allocation75_spill] sm:$0xff] }
 0xd08   : > { %v6532_v57 = vpop.eup %6531 }
 0xd09   : > { %v5660_v12 = vrot.slane %v6532_v57, %v5590_v31  ;;  %v5674_v15 = vrot.slane %v6532_v57, %v5604_v9  ;;  %v5667_v52 = vrot.slane %v6532_v57, %v5597_v33  ;;  %v5681_v54 = vrot.slane %v6532_v57, %v5611_v49  ;;  %v5758_v49 = vpop.permute.xlu1 %5757  ;;  %v6047_v57 = vld [vmem:[%s10058_s2 + $0x11a] sm:$0xff] }
 0xd0a   : > { %v5760_v60 = vsel %vm5759_vm9, %v5756_v36, %v5758_v49 }
 0xd0b   : > { %v5686_v56 = vmul.f32 %v5660_v12, %v5617_v44  ;;  %v5688_v17 = vmul.f32 %v5674_v15, %v5619_v27  ;;  %v5687_v32 = vmul.f32 %v5667_v52, %v5618_v7  ;;  %v5689_v16 = vmul.f32 %v5681_v54, %v5620_v63  ;;  %v10842_v27 = vld [vmem:[#allocation72_spill] sm:$0xff]  ;;  %v6045_v15 = vld [vmem:[%s10058_s2 + $0x10a] sm:$0xff] }
 0xd0c   : > { %v4368_v7 = vmul.u32 4, %v10837_v3  ;;  %v4370_v63 = vmul.u32 4, %v10842_v27 }
 0xd0d   : > { %v5702_v22 = vmul.f32 %v5691_v34, %v5686_v56  ;;  %v5704_v41 = vmul.f32 %v5695_v61, %v5688_v17  ;;  %v5703_v30 = vmul.f32 %v5693_v19, %v5687_v32  ;;  %v5705_v50 = vmul.f32 %v5697_v14, %v5689_v16  ;;  %v6044_v56 = vld [vmem:[%s10058_s2 + $0x102] sm:$0xff]  ;;  %v6043_v17 = vld [vmem:[%s10058_s2 + $0xfa] sm:$0xff]  ;;  %v6042_v32 = vld [vmem:[%s10058_s2 + $0xf2] sm:$0xff] }
 0xd0e   : > { %v6027_v19 = vrot.slane %v6018_v51, %v10841_v43  ;;  %v4363_v34 = vmul.u32 4, %v10845_v46  ;;  %v6048_v43 = vld [vmem:[%s10058_s2 + $0x122] sm:$0xff]  ;;  %v6041_v16 = vld [vmem:[%s10058_s2 + $0xea] sm:$0xff] }
 0xd0f   : > { %v5719_v1 = vadd.f32 %v5709_v28, %v5703_v30  ;;  %v5718_v29 = vadd.f32 %v5707_v40, %v5702_v22  ;;  %v5721_v11 = vadd.f32 %v5713_v62, %v5705_v50  ;;  %v5720_v2 = vadd.f32 %v5711_v0, %v5704_v41  ;;  %v6029_v62 = vpop.permute.xlu1 %6028  ;;  %v6256_v22 = vld [vmem:[%s10057_s1 + $0x2] ss:$0 sm:$0xff] }
 0xd10   : > { %6030 = vrot.lane.b32.xlu1 %v6027_v19, %s6640_s27  ;;  %vm4364_vm2 = vcmp.lt.s32.totalorder %v10837_v3, %v4363_v34 }
 0xd11   : > { %v5738_v24 = vcombine.low %v5718_v29, %v5719_v1  ;;  %v5739_v23 = vcombine.low %v5720_v2, %v5721_v11 }
 0xd13   : > { %v5746_v31 = vrot.slane %v5738_v24, %v10834_v8  ;;  %v5753_v33 = vrot.slane %v5739_v23, %v10834_v8  ;;  %v10843_v8 = vld [vmem:[#allocation69_spill] sm:$0xff] }
 0xd14   : > { %vm4369_vm11 = vcmp.ge.s32.totalorder %v10843_v8, %v4368_v7  ;;  %vm4371_vm12 = vcmp.lt.s32.totalorder %v10843_v8, %v4370_v63  ;;  %v4361_v38 = vmul.u32 4, %v10843_v8 }
 0xd15   : > { %v5754_v9 = vcombine.low %v5746_v31, %v5753_v33  ;;  %vm4372_vm13 = vmand %vm4369_vm11, %vm4371_vm12 }
 0xd16   : > { %v6249_v59 = vsel %vm4372_vm13, 1.0, %v10839_v20 }
 0xd17   : > { %6404 = vmatmul.mubr.msk.f32.vlgmr.msra.gmra.mxu0 %vm4344_vm7, %v5754_v9  ;;  %v10846_v9 = vld [vmem:[#allocation111_spill] sm:$0xff] }
 0xd18   : > { %6413 = vmatprep.mubr.msk.f32.mxu0 %vm6629_vm6, %v10839_v20 }
 0xd82   : > { %v6031_v0 = vpop.permute.xlu1 %6030 }
 0xdd7   : > { %v5830_v47 = vpop.f32.mrf.mxu0 }
 0xdd8   : > { %v5831_v37 = vadd.f32 %v5830_v47, %v5760_v60 }
 0xdd9   : > { %v6405_v53 = vpop.f32.mrf.mxu0 }
 0xdda   : > { %v5835_v44 = vmul.f32 0.70710677, %v5831_v37  ;;  %v5834_v6 = vmul.f32 0.5, %v5831_v37 }
 0xddc   : > { %6533 = verf.f32 %v5835_v44 }
 0xde9   : > { %v6534_v4 = vpop.eup %6533 }
 0xdea   : > { %v5837_v48 = vadd.f32 1.0, %v6534_v4 }
 0xdec   : > { %v5838_v5 = vmul.f32 %v5837_v48, %v5834_v6 }
 0xdee   : > { %v5839_v58 = vmul.f32 %v5838_v5, %v5838_v5 }
 0xdf0   : > { %6407 = vmatpush3.msra.mxu1 %v5839_v58 }
 0xdf1   : > { %6409 = vmatmul.mubr.msk.f32.vlgmr.msra.gmra.mxu1 %vm10844_vm1, %v6249_v59  ;;  %6416 = vmatprep.subr.mxu1 %v10839_v20 }
 0xdf2   : > { %6432 = vmatprep.mubr.msk.f32.mxu1 %vm6629_vm6, %v10839_v20  ;;  %vm4362_vm6 = vcmp.ge.s32.totalorder %v10837_v3, %v4361_v38  ;;  %6417 = vmatpush3.msra.mxu1 %v6048_v43  ;;  %v6046_v3 = vld [vmem:[%s10058_s2 + $0x112] sm:$0xff] }
 0xdf3   : > { %vm4365_vm3 = vmand %vm4362_vm6, %vm4364_vm2  ;;  %6418 = vmatprep.subr.mxu1 %v10839_v20 }
 0xdf4   : > { %v6248_v40 = vsel %vm4365_vm3, 1.0, %v10839_v20  ;;  %6419 = vmatpush3.msra.mxu1 %v6047_v57 }
 0xdf5   : > { %6420 = vmatprep.subr.mxu1 %v10839_v20 }
 0xdf6   : > { %6421 = vmatpush3.msra.mxu1 %v6046_v3 }
 0xdf7   : > { %6422 = vmatprep.subr.mxu1 %v10839_v20 }
 0xdf8   : > { %6423 = vmatpush3.msra.mxu1 %v6045_v15 }
 0xdf9   : > { %6424 = vmatprep.subr.mxu1 %v10839_v20 }
 0xdfa   : > { %6425 = vmatpush3.msra.mxu1 %v6044_v56 }
 0xdfb   : > { %6426 = vmatprep.subr.mxu1 %v10839_v20 }
 0xdfc   : > { %6427 = vmatpush3.msra.mxu1 %v6043_v17 }
 0xdfd   : > { %6428 = vmatprep.subr.mxu1 %v10839_v20 }
 0xdfe   : > { %6429 = vmatpush3.msra.mxu1 %v6042_v32 }
 0xdff   : > { %6430 = vmatprep.subr.mxu1 %v10839_v20  ;;  %v6257_v20 = vld [vmem:[%s10057_s1 + $0x3] ss:$0 sm:$0xff] }
 0xe00   : > { %6431 = vmatpush3.msra.mxu1 %v6041_v16 }
 0xeb1   : > { %v5909_v10 = vpop.f32.mrf.mxu1 }
 0xeb2   : > { %6535 = vrsqrt.f32 %v5909_v10  ;;  %vm5915_vm14 = vcmp.eq.f32.partialorder %v5909_v10, inf  ;;  %v5918_v35 = vand.u32 2147483648, %v5909_v10  ;;  %vm5917_vm10 = vcmp.eq.f32.partialorder %v5909_v10, 0.0 }
 0xeb3   : > { %v6410_v25 = vpop.f32.mrf.mxu1 }
 0xebf   : > { %v6536_v18 = vpop.eup %6535 }
 0xec0   : > { %v5914_v13 = vmul.f32 %v6536_v18, %v5909_v10 }
 0xec2   : > { %v5916_v39 = vsel %vm5915_vm14, %v5909_v10, %v5914_v13 }
 0xec3   : > { %v5919_v26 = vsel %vm5917_vm10, %v5918_v35, %v5916_v39 }
 0xec4   : > { %v5921_v55 = vsel %vm5920_vm0, %v5919_v26, 0.0 }
 0xec5   : > { %5922 = vadd.xlane.f32.xlu0 %v5921_v55 }
 0xf4e   : > { %v5923_v14 = vpop.xlane.xlu0 %5922 }
 0xf4f   : > { %v5925_v28 = vmul.f32 0.015625, %v5923_v14 }
 0xf51   : > { %v5926_v45 = vadd.f32 1e-06, %v5925_v28 }
 0xf53   : > { %6537 = vrcp.f32 %v5926_v45 }
 0xf60   : > { %v6538_v61 = vpop.eup %6537 }
 0xf61   : > { %v5928_v21 = vmul.f32 %v6538_v61, %v5919_v26 }
 0xf63   : > { %6412 = vmatpush3.msk.msra.mxu0 %vm811_vm4, %v5928_v21  ;;  %vm6032_vm4 = vcmask 523264  }
 0xf64   : > { %6414 = vmatmul.mubr.msk.f32.vlgmr.msra.gmra.mxu0 %vm3444_vm15, %v6248_v40  ;;  %v6033_v50 = vsel %vm6032_vm4, %v6029_v62, %v6031_v0 }
0x1024   : > { %v6001_v12 = vpop.f32.mrf.mxu0 }
0x1025   : > { %v6006_v52 = vmul.f32 %v6001_v12, %v5838_v5 }
0x1026   : > { %v6415_v54 = vpop.f32.mrf.mxu0 }
0x1027   : > { %6014 = vrot.lane.b32.xlu1 %v6006_v52, %s6634_s26 }
0x102b   : > { %6037 = vrot.lane.b32.xlu1 %v5838_v5, %s6634_s26 }
0x1099   : > { %v6015_v41 = vpop.permute.xlu1 %6014 }
0x109a   : > { %v6017_v30 = vmul.f32 %v6256_v22, %v6015_v41 }
0x109c   : > { %v6035_v1 = vadd.f32 %v6033_v50, %v6017_v30 }
0x109d   : > { %v6038_v29 = vpop.permute.xlu1 %6037 }
0x109e   : > { %v6040_v11 = vadd.f32 %v6038_v29, %v6035_v1 }
0x10a0   : > { %6056 = vrot.lane.b32.xlu1 %v6040_v11, %s6625_s4 }
0x10a4   : > { %6058 = vrot.lane.b32.xlu1 %v6257_v20, %s6625_s4  ;;  %s6136_s4 = scalar_lea.sflag [#allocation5], %s162_s29 }
0x1112   : > { %v6057_v2 = vpop.permute.xlu1 %6056 }
0x1113   : > { %6433 = vmatmul.mubr.msk.f32.vlgmr.msra.gmra.mxu1 %vm6032_vm4, %v6057_v2 }
0x1116   : > { %v6059_v24 = vpop.permute.xlu1 %6058 }
0x11d3   : > { %v6129_v23 = vpop.f32.mrf.mxu1 }
0x11d4   : > { %v6130_v31 = vadd.f32 %v6129_v23, %v6059_v24 }
0x11d5   : > { %v6434_v33 = vpop.f32.mrf.mxu1 }
0x11d6   : > { %v6133_v49 = vadd.f32 %v6130_v31, %v10846_v9 }
0x11d8   : > { %6134 = vst.msk [vmem:[%s164_s25] sm:$0xff] %vm4344_vm7, %v6133_v49 }
0x11d9   : > { %6571 = shalt.err (!%p6568_p3)
}
0x11da   : > { %s6572_s10 = scalar_lea.hbm %s6147_s6, 128  ;;  %s6576_s17 = scalar_lea.hbm %s10059_s3, 256 }
0x11db   : > { %p6573_p4 = scmp.ne.s32.totalorder %s6147_s6, %s6572_s10  ;;  %p6577_p9 = scmp.lt.s32.totalorder %s6147_s6, %s10059_s3 }
0x11dc   : > { %p6578_p10 = scmp.lt.s32.totalorder %s6576_s17, %s6572_s10 }
0x11dd   : > { %p6574_p7 = pnand %p6573_p4, %p6700_p5 }
0x11de   : > { %p6579_p11 = por %p6578_p10, %p6577_p9 }
0x11df   : > { %p6575_p8 = pneg %p6574_p7 }
0x11e1   : > { %p6580_p12 = pnand %p6579_p11, %p6575_p8 }
0x11e3   : > { %6583 = shalt.err (!%p6580_p12)
}
0x11e4   : > { %6435 = dma.vmem_to_hbm [thread:$0]  (%p6700_p5), %s6150_s28, 128, %s6147_s6, %s6136_s4  }
0x11e5 PF: > { %p6441_p13 = scmp.ge.s32.totalorder %s6618_s15, 2  ;;  %s6161_s29 = sand.u32 1, %s6606_s12  }
0x11e6   : > { %s6162_s20 = scalar_lea.sflag [#allocation5], %s6161_s29 }
0x11e7   : > { %p6438_p0 = pnand %p6441_p13, %p6704_p6 }
0x11e9   : > { %p6439_p1 = pneg %p6438_p0 }
0x11eb   : > { %6601 = dma.done.wait (%p6439_p1), %s6162_s20, 128  }
0x11ec   : > { %6603 = vsyncadd (%p6439_p1), %s6162_s20, 4294967168  ;;  %p13_p2 = scmp.ge.s32.totalorder %s6687_s18, 4   ;;  %s10847_s12 = smov %s6610_s13 }
0x11ed   : > { %s10848_s13 = smov %s6614_s14  ;;  %s10849_s14 = smov %s6698_s21 }
0x11ee   : > { %s10850_s15 = smov %s6687_s18  ;;  %15 = sbr.rel (!%p13_p2) target bundleno = 3 (0x3), region = 69 }
0x11f3   :  { %6167 = vsyncpa [#allocation5], 1 }
0x11f4   :  { %6169 = vsyncpa [#allocation5 + $0x1], 1 }

</bundles_post_ra>
